<compile_context>
chip_gen: v7x
topology: tpu7x:2x2x1
jax: 0.10.0
libtpu: 0.0.40
codegen_flags: <defaults>
</compile_context>

<pallas_src>
import math
import functools

import jax
import jax.numpy as jnp
from jax.experimental import pallas as pl
from jax.experimental.pallas import tpu as pltpu  # noqa: F401  (TPU backend assumed)

# ----------------------------- config (small, consistent with the module) ---
VOCAB = 64
D_MODEL = 32
N_LAYERS = 2
N_HEADS = 4
D_FF = 64
MAX_SEQ_LEN = 64
EPS = 1e-5  # nn.LayerNorm default

# kernel argument order for the packed parameters (after src, tgt)
_PARAM_ORDER = (
    "e_ln1_g", "e_ln1_b", "e_wq", "e_wk", "e_wv", "e_wo",
    "e_ln2_g", "e_ln2_b", "e_w1", "e_w2",
    "enc_norm_g", "enc_norm_b",
    "d_ln1_g", "d_ln1_b", "d_sa_wq", "d_sa_wk", "d_sa_wv", "d_sa_wo",
    "d_ln2_g", "d_ln2_b", "d_ca_wq", "d_ca_wk", "d_ca_wv", "d_ca_wo",
    "d_ln3_g", "d_ln3_b", "d_w1", "d_w2",
    "dec_norm_g", "dec_norm_b",
    "emb",
)


# ----------------------------- fused kernel -----------------------------------
def _transformer_kernel(
    src_ref, tgt_ref,
    e_ln1_g, e_ln1_b, e_wq, e_wk, e_wv, e_wo,
    e_ln2_g, e_ln2_b, e_w1, e_w2,
    enc_norm_g, enc_norm_b,
    d_ln1_g, d_ln1_b, d_sa_wq, d_sa_wk, d_sa_wv, d_sa_wo,
    d_ln2_g, d_ln2_b, d_ca_wq, d_ca_wk, d_ca_wv, d_ca_wo,
    d_ln3_g, d_ln3_b, d_w1, d_w2,
    dec_norm_g, dec_norm_b,
    emb_ref,
    o_ref,
    *, n_layers, n_heads, batch, s_src, s_tgt,
):
    f32 = jnp.float32
    H = n_heads

    def layernorm(x, g, b):
        mean = jnp.mean(x, axis=-1, keepdims=True)
        var = jnp.mean(jnp.square(x - mean), axis=-1, keepdims=True)
        return (x - mean) * jax.lax.rsqrt(var + EPS) * g + b

    def linear(x, w):
        # y = x @ W^T with PyTorch (out, in) weight layout, f32 MXU accumulation
        return jax.lax.dot_general(x, w, (((1,), (1,)), ((), ())),
                                   preferred_element_type=f32)

    def attention(xq, xkv, sq, sk, wq_h, wk_h, wv_h, wo_h, bias):
        # xq: (batch*sq, D) normed queries; xkv: (batch*sk, D) normed key/value source.
        # wq_h/wk_h/wv_h: (H, dh, D)  (1/sqrt(dh) folded into wq_h);  wo_h: (H, D, dh).
        d = xq.shape[-1]
        outs = []
        for b in range(batch):                           # static unroll over (tiny) batch
            nq = xq[b * sq:(b + 1) * sq]                 # (sq, D) sublane-aligned static slice
            nk = xkv[b * sk:(b + 1) * sk]                # (sk, D)
            qb = jnp.broadcast_to(nq[None], (H, sq, d))
            kb = jnp.broadcast_to(nk[None], (H, sk, d))
            q = jnp.einsum('hsd,hed->hse', qb, wq_h, preferred_element_type=f32)  # (H,sq,dh)
            k = jnp.einsum('hsd,hed->hse', kb, wk_h, preferred_element_type=f32)  # (H,sk,dh)
            v = jnp.einsum('hsd,hed->hse', kb, wv_h, preferred_element_type=f32)  # (H,sk,dh)
            s = jnp.einsum('hqe,hke->hqk', q, k, preferred_element_type=f32)      # (H,sq,sk)
            if bias is not None:
                s = s + bias[None]
            m = jnp.max(s, axis=-1, keepdims=True)
            p = jnp.exp(s - m)
            p = p / jnp.sum(p, axis=-1, keepdims=True)   # exact softmax (reference parity)
            ctx = jnp.einsum('hqk,hke->hqe', p, v, preferred_element_type=f32)    # (H,sq,dh)
            ob = jnp.einsum('hqe,hde->hqd', ctx, wo_h, preferred_element_type=f32)  # (H,sq,D)
            outs.append(jnp.sum(ob, axis=0))             # head merge = sum of per-head out-proj
        return jnp.concatenate(outs, axis=0)             # (batch*sq, D)

    # ------------------------------- encoder --------------------------------
    x = src_ref[...]                                     # (B*Ssrc, D)
    for l in range(n_layers):                            # static unroll over layers
        n = layernorm(x, e_ln1_g[l], e_ln1_b[l])
        x = x + attention(n, n, s_src, s_src,
                          e_wq[pl.ds(l * H, H)], e_wk[pl.ds(l * H, H)],
                          e_wv[pl.ds(l * H, H)], e_wo[pl.ds(l * H, H)], None)
        n = layernorm(x, e_ln2_g[l], e_ln2_b[l])
        h = linear(n, e_w1[l])
        h = h * jax.nn.sigmoid(h)                        # SiLU (EUP path)
        x = x + linear(h, e_w2[l])
    memory = layernorm(x, enc_norm_g[...], enc_norm_b[...])

    # causal mask built in-register (no HBM table / extra DMA); large-finite (NaN-safe)
    rows = jax.lax.broadcasted_iota(jnp.int32, (s_tgt, s_tgt), 0)
    cols = jax.lax.broadcasted_iota(jnp.int32, (s_tgt, s_tgt), 1)
    causal = jnp.where(cols > rows, f32(-1e30), f32(0.0))

    # ------------------------------- decoder --------------------------------
    y = tgt_ref[...]                                     # (B*Stgt, D)
    for l in range(n_layers):
        n = layernorm(y, d_ln1_g[l], d_ln1_b[l])
        y = y + attention(n, n, s_tgt, s_tgt,
                          d_sa_wq[pl.ds(l * H, H)], d_sa_wk[pl.ds(l * H, H)],
                          d_sa_wv[pl.ds(l * H, H)], d_sa_wo[pl.ds(l * H, H)], causal)
        n = layernorm(y, d_ln2_g[l], d_ln2_b[l])
        y = y + attention(n, memory, s_tgt, s_src,
                          d_ca_wq[pl.ds(l * H, H)], d_ca_wk[pl.ds(l * H, H)],
                          d_ca_wv[pl.ds(l * H, H)], d_ca_wo[pl.ds(l * H, H)], None)
        n = layernorm(y, d_ln3_g[l], d_ln3_b[l])
        h = linear(n, d_w1[l])
        h = h * jax.nn.sigmoid(h)
        y = y + linear(h, d_w2[l])

    # --------------------- final decoder norm + tied output head ------------
    n = layernorm(y, dec_norm_g[...], dec_norm_b[...])
    o_ref[...] = linear(n, emb_ref[...])                 # logits (B*Stgt, V)


# ----------------------------- forward wrapper ---------------------------------
def forward(packed, src_ids, tgt_ids):
    b, s_src = src_ids.shape
    s_tgt = tgt_ids.shape[1]
    emb = packed["emb"]
    pe = packed["pe"]

    # embedding gather + positional-encoding add = plain-JAX glue (XLA gather)
    src_x = (jnp.take(emb, src_ids, axis=0) + pe[None, :s_src, :]).reshape(b * s_src, D_MODEL)
    tgt_x = (jnp.take(emb, tgt_ids, axis=0) + pe[None, :s_tgt, :]).reshape(b * s_tgt, D_MODEL)

    kernel = functools.partial(_transformer_kernel, n_layers=N_LAYERS, n_heads=N_HEADS,
                               batch=b, s_src=s_src, s_tgt=s_tgt)
    args = [src_x, tgt_x] + [packed[k] for k in _PARAM_ORDER]
    # single grid-less call: every array is placed in VMEM in full (total << 1 MiB)
    logits = pl.pallas_call(
        kernel,
        out_shape=jax.ShapeDtypeStruct((b * s_tgt, VOCAB), jnp.float32),
    )(*args)
    return logits.reshape(b, s_tgt, VOCAB)


# ----------------------------- deterministic parameter init -------------------
def positional_encoding_table(max_len, d_model):
    position = jnp.arange(max_len, dtype=jnp.float32)[:, None]
    div_term = jnp.exp(jnp.arange(0, d_model, 2, dtype=jnp.float32)
                       * (-math.log(10000.0) / d_model))
    pe = jnp.zeros((max_len, d_model), jnp.float32)
    pe = pe.at[:, 0::2].set(jnp.sin(position * div_term))
    pe = pe.at[:, 1::2].set(jnp.cos(position * div_term))
    return pe


def _ln_param():
    return jnp.ones((D_MODEL,), jnp.float32), jnp.zeros((D_MODEL,), jnp.float32)


def init_params(key):
    """Logical parameters in the PyTorch module's layout."""
    keys = jax.random.split(key, 1 + 2 * N_LAYERS)
    params = {"embedding": jax.random.normal(keys[0], (VOCAB, D_MODEL), jnp.float32) * 0.02}

    def attn_weights(k):
        k_in, k_out = jax.random.split(k)
        in_proj = jax.random.normal(k_in, (3 * D_MODEL, D_MODEL), jnp.float32) * 0.02
        out_proj = jax.random.normal(k_out, (D_MODEL, D_MODEL), jnp.float32) * 0.02
        return in_proj, out_proj

    def ff_weights(k):
        k1, k2 = jax.random.split(k)
        return (jax.random.normal(k1, (D_FF, D_MODEL), jnp.float32) * 0.02,
                jax.random.normal(k2, (D_MODEL, D_FF), jnp.float32) * 0.02)

    enc_layers = []
    for i in range(N_LAYERS):
        ka, kf = jax.random.split(keys[1 + i])
        sa_in, sa_out = attn_weights(ka)
        w1, w2 = ff_weights(kf)
        g1, b1 = _ln_param()
        g2, b2 = _ln_param()
        enc_layers.append(dict(sa_in=sa_in, sa_out=sa_out, ff_w1=w1, ff_w2=w2,
                               ln1_g=g1, ln1_b=b1, ln2_g=g2, ln2_b=b2))
    params["encoder_layers"] = enc_layers

    dec_layers = []
    for i in range(N_LAYERS):
        ka, kc, kf = jax.random.split(keys[1 + N_LAYERS + i], 3)
        sa_in, sa_out = attn_weights(ka)
        ca_in, ca_out = attn_weights(kc)
        w1, w2 = ff_weights(kf)
        g1, b1 = _ln_param()
        g2, b2 = _ln_param()
        g3, b3 = _ln_param()
        dec_layers.append(dict(sa_in=sa_in, sa_out=sa_out, ca_in=ca_in, ca_out=ca_out,
                               ff_w1=w1, ff_w2=w2,
                               ln1_g=g1, ln1_b=b1, ln2_g=g2, ln2_b=b2, ln3_g=g3, ln3_b=b3))
    params["decoder_layers"] = dec_layers

    params["enc_norm_g"], params["enc_norm_b"] = _ln_param()
    params["dec_norm_g"], params["dec_norm_b"] = _ln_param()
    params["pe"] = positional_encoding_table(MAX_SEQ_LEN, D_MODEL)
    return params


def pack_params(params):
    """One-time packing: stack layers, pre-split heads, fold 1/sqrt(dh) into Q weights."""
    dh = D_MODEL // N_HEADS
    scale = 1.0 / math.sqrt(dh)

    def qkv_heads(in_proj):        # (3D, D) -> three (H, dh, D), scale folded into Q
        wq, wk, wv = in_proj[:D_MODEL], in_proj[D_MODEL:2 * D_MODEL], in_proj[2 * D_MODEL:]
        to_h = lambda m: m.reshape(N_HEADS, dh, D_MODEL)
        return to_h(wq) * scale, to_h(wk), to_h(wv)

    def out_heads(out_proj):       # (D, D) -> (H, D, dh): per-head slice of the input dim
        return out_proj.reshape(D_MODEL, N_HEADS, dh).transpose(1, 0, 2)

    cat = lambda pieces: jnp.concatenate(list(pieces), axis=0)   # -> (L*H, ...)

    def stack_ln(layers, name):
        return jnp.stack([lp[name] for lp in layers]).reshape(N_LAYERS, 1, D_MODEL)

    enc = params["encoder_layers"]
    dec = params["decoder_layers"]

    e_q, e_k, e_v = zip(*[qkv_heads(lp["sa_in"]) for lp in enc])
    d_sq, d_sk, d_sv = zip(*[qkv_heads(lp["sa_in"]) for lp in dec])
    d_cq, d_ck, d_cv = zip(*[qkv_heads(lp["ca_in"]) for lp in dec])

    return dict(
        e_ln1_g=stack_ln(enc, "ln1_g"), e_ln1_b=stack_ln(enc, "ln1_b"),
        e_wq=cat(e_q), e_wk=cat(e_k), e_wv=cat(e_v),
        e_wo=cat(out_heads(lp["sa_out"]) for lp in enc),
        e_ln2_g=stack_ln(enc, "ln2_g"), e_ln2_b=stack_ln(enc, "ln2_b"),
        e_w1=jnp.stack([lp["ff_w1"] for lp in enc]),
        e_w2=jnp.stack([lp["ff_w2"] for lp in enc]),
        enc_norm_g=params["enc_norm_g"].reshape(1, D_MODEL),
        enc_norm_b=params["enc_norm_b"].reshape(1, D_MODEL),
        d_ln1_g=stack_ln(dec, "ln1_g"), d_ln1_b=stack_ln(dec, "ln1_b"),
        d_sa_wq=cat(d_sq), d_sa_wk=cat(d_sk), d_sa_wv=cat(d_sv),
        d_sa_wo=cat(out_heads(lp["sa_out"]) for lp in dec),
        d_ln2_g=stack_ln(dec, "ln2_g"), d_ln2_b=stack_ln(dec, "ln2_b"),
        d_ca_wq=cat(d_cq), d_ca_wk=cat(d_ck), d_ca_wv=cat(d_cv),
        d_ca_wo=cat(out_heads(lp["ca_out"]) for lp in dec),
        d_ln3_g=stack_ln(dec, "ln3_g"), d_ln3_b=stack_ln(dec, "ln3_b"),
        d_w1=jnp.stack([lp["ff_w1"] for lp in dec]),
        d_w2=jnp.stack([lp["ff_w2"] for lp in dec]),
        dec_norm_g=params["dec_norm_g"].reshape(1, D_MODEL),
        dec_norm_b=params["dec_norm_b"].reshape(1, D_MODEL),
        emb=params["embedding"],
        pe=params["pe"],
    )


# ----------------------------- main --------------------------------------------
if __name__ == "__main__":
    key = jax.random.PRNGKey(0)
    k_param, k_src, k_tgt = jax.random.split(key, 3)
    params = init_params(k_param)
    packed = pack_params(params)   # done once, outside the jitted forward

    B, S_SRC, S_TGT = 2, 8, 8
    src_ids = jax.random.randint(k_src, (B, S_SRC), 0, VOCAB, dtype=jnp.int32)
    tgt_ids = jax.random.randint(k_tgt, (B, S_TGT), 0, VOCAB, dtype=jnp.int32)

    logits = jax.jit(forward)(packed, src_ids, tgt_ids)
    jax.block_until_ready(logits)
    assert logits.shape == (B, S_TGT, VOCAB)
    assert logits.dtype == jnp.float32
    assert bool(jnp.all(jnp.isfinite(logits)))
    print("KERNEL_OK")
</pallas_src>

<mosaic_0001>
module attributes {stable_mosaic.version = 11 : i64} {
  func.func @_transformer_kernel(%arg0: memref<16x32xf32, #tpu.memory_space<vmem>>, %arg1: memref<16x32xf32, #tpu.memory_space<vmem>>, %arg2: memref<2x1x32xf32, #tpu.memory_space<vmem>>, %arg3: memref<2x1x32xf32, #tpu.memory_space<vmem>>, %arg4: memref<8x8x32xf32, #tpu.memory_space<vmem>>, %arg5: memref<8x8x32xf32, #tpu.memory_space<vmem>>, %arg6: memref<8x8x32xf32, #tpu.memory_space<vmem>>, %arg7: memref<8x32x8xf32, #tpu.memory_space<vmem>>, %arg8: memref<2x1x32xf32, #tpu.memory_space<vmem>>, %arg9: memref<2x1x32xf32, #tpu.memory_space<vmem>>, %arg10: memref<2x64x32xf32, #tpu.memory_space<vmem>>, %arg11: memref<2x32x64xf32, #tpu.memory_space<vmem>>, %arg12: memref<1x32xf32, #tpu.memory_space<vmem>>, %arg13: memref<1x32xf32, #tpu.memory_space<vmem>>, %arg14: memref<2x1x32xf32, #tpu.memory_space<vmem>>, %arg15: memref<2x1x32xf32, #tpu.memory_space<vmem>>, %arg16: memref<8x8x32xf32, #tpu.memory_space<vmem>>, %arg17: memref<8x8x32xf32, #tpu.memory_space<vmem>>, %arg18: memref<8x8x32xf32, #tpu.memory_space<vmem>>, %arg19: memref<8x32x8xf32, #tpu.memory_space<vmem>>, %arg20: memref<2x1x32xf32, #tpu.memory_space<vmem>>, %arg21: memref<2x1x32xf32, #tpu.memory_space<vmem>>, %arg22: memref<8x8x32xf32, #tpu.memory_space<vmem>>, %arg23: memref<8x8x32xf32, #tpu.memory_space<vmem>>, %arg24: memref<8x8x32xf32, #tpu.memory_space<vmem>>, %arg25: memref<8x32x8xf32, #tpu.memory_space<vmem>>, %arg26: memref<2x1x32xf32, #tpu.memory_space<vmem>>, %arg27: memref<2x1x32xf32, #tpu.memory_space<vmem>>, %arg28: memref<2x64x32xf32, #tpu.memory_space<vmem>>, %arg29: memref<2x32x64xf32, #tpu.memory_space<vmem>>, %arg30: memref<1x32xf32, #tpu.memory_space<vmem>>, %arg31: memref<1x32xf32, #tpu.memory_space<vmem>>, %arg32: memref<64x32xf32, #tpu.memory_space<vmem>>, %arg33: memref<16x64xf32, #tpu.memory_space<vmem>>) attributes {dimension_semantics = [], scalar_prefetch = 0 : i64, scratch_operands = 0 : i64, tpu.core_type = #tpu.core_type<tc>} {
    %c0 = arith.constant 0 : index
    %c0_0 = arith.constant 0 : index
    %0 = vector.load %arg0[%c0, %c0_0] : memref<16x32xf32, #tpu.memory_space<vmem>>, vector<16x32xf32>
    %c0_1 = arith.constant 0 : index
    %c0_2 = arith.constant 0 : index
    %c0_3 = arith.constant 0 : index
    %1 = vector.load %arg2[%c0_1, %c0_2, %c0_3] : memref<2x1x32xf32, #tpu.memory_space<vmem>>, vector<1x1x32xf32>
    %2 = vector.shape_cast %1 : vector<1x1x32xf32> to vector<1x32xf32>
    %c0_4 = arith.constant 0 : index
    %c0_5 = arith.constant 0 : index
    %c0_6 = arith.constant 0 : index
    %3 = vector.load %arg3[%c0_4, %c0_5, %c0_6] : memref<2x1x32xf32, #tpu.memory_space<vmem>>, vector<1x1x32xf32>
    %4 = vector.shape_cast %3 : vector<1x1x32xf32> to vector<1x32xf32>
    %cst = arith.constant dense<0.000000e+00> : vector<16xf32>
    %5 = vector.multi_reduction <add>, %0, %cst [1] : vector<16x32xf32> to vector<16xf32>
    %6 = vector.shape_cast %5 : vector<16xf32> to vector<16x1xf32>
    %cst_7 = arith.constant 3.200000e+01 : f32
    %7 = vector.broadcast %cst_7 : f32 to vector<16x1xf32>
    %8 = arith.divf %6, %7 : vector<16x1xf32>
    %9 = vector.broadcast %8 : vector<16x1xf32> to vector<16x32xf32>
    %10 = arith.subf %0, %9 : vector<16x32xf32>
    %11 = arith.mulf %10, %10 : vector<16x32xf32>
    %cst_8 = arith.constant dense<0.000000e+00> : vector<16xf32>
    %12 = vector.multi_reduction <add>, %11, %cst_8 [1] : vector<16x32xf32> to vector<16xf32>
    %13 = vector.shape_cast %12 : vector<16xf32> to vector<16x1xf32>
    %cst_9 = arith.constant 3.200000e+01 : f32
    %14 = vector.broadcast %cst_9 : f32 to vector<16x1xf32>
    %15 = arith.divf %13, %14 : vector<16x1xf32>
    %16 = vector.broadcast %8 : vector<16x1xf32> to vector<16x32xf32>
    %17 = arith.subf %0, %16 : vector<16x32xf32>
    %cst_10 = arith.constant 9.99999974E-6 : f32
    %18 = vector.broadcast %cst_10 : f32 to vector<16x1xf32>
    %19 = arith.addf %15, %18 : vector<16x1xf32>
    %20 = math.rsqrt %19 : vector<16x1xf32>
    %21 = vector.broadcast %20 : vector<16x1xf32> to vector<16x32xf32>
    %22 = arith.mulf %17, %21 : vector<16x32xf32>
    %23 = vector.broadcast %2 : vector<1x32xf32> to vector<16x32xf32>
    %24 = arith.mulf %22, %23 : vector<16x32xf32>
    %25 = vector.broadcast %4 : vector<1x32xf32> to vector<16x32xf32>
    %26 = arith.addf %24, %25 : vector<16x32xf32>
    %c0_11 = arith.constant 0 : index
    %c0_12 = arith.constant 0 : index
    %c0_13 = arith.constant 0 : index
    %27 = vector.load %arg4[%c0_11, %c0_12, %c0_13] : memref<8x8x32xf32, #tpu.memory_space<vmem>>, vector<4x8x32xf32>
    %c0_14 = arith.constant 0 : index
    %c0_15 = arith.constant 0 : index
    %c0_16 = arith.constant 0 : index
    %28 = vector.load %arg5[%c0_14, %c0_15, %c0_16] : memref<8x8x32xf32, #tpu.memory_space<vmem>>, vector<4x8x32xf32>
    %c0_17 = arith.constant 0 : index
    %c0_18 = arith.constant 0 : index
    %c0_19 = arith.constant 0 : index
    %29 = vector.load %arg6[%c0_17, %c0_18, %c0_19] : memref<8x8x32xf32, #tpu.memory_space<vmem>>, vector<4x8x32xf32>
    %c0_20 = arith.constant 0 : index
    %c0_21 = arith.constant 0 : index
    %c0_22 = arith.constant 0 : index
    %30 = vector.load %arg7[%c0_20, %c0_21, %c0_22] : memref<8x32x8xf32, #tpu.memory_space<vmem>>, vector<4x32x8xf32>
    %31 = vector.extract_strided_slice %26 {offsets = [0, 0], sizes = [8, 32], strides = [1, 1]} : vector<16x32xf32> to vector<8x32xf32>
    %32 = vector.extract_strided_slice %26 {offsets = [0, 0], sizes = [8, 32], strides = [1, 1]} : vector<16x32xf32> to vector<8x32xf32>
    %33 = vector.shape_cast %31 : vector<8x32xf32> to vector<1x8x32xf32>
    %34 = vector.shape_cast %33 : vector<1x8x32xf32> to vector<1x8x32xf32>
    %35 = vector.broadcast %34 : vector<1x8x32xf32> to vector<4x8x32xf32>
    %36 = vector.shape_cast %32 : vector<8x32xf32> to vector<1x8x32xf32>
    %37 = vector.shape_cast %36 : vector<1x8x32xf32> to vector<1x8x32xf32>
    %38 = vector.broadcast %37 : vector<1x8x32xf32> to vector<4x8x32xf32>
    "tpu.trace_start"() <{level = 10 : i32, message = "hsd,hed->hse"}> : () -> ()
    %cst_23 = arith.constant dense<0.000000e+00> : vector<4x8x8xf32>
    %39 = tpu.matmul %35, %27, %cst_23 {dimension_numbers = #tpu.dot_dimension_numbers<[2], [2], [1], [1], [0, 0, 0, 1, 1, 1], [0], [0]>} : vector<4x8x32xf32>, vector<4x8x32xf32>, vector<4x8x8xf32> -> vector<4x8x8xf32>
    %cst_24 = arith.constant dense<0.000000e+00> : vector<4x8x8xf32>
    %40 = tpu.matmul %38, %28, %cst_24 {dimension_numbers = #tpu.dot_dimension_numbers<[2], [2], [1], [1], [0, 0, 0, 1, 1, 1], [0], [0]>} : vector<4x8x32xf32>, vector<4x8x32xf32>, vector<4x8x8xf32> -> vector<4x8x8xf32>
    %cst_25 = arith.constant dense<0.000000e+00> : vector<4x8x8xf32>
    %41 = tpu.matmul %38, %29, %cst_25 {dimension_numbers = #tpu.dot_dimension_numbers<[2], [2], [1], [1], [0, 0, 0, 1, 1, 1], [0], [0]>} : vector<4x8x32xf32>, vector<4x8x32xf32>, vector<4x8x8xf32> -> vector<4x8x8xf32>
    "tpu.trace_stop"() : () -> ()
    "tpu.trace_start"() <{level = 10 : i32, message = "hqe,hke->hqk"}> : () -> ()
    %cst_26 = arith.constant dense<0.000000e+00> : vector<4x8x8xf32>
    %42 = tpu.matmul %39, %40, %cst_26 {dimension_numbers = #tpu.dot_dimension_numbers<[2], [2], [1], [1], [0, 0, 0, 1, 1, 1], [0], [0]>} : vector<4x8x8xf32>, vector<4x8x8xf32>, vector<4x8x8xf32> -> vector<4x8x8xf32>
    "tpu.trace_stop"() : () -> ()
    %cst_27 = arith.constant dense<0xFF800000> : vector<4x8xf32>
    %43 = vector.multi_reduction <maximumf>, %42, %cst_27 [2] : vector<4x8x8xf32> to vector<4x8xf32>
    %44 = vector.shape_cast %43 : vector<4x8xf32> to vector<4x8x1xf32>
    %45 = vector.broadcast %44 : vector<4x8x1xf32> to vector<4x8x8xf32>
    %46 = arith.subf %42, %45 : vector<4x8x8xf32>
    %47 = math.exp %46 : vector<4x8x8xf32>
    %cst_28 = arith.constant dense<0.000000e+00> : vector<4x8xf32>
    %48 = vector.multi_reduction <add>, %47, %cst_28 [2] : vector<4x8x8xf32> to vector<4x8xf32>
    %49 = vector.shape_cast %48 : vector<4x8xf32> to vector<4x8x1xf32>
    %50 = vector.broadcast %49 : vector<4x8x1xf32> to vector<4x8x8xf32>
    %51 = arith.divf %47, %50 : vector<4x8x8xf32>
    "tpu.trace_start"() <{level = 10 : i32, message = "hqk,hke->hqe"}> : () -> ()
    %cst_29 = arith.constant dense<0.000000e+00> : vector<4x8x8xf32>
    %52 = tpu.matmul %51, %41, %cst_29 {dimension_numbers = #tpu.dot_dimension_numbers<[2], [1], [1], [2], [0, 0, 0, 1, 1, 2], [0], [0]>} : vector<4x8x8xf32>, vector<4x8x8xf32>, vector<4x8x8xf32> -> vector<4x8x8xf32>
    "tpu.trace_stop"() : () -> ()
    "tpu.trace_start"() <{level = 10 : i32, message = "hqe,hde->hqd"}> : () -> ()
    %cst_30 = arith.constant dense<0.000000e+00> : vector<4x8x32xf32>
    %53 = tpu.matmul %52, %30, %cst_30 {dimension_numbers = #tpu.dot_dimension_numbers<[2], [2], [1], [1], [0, 0, 0, 1, 1, 1], [0], [0]>} : vector<4x8x8xf32>, vector<4x32x8xf32>, vector<4x8x32xf32> -> vector<4x8x32xf32>
    "tpu.trace_stop"() : () -> ()
    %cst_31 = arith.constant dense<0.000000e+00> : vector<8x32xf32>
    %54 = vector.multi_reduction <add>, %53, %cst_31 [0] : vector<4x8x32xf32> to vector<8x32xf32>
    %55 = vector.extract_strided_slice %26 {offsets = [8, 0], sizes = [8, 32], strides = [1, 1]} : vector<16x32xf32> to vector<8x32xf32>
    %56 = vector.extract_strided_slice %26 {offsets = [8, 0], sizes = [8, 32], strides = [1, 1]} : vector<16x32xf32> to vector<8x32xf32>
    %57 = vector.shape_cast %55 : vector<8x32xf32> to vector<1x8x32xf32>
    %58 = vector.shape_cast %57 : vector<1x8x32xf32> to vector<1x8x32xf32>
    %59 = vector.broadcast %58 : vector<1x8x32xf32> to vector<4x8x32xf32>
    %60 = vector.shape_cast %56 : vector<8x32xf32> to vector<1x8x32xf32>
    %61 = vector.shape_cast %60 : vector<1x8x32xf32> to vector<1x8x32xf32>
    %62 = vector.broadcast %61 : vector<1x8x32xf32> to vector<4x8x32xf32>
    "tpu.trace_start"() <{level = 10 : i32, message = "hsd,hed->hse"}> : () -> ()
    %cst_32 = arith.constant dense<0.000000e+00> : vector<4x8x8xf32>
    %63 = tpu.matmul %59, %27, %cst_32 {dimension_numbers = #tpu.dot_dimension_numbers<[2], [2], [1], [1], [0, 0, 0, 1, 1, 1], [0], [0]>} : vector<4x8x32xf32>, vector<4x8x32xf32>, vector<4x8x8xf32> -> vector<4x8x8xf32>
    %cst_33 = arith.constant dense<0.000000e+00> : vector<4x8x8xf32>
    %64 = tpu.matmul %62, %28, %cst_33 {dimension_numbers = #tpu.dot_dimension_numbers<[2], [2], [1], [1], [0, 0, 0, 1, 1, 1], [0], [0]>} : vector<4x8x32xf32>, vector<4x8x32xf32>, vector<4x8x8xf32> -> vector<4x8x8xf32>
    %cst_34 = arith.constant dense<0.000000e+00> : vector<4x8x8xf32>
    %65 = tpu.matmul %62, %29, %cst_34 {dimension_numbers = #tpu.dot_dimension_numbers<[2], [2], [1], [1], [0, 0, 0, 1, 1, 1], [0], [0]>} : vector<4x8x32xf32>, vector<4x8x32xf32>, vector<4x8x8xf32> -> vector<4x8x8xf32>
    "tpu.trace_stop"() : () -> ()
    "tpu.trace_start"() <{level = 10 : i32, message = "hqe,hke->hqk"}> : () -> ()
    %cst_35 = arith.constant dense<0.000000e+00> : vector<4x8x8xf32>
    %66 = tpu.matmul %63, %64, %cst_35 {dimension_numbers = #tpu.dot_dimension_numbers<[2], [2], [1], [1], [0, 0, 0, 1, 1, 1], [0], [0]>} : vector<4x8x8xf32>, vector<4x8x8xf32>, vector<4x8x8xf32> -> vector<4x8x8xf32>
    "tpu.trace_stop"() : () -> ()
    %cst_36 = arith.constant dense<0xFF800000> : vector<4x8xf32>
    %67 = vector.multi_reduction <maximumf>, %66, %cst_36 [2] : vector<4x8x8xf32> to vector<4x8xf32>
    %68 = vector.shape_cast %67 : vector<4x8xf32> to vector<4x8x1xf32>
    %69 = vector.broadcast %68 : vector<4x8x1xf32> to vector<4x8x8xf32>
    %70 = arith.subf %66, %69 : vector<4x8x8xf32>
    %71 = math.exp %70 : vector<4x8x8xf32>
    %cst_37 = arith.constant dense<0.000000e+00> : vector<4x8xf32>
    %72 = vector.multi_reduction <add>, %71, %cst_37 [2] : vector<4x8x8xf32> to vector<4x8xf32>
    %73 = vector.shape_cast %72 : vector<4x8xf32> to vector<4x8x1xf32>
    %74 = vector.broadcast %73 : vector<4x8x1xf32> to vector<4x8x8xf32>
    %75 = arith.divf %71, %74 : vector<4x8x8xf32>
    "tpu.trace_start"() <{level = 10 : i32, message = "hqk,hke->hqe"}> : () -> ()
    %cst_38 = arith.constant dense<0.000000e+00> : vector<4x8x8xf32>
    %76 = tpu.matmul %75, %65, %cst_38 {dimension_numbers = #tpu.dot_dimension_numbers<[2], [1], [1], [2], [0, 0, 0, 1, 1, 2], [0], [0]>} : vector<4x8x8xf32>, vector<4x8x8xf32>, vector<4x8x8xf32> -> vector<4x8x8xf32>
    "tpu.trace_stop"() : () -> ()
    "tpu.trace_start"() <{level = 10 : i32, message = "hqe,hde->hqd"}> : () -> ()
    %cst_39 = arith.constant dense<0.000000e+00> : vector<4x8x32xf32>
    %77 = tpu.matmul %76, %30, %cst_39 {dimension_numbers = #tpu.dot_dimension_numbers<[2], [2], [1], [1], [0, 0, 0, 1, 1, 1], [0], [0]>} : vector<4x8x8xf32>, vector<4x32x8xf32>, vector<4x8x32xf32> -> vector<4x8x32xf32>
    "tpu.trace_stop"() : () -> ()
    %cst_40 = arith.constant dense<0.000000e+00> : vector<8x32xf32>
    %78 = vector.multi_reduction <add>, %77, %cst_40 [0] : vector<4x8x32xf32> to vector<8x32xf32>
    %79 = tpu.concatenate %54, %78 in 0 : vector<8x32xf32>, vector<8x32xf32> -> vector<16x32xf32>
    %80 = arith.addf %0, %79 : vector<16x32xf32>
    %c0_41 = arith.constant 0 : index
    %c0_42 = arith.constant 0 : index
    %c0_43 = arith.constant 0 : index
    %81 = vector.load %arg8[%c0_41, %c0_42, %c0_43] : memref<2x1x32xf32, #tpu.memory_space<vmem>>, vector<1x1x32xf32>
    %82 = vector.shape_cast %81 : vector<1x1x32xf32> to vector<1x32xf32>
    %c0_44 = arith.constant 0 : index
    %c0_45 = arith.constant 0 : index
    %c0_46 = arith.constant 0 : index
    %83 = vector.load %arg9[%c0_44, %c0_45, %c0_46] : memref<2x1x32xf32, #tpu.memory_space<vmem>>, vector<1x1x32xf32>
    %84 = vector.shape_cast %83 : vector<1x1x32xf32> to vector<1x32xf32>
    %cst_47 = arith.constant dense<0.000000e+00> : vector<16xf32>
    %85 = vector.multi_reduction <add>, %80, %cst_47 [1] : vector<16x32xf32> to vector<16xf32>
    %86 = vector.shape_cast %85 : vector<16xf32> to vector<16x1xf32>
    %cst_48 = arith.constant 3.200000e+01 : f32
    %87 = vector.broadcast %cst_48 : f32 to vector<16x1xf32>
    %88 = arith.divf %86, %87 : vector<16x1xf32>
    %89 = vector.broadcast %88 : vector<16x1xf32> to vector<16x32xf32>
    %90 = arith.subf %80, %89 : vector<16x32xf32>
    %91 = arith.mulf %90, %90 : vector<16x32xf32>
    %cst_49 = arith.constant dense<0.000000e+00> : vector<16xf32>
    %92 = vector.multi_reduction <add>, %91, %cst_49 [1] : vector<16x32xf32> to vector<16xf32>
    %93 = vector.shape_cast %92 : vector<16xf32> to vector<16x1xf32>
    %cst_50 = arith.constant 3.200000e+01 : f32
    %94 = vector.broadcast %cst_50 : f32 to vector<16x1xf32>
    %95 = arith.divf %93, %94 : vector<16x1xf32>
    %96 = vector.broadcast %88 : vector<16x1xf32> to vector<16x32xf32>
    %97 = arith.subf %80, %96 : vector<16x32xf32>
    %cst_51 = arith.constant 9.99999974E-6 : f32
    %98 = vector.broadcast %cst_51 : f32 to vector<16x1xf32>
    %99 = arith.addf %95, %98 : vector<16x1xf32>
    %100 = math.rsqrt %99 : vector<16x1xf32>
    %101 = vector.broadcast %100 : vector<16x1xf32> to vector<16x32xf32>
    %102 = arith.mulf %97, %101 : vector<16x32xf32>
    %103 = vector.broadcast %82 : vector<1x32xf32> to vector<16x32xf32>
    %104 = arith.mulf %102, %103 : vector<16x32xf32>
    %105 = vector.broadcast %84 : vector<1x32xf32> to vector<16x32xf32>
    %106 = arith.addf %104, %105 : vector<16x32xf32>
    %c0_52 = arith.constant 0 : index
    %c0_53 = arith.constant 0 : index
    %c0_54 = arith.constant 0 : index
    %107 = vector.load %arg10[%c0_52, %c0_53, %c0_54] : memref<2x64x32xf32, #tpu.memory_space<vmem>>, vector<1x64x32xf32>
    %108 = vector.shape_cast %107 : vector<1x64x32xf32> to vector<64x32xf32>
    %cst_55 = arith.constant dense<0.000000e+00> : vector<16x64xf32>
    %109 = tpu.matmul %106, %108, %cst_55 {dimension_numbers = #tpu.dot_dimension_numbers<[1], [1], [0], [0], [0, 0, 1, 0], [], []>} : vector<16x32xf32>, vector<64x32xf32>, vector<16x64xf32> -> vector<16x64xf32>
    %110 = arith.negf %109 : vector<16x64xf32>
    %111 = math.exp %110 : vector<16x64xf32>
    %cst_56 = arith.constant 1.000000e+00 : f32
    %112 = vector.broadcast %cst_56 : f32 to vector<16x64xf32>
    %113 = arith.addf %112, %111 : vector<16x64xf32>
    %114 = arith.divf %112, %113 : vector<16x64xf32>
    %115 = arith.mulf %109, %114 : vector<16x64xf32>
    %c0_57 = arith.constant 0 : index
    %c0_58 = arith.constant 0 : index
    %c0_59 = arith.constant 0 : index
    %116 = vector.load %arg11[%c0_57, %c0_58, %c0_59] : memref<2x32x64xf32, #tpu.memory_space<vmem>>, vector<1x32x64xf32>
    %117 = vector.shape_cast %116 : vector<1x32x64xf32> to vector<32x64xf32>
    %cst_60 = arith.constant dense<0.000000e+00> : vector<16x32xf32>
    %118 = tpu.matmul %115, %117, %cst_60 {dimension_numbers = #tpu.dot_dimension_numbers<[1], [1], [0], [0], [0, 0, 1, 0], [], []>} : vector<16x64xf32>, vector<32x64xf32>, vector<16x32xf32> -> vector<16x32xf32>
    %119 = arith.addf %80, %118 : vector<16x32xf32>
    %c1 = arith.constant 1 : index
    %c0_61 = arith.constant 0 : index
    %c0_62 = arith.constant 0 : index
    %120 = vector.load %arg2[%c1, %c0_61, %c0_62] : memref<2x1x32xf32, #tpu.memory_space<vmem>>, vector<1x1x32xf32>
    %121 = vector.shape_cast %120 : vector<1x1x32xf32> to vector<1x32xf32>
    %c1_63 = arith.constant 1 : index
    %c0_64 = arith.constant 0 : index
    %c0_65 = arith.constant 0 : index
    %122 = vector.load %arg3[%c1_63, %c0_64, %c0_65] : memref<2x1x32xf32, #tpu.memory_space<vmem>>, vector<1x1x32xf32>
    %123 = vector.shape_cast %122 : vector<1x1x32xf32> to vector<1x32xf32>
    %cst_66 = arith.constant dense<0.000000e+00> : vector<16xf32>
    %124 = vector.multi_reduction <add>, %119, %cst_66 [1] : vector<16x32xf32> to vector<16xf32>
    %125 = vector.shape_cast %124 : vector<16xf32> to vector<16x1xf32>
    %cst_67 = arith.constant 3.200000e+01 : f32
    %126 = vector.broadcast %cst_67 : f32 to vector<16x1xf32>
    %127 = arith.divf %125, %126 : vector<16x1xf32>
    %128 = vector.broadcast %127 : vector<16x1xf32> to vector<16x32xf32>
    %129 = arith.subf %119, %128 : vector<16x32xf32>
    %130 = arith.mulf %129, %129 : vector<16x32xf32>
    %cst_68 = arith.constant dense<0.000000e+00> : vector<16xf32>
    %131 = vector.multi_reduction <add>, %130, %cst_68 [1] : vector<16x32xf32> to vector<16xf32>
    %132 = vector.shape_cast %131 : vector<16xf32> to vector<16x1xf32>
    %cst_69 = arith.constant 3.200000e+01 : f32
    %133 = vector.broadcast %cst_69 : f32 to vector<16x1xf32>
    %134 = arith.divf %132, %133 : vector<16x1xf32>
    %135 = vector.broadcast %127 : vector<16x1xf32> to vector<16x32xf32>
    %136 = arith.subf %119, %135 : vector<16x32xf32>
    %cst_70 = arith.constant 9.99999974E-6 : f32
    %137 = vector.broadcast %cst_70 : f32 to vector<16x1xf32>
    %138 = arith.addf %134, %137 : vector<16x1xf32>
    %139 = math.rsqrt %138 : vector<16x1xf32>
    %140 = vector.broadcast %139 : vector<16x1xf32> to vector<16x32xf32>
    %141 = arith.mulf %136, %140 : vector<16x32xf32>
    %142 = vector.broadcast %121 : vector<1x32xf32> to vector<16x32xf32>
    %143 = arith.mulf %141, %142 : vector<16x32xf32>
    %144 = vector.broadcast %123 : vector<1x32xf32> to vector<16x32xf32>
    %145 = arith.addf %143, %144 : vector<16x32xf32>
    %c4 = arith.constant 4 : index
    %c0_71 = arith.constant 0 : index
    %c0_72 = arith.constant 0 : index
    %146 = vector.load %arg4[%c4, %c0_71, %c0_72] : memref<8x8x32xf32, #tpu.memory_space<vmem>>, vector<4x8x32xf32>
    %c4_73 = arith.constant 4 : index
    %c0_74 = arith.constant 0 : index
    %c0_75 = arith.constant 0 : index
    %147 = vector.load %arg5[%c4_73, %c0_74, %c0_75] : memref<8x8x32xf32, #tpu.memory_space<vmem>>, vector<4x8x32xf32>
    %c4_76 = arith.constant 4 : index
    %c0_77 = arith.constant 0 : index
    %c0_78 = arith.constant 0 : index
    %148 = vector.load %arg6[%c4_76, %c0_77, %c0_78] : memref<8x8x32xf32, #tpu.memory_space<vmem>>, vector<4x8x32xf32>
    %c4_79 = arith.constant 4 : index
    %c0_80 = arith.constant 0 : index
    %c0_81 = arith.constant 0 : index
    %149 = vector.load %arg7[%c4_79, %c0_80, %c0_81] : memref<8x32x8xf32, #tpu.memory_space<vmem>>, vector<4x32x8xf32>
    %150 = vector.extract_strided_slice %145 {offsets = [0, 0], sizes = [8, 32], strides = [1, 1]} : vector<16x32xf32> to vector<8x32xf32>
    %151 = vector.extract_strided_slice %145 {offsets = [0, 0], sizes = [8, 32], strides = [1, 1]} : vector<16x32xf32> to vector<8x32xf32>
    %152 = vector.shape_cast %150 : vector<8x32xf32> to vector<1x8x32xf32>
    %153 = vector.shape_cast %152 : vector<1x8x32xf32> to vector<1x8x32xf32>
    %154 = vector.broadcast %153 : vector<1x8x32xf32> to vector<4x8x32xf32>
    %155 = vector.shape_cast %151 : vector<8x32xf32> to vector<1x8x32xf32>
    %156 = vector.shape_cast %155 : vector<1x8x32xf32> to vector<1x8x32xf32>
    %157 = vector.broadcast %156 : vector<1x8x32xf32> to vector<4x8x32xf32>
    "tpu.trace_start"() <{level = 10 : i32, message = "hsd,hed->hse"}> : () -> ()
    %cst_82 = arith.constant dense<0.000000e+00> : vector<4x8x8xf32>
    %158 = tpu.matmul %154, %146, %cst_82 {dimension_numbers = #tpu.dot_dimension_numbers<[2], [2], [1], [1], [0, 0, 0, 1, 1, 1], [0], [0]>} : vector<4x8x32xf32>, vector<4x8x32xf32>, vector<4x8x8xf32> -> vector<4x8x8xf32>
    %cst_83 = arith.constant dense<0.000000e+00> : vector<4x8x8xf32>
    %159 = tpu.matmul %157, %147, %cst_83 {dimension_numbers = #tpu.dot_dimension_numbers<[2], [2], [1], [1], [0, 0, 0, 1, 1, 1], [0], [0]>} : vector<4x8x32xf32>, vector<4x8x32xf32>, vector<4x8x8xf32> -> vector<4x8x8xf32>
    %cst_84 = arith.constant dense<0.000000e+00> : vector<4x8x8xf32>
    %160 = tpu.matmul %157, %148, %cst_84 {dimension_numbers = #tpu.dot_dimension_numbers<[2], [2], [1], [1], [0, 0, 0, 1, 1, 1], [0], [0]>} : vector<4x8x32xf32>, vector<4x8x32xf32>, vector<4x8x8xf32> -> vector<4x8x8xf32>
    "tpu.trace_stop"() : () -> ()
    "tpu.trace_start"() <{level = 10 : i32, message = "hqe,hke->hqk"}> : () -> ()
    %cst_85 = arith.constant dense<0.000000e+00> : vector<4x8x8xf32>
    %161 = tpu.matmul %158, %159, %cst_85 {dimension_numbers = #tpu.dot_dimension_numbers<[2], [2], [1], [1], [0, 0, 0, 1, 1, 1], [0], [0]>} : vector<4x8x8xf32>, vector<4x8x8xf32>, vector<4x8x8xf32> -> vector<4x8x8xf32>
    "tpu.trace_stop"() : () -> ()
    %cst_86 = arith.constant dense<0xFF800000> : vector<4x8xf32>
    %162 = vector.multi_reduction <maximumf>, %161, %cst_86 [2] : vector<4x8x8xf32> to vector<4x8xf32>
    %163 = vector.shape_cast %162 : vector<4x8xf32> to vector<4x8x1xf32>
    %164 = vector.broadcast %163 : vector<4x8x1xf32> to vector<4x8x8xf32>
    %165 = arith.subf %161, %164 : vector<4x8x8xf32>
    %166 = math.exp %165 : vector<4x8x8xf32>
    %cst_87 = arith.constant dense<0.000000e+00> : vector<4x8xf32>
    %167 = vector.multi_reduction <add>, %166, %cst_87 [2] : vector<4x8x8xf32> to vector<4x8xf32>
    %168 = vector.shape_cast %167 : vector<4x8xf32> to vector<4x8x1xf32>
    %169 = vector.broadcast %168 : vector<4x8x1xf32> to vector<4x8x8xf32>
    %170 = arith.divf %166, %169 : vector<4x8x8xf32>
    "tpu.trace_start"() <{level = 10 : i32, message = "hqk,hke->hqe"}> : () -> ()
    %cst_88 = arith.constant dense<0.000000e+00> : vector<4x8x8xf32>
    %171 = tpu.matmul %170, %160, %cst_88 {dimension_numbers = #tpu.dot_dimension_numbers<[2], [1], [1], [2], [0, 0, 0, 1, 1, 2], [0], [0]>} : vector<4x8x8xf32>, vector<4x8x8xf32>, vector<4x8x8xf32> -> vector<4x8x8xf32>
    "tpu.trace_stop"() : () -> ()
    "tpu.trace_start"() <{level = 10 : i32, message = "hqe,hde->hqd"}> : () -> ()
    %cst_89 = arith.constant dense<0.000000e+00> : vector<4x8x32xf32>
    %172 = tpu.matmul %171, %149, %cst_89 {dimension_numbers = #tpu.dot_dimension_numbers<[2], [2], [1], [1], [0, 0, 0, 1, 1, 1], [0], [0]>} : vector<4x8x8xf32>, vector<4x32x8xf32>, vector<4x8x32xf32> -> vector<4x8x32xf32>
    "tpu.trace_stop"() : () -> ()
    %cst_90 = arith.constant dense<0.000000e+00> : vector<8x32xf32>
    %173 = vector.multi_reduction <add>, %172, %cst_90 [0] : vector<4x8x32xf32> to vector<8x32xf32>
    %174 = vector.extract_strided_slice %145 {offsets = [8, 0], sizes = [8, 32], strides = [1, 1]} : vector<16x32xf32> to vector<8x32xf32>
    %175 = vector.extract_strided_slice %145 {offsets = [8, 0], sizes = [8, 32], strides = [1, 1]} : vector<16x32xf32> to vector<8x32xf32>
    %176 = vector.shape_cast %174 : vector<8x32xf32> to vector<1x8x32xf32>
    %177 = vector.shape_cast %176 : vector<1x8x32xf32> to vector<1x8x32xf32>
    %178 = vector.broadcast %177 : vector<1x8x32xf32> to vector<4x8x32xf32>
    %179 = vector.shape_cast %175 : vector<8x32xf32> to vector<1x8x32xf32>
    %180 = vector.shape_cast %179 : vector<1x8x32xf32> to vector<1x8x32xf32>
    %181 = vector.broadcast %180 : vector<1x8x32xf32> to vector<4x8x32xf32>
    "tpu.trace_start"() <{level = 10 : i32, message = "hsd,hed->hse"}> : () -> ()
    %cst_91 = arith.constant dense<0.000000e+00> : vector<4x8x8xf32>
    %182 = tpu.matmul %178, %146, %cst_91 {dimension_numbers = #tpu.dot_dimension_numbers<[2], [2], [1], [1], [0, 0, 0, 1, 1, 1], [0], [0]>} : vector<4x8x32xf32>, vector<4x8x32xf32>, vector<4x8x8xf32> -> vector<4x8x8xf32>
    %cst_92 = arith.constant dense<0.000000e+00> : vector<4x8x8xf32>
    %183 = tpu.matmul %181, %147, %cst_92 {dimension_numbers = #tpu.dot_dimension_numbers<[2], [2], [1], [1], [0, 0, 0, 1, 1, 1], [0], [0]>} : vector<4x8x32xf32>, vector<4x8x32xf32>, vector<4x8x8xf32> -> vector<4x8x8xf32>
    %cst_93 = arith.constant dense<0.000000e+00> : vector<4x8x8xf32>
    %184 = tpu.matmul %181, %148, %cst_93 {dimension_numbers = #tpu.dot_dimension_numbers<[2], [2], [1], [1], [0, 0, 0, 1, 1, 1], [0], [0]>} : vector<4x8x32xf32>, vector<4x8x32xf32>, vector<4x8x8xf32> -> vector<4x8x8xf32>
    "tpu.trace_stop"() : () -> ()
    "tpu.trace_start"() <{level = 10 : i32, message = "hqe,hke->hqk"}> : () -> ()
    %cst_94 = arith.constant dense<0.000000e+00> : vector<4x8x8xf32>
    %185 = tpu.matmul %182, %183, %cst_94 {dimension_numbers = #tpu.dot_dimension_numbers<[2], [2], [1], [1], [0, 0, 0, 1, 1, 1], [0], [0]>} : vector<4x8x8xf32>, vector<4x8x8xf32>, vector<4x8x8xf32> -> vector<4x8x8xf32>
    "tpu.trace_stop"() : () -> ()
    %cst_95 = arith.constant dense<0xFF800000> : vector<4x8xf32>
    %186 = vector.multi_reduction <maximumf>, %185, %cst_95 [2] : vector<4x8x8xf32> to vector<4x8xf32>
    %187 = vector.shape_cast %186 : vector<4x8xf32> to vector<4x8x1xf32>
    %188 = vector.broadcast %187 : vector<4x8x1xf32> to vector<4x8x8xf32>
    %189 = arith.subf %185, %188 : vector<4x8x8xf32>
    %190 = math.exp %189 : vector<4x8x8xf32>
    %cst_96 = arith.constant dense<0.000000e+00> : vector<4x8xf32>
    %191 = vector.multi_reduction <add>, %190, %cst_96 [2] : vector<4x8x8xf32> to vector<4x8xf32>
    %192 = vector.shape_cast %191 : vector<4x8xf32> to vector<4x8x1xf32>
    %193 = vector.broadcast %192 : vector<4x8x1xf32> to vector<4x8x8xf32>
    %194 = arith.divf %190, %193 : vector<4x8x8xf32>
    "tpu.trace_start"() <{level = 10 : i32, message = "hqk,hke->hqe"}> : () -> ()
    %cst_97 = arith.constant dense<0.000000e+00> : vector<4x8x8xf32>
    %195 = tpu.matmul %194, %184, %cst_97 {dimension_numbers = #tpu.dot_dimension_numbers<[2], [1], [1], [2], [0, 0, 0, 1, 1, 2], [0], [0]>} : vector<4x8x8xf32>, vector<4x8x8xf32>, vector<4x8x8xf32> -> vector<4x8x8xf32>
    "tpu.trace_stop"() : () -> ()
    "tpu.trace_start"() <{level = 10 : i32, message = "hqe,hde->hqd"}> : () -> ()
    %cst_98 = arith.constant dense<0.000000e+00> : vector<4x8x32xf32>
    %196 = tpu.matmul %195, %149, %cst_98 {dimension_numbers = #tpu.dot_dimension_numbers<[2], [2], [1], [1], [0, 0, 0, 1, 1, 1], [0], [0]>} : vector<4x8x8xf32>, vector<4x32x8xf32>, vector<4x8x32xf32> -> vector<4x8x32xf32>
    "tpu.trace_stop"() : () -> ()
    %cst_99 = arith.constant dense<0.000000e+00> : vector<8x32xf32>
    %197 = vector.multi_reduction <add>, %196, %cst_99 [0] : vector<4x8x32xf32> to vector<8x32xf32>
    %198 = tpu.concatenate %173, %197 in 0 : vector<8x32xf32>, vector<8x32xf32> -> vector<16x32xf32>
    %199 = arith.addf %119, %198 : vector<16x32xf32>
    %c1_100 = arith.constant 1 : index
    %c0_101 = arith.constant 0 : index
    %c0_102 = arith.constant 0 : index
    %200 = vector.load %arg8[%c1_100, %c0_101, %c0_102] : memref<2x1x32xf32, #tpu.memory_space<vmem>>, vector<1x1x32xf32>
    %201 = vector.shape_cast %200 : vector<1x1x32xf32> to vector<1x32xf32>
    %c1_103 = arith.constant 1 : index
    %c0_104 = arith.constant 0 : index
    %c0_105 = arith.constant 0 : index
    %202 = vector.load %arg9[%c1_103, %c0_104, %c0_105] : memref<2x1x32xf32, #tpu.memory_space<vmem>>, vector<1x1x32xf32>
    %203 = vector.shape_cast %202 : vector<1x1x32xf32> to vector<1x32xf32>
    %cst_106 = arith.constant dense<0.000000e+00> : vector<16xf32>
    %204 = vector.multi_reduction <add>, %199, %cst_106 [1] : vector<16x32xf32> to vector<16xf32>
    %205 = vector.shape_cast %204 : vector<16xf32> to vector<16x1xf32>
    %cst_107 = arith.constant 3.200000e+01 : f32
    %206 = vector.broadcast %cst_107 : f32 to vector<16x1xf32>
    %207 = arith.divf %205, %206 : vector<16x1xf32>
    %208 = vector.broadcast %207 : vector<16x1xf32> to vector<16x32xf32>
    %209 = arith.subf %199, %208 : vector<16x32xf32>
    %210 = arith.mulf %209, %209 : vector<16x32xf32>
    %cst_108 = arith.constant dense<0.000000e+00> : vector<16xf32>
    %211 = vector.multi_reduction <add>, %210, %cst_108 [1] : vector<16x32xf32> to vector<16xf32>
    %212 = vector.shape_cast %211 : vector<16xf32> to vector<16x1xf32>
    %cst_109 = arith.constant 3.200000e+01 : f32
    %213 = vector.broadcast %cst_109 : f32 to vector<16x1xf32>
    %214 = arith.divf %212, %213 : vector<16x1xf32>
    %215 = vector.broadcast %207 : vector<16x1xf32> to vector<16x32xf32>
    %216 = arith.subf %199, %215 : vector<16x32xf32>
    %cst_110 = arith.constant 9.99999974E-6 : f32
    %217 = vector.broadcast %cst_110 : f32 to vector<16x1xf32>
    %218 = arith.addf %214, %217 : vector<16x1xf32>
    %219 = math.rsqrt %218 : vector<16x1xf32>
    %220 = vector.broadcast %219 : vector<16x1xf32> to vector<16x32xf32>
    %221 = arith.mulf %216, %220 : vector<16x32xf32>
    %222 = vector.broadcast %201 : vector<1x32xf32> to vector<16x32xf32>
    %223 = arith.mulf %221, %222 : vector<16x32xf32>
    %224 = vector.broadcast %203 : vector<1x32xf32> to vector<16x32xf32>
    %225 = arith.addf %223, %224 : vector<16x32xf32>
    %c1_111 = arith.constant 1 : index
    %c0_112 = arith.constant 0 : index
    %c0_113 = arith.constant 0 : index
    %226 = vector.load %arg10[%c1_111, %c0_112, %c0_113] : memref<2x64x32xf32, #tpu.memory_space<vmem>>, vector<1x64x32xf32>
    %227 = vector.shape_cast %226 : vector<1x64x32xf32> to vector<64x32xf32>
    %cst_114 = arith.constant dense<0.000000e+00> : vector<16x64xf32>
    %228 = tpu.matmul %225, %227, %cst_114 {dimension_numbers = #tpu.dot_dimension_numbers<[1], [1], [0], [0], [0, 0, 1, 0], [], []>} : vector<16x32xf32>, vector<64x32xf32>, vector<16x64xf32> -> vector<16x64xf32>
    %229 = arith.negf %228 : vector<16x64xf32>
    %230 = math.exp %229 : vector<16x64xf32>
    %cst_115 = arith.constant 1.000000e+00 : f32
    %231 = vector.broadcast %cst_115 : f32 to vector<16x64xf32>
    %232 = arith.addf %231, %230 : vector<16x64xf32>
    %233 = arith.divf %231, %232 : vector<16x64xf32>
    %234 = arith.mulf %228, %233 : vector<16x64xf32>
    %c1_116 = arith.constant 1 : index
    %c0_117 = arith.constant 0 : index
    %c0_118 = arith.constant 0 : index
    %235 = vector.load %arg11[%c1_116, %c0_117, %c0_118] : memref<2x32x64xf32, #tpu.memory_space<vmem>>, vector<1x32x64xf32>
    %236 = vector.shape_cast %235 : vector<1x32x64xf32> to vector<32x64xf32>
    %cst_119 = arith.constant dense<0.000000e+00> : vector<16x32xf32>
    %237 = tpu.matmul %234, %236, %cst_119 {dimension_numbers = #tpu.dot_dimension_numbers<[1], [1], [0], [0], [0, 0, 1, 0], [], []>} : vector<16x64xf32>, vector<32x64xf32>, vector<16x32xf32> -> vector<16x32xf32>
    %238 = arith.addf %199, %237 : vector<16x32xf32>
    %c0_120 = arith.constant 0 : index
    %c0_121 = arith.constant 0 : index
    %239 = vector.load %arg12[%c0_120, %c0_121] : memref<1x32xf32, #tpu.memory_space<vmem>>, vector<1x32xf32>
    %c0_122 = arith.constant 0 : index
    %c0_123 = arith.constant 0 : index
    %240 = vector.load %arg13[%c0_122, %c0_123] : memref<1x32xf32, #tpu.memory_space<vmem>>, vector<1x32xf32>
    %cst_124 = arith.constant dense<0.000000e+00> : vector<16xf32>
    %241 = vector.multi_reduction <add>, %238, %cst_124 [1] : vector<16x32xf32> to vector<16xf32>
    %242 = vector.shape_cast %241 : vector<16xf32> to vector<16x1xf32>
    %cst_125 = arith.constant 3.200000e+01 : f32
    %243 = vector.broadcast %cst_125 : f32 to vector<16x1xf32>
    %244 = arith.divf %242, %243 : vector<16x1xf32>
    %245 = vector.broadcast %244 : vector<16x1xf32> to vector<16x32xf32>
    %246 = arith.subf %238, %245 : vector<16x32xf32>
    %247 = arith.mulf %246, %246 : vector<16x32xf32>
    %cst_126 = arith.constant dense<0.000000e+00> : vector<16xf32>
    %248 = vector.multi_reduction <add>, %247, %cst_126 [1] : vector<16x32xf32> to vector<16xf32>
    %249 = vector.shape_cast %248 : vector<16xf32> to vector<16x1xf32>
    %cst_127 = arith.constant 3.200000e+01 : f32
    %250 = vector.broadcast %cst_127 : f32 to vector<16x1xf32>
    %251 = arith.divf %249, %250 : vector<16x1xf32>
    %252 = vector.broadcast %244 : vector<16x1xf32> to vector<16x32xf32>
    %253 = arith.subf %238, %252 : vector<16x32xf32>
    %cst_128 = arith.constant 9.99999974E-6 : f32
    %254 = vector.broadcast %cst_128 : f32 to vector<16x1xf32>
    %255 = arith.addf %251, %254 : vector<16x1xf32>
    %256 = math.rsqrt %255 : vector<16x1xf32>
    %257 = vector.broadcast %256 : vector<16x1xf32> to vector<16x32xf32>
    %258 = arith.mulf %253, %257 : vector<16x32xf32>
    %259 = vector.broadcast %239 : vector<1x32xf32> to vector<16x32xf32>
    %260 = arith.mulf %258, %259 : vector<16x32xf32>
    %261 = vector.broadcast %240 : vector<1x32xf32> to vector<16x32xf32>
    %262 = arith.addf %260, %261 : vector<16x32xf32>
    %263 = tpu.iota {dimensions = array<i32: 0>} : vector<8x8xi32>
    %264 = tpu.iota {dimensions = array<i32: 1>} : vector<8x8xi32>
    %265 = arith.cmpi sgt, %264, %263 : vector<8x8xi32>
    %cst_129 = arith.constant -1.000000e+30 : f32
    %cst_130 = arith.constant 0.000000e+00 : f32
    %266 = vector.broadcast %cst_129 : f32 to vector<8x8xf32>
    %267 = vector.broadcast %cst_130 : f32 to vector<8x8xf32>
    %268 = arith.select %265, %266, %267 : vector<8x8xi1>, vector<8x8xf32>
    %c0_131 = arith.constant 0 : index
    %c0_132 = arith.constant 0 : index
    %269 = vector.load %arg1[%c0_131, %c0_132] : memref<16x32xf32, #tpu.memory_space<vmem>>, vector<16x32xf32>
    %c0_133 = arith.constant 0 : index
    %c0_134 = arith.constant 0 : index
    %c0_135 = arith.constant 0 : index
    %270 = vector.load %arg14[%c0_133, %c0_134, %c0_135] : memref<2x1x32xf32, #tpu.memory_space<vmem>>, vector<1x1x32xf32>
    %271 = vector.shape_cast %270 : vector<1x1x32xf32> to vector<1x32xf32>
    %c0_136 = arith.constant 0 : index
    %c0_137 = arith.constant 0 : index
    %c0_138 = arith.constant 0 : index
    %272 = vector.load %arg15[%c0_136, %c0_137, %c0_138] : memref<2x1x32xf32, #tpu.memory_space<vmem>>, vector<1x1x32xf32>
    %273 = vector.shape_cast %272 : vector<1x1x32xf32> to vector<1x32xf32>
    %cst_139 = arith.constant dense<0.000000e+00> : vector<16xf32>
    %274 = vector.multi_reduction <add>, %269, %cst_139 [1] : vector<16x32xf32> to vector<16xf32>
    %275 = vector.shape_cast %274 : vector<16xf32> to vector<16x1xf32>
    %cst_140 = arith.constant 3.200000e+01 : f32
    %276 = vector.broadcast %cst_140 : f32 to vector<16x1xf32>
    %277 = arith.divf %275, %276 : vector<16x1xf32>
    %278 = vector.broadcast %277 : vector<16x1xf32> to vector<16x32xf32>
    %279 = arith.subf %269, %278 : vector<16x32xf32>
    %280 = arith.mulf %279, %279 : vector<16x32xf32>
    %cst_141 = arith.constant dense<0.000000e+00> : vector<16xf32>
    %281 = vector.multi_reduction <add>, %280, %cst_141 [1] : vector<16x32xf32> to vector<16xf32>
    %282 = vector.shape_cast %281 : vector<16xf32> to vector<16x1xf32>
    %cst_142 = arith.constant 3.200000e+01 : f32
    %283 = vector.broadcast %cst_142 : f32 to vector<16x1xf32>
    %284 = arith.divf %282, %283 : vector<16x1xf32>
    %285 = vector.broadcast %277 : vector<16x1xf32> to vector<16x32xf32>
    %286 = arith.subf %269, %285 : vector<16x32xf32>
    %cst_143 = arith.constant 9.99999974E-6 : f32
    %287 = vector.broadcast %cst_143 : f32 to vector<16x1xf32>
    %288 = arith.addf %284, %287 : vector<16x1xf32>
    %289 = math.rsqrt %288 : vector<16x1xf32>
    %290 = vector.broadcast %289 : vector<16x1xf32> to vector<16x32xf32>
    %291 = arith.mulf %286, %290 : vector<16x32xf32>
    %292 = vector.broadcast %271 : vector<1x32xf32> to vector<16x32xf32>
    %293 = arith.mulf %291, %292 : vector<16x32xf32>
    %294 = vector.broadcast %273 : vector<1x32xf32> to vector<16x32xf32>
    %295 = arith.addf %293, %294 : vector<16x32xf32>
    %c0_144 = arith.constant 0 : index
    %c0_145 = arith.constant 0 : index
    %c0_146 = arith.constant 0 : index
    %296 = vector.load %arg16[%c0_144, %c0_145, %c0_146] : memref<8x8x32xf32, #tpu.memory_space<vmem>>, vector<4x8x32xf32>
    %c0_147 = arith.constant 0 : index
    %c0_148 = arith.constant 0 : index
    %c0_149 = arith.constant 0 : index
    %297 = vector.load %arg17[%c0_147, %c0_148, %c0_149] : memref<8x8x32xf32, #tpu.memory_space<vmem>>, vector<4x8x32xf32>
    %c0_150 = arith.constant 0 : index
    %c0_151 = arith.constant 0 : index
    %c0_152 = arith.constant 0 : index
    %298 = vector.load %arg18[%c0_150, %c0_151, %c0_152] : memref<8x8x32xf32, #tpu.memory_space<vmem>>, vector<4x8x32xf32>
    %c0_153 = arith.constant 0 : index
    %c0_154 = arith.constant 0 : index
    %c0_155 = arith.constant 0 : index
    %299 = vector.load %arg19[%c0_153, %c0_154, %c0_155] : memref<8x32x8xf32, #tpu.memory_space<vmem>>, vector<4x32x8xf32>
    %300 = vector.extract_strided_slice %295 {offsets = [0, 0], sizes = [8, 32], strides = [1, 1]} : vector<16x32xf32> to vector<8x32xf32>
    %301 = vector.extract_strided_slice %295 {offsets = [0, 0], sizes = [8, 32], strides = [1, 1]} : vector<16x32xf32> to vector<8x32xf32>
    %302 = vector.shape_cast %300 : vector<8x32xf32> to vector<1x8x32xf32>
    %303 = vector.shape_cast %302 : vector<1x8x32xf32> to vector<1x8x32xf32>
    %304 = vector.broadcast %303 : vector<1x8x32xf32> to vector<4x8x32xf32>
    %305 = vector.shape_cast %301 : vector<8x32xf32> to vector<1x8x32xf32>
    %306 = vector.shape_cast %305 : vector<1x8x32xf32> to vector<1x8x32xf32>
    %307 = vector.broadcast %306 : vector<1x8x32xf32> to vector<4x8x32xf32>
    "tpu.trace_start"() <{level = 10 : i32, message = "hsd,hed->hse"}> : () -> ()
    %cst_156 = arith.constant dense<0.000000e+00> : vector<4x8x8xf32>
    %308 = tpu.matmul %304, %296, %cst_156 {dimension_numbers = #tpu.dot_dimension_numbers<[2], [2], [1], [1], [0, 0, 0, 1, 1, 1], [0], [0]>} : vector<4x8x32xf32>, vector<4x8x32xf32>, vector<4x8x8xf32> -> vector<4x8x8xf32>
    %cst_157 = arith.constant dense<0.000000e+00> : vector<4x8x8xf32>
    %309 = tpu.matmul %307, %297, %cst_157 {dimension_numbers = #tpu.dot_dimension_numbers<[2], [2], [1], [1], [0, 0, 0, 1, 1, 1], [0], [0]>} : vector<4x8x32xf32>, vector<4x8x32xf32>, vector<4x8x8xf32> -> vector<4x8x8xf32>
    %cst_158 = arith.constant dense<0.000000e+00> : vector<4x8x8xf32>
    %310 = tpu.matmul %307, %298, %cst_158 {dimension_numbers = #tpu.dot_dimension_numbers<[2], [2], [1], [1], [0, 0, 0, 1, 1, 1], [0], [0]>} : vector<4x8x32xf32>, vector<4x8x32xf32>, vector<4x8x8xf32> -> vector<4x8x8xf32>
    "tpu.trace_stop"() : () -> ()
    "tpu.trace_start"() <{level = 10 : i32, message = "hqe,hke->hqk"}> : () -> ()
    %cst_159 = arith.constant dense<0.000000e+00> : vector<4x8x8xf32>
    %311 = tpu.matmul %308, %309, %cst_159 {dimension_numbers = #tpu.dot_dimension_numbers<[2], [2], [1], [1], [0, 0, 0, 1, 1, 1], [0], [0]>} : vector<4x8x8xf32>, vector<4x8x8xf32>, vector<4x8x8xf32> -> vector<4x8x8xf32>
    "tpu.trace_stop"() : () -> ()
    %312 = vector.shape_cast %268 : vector<8x8xf32> to vector<1x8x8xf32>
    %313 = vector.broadcast %312 : vector<1x8x8xf32> to vector<4x8x8xf32>
    %314 = arith.addf %311, %313 : vector<4x8x8xf32>
    %cst_160 = arith.constant dense<0xFF800000> : vector<4x8xf32>
    %315 = vector.multi_reduction <maximumf>, %314, %cst_160 [2] : vector<4x8x8xf32> to vector<4x8xf32>
    %316 = vector.shape_cast %315 : vector<4x8xf32> to vector<4x8x1xf32>
    %317 = vector.broadcast %316 : vector<4x8x1xf32> to vector<4x8x8xf32>
    %318 = arith.subf %314, %317 : vector<4x8x8xf32>
    %319 = math.exp %318 : vector<4x8x8xf32>
    %cst_161 = arith.constant dense<0.000000e+00> : vector<4x8xf32>
    %320 = vector.multi_reduction <add>, %319, %cst_161 [2] : vector<4x8x8xf32> to vector<4x8xf32>
    %321 = vector.shape_cast %320 : vector<4x8xf32> to vector<4x8x1xf32>
    %322 = vector.broadcast %321 : vector<4x8x1xf32> to vector<4x8x8xf32>
    %323 = arith.divf %319, %322 : vector<4x8x8xf32>
    "tpu.trace_start"() <{level = 10 : i32, message = "hqk,hke->hqe"}> : () -> ()
    %cst_162 = arith.constant dense<0.000000e+00> : vector<4x8x8xf32>
    %324 = tpu.matmul %323, %310, %cst_162 {dimension_numbers = #tpu.dot_dimension_numbers<[2], [1], [1], [2], [0, 0, 0, 1, 1, 2], [0], [0]>} : vector<4x8x8xf32>, vector<4x8x8xf32>, vector<4x8x8xf32> -> vector<4x8x8xf32>
    "tpu.trace_stop"() : () -> ()
    "tpu.trace_start"() <{level = 10 : i32, message = "hqe,hde->hqd"}> : () -> ()
    %cst_163 = arith.constant dense<0.000000e+00> : vector<4x8x32xf32>
    %325 = tpu.matmul %324, %299, %cst_163 {dimension_numbers = #tpu.dot_dimension_numbers<[2], [2], [1], [1], [0, 0, 0, 1, 1, 1], [0], [0]>} : vector<4x8x8xf32>, vector<4x32x8xf32>, vector<4x8x32xf32> -> vector<4x8x32xf32>
    "tpu.trace_stop"() : () -> ()
    %cst_164 = arith.constant dense<0.000000e+00> : vector<8x32xf32>
    %326 = vector.multi_reduction <add>, %325, %cst_164 [0] : vector<4x8x32xf32> to vector<8x32xf32>
    %327 = vector.extract_strided_slice %295 {offsets = [8, 0], sizes = [8, 32], strides = [1, 1]} : vector<16x32xf32> to vector<8x32xf32>
    %328 = vector.extract_strided_slice %295 {offsets = [8, 0], sizes = [8, 32], strides = [1, 1]} : vector<16x32xf32> to vector<8x32xf32>
    %329 = vector.shape_cast %327 : vector<8x32xf32> to vector<1x8x32xf32>
    %330 = vector.shape_cast %329 : vector<1x8x32xf32> to vector<1x8x32xf32>
    %331 = vector.broadcast %330 : vector<1x8x32xf32> to vector<4x8x32xf32>
    %332 = vector.shape_cast %328 : vector<8x32xf32> to vector<1x8x32xf32>
    %333 = vector.shape_cast %332 : vector<1x8x32xf32> to vector<1x8x32xf32>
    %334 = vector.broadcast %333 : vector<1x8x32xf32> to vector<4x8x32xf32>
    "tpu.trace_start"() <{level = 10 : i32, message = "hsd,hed->hse"}> : () -> ()
    %cst_165 = arith.constant dense<0.000000e+00> : vector<4x8x8xf32>
    %335 = tpu.matmul %331, %296, %cst_165 {dimension_numbers = #tpu.dot_dimension_numbers<[2], [2], [1], [1], [0, 0, 0, 1, 1, 1], [0], [0]>} : vector<4x8x32xf32>, vector<4x8x32xf32>, vector<4x8x8xf32> -> vector<4x8x8xf32>
    %cst_166 = arith.constant dense<0.000000e+00> : vector<4x8x8xf32>
    %336 = tpu.matmul %334, %297, %cst_166 {dimension_numbers = #tpu.dot_dimension_numbers<[2], [2], [1], [1], [0, 0, 0, 1, 1, 1], [0], [0]>} : vector<4x8x32xf32>, vector<4x8x32xf32>, vector<4x8x8xf32> -> vector<4x8x8xf32>
    %cst_167 = arith.constant dense<0.000000e+00> : vector<4x8x8xf32>
    %337 = tpu.matmul %334, %298, %cst_167 {dimension_numbers = #tpu.dot_dimension_numbers<[2], [2], [1], [1], [0, 0, 0, 1, 1, 1], [0], [0]>} : vector<4x8x32xf32>, vector<4x8x32xf32>, vector<4x8x8xf32> -> vector<4x8x8xf32>
    "tpu.trace_stop"() : () -> ()
    "tpu.trace_start"() <{level = 10 : i32, message = "hqe,hke->hqk"}> : () -> ()
    %cst_168 = arith.constant dense<0.000000e+00> : vector<4x8x8xf32>
    %338 = tpu.matmul %335, %336, %cst_168 {dimension_numbers = #tpu.dot_dimension_numbers<[2], [2], [1], [1], [0, 0, 0, 1, 1, 1], [0], [0]>} : vector<4x8x8xf32>, vector<4x8x8xf32>, vector<4x8x8xf32> -> vector<4x8x8xf32>
    "tpu.trace_stop"() : () -> ()
    %339 = vector.shape_cast %268 : vector<8x8xf32> to vector<1x8x8xf32>
    %340 = vector.broadcast %339 : vector<1x8x8xf32> to vector<4x8x8xf32>
    %341 = arith.addf %338, %340 : vector<4x8x8xf32>
    %cst_169 = arith.constant dense<0xFF800000> : vector<4x8xf32>
    %342 = vector.multi_reduction <maximumf>, %341, %cst_169 [2] : vector<4x8x8xf32> to vector<4x8xf32>
    %343 = vector.shape_cast %342 : vector<4x8xf32> to vector<4x8x1xf32>
    %344 = vector.broadcast %343 : vector<4x8x1xf32> to vector<4x8x8xf32>
    %345 = arith.subf %341, %344 : vector<4x8x8xf32>
    %346 = math.exp %345 : vector<4x8x8xf32>
    %cst_170 = arith.constant dense<0.000000e+00> : vector<4x8xf32>
    %347 = vector.multi_reduction <add>, %346, %cst_170 [2] : vector<4x8x8xf32> to vector<4x8xf32>
    %348 = vector.shape_cast %347 : vector<4x8xf32> to vector<4x8x1xf32>
    %349 = vector.broadcast %348 : vector<4x8x1xf32> to vector<4x8x8xf32>
    %350 = arith.divf %346, %349 : vector<4x8x8xf32>
    "tpu.trace_start"() <{level = 10 : i32, message = "hqk,hke->hqe"}> : () -> ()
    %cst_171 = arith.constant dense<0.000000e+00> : vector<4x8x8xf32>
    %351 = tpu.matmul %350, %337, %cst_171 {dimension_numbers = #tpu.dot_dimension_numbers<[2], [1], [1], [2], [0, 0, 0, 1, 1, 2], [0], [0]>} : vector<4x8x8xf32>, vector<4x8x8xf32>, vector<4x8x8xf32> -> vector<4x8x8xf32>
    "tpu.trace_stop"() : () -> ()
    "tpu.trace_start"() <{level = 10 : i32, message = "hqe,hde->hqd"}> : () -> ()
    %cst_172 = arith.constant dense<0.000000e+00> : vector<4x8x32xf32>
    %352 = tpu.matmul %351, %299, %cst_172 {dimension_numbers = #tpu.dot_dimension_numbers<[2], [2], [1], [1], [0, 0, 0, 1, 1, 1], [0], [0]>} : vector<4x8x8xf32>, vector<4x32x8xf32>, vector<4x8x32xf32> -> vector<4x8x32xf32>
    "tpu.trace_stop"() : () -> ()
    %cst_173 = arith.constant dense<0.000000e+00> : vector<8x32xf32>
    %353 = vector.multi_reduction <add>, %352, %cst_173 [0] : vector<4x8x32xf32> to vector<8x32xf32>
    %354 = tpu.concatenate %326, %353 in 0 : vector<8x32xf32>, vector<8x32xf32> -> vector<16x32xf32>
    %355 = arith.addf %269, %354 : vector<16x32xf32>
    %c0_174 = arith.constant 0 : index
    %c0_175 = arith.constant 0 : index
    %c0_176 = arith.constant 0 : index
    %356 = vector.load %arg20[%c0_174, %c0_175, %c0_176] : memref<2x1x32xf32, #tpu.memory_space<vmem>>, vector<1x1x32xf32>
    %357 = vector.shape_cast %356 : vector<1x1x32xf32> to vector<1x32xf32>
    %c0_177 = arith.constant 0 : index
    %c0_178 = arith.constant 0 : index
    %c0_179 = arith.constant 0 : index
    %358 = vector.load %arg21[%c0_177, %c0_178, %c0_179] : memref<2x1x32xf32, #tpu.memory_space<vmem>>, vector<1x1x32xf32>
    %359 = vector.shape_cast %358 : vector<1x1x32xf32> to vector<1x32xf32>
    %cst_180 = arith.constant dense<0.000000e+00> : vector<16xf32>
    %360 = vector.multi_reduction <add>, %355, %cst_180 [1] : vector<16x32xf32> to vector<16xf32>
    %361 = vector.shape_cast %360 : vector<16xf32> to vector<16x1xf32>
    %cst_181 = arith.constant 3.200000e+01 : f32
    %362 = vector.broadcast %cst_181 : f32 to vector<16x1xf32>
    %363 = arith.divf %361, %362 : vector<16x1xf32>
    %364 = vector.broadcast %363 : vector<16x1xf32> to vector<16x32xf32>
    %365 = arith.subf %355, %364 : vector<16x32xf32>
    %366 = arith.mulf %365, %365 : vector<16x32xf32>
    %cst_182 = arith.constant dense<0.000000e+00> : vector<16xf32>
    %367 = vector.multi_reduction <add>, %366, %cst_182 [1] : vector<16x32xf32> to vector<16xf32>
    %368 = vector.shape_cast %367 : vector<16xf32> to vector<16x1xf32>
    %cst_183 = arith.constant 3.200000e+01 : f32
    %369 = vector.broadcast %cst_183 : f32 to vector<16x1xf32>
    %370 = arith.divf %368, %369 : vector<16x1xf32>
    %371 = vector.broadcast %363 : vector<16x1xf32> to vector<16x32xf32>
    %372 = arith.subf %355, %371 : vector<16x32xf32>
    %cst_184 = arith.constant 9.99999974E-6 : f32
    %373 = vector.broadcast %cst_184 : f32 to vector<16x1xf32>
    %374 = arith.addf %370, %373 : vector<16x1xf32>
    %375 = math.rsqrt %374 : vector<16x1xf32>
    %376 = vector.broadcast %375 : vector<16x1xf32> to vector<16x32xf32>
    %377 = arith.mulf %372, %376 : vector<16x32xf32>
    %378 = vector.broadcast %357 : vector<1x32xf32> to vector<16x32xf32>
    %379 = arith.mulf %377, %378 : vector<16x32xf32>
    %380 = vector.broadcast %359 : vector<1x32xf32> to vector<16x32xf32>
    %381 = arith.addf %379, %380 : vector<16x32xf32>
    %c0_185 = arith.constant 0 : index
    %c0_186 = arith.constant 0 : index
    %c0_187 = arith.constant 0 : index
    %382 = vector.load %arg22[%c0_185, %c0_186, %c0_187] : memref<8x8x32xf32, #tpu.memory_space<vmem>>, vector<4x8x32xf32>
    %c0_188 = arith.constant 0 : index
    %c0_189 = arith.constant 0 : index
    %c0_190 = arith.constant 0 : index
    %383 = vector.load %arg23[%c0_188, %c0_189, %c0_190] : memref<8x8x32xf32, #tpu.memory_space<vmem>>, vector<4x8x32xf32>
    %c0_191 = arith.constant 0 : index
    %c0_192 = arith.constant 0 : index
    %c0_193 = arith.constant 0 : index
    %384 = vector.load %arg24[%c0_191, %c0_192, %c0_193] : memref<8x8x32xf32, #tpu.memory_space<vmem>>, vector<4x8x32xf32>
    %c0_194 = arith.constant 0 : index
    %c0_195 = arith.constant 0 : index
    %c0_196 = arith.constant 0 : index
    %385 = vector.load %arg25[%c0_194, %c0_195, %c0_196] : memref<8x32x8xf32, #tpu.memory_space<vmem>>, vector<4x32x8xf32>
    %386 = vector.extract_strided_slice %381 {offsets = [0, 0], sizes = [8, 32], strides = [1, 1]} : vector<16x32xf32> to vector<8x32xf32>
    %387 = vector.extract_strided_slice %262 {offsets = [0, 0], sizes = [8, 32], strides = [1, 1]} : vector<16x32xf32> to vector<8x32xf32>
    %388 = vector.shape_cast %386 : vector<8x32xf32> to vector<1x8x32xf32>
    %389 = vector.shape_cast %388 : vector<1x8x32xf32> to vector<1x8x32xf32>
    %390 = vector.broadcast %389 : vector<1x8x32xf32> to vector<4x8x32xf32>
    %391 = vector.shape_cast %387 : vector<8x32xf32> to vector<1x8x32xf32>
    %392 = vector.shape_cast %391 : vector<1x8x32xf32> to vector<1x8x32xf32>
    %393 = vector.broadcast %392 : vector<1x8x32xf32> to vector<4x8x32xf32>
    "tpu.trace_start"() <{level = 10 : i32, message = "hsd,hed->hse"}> : () -> ()
    %cst_197 = arith.constant dense<0.000000e+00> : vector<4x8x8xf32>
    %394 = tpu.matmul %390, %382, %cst_197 {dimension_numbers = #tpu.dot_dimension_numbers<[2], [2], [1], [1], [0, 0, 0, 1, 1, 1], [0], [0]>} : vector<4x8x32xf32>, vector<4x8x32xf32>, vector<4x8x8xf32> -> vector<4x8x8xf32>
    %cst_198 = arith.constant dense<0.000000e+00> : vector<4x8x8xf32>
    %395 = tpu.matmul %393, %383, %cst_198 {dimension_numbers = #tpu.dot_dimension_numbers<[2], [2], [1], [1], [0, 0, 0, 1, 1, 1], [0], [0]>} : vector<4x8x32xf32>, vector<4x8x32xf32>, vector<4x8x8xf32> -> vector<4x8x8xf32>
    %cst_199 = arith.constant dense<0.000000e+00> : vector<4x8x8xf32>
    %396 = tpu.matmul %393, %384, %cst_199 {dimension_numbers = #tpu.dot_dimension_numbers<[2], [2], [1], [1], [0, 0, 0, 1, 1, 1], [0], [0]>} : vector<4x8x32xf32>, vector<4x8x32xf32>, vector<4x8x8xf32> -> vector<4x8x8xf32>
    "tpu.trace_stop"() : () -> ()
    "tpu.trace_start"() <{level = 10 : i32, message = "hqe,hke->hqk"}> : () -> ()
    %cst_200 = arith.constant dense<0.000000e+00> : vector<4x8x8xf32>
    %397 = tpu.matmul %394, %395, %cst_200 {dimension_numbers = #tpu.dot_dimension_numbers<[2], [2], [1], [1], [0, 0, 0, 1, 1, 1], [0], [0]>} : vector<4x8x8xf32>, vector<4x8x8xf32>, vector<4x8x8xf32> -> vector<4x8x8xf32>
    "tpu.trace_stop"() : () -> ()
    %cst_201 = arith.constant dense<0xFF800000> : vector<4x8xf32>
    %398 = vector.multi_reduction <maximumf>, %397, %cst_201 [2] : vector<4x8x8xf32> to vector<4x8xf32>
    %399 = vector.shape_cast %398 : vector<4x8xf32> to vector<4x8x1xf32>
    %400 = vector.broadcast %399 : vector<4x8x1xf32> to vector<4x8x8xf32>
    %401 = arith.subf %397, %400 : vector<4x8x8xf32>
    %402 = math.exp %401 : vector<4x8x8xf32>
    %cst_202 = arith.constant dense<0.000000e+00> : vector<4x8xf32>
    %403 = vector.multi_reduction <add>, %402, %cst_202 [2] : vector<4x8x8xf32> to vector<4x8xf32>
    %404 = vector.shape_cast %403 : vector<4x8xf32> to vector<4x8x1xf32>
    %405 = vector.broadcast %404 : vector<4x8x1xf32> to vector<4x8x8xf32>
    %406 = arith.divf %402, %405 : vector<4x8x8xf32>
    "tpu.trace_start"() <{level = 10 : i32, message = "hqk,hke->hqe"}> : () -> ()
    %cst_203 = arith.constant dense<0.000000e+00> : vector<4x8x8xf32>
    %407 = tpu.matmul %406, %396, %cst_203 {dimension_numbers = #tpu.dot_dimension_numbers<[2], [1], [1], [2], [0, 0, 0, 1, 1, 2], [0], [0]>} : vector<4x8x8xf32>, vector<4x8x8xf32>, vector<4x8x8xf32> -> vector<4x8x8xf32>
    "tpu.trace_stop"() : () -> ()
    "tpu.trace_start"() <{level = 10 : i32, message = "hqe,hde->hqd"}> : () -> ()
    %cst_204 = arith.constant dense<0.000000e+00> : vector<4x8x32xf32>
    %408 = tpu.matmul %407, %385, %cst_204 {dimension_numbers = #tpu.dot_dimension_numbers<[2], [2], [1], [1], [0, 0, 0, 1, 1, 1], [0], [0]>} : vector<4x8x8xf32>, vector<4x32x8xf32>, vector<4x8x32xf32> -> vector<4x8x32xf32>
    "tpu.trace_stop"() : () -> ()
    %cst_205 = arith.constant dense<0.000000e+00> : vector<8x32xf32>
    %409 = vector.multi_reduction <add>, %408, %cst_205 [0] : vector<4x8x32xf32> to vector<8x32xf32>
    %410 = vector.extract_strided_slice %381 {offsets = [8, 0], sizes = [8, 32], strides = [1, 1]} : vector<16x32xf32> to vector<8x32xf32>
    %411 = vector.extract_strided_slice %262 {offsets = [8, 0], sizes = [8, 32], strides = [1, 1]} : vector<16x32xf32> to vector<8x32xf32>
    %412 = vector.shape_cast %410 : vector<8x32xf32> to vector<1x8x32xf32>
    %413 = vector.shape_cast %412 : vector<1x8x32xf32> to vector<1x8x32xf32>
    %414 = vector.broadcast %413 : vector<1x8x32xf32> to vector<4x8x32xf32>
    %415 = vector.shape_cast %411 : vector<8x32xf32> to vector<1x8x32xf32>
    %416 = vector.shape_cast %415 : vector<1x8x32xf32> to vector<1x8x32xf32>
    %417 = vector.broadcast %416 : vector<1x8x32xf32> to vector<4x8x32xf32>
    "tpu.trace_start"() <{level = 10 : i32, message = "hsd,hed->hse"}> : () -> ()
    %cst_206 = arith.constant dense<0.000000e+00> : vector<4x8x8xf32>
    %418 = tpu.matmul %414, %382, %cst_206 {dimension_numbers = #tpu.dot_dimension_numbers<[2], [2], [1], [1], [0, 0, 0, 1, 1, 1], [0], [0]>} : vector<4x8x32xf32>, vector<4x8x32xf32>, vector<4x8x8xf32> -> vector<4x8x8xf32>
    %cst_207 = arith.constant dense<0.000000e+00> : vector<4x8x8xf32>
    %419 = tpu.matmul %417, %383, %cst_207 {dimension_numbers = #tpu.dot_dimension_numbers<[2], [2], [1], [1], [0, 0, 0, 1, 1, 1], [0], [0]>} : vector<4x8x32xf32>, vector<4x8x32xf32>, vector<4x8x8xf32> -> vector<4x8x8xf32>
    %cst_208 = arith.constant dense<0.000000e+00> : vector<4x8x8xf32>
    %420 = tpu.matmul %417, %384, %cst_208 {dimension_numbers = #tpu.dot_dimension_numbers<[2], [2], [1], [1], [0, 0, 0, 1, 1, 1], [0], [0]>} : vector<4x8x32xf32>, vector<4x8x32xf32>, vector<4x8x8xf32> -> vector<4x8x8xf32>
    "tpu.trace_stop"() : () -> ()
    "tpu.trace_start"() <{level = 10 : i32, message = "hqe,hke->hqk"}> : () -> ()
    %cst_209 = arith.constant dense<0.000000e+00> : vector<4x8x8xf32>
    %421 = tpu.matmul %418, %419, %cst_209 {dimension_numbers = #tpu.dot_dimension_numbers<[2], [2], [1], [1], [0, 0, 0, 1, 1, 1], [0], [0]>} : vector<4x8x8xf32>, vector<4x8x8xf32>, vector<4x8x8xf32> -> vector<4x8x8xf32>
    "tpu.trace_stop"() : () -> ()
    %cst_210 = arith.constant dense<0xFF800000> : vector<4x8xf32>
    %422 = vector.multi_reduction <maximumf>, %421, %cst_210 [2] : vector<4x8x8xf32> to vector<4x8xf32>
    %423 = vector.shape_cast %422 : vector<4x8xf32> to vector<4x8x1xf32>
    %424 = vector.broadcast %423 : vector<4x8x1xf32> to vector<4x8x8xf32>
    %425 = arith.subf %421, %424 : vector<4x8x8xf32>
    %426 = math.exp %425 : vector<4x8x8xf32>
    %cst_211 = arith.constant dense<0.000000e+00> : vector<4x8xf32>
    %427 = vector.multi_reduction <add>, %426, %cst_211 [2] : vector<4x8x8xf32> to vector<4x8xf32>
    %428 = vector.shape_cast %427 : vector<4x8xf32> to vector<4x8x1xf32>
    %429 = vector.broadcast %428 : vector<4x8x1xf32> to vector<4x8x8xf32>
    %430 = arith.divf %426, %429 : vector<4x8x8xf32>
    "tpu.trace_start"() <{level = 10 : i32, message = "hqk,hke->hqe"}> : () -> ()
    %cst_212 = arith.constant dense<0.000000e+00> : vector<4x8x8xf32>
    %431 = tpu.matmul %430, %420, %cst_212 {dimension_numbers = #tpu.dot_dimension_numbers<[2], [1], [1], [2], [0, 0, 0, 1, 1, 2], [0], [0]>} : vector<4x8x8xf32>, vector<4x8x8xf32>, vector<4x8x8xf32> -> vector<4x8x8xf32>
    "tpu.trace_stop"() : () -> ()
    "tpu.trace_start"() <{level = 10 : i32, message = "hqe,hde->hqd"}> : () -> ()
    %cst_213 = arith.constant dense<0.000000e+00> : vector<4x8x32xf32>
    %432 = tpu.matmul %431, %385, %cst_213 {dimension_numbers = #tpu.dot_dimension_numbers<[2], [2], [1], [1], [0, 0, 0, 1, 1, 1], [0], [0]>} : vector<4x8x8xf32>, vector<4x32x8xf32>, vector<4x8x32xf32> -> vector<4x8x32xf32>
    "tpu.trace_stop"() : () -> ()
    %cst_214 = arith.constant dense<0.000000e+00> : vector<8x32xf32>
    %433 = vector.multi_reduction <add>, %432, %cst_214 [0] : vector<4x8x32xf32> to vector<8x32xf32>
    %434 = tpu.concatenate %409, %433 in 0 : vector<8x32xf32>, vector<8x32xf32> -> vector<16x32xf32>
    %435 = arith.addf %355, %434 : vector<16x32xf32>
    %c0_215 = arith.constant 0 : index
    %c0_216 = arith.constant 0 : index
    %c0_217 = arith.constant 0 : index
    %436 = vector.load %arg26[%c0_215, %c0_216, %c0_217] : memref<2x1x32xf32, #tpu.memory_space<vmem>>, vector<1x1x32xf32>
    %437 = vector.shape_cast %436 : vector<1x1x32xf32> to vector<1x32xf32>
    %c0_218 = arith.constant 0 : index
    %c0_219 = arith.constant 0 : index
    %c0_220 = arith.constant 0 : index
    %438 = vector.load %arg27[%c0_218, %c0_219, %c0_220] : memref<2x1x32xf32, #tpu.memory_space<vmem>>, vector<1x1x32xf32>
    %439 = vector.shape_cast %438 : vector<1x1x32xf32> to vector<1x32xf32>
    %cst_221 = arith.constant dense<0.000000e+00> : vector<16xf32>
    %440 = vector.multi_reduction <add>, %435, %cst_221 [1] : vector<16x32xf32> to vector<16xf32>
    %441 = vector.shape_cast %440 : vector<16xf32> to vector<16x1xf32>
    %cst_222 = arith.constant 3.200000e+01 : f32
    %442 = vector.broadcast %cst_222 : f32 to vector<16x1xf32>
    %443 = arith.divf %441, %442 : vector<16x1xf32>
    %444 = vector.broadcast %443 : vector<16x1xf32> to vector<16x32xf32>
    %445 = arith.subf %435, %444 : vector<16x32xf32>
    %446 = arith.mulf %445, %445 : vector<16x32xf32>
    %cst_223 = arith.constant dense<0.000000e+00> : vector<16xf32>
    %447 = vector.multi_reduction <add>, %446, %cst_223 [1] : vector<16x32xf32> to vector<16xf32>
    %448 = vector.shape_cast %447 : vector<16xf32> to vector<16x1xf32>
    %cst_224 = arith.constant 3.200000e+01 : f32
    %449 = vector.broadcast %cst_224 : f32 to vector<16x1xf32>
    %450 = arith.divf %448, %449 : vector<16x1xf32>
    %451 = vector.broadcast %443 : vector<16x1xf32> to vector<16x32xf32>
    %452 = arith.subf %435, %451 : vector<16x32xf32>
    %cst_225 = arith.constant 9.99999974E-6 : f32
    %453 = vector.broadcast %cst_225 : f32 to vector<16x1xf32>
    %454 = arith.addf %450, %453 : vector<16x1xf32>
    %455 = math.rsqrt %454 : vector<16x1xf32>
    %456 = vector.broadcast %455 : vector<16x1xf32> to vector<16x32xf32>
    %457 = arith.mulf %452, %456 : vector<16x32xf32>
    %458 = vector.broadcast %437 : vector<1x32xf32> to vector<16x32xf32>
    %459 = arith.mulf %457, %458 : vector<16x32xf32>
    %460 = vector.broadcast %439 : vector<1x32xf32> to vector<16x32xf32>
    %461 = arith.addf %459, %460 : vector<16x32xf32>
    %c0_226 = arith.constant 0 : index
    %c0_227 = arith.constant 0 : index
    %c0_228 = arith.constant 0 : index
    %462 = vector.load %arg28[%c0_226, %c0_227, %c0_228] : memref<2x64x32xf32, #tpu.memory_space<vmem>>, vector<1x64x32xf32>
    %463 = vector.shape_cast %462 : vector<1x64x32xf32> to vector<64x32xf32>
    %cst_229 = arith.constant dense<0.000000e+00> : vector<16x64xf32>
    %464 = tpu.matmul %461, %463, %cst_229 {dimension_numbers = #tpu.dot_dimension_numbers<[1], [1], [0], [0], [0, 0, 1, 0], [], []>} : vector<16x32xf32>, vector<64x32xf32>, vector<16x64xf32> -> vector<16x64xf32>
    %465 = arith.negf %464 : vector<16x64xf32>
    %466 = math.exp %465 : vector<16x64xf32>
    %cst_230 = arith.constant 1.000000e+00 : f32
    %467 = vector.broadcast %cst_230 : f32 to vector<16x64xf32>
    %468 = arith.addf %467, %466 : vector<16x64xf32>
    %469 = arith.divf %467, %468 : vector<16x64xf32>
    %470 = arith.mulf %464, %469 : vector<16x64xf32>
    %c0_231 = arith.constant 0 : index
    %c0_232 = arith.constant 0 : index
    %c0_233 = arith.constant 0 : index
    %471 = vector.load %arg29[%c0_231, %c0_232, %c0_233] : memref<2x32x64xf32, #tpu.memory_space<vmem>>, vector<1x32x64xf32>
    %472 = vector.shape_cast %471 : vector<1x32x64xf32> to vector<32x64xf32>
    %cst_234 = arith.constant dense<0.000000e+00> : vector<16x32xf32>
    %473 = tpu.matmul %470, %472, %cst_234 {dimension_numbers = #tpu.dot_dimension_numbers<[1], [1], [0], [0], [0, 0, 1, 0], [], []>} : vector<16x64xf32>, vector<32x64xf32>, vector<16x32xf32> -> vector<16x32xf32>
    %474 = arith.addf %435, %473 : vector<16x32xf32>
    %c1_235 = arith.constant 1 : index
    %c0_236 = arith.constant 0 : index
    %c0_237 = arith.constant 0 : index
    %475 = vector.load %arg14[%c1_235, %c0_236, %c0_237] : memref<2x1x32xf32, #tpu.memory_space<vmem>>, vector<1x1x32xf32>
    %476 = vector.shape_cast %475 : vector<1x1x32xf32> to vector<1x32xf32>
    %c1_238 = arith.constant 1 : index
    %c0_239 = arith.constant 0 : index
    %c0_240 = arith.constant 0 : index
    %477 = vector.load %arg15[%c1_238, %c0_239, %c0_240] : memref<2x1x32xf32, #tpu.memory_space<vmem>>, vector<1x1x32xf32>
    %478 = vector.shape_cast %477 : vector<1x1x32xf32> to vector<1x32xf32>
    %cst_241 = arith.constant dense<0.000000e+00> : vector<16xf32>
    %479 = vector.multi_reduction <add>, %474, %cst_241 [1] : vector<16x32xf32> to vector<16xf32>
    %480 = vector.shape_cast %479 : vector<16xf32> to vector<16x1xf32>
    %cst_242 = arith.constant 3.200000e+01 : f32
    %481 = vector.broadcast %cst_242 : f32 to vector<16x1xf32>
    %482 = arith.divf %480, %481 : vector<16x1xf32>
    %483 = vector.broadcast %482 : vector<16x1xf32> to vector<16x32xf32>
    %484 = arith.subf %474, %483 : vector<16x32xf32>
    %485 = arith.mulf %484, %484 : vector<16x32xf32>
    %cst_243 = arith.constant dense<0.000000e+00> : vector<16xf32>
    %486 = vector.multi_reduction <add>, %485, %cst_243 [1] : vector<16x32xf32> to vector<16xf32>
    %487 = vector.shape_cast %486 : vector<16xf32> to vector<16x1xf32>
    %cst_244 = arith.constant 3.200000e+01 : f32
    %488 = vector.broadcast %cst_244 : f32 to vector<16x1xf32>
    %489 = arith.divf %487, %488 : vector<16x1xf32>
    %490 = vector.broadcast %482 : vector<16x1xf32> to vector<16x32xf32>
    %491 = arith.subf %474, %490 : vector<16x32xf32>
    %cst_245 = arith.constant 9.99999974E-6 : f32
    %492 = vector.broadcast %cst_245 : f32 to vector<16x1xf32>
    %493 = arith.addf %489, %492 : vector<16x1xf32>
    %494 = math.rsqrt %493 : vector<16x1xf32>
    %495 = vector.broadcast %494 : vector<16x1xf32> to vector<16x32xf32>
    %496 = arith.mulf %491, %495 : vector<16x32xf32>
    %497 = vector.broadcast %476 : vector<1x32xf32> to vector<16x32xf32>
    %498 = arith.mulf %496, %497 : vector<16x32xf32>
    %499 = vector.broadcast %478 : vector<1x32xf32> to vector<16x32xf32>
    %500 = arith.addf %498, %499 : vector<16x32xf32>
    %c4_246 = arith.constant 4 : index
    %c0_247 = arith.constant 0 : index
    %c0_248 = arith.constant 0 : index
    %501 = vector.load %arg16[%c4_246, %c0_247, %c0_248] : memref<8x8x32xf32, #tpu.memory_space<vmem>>, vector<4x8x32xf32>
    %c4_249 = arith.constant 4 : index
    %c0_250 = arith.constant 0 : index
    %c0_251 = arith.constant 0 : index
    %502 = vector.load %arg17[%c4_249, %c0_250, %c0_251] : memref<8x8x32xf32, #tpu.memory_space<vmem>>, vector<4x8x32xf32>
    %c4_252 = arith.constant 4 : index
    %c0_253 = arith.constant 0 : index
    %c0_254 = arith.constant 0 : index
    %503 = vector.load %arg18[%c4_252, %c0_253, %c0_254] : memref<8x8x32xf32, #tpu.memory_space<vmem>>, vector<4x8x32xf32>
    %c4_255 = arith.constant 4 : index
    %c0_256 = arith.constant 0 : index
    %c0_257 = arith.constant 0 : index
    %504 = vector.load %arg19[%c4_255, %c0_256, %c0_257] : memref<8x32x8xf32, #tpu.memory_space<vmem>>, vector<4x32x8xf32>
    %505 = vector.extract_strided_slice %500 {offsets = [0, 0], sizes = [8, 32], strides = [1, 1]} : vector<16x32xf32> to vector<8x32xf32>
    %506 = vector.extract_strided_slice %500 {offsets = [0, 0], sizes = [8, 32], strides = [1, 1]} : vector<16x32xf32> to vector<8x32xf32>
    %507 = vector.shape_cast %505 : vector<8x32xf32> to vector<1x8x32xf32>
    %508 = vector.shape_cast %507 : vector<1x8x32xf32> to vector<1x8x32xf32>
    %509 = vector.broadcast %508 : vector<1x8x32xf32> to vector<4x8x32xf32>
    %510 = vector.shape_cast %506 : vector<8x32xf32> to vector<1x8x32xf32>
    %511 = vector.shape_cast %510 : vector<1x8x32xf32> to vector<1x8x32xf32>
    %512 = vector.broadcast %511 : vector<1x8x32xf32> to vector<4x8x32xf32>
    "tpu.trace_start"() <{level = 10 : i32, message = "hsd,hed->hse"}> : () -> ()
    %cst_258 = arith.constant dense<0.000000e+00> : vector<4x8x8xf32>
    %513 = tpu.matmul %509, %501, %cst_258 {dimension_numbers = #tpu.dot_dimension_numbers<[2], [2], [1], [1], [0, 0, 0, 1, 1, 1], [0], [0]>} : vector<4x8x32xf32>, vector<4x8x32xf32>, vector<4x8x8xf32> -> vector<4x8x8xf32>
    %cst_259 = arith.constant dense<0.000000e+00> : vector<4x8x8xf32>
    %514 = tpu.matmul %512, %502, %cst_259 {dimension_numbers = #tpu.dot_dimension_numbers<[2], [2], [1], [1], [0, 0, 0, 1, 1, 1], [0], [0]>} : vector<4x8x32xf32>, vector<4x8x32xf32>, vector<4x8x8xf32> -> vector<4x8x8xf32>
    %cst_260 = arith.constant dense<0.000000e+00> : vector<4x8x8xf32>
    %515 = tpu.matmul %512, %503, %cst_260 {dimension_numbers = #tpu.dot_dimension_numbers<[2], [2], [1], [1], [0, 0, 0, 1, 1, 1], [0], [0]>} : vector<4x8x32xf32>, vector<4x8x32xf32>, vector<4x8x8xf32> -> vector<4x8x8xf32>
    "tpu.trace_stop"() : () -> ()
    "tpu.trace_start"() <{level = 10 : i32, message = "hqe,hke->hqk"}> : () -> ()
    %cst_261 = arith.constant dense<0.000000e+00> : vector<4x8x8xf32>
    %516 = tpu.matmul %513, %514, %cst_261 {dimension_numbers = #tpu.dot_dimension_numbers<[2], [2], [1], [1], [0, 0, 0, 1, 1, 1], [0], [0]>} : vector<4x8x8xf32>, vector<4x8x8xf32>, vector<4x8x8xf32> -> vector<4x8x8xf32>
    "tpu.trace_stop"() : () -> ()
    %517 = vector.shape_cast %268 : vector<8x8xf32> to vector<1x8x8xf32>
    %518 = vector.broadcast %517 : vector<1x8x8xf32> to vector<4x8x8xf32>
    %519 = arith.addf %516, %518 : vector<4x8x8xf32>
    %cst_262 = arith.constant dense<0xFF800000> : vector<4x8xf32>
    %520 = vector.multi_reduction <maximumf>, %519, %cst_262 [2] : vector<4x8x8xf32> to vector<4x8xf32>
    %521 = vector.shape_cast %520 : vector<4x8xf32> to vector<4x8x1xf32>
    %522 = vector.broadcast %521 : vector<4x8x1xf32> to vector<4x8x8xf32>
    %523 = arith.subf %519, %522 : vector<4x8x8xf32>
    %524 = math.exp %523 : vector<4x8x8xf32>
    %cst_263 = arith.constant dense<0.000000e+00> : vector<4x8xf32>
    %525 = vector.multi_reduction <add>, %524, %cst_263 [2] : vector<4x8x8xf32> to vector<4x8xf32>
    %526 = vector.shape_cast %525 : vector<4x8xf32> to vector<4x8x1xf32>
    %527 = vector.broadcast %526 : vector<4x8x1xf32> to vector<4x8x8xf32>
    %528 = arith.divf %524, %527 : vector<4x8x8xf32>
    "tpu.trace_start"() <{level = 10 : i32, message = "hqk,hke->hqe"}> : () -> ()
    %cst_264 = arith.constant dense<0.000000e+00> : vector<4x8x8xf32>
    %529 = tpu.matmul %528, %515, %cst_264 {dimension_numbers = #tpu.dot_dimension_numbers<[2], [1], [1], [2], [0, 0, 0, 1, 1, 2], [0], [0]>} : vector<4x8x8xf32>, vector<4x8x8xf32>, vector<4x8x8xf32> -> vector<4x8x8xf32>
    "tpu.trace_stop"() : () -> ()
    "tpu.trace_start"() <{level = 10 : i32, message = "hqe,hde->hqd"}> : () -> ()
    %cst_265 = arith.constant dense<0.000000e+00> : vector<4x8x32xf32>
    %530 = tpu.matmul %529, %504, %cst_265 {dimension_numbers = #tpu.dot_dimension_numbers<[2], [2], [1], [1], [0, 0, 0, 1, 1, 1], [0], [0]>} : vector<4x8x8xf32>, vector<4x32x8xf32>, vector<4x8x32xf32> -> vector<4x8x32xf32>
    "tpu.trace_stop"() : () -> ()
    %cst_266 = arith.constant dense<0.000000e+00> : vector<8x32xf32>
    %531 = vector.multi_reduction <add>, %530, %cst_266 [0] : vector<4x8x32xf32> to vector<8x32xf32>
    %532 = vector.extract_strided_slice %500 {offsets = [8, 0], sizes = [8, 32], strides = [1, 1]} : vector<16x32xf32> to vector<8x32xf32>
    %533 = vector.extract_strided_slice %500 {offsets = [8, 0], sizes = [8, 32], strides = [1, 1]} : vector<16x32xf32> to vector<8x32xf32>
    %534 = vector.shape_cast %532 : vector<8x32xf32> to vector<1x8x32xf32>
    %535 = vector.shape_cast %534 : vector<1x8x32xf32> to vector<1x8x32xf32>
    %536 = vector.broadcast %535 : vector<1x8x32xf32> to vector<4x8x32xf32>
    %537 = vector.shape_cast %533 : vector<8x32xf32> to vector<1x8x32xf32>
    %538 = vector.shape_cast %537 : vector<1x8x32xf32> to vector<1x8x32xf32>
    %539 = vector.broadcast %538 : vector<1x8x32xf32> to vector<4x8x32xf32>
    "tpu.trace_start"() <{level = 10 : i32, message = "hsd,hed->hse"}> : () -> ()
    %cst_267 = arith.constant dense<0.000000e+00> : vector<4x8x8xf32>
    %540 = tpu.matmul %536, %501, %cst_267 {dimension_numbers = #tpu.dot_dimension_numbers<[2], [2], [1], [1], [0, 0, 0, 1, 1, 1], [0], [0]>} : vector<4x8x32xf32>, vector<4x8x32xf32>, vector<4x8x8xf32> -> vector<4x8x8xf32>
    %cst_268 = arith.constant dense<0.000000e+00> : vector<4x8x8xf32>
    %541 = tpu.matmul %539, %502, %cst_268 {dimension_numbers = #tpu.dot_dimension_numbers<[2], [2], [1], [1], [0, 0, 0, 1, 1, 1], [0], [0]>} : vector<4x8x32xf32>, vector<4x8x32xf32>, vector<4x8x8xf32> -> vector<4x8x8xf32>
    %cst_269 = arith.constant dense<0.000000e+00> : vector<4x8x8xf32>
    %542 = tpu.matmul %539, %503, %cst_269 {dimension_numbers = #tpu.dot_dimension_numbers<[2], [2], [1], [1], [0, 0, 0, 1, 1, 1], [0], [0]>} : vector<4x8x32xf32>, vector<4x8x32xf32>, vector<4x8x8xf32> -> vector<4x8x8xf32>
    "tpu.trace_stop"() : () -> ()
    "tpu.trace_start"() <{level = 10 : i32, message = "hqe,hke->hqk"}> : () -> ()
    %cst_270 = arith.constant dense<0.000000e+00> : vector<4x8x8xf32>
    %543 = tpu.matmul %540, %541, %cst_270 {dimension_numbers = #tpu.dot_dimension_numbers<[2], [2], [1], [1], [0, 0, 0, 1, 1, 1], [0], [0]>} : vector<4x8x8xf32>, vector<4x8x8xf32>, vector<4x8x8xf32> -> vector<4x8x8xf32>
    "tpu.trace_stop"() : () -> ()
    %544 = vector.shape_cast %268 : vector<8x8xf32> to vector<1x8x8xf32>
    %545 = vector.broadcast %544 : vector<1x8x8xf32> to vector<4x8x8xf32>
    %546 = arith.addf %543, %545 : vector<4x8x8xf32>
    %cst_271 = arith.constant dense<0xFF800000> : vector<4x8xf32>
    %547 = vector.multi_reduction <maximumf>, %546, %cst_271 [2] : vector<4x8x8xf32> to vector<4x8xf32>
    %548 = vector.shape_cast %547 : vector<4x8xf32> to vector<4x8x1xf32>
    %549 = vector.broadcast %548 : vector<4x8x1xf32> to vector<4x8x8xf32>
    %550 = arith.subf %546, %549 : vector<4x8x8xf32>
    %551 = math.exp %550 : vector<4x8x8xf32>
    %cst_272 = arith.constant dense<0.000000e+00> : vector<4x8xf32>
    %552 = vector.multi_reduction <add>, %551, %cst_272 [2] : vector<4x8x8xf32> to vector<4x8xf32>
    %553 = vector.shape_cast %552 : vector<4x8xf32> to vector<4x8x1xf32>
    %554 = vector.broadcast %553 : vector<4x8x1xf32> to vector<4x8x8xf32>
    %555 = arith.divf %551, %554 : vector<4x8x8xf32>
    "tpu.trace_start"() <{level = 10 : i32, message = "hqk,hke->hqe"}> : () -> ()
    %cst_273 = arith.constant dense<0.000000e+00> : vector<4x8x8xf32>
    %556 = tpu.matmul %555, %542, %cst_273 {dimension_numbers = #tpu.dot_dimension_numbers<[2], [1], [1], [2], [0, 0, 0, 1, 1, 2], [0], [0]>} : vector<4x8x8xf32>, vector<4x8x8xf32>, vector<4x8x8xf32> -> vector<4x8x8xf32>
    "tpu.trace_stop"() : () -> ()
    "tpu.trace_start"() <{level = 10 : i32, message = "hqe,hde->hqd"}> : () -> ()
    %cst_274 = arith.constant dense<0.000000e+00> : vector<4x8x32xf32>
    %557 = tpu.matmul %556, %504, %cst_274 {dimension_numbers = #tpu.dot_dimension_numbers<[2], [2], [1], [1], [0, 0, 0, 1, 1, 1], [0], [0]>} : vector<4x8x8xf32>, vector<4x32x8xf32>, vector<4x8x32xf32> -> vector<4x8x32xf32>
    "tpu.trace_stop"() : () -> ()
    %cst_275 = arith.constant dense<0.000000e+00> : vector<8x32xf32>
    %558 = vector.multi_reduction <add>, %557, %cst_275 [0] : vector<4x8x32xf32> to vector<8x32xf32>
    %559 = tpu.concatenate %531, %558 in 0 : vector<8x32xf32>, vector<8x32xf32> -> vector<16x32xf32>
    %560 = arith.addf %474, %559 : vector<16x32xf32>
    %c1_276 = arith.constant 1 : index
    %c0_277 = arith.constant 0 : index
    %c0_278 = arith.constant 0 : index
    %561 = vector.load %arg20[%c1_276, %c0_277, %c0_278] : memref<2x1x32xf32, #tpu.memory_space<vmem>>, vector<1x1x32xf32>
    %562 = vector.shape_cast %561 : vector<1x1x32xf32> to vector<1x32xf32>
    %c1_279 = arith.constant 1 : index
    %c0_280 = arith.constant 0 : index
    %c0_281 = arith.constant 0 : index
    %563 = vector.load %arg21[%c1_279, %c0_280, %c0_281] : memref<2x1x32xf32, #tpu.memory_space<vmem>>, vector<1x1x32xf32>
    %564 = vector.shape_cast %563 : vector<1x1x32xf32> to vector<1x32xf32>
    %cst_282 = arith.constant dense<0.000000e+00> : vector<16xf32>
    %565 = vector.multi_reduction <add>, %560, %cst_282 [1] : vector<16x32xf32> to vector<16xf32>
    %566 = vector.shape_cast %565 : vector<16xf32> to vector<16x1xf32>
    %cst_283 = arith.constant 3.200000e+01 : f32
    %567 = vector.broadcast %cst_283 : f32 to vector<16x1xf32>
    %568 = arith.divf %566, %567 : vector<16x1xf32>
    %569 = vector.broadcast %568 : vector<16x1xf32> to vector<16x32xf32>
    %570 = arith.subf %560, %569 : vector<16x32xf32>
    %571 = arith.mulf %570, %570 : vector<16x32xf32>
    %cst_284 = arith.constant dense<0.000000e+00> : vector<16xf32>
    %572 = vector.multi_reduction <add>, %571, %cst_284 [1] : vector<16x32xf32> to vector<16xf32>
    %573 = vector.shape_cast %572 : vector<16xf32> to vector<16x1xf32>
    %cst_285 = arith.constant 3.200000e+01 : f32
    %574 = vector.broadcast %cst_285 : f32 to vector<16x1xf32>
    %575 = arith.divf %573, %574 : vector<16x1xf32>
    %576 = vector.broadcast %568 : vector<16x1xf32> to vector<16x32xf32>
    %577 = arith.subf %560, %576 : vector<16x32xf32>
    %cst_286 = arith.constant 9.99999974E-6 : f32
    %578 = vector.broadcast %cst_286 : f32 to vector<16x1xf32>
    %579 = arith.addf %575, %578 : vector<16x1xf32>
    %580 = math.rsqrt %579 : vector<16x1xf32>
    %581 = vector.broadcast %580 : vector<16x1xf32> to vector<16x32xf32>
    %582 = arith.mulf %577, %581 : vector<16x32xf32>
    %583 = vector.broadcast %562 : vector<1x32xf32> to vector<16x32xf32>
    %584 = arith.mulf %582, %583 : vector<16x32xf32>
    %585 = vector.broadcast %564 : vector<1x32xf32> to vector<16x32xf32>
    %586 = arith.addf %584, %585 : vector<16x32xf32>
    %c4_287 = arith.constant 4 : index
    %c0_288 = arith.constant 0 : index
    %c0_289 = arith.constant 0 : index
    %587 = vector.load %arg22[%c4_287, %c0_288, %c0_289] : memref<8x8x32xf32, #tpu.memory_space<vmem>>, vector<4x8x32xf32>
    %c4_290 = arith.constant 4 : index
    %c0_291 = arith.constant 0 : index
    %c0_292 = arith.constant 0 : index
    %588 = vector.load %arg23[%c4_290, %c0_291, %c0_292] : memref<8x8x32xf32, #tpu.memory_space<vmem>>, vector<4x8x32xf32>
    %c4_293 = arith.constant 4 : index
    %c0_294 = arith.constant 0 : index
    %c0_295 = arith.constant 0 : index
    %589 = vector.load %arg24[%c4_293, %c0_294, %c0_295] : memref<8x8x32xf32, #tpu.memory_space<vmem>>, vector<4x8x32xf32>
    %c4_296 = arith.constant 4 : index
    %c0_297 = arith.constant 0 : index
    %c0_298 = arith.constant 0 : index
    %590 = vector.load %arg25[%c4_296, %c0_297, %c0_298] : memref<8x32x8xf32, #tpu.memory_space<vmem>>, vector<4x32x8xf32>
    %591 = vector.extract_strided_slice %586 {offsets = [0, 0], sizes = [8, 32], strides = [1, 1]} : vector<16x32xf32> to vector<8x32xf32>
    %592 = vector.extract_strided_slice %262 {offsets = [0, 0], sizes = [8, 32], strides = [1, 1]} : vector<16x32xf32> to vector<8x32xf32>
    %593 = vector.shape_cast %591 : vector<8x32xf32> to vector<1x8x32xf32>
    %594 = vector.shape_cast %593 : vector<1x8x32xf32> to vector<1x8x32xf32>
    %595 = vector.broadcast %594 : vector<1x8x32xf32> to vector<4x8x32xf32>
    %596 = vector.shape_cast %592 : vector<8x32xf32> to vector<1x8x32xf32>
    %597 = vector.shape_cast %596 : vector<1x8x32xf32> to vector<1x8x32xf32>
    %598 = vector.broadcast %597 : vector<1x8x32xf32> to vector<4x8x32xf32>
    "tpu.trace_start"() <{level = 10 : i32, message = "hsd,hed->hse"}> : () -> ()
    %cst_299 = arith.constant dense<0.000000e+00> : vector<4x8x8xf32>
    %599 = tpu.matmul %595, %587, %cst_299 {dimension_numbers = #tpu.dot_dimension_numbers<[2], [2], [1], [1], [0, 0, 0, 1, 1, 1], [0], [0]>} : vector<4x8x32xf32>, vector<4x8x32xf32>, vector<4x8x8xf32> -> vector<4x8x8xf32>
    %cst_300 = arith.constant dense<0.000000e+00> : vector<4x8x8xf32>
    %600 = tpu.matmul %598, %588, %cst_300 {dimension_numbers = #tpu.dot_dimension_numbers<[2], [2], [1], [1], [0, 0, 0, 1, 1, 1], [0], [0]>} : vector<4x8x32xf32>, vector<4x8x32xf32>, vector<4x8x8xf32> -> vector<4x8x8xf32>
    %cst_301 = arith.constant dense<0.000000e+00> : vector<4x8x8xf32>
    %601 = tpu.matmul %598, %589, %cst_301 {dimension_numbers = #tpu.dot_dimension_numbers<[2], [2], [1], [1], [0, 0, 0, 1, 1, 1], [0], [0]>} : vector<4x8x32xf32>, vector<4x8x32xf32>, vector<4x8x8xf32> -> vector<4x8x8xf32>
    "tpu.trace_stop"() : () -> ()
    "tpu.trace_start"() <{level = 10 : i32, message = "hqe,hke->hqk"}> : () -> ()
    %cst_302 = arith.constant dense<0.000000e+00> : vector<4x8x8xf32>
    %602 = tpu.matmul %599, %600, %cst_302 {dimension_numbers = #tpu.dot_dimension_numbers<[2], [2], [1], [1], [0, 0, 0, 1, 1, 1], [0], [0]>} : vector<4x8x8xf32>, vector<4x8x8xf32>, vector<4x8x8xf32> -> vector<4x8x8xf32>
    "tpu.trace_stop"() : () -> ()
    %cst_303 = arith.constant dense<0xFF800000> : vector<4x8xf32>
    %603 = vector.multi_reduction <maximumf>, %602, %cst_303 [2] : vector<4x8x8xf32> to vector<4x8xf32>
    %604 = vector.shape_cast %603 : vector<4x8xf32> to vector<4x8x1xf32>
    %605 = vector.broadcast %604 : vector<4x8x1xf32> to vector<4x8x8xf32>
    %606 = arith.subf %602, %605 : vector<4x8x8xf32>
    %607 = math.exp %606 : vector<4x8x8xf32>
    %cst_304 = arith.constant dense<0.000000e+00> : vector<4x8xf32>
    %608 = vector.multi_reduction <add>, %607, %cst_304 [2] : vector<4x8x8xf32> to vector<4x8xf32>
    %609 = vector.shape_cast %608 : vector<4x8xf32> to vector<4x8x1xf32>
    %610 = vector.broadcast %609 : vector<4x8x1xf32> to vector<4x8x8xf32>
    %611 = arith.divf %607, %610 : vector<4x8x8xf32>
    "tpu.trace_start"() <{level = 10 : i32, message = "hqk,hke->hqe"}> : () -> ()
    %cst_305 = arith.constant dense<0.000000e+00> : vector<4x8x8xf32>
    %612 = tpu.matmul %611, %601, %cst_305 {dimension_numbers = #tpu.dot_dimension_numbers<[2], [1], [1], [2], [0, 0, 0, 1, 1, 2], [0], [0]>} : vector<4x8x8xf32>, vector<4x8x8xf32>, vector<4x8x8xf32> -> vector<4x8x8xf32>
    "tpu.trace_stop"() : () -> ()
    "tpu.trace_start"() <{level = 10 : i32, message = "hqe,hde->hqd"}> : () -> ()
    %cst_306 = arith.constant dense<0.000000e+00> : vector<4x8x32xf32>
    %613 = tpu.matmul %612, %590, %cst_306 {dimension_numbers = #tpu.dot_dimension_numbers<[2], [2], [1], [1], [0, 0, 0, 1, 1, 1], [0], [0]>} : vector<4x8x8xf32>, vector<4x32x8xf32>, vector<4x8x32xf32> -> vector<4x8x32xf32>
    "tpu.trace_stop"() : () -> ()
    %cst_307 = arith.constant dense<0.000000e+00> : vector<8x32xf32>
    %614 = vector.multi_reduction <add>, %613, %cst_307 [0] : vector<4x8x32xf32> to vector<8x32xf32>
    %615 = vector.extract_strided_slice %586 {offsets = [8, 0], sizes = [8, 32], strides = [1, 1]} : vector<16x32xf32> to vector<8x32xf32>
    %616 = vector.extract_strided_slice %262 {offsets = [8, 0], sizes = [8, 32], strides = [1, 1]} : vector<16x32xf32> to vector<8x32xf32>
    %617 = vector.shape_cast %615 : vector<8x32xf32> to vector<1x8x32xf32>
    %618 = vector.shape_cast %617 : vector<1x8x32xf32> to vector<1x8x32xf32>
    %619 = vector.broadcast %618 : vector<1x8x32xf32> to vector<4x8x32xf32>
    %620 = vector.shape_cast %616 : vector<8x32xf32> to vector<1x8x32xf32>
    %621 = vector.shape_cast %620 : vector<1x8x32xf32> to vector<1x8x32xf32>
    %622 = vector.broadcast %621 : vector<1x8x32xf32> to vector<4x8x32xf32>
    "tpu.trace_start"() <{level = 10 : i32, message = "hsd,hed->hse"}> : () -> ()
    %cst_308 = arith.constant dense<0.000000e+00> : vector<4x8x8xf32>
    %623 = tpu.matmul %619, %587, %cst_308 {dimension_numbers = #tpu.dot_dimension_numbers<[2], [2], [1], [1], [0, 0, 0, 1, 1, 1], [0], [0]>} : vector<4x8x32xf32>, vector<4x8x32xf32>, vector<4x8x8xf32> -> vector<4x8x8xf32>
    %cst_309 = arith.constant dense<0.000000e+00> : vector<4x8x8xf32>
    %624 = tpu.matmul %622, %588, %cst_309 {dimension_numbers = #tpu.dot_dimension_numbers<[2], [2], [1], [1], [0, 0, 0, 1, 1, 1], [0], [0]>} : vector<4x8x32xf32>, vector<4x8x32xf32>, vector<4x8x8xf32> -> vector<4x8x8xf32>
    %cst_310 = arith.constant dense<0.000000e+00> : vector<4x8x8xf32>
    %625 = tpu.matmul %622, %589, %cst_310 {dimension_numbers = #tpu.dot_dimension_numbers<[2], [2], [1], [1], [0, 0, 0, 1, 1, 1], [0], [0]>} : vector<4x8x32xf32>, vector<4x8x32xf32>, vector<4x8x8xf32> -> vector<4x8x8xf32>
    "tpu.trace_stop"() : () -> ()
    "tpu.trace_start"() <{level = 10 : i32, message = "hqe,hke->hqk"}> : () -> ()
    %cst_311 = arith.constant dense<0.000000e+00> : vector<4x8x8xf32>
    %626 = tpu.matmul %623, %624, %cst_311 {dimension_numbers = #tpu.dot_dimension_numbers<[2], [2], [1], [1], [0, 0, 0, 1, 1, 1], [0], [0]>} : vector<4x8x8xf32>, vector<4x8x8xf32>, vector<4x8x8xf32> -> vector<4x8x8xf32>
    "tpu.trace_stop"() : () -> ()
    %cst_312 = arith.constant dense<0xFF800000> : vector<4x8xf32>
    %627 = vector.multi_reduction <maximumf>, %626, %cst_312 [2] : vector<4x8x8xf32> to vector<4x8xf32>
    %628 = vector.shape_cast %627 : vector<4x8xf32> to vector<4x8x1xf32>
    %629 = vector.broadcast %628 : vector<4x8x1xf32> to vector<4x8x8xf32>
    %630 = arith.subf %626, %629 : vector<4x8x8xf32>
    %631 = math.exp %630 : vector<4x8x8xf32>
    %cst_313 = arith.constant dense<0.000000e+00> : vector<4x8xf32>
    %632 = vector.multi_reduction <add>, %631, %cst_313 [2] : vector<4x8x8xf32> to vector<4x8xf32>
    %633 = vector.shape_cast %632 : vector<4x8xf32> to vector<4x8x1xf32>
    %634 = vector.broadcast %633 : vector<4x8x1xf32> to vector<4x8x8xf32>
    %635 = arith.divf %631, %634 : vector<4x8x8xf32>
    "tpu.trace_start"() <{level = 10 : i32, message = "hqk,hke->hqe"}> : () -> ()
    %cst_314 = arith.constant dense<0.000000e+00> : vector<4x8x8xf32>
    %636 = tpu.matmul %635, %625, %cst_314 {dimension_numbers = #tpu.dot_dimension_numbers<[2], [1], [1], [2], [0, 0, 0, 1, 1, 2], [0], [0]>} : vector<4x8x8xf32>, vector<4x8x8xf32>, vector<4x8x8xf32> -> vector<4x8x8xf32>
    "tpu.trace_stop"() : () -> ()
    "tpu.trace_start"() <{level = 10 : i32, message = "hqe,hde->hqd"}> : () -> ()
    %cst_315 = arith.constant dense<0.000000e+00> : vector<4x8x32xf32>
    %637 = tpu.matmul %636, %590, %cst_315 {dimension_numbers = #tpu.dot_dimension_numbers<[2], [2], [1], [1], [0, 0, 0, 1, 1, 1], [0], [0]>} : vector<4x8x8xf32>, vector<4x32x8xf32>, vector<4x8x32xf32> -> vector<4x8x32xf32>
    "tpu.trace_stop"() : () -> ()
    %cst_316 = arith.constant dense<0.000000e+00> : vector<8x32xf32>
    %638 = vector.multi_reduction <add>, %637, %cst_316 [0] : vector<4x8x32xf32> to vector<8x32xf32>
    %639 = tpu.concatenate %614, %638 in 0 : vector<8x32xf32>, vector<8x32xf32> -> vector<16x32xf32>
    %640 = arith.addf %560, %639 : vector<16x32xf32>
    %c1_317 = arith.constant 1 : index
    %c0_318 = arith.constant 0 : index
    %c0_319 = arith.constant 0 : index
    %641 = vector.load %arg26[%c1_317, %c0_318, %c0_319] : memref<2x1x32xf32, #tpu.memory_space<vmem>>, vector<1x1x32xf32>
    %642 = vector.shape_cast %641 : vector<1x1x32xf32> to vector<1x32xf32>
    %c1_320 = arith.constant 1 : index
    %c0_321 = arith.constant 0 : index
    %c0_322 = arith.constant 0 : index
    %643 = vector.load %arg27[%c1_320, %c0_321, %c0_322] : memref<2x1x32xf32, #tpu.memory_space<vmem>>, vector<1x1x32xf32>
    %644 = vector.shape_cast %643 : vector<1x1x32xf32> to vector<1x32xf32>
    %cst_323 = arith.constant dense<0.000000e+00> : vector<16xf32>
    %645 = vector.multi_reduction <add>, %640, %cst_323 [1] : vector<16x32xf32> to vector<16xf32>
    %646 = vector.shape_cast %645 : vector<16xf32> to vector<16x1xf32>
    %cst_324 = arith.constant 3.200000e+01 : f32
    %647 = vector.broadcast %cst_324 : f32 to vector<16x1xf32>
    %648 = arith.divf %646, %647 : vector<16x1xf32>
    %649 = vector.broadcast %648 : vector<16x1xf32> to vector<16x32xf32>
    %650 = arith.subf %640, %649 : vector<16x32xf32>
    %651 = arith.mulf %650, %650 : vector<16x32xf32>
    %cst_325 = arith.constant dense<0.000000e+00> : vector<16xf32>
    %652 = vector.multi_reduction <add>, %651, %cst_325 [1] : vector<16x32xf32> to vector<16xf32>
    %653 = vector.shape_cast %652 : vector<16xf32> to vector<16x1xf32>
    %cst_326 = arith.constant 3.200000e+01 : f32
    %654 = vector.broadcast %cst_326 : f32 to vector<16x1xf32>
    %655 = arith.divf %653, %654 : vector<16x1xf32>
    %656 = vector.broadcast %648 : vector<16x1xf32> to vector<16x32xf32>
    %657 = arith.subf %640, %656 : vector<16x32xf32>
    %cst_327 = arith.constant 9.99999974E-6 : f32
    %658 = vector.broadcast %cst_327 : f32 to vector<16x1xf32>
    %659 = arith.addf %655, %658 : vector<16x1xf32>
    %660 = math.rsqrt %659 : vector<16x1xf32>
    %661 = vector.broadcast %660 : vector<16x1xf32> to vector<16x32xf32>
    %662 = arith.mulf %657, %661 : vector<16x32xf32>
    %663 = vector.broadcast %642 : vector<1x32xf32> to vector<16x32xf32>
    %664 = arith.mulf %662, %663 : vector<16x32xf32>
    %665 = vector.broadcast %644 : vector<1x32xf32> to vector<16x32xf32>
    %666 = arith.addf %664, %665 : vector<16x32xf32>
    %c1_328 = arith.constant 1 : index
    %c0_329 = arith.constant 0 : index
    %c0_330 = arith.constant 0 : index
    %667 = vector.load %arg28[%c1_328, %c0_329, %c0_330] : memref<2x64x32xf32, #tpu.memory_space<vmem>>, vector<1x64x32xf32>
    %668 = vector.shape_cast %667 : vector<1x64x32xf32> to vector<64x32xf32>
    %cst_331 = arith.constant dense<0.000000e+00> : vector<16x64xf32>
    %669 = tpu.matmul %666, %668, %cst_331 {dimension_numbers = #tpu.dot_dimension_numbers<[1], [1], [0], [0], [0, 0, 1, 0], [], []>} : vector<16x32xf32>, vector<64x32xf32>, vector<16x64xf32> -> vector<16x64xf32>
    %670 = arith.negf %669 : vector<16x64xf32>
    %671 = math.exp %670 : vector<16x64xf32>
    %cst_332 = arith.constant 1.000000e+00 : f32
    %672 = vector.broadcast %cst_332 : f32 to vector<16x64xf32>
    %673 = arith.addf %672, %671 : vector<16x64xf32>
    %674 = arith.divf %672, %673 : vector<16x64xf32>
    %675 = arith.mulf %669, %674 : vector<16x64xf32>
    %c1_333 = arith.constant 1 : index
    %c0_334 = arith.constant 0 : index
    %c0_335 = arith.constant 0 : index
    %676 = vector.load %arg29[%c1_333, %c0_334, %c0_335] : memref<2x32x64xf32, #tpu.memory_space<vmem>>, vector<1x32x64xf32>
    %677 = vector.shape_cast %676 : vector<1x32x64xf32> to vector<32x64xf32>
    %cst_336 = arith.constant dense<0.000000e+00> : vector<16x32xf32>
    %678 = tpu.matmul %675, %677, %cst_336 {dimension_numbers = #tpu.dot_dimension_numbers<[1], [1], [0], [0], [0, 0, 1, 0], [], []>} : vector<16x64xf32>, vector<32x64xf32>, vector<16x32xf32> -> vector<16x32xf32>
    %679 = arith.addf %640, %678 : vector<16x32xf32>
    %c0_337 = arith.constant 0 : index
    %c0_338 = arith.constant 0 : index
    %680 = vector.load %arg30[%c0_337, %c0_338] : memref<1x32xf32, #tpu.memory_space<vmem>>, vector<1x32xf32>
    %c0_339 = arith.constant 0 : index
    %c0_340 = arith.constant 0 : index
    %681 = vector.load %arg31[%c0_339, %c0_340] : memref<1x32xf32, #tpu.memory_space<vmem>>, vector<1x32xf32>
    %cst_341 = arith.constant dense<0.000000e+00> : vector<16xf32>
    %682 = vector.multi_reduction <add>, %679, %cst_341 [1] : vector<16x32xf32> to vector<16xf32>
    %683 = vector.shape_cast %682 : vector<16xf32> to vector<16x1xf32>
    %cst_342 = arith.constant 3.200000e+01 : f32
    %684 = vector.broadcast %cst_342 : f32 to vector<16x1xf32>
    %685 = arith.divf %683, %684 : vector<16x1xf32>
    %686 = vector.broadcast %685 : vector<16x1xf32> to vector<16x32xf32>
    %687 = arith.subf %679, %686 : vector<16x32xf32>
    %688 = arith.mulf %687, %687 : vector<16x32xf32>
    %cst_343 = arith.constant dense<0.000000e+00> : vector<16xf32>
    %689 = vector.multi_reduction <add>, %688, %cst_343 [1] : vector<16x32xf32> to vector<16xf32>
    %690 = vector.shape_cast %689 : vector<16xf32> to vector<16x1xf32>
    %cst_344 = arith.constant 3.200000e+01 : f32
    %691 = vector.broadcast %cst_344 : f32 to vector<16x1xf32>
    %692 = arith.divf %690, %691 : vector<16x1xf32>
    %693 = vector.broadcast %685 : vector<16x1xf32> to vector<16x32xf32>
    %694 = arith.subf %679, %693 : vector<16x32xf32>
    %cst_345 = arith.constant 9.99999974E-6 : f32
    %695 = vector.broadcast %cst_345 : f32 to vector<16x1xf32>
    %696 = arith.addf %692, %695 : vector<16x1xf32>
    %697 = math.rsqrt %696 : vector<16x1xf32>
    %698 = vector.broadcast %697 : vector<16x1xf32> to vector<16x32xf32>
    %699 = arith.mulf %694, %698 : vector<16x32xf32>
    %700 = vector.broadcast %680 : vector<1x32xf32> to vector<16x32xf32>
    %701 = arith.mulf %699, %700 : vector<16x32xf32>
    %702 = vector.broadcast %681 : vector<1x32xf32> to vector<16x32xf32>
    %703 = arith.addf %701, %702 : vector<16x32xf32>
    %c0_346 = arith.constant 0 : index
    %c0_347 = arith.constant 0 : index
    %704 = vector.load %arg32[%c0_346, %c0_347] : memref<64x32xf32, #tpu.memory_space<vmem>>, vector<64x32xf32>
    %cst_348 = arith.constant dense<0.000000e+00> : vector<16x64xf32>
    %705 = tpu.matmul %703, %704, %cst_348 {dimension_numbers = #tpu.dot_dimension_numbers<[1], [1], [0], [0], [0, 0, 1, 0], [], []>} : vector<16x32xf32>, vector<64x32xf32>, vector<16x64xf32> -> vector<16x64xf32>
    %c0_349 = arith.constant 0 : index
    %c0_350 = arith.constant 0 : index
    %706 = vector.load %arg33[%c0_349, %c0_350] : memref<16x64xf32, #tpu.memory_space<vmem>>, vector<16x64xf32>
    tpu.vector_store %arg33[%c0_349, %c0_350], %705 {strides = array<i32>} : memref<16x64xf32, #tpu.memory_space<vmem>>, vector<16x64xf32>,
    return
  }
}

</mosaic_0001>

<bundles_post_ra>
// kernel: forward.1
= control target key start
LH: loop header
LB: loop body
LE: loop exit
PB: predicated region body
PF: predicated region fallthrough
CT: control target
= control target key end

     0   :  { %s28294_s6 = smov 1   ;;  %s28295_s10 = smov 2   ;;  %s31555_s0 = inlined_call_operand.smem [shape: u32[34], index: -1, kind: input, shape index: {}] }
   0x1   :  { %s28341_s5 = sld [smem:[%s31555_s0]]   ;;  %s28296_s14 = smov 3  }
   0x2   :  { %s28346_s9 = sld [smem:[%s31555_s0 + %s28294_s6]]   ;;  %s28297_s18 = smov 4  }
   0x3   :  { %s28351_s13 = sld [smem:[%s31555_s0 + %s28295_s10]]   ;;  %s28298_s22 = smov 5  }
   0x4   :  { %s28356_s17 = sld [smem:[%s31555_s0 + %s28296_s14]]   ;;  %s28299_s26 = smov 6  }
   0x5   :  { %s28361_s21 = sld [smem:[%s31555_s0 + %s28297_s18]]   ;;  %s28300_s30 = smov 7  }
   0x6   :  { %s28366_s25 = sld [smem:[%s31555_s0 + %s28298_s22]]   ;;  %s28301_s4 = smov 8  }
   0x7   :  { %s28371_s29 = sld [smem:[%s31555_s0 + %s28299_s26]]   ;;  %s28302_s10 = smov 9  }
   0x8   :  { %s28376_s3 = sld [smem:[%s31555_s0 + %s28300_s30]]   ;;  %s28303_s15 = smov 10  }
   0x9   :  { %s28381_s8 = sld [smem:[%s31555_s0 + %s28301_s4]]   ;;  %s28304_s20 = smov 11  }
   0xa   :  { %s28386_s14 = sld [smem:[%s31555_s0 + %s28302_s10]]   ;;  %s28305_s26 = smov 12  }
   0xb   :  { %s28391_s19 = sld [smem:[%s31555_s0 + %s28303_s15]]   ;;  %s28306_s1 = smov 13  }
   0xc   :  { %s28396_s24 = sld [smem:[%s31555_s0 + %s28304_s20]]   ;;  %s28307_s7 = smov 14  }
   0xd   :  { %s28401_s30 = sld [smem:[%s31555_s0 + %s28305_s26]]   ;;  %s28308_s15 = smov 15  }
   0xe   :  { %s28406_s6 = sld [smem:[%s31555_s0 + %s28306_s1]]   ;;  %s28309_s22 = smov 16  }
   0xf   :  { %s28411_s12 = sld [smem:[%s31555_s0 + %s28307_s7]]   ;;  %s28310_s28 = smov 17  }
  0x10   :  { %s28416_s20 = sld [smem:[%s31555_s0 + %s28308_s15]]   ;;  %s28311_s7 = smov 18  }
  0x11   :  { %s28421_s27 = sld [smem:[%s31555_s0 + %s28309_s22]]   ;;  %s28312_s15 = smov 19  }
  0x12   :  { %s28426_s4 = sld [smem:[%s31555_s0 + %s28310_s28]]   ;;  %s28313_s22 = smov 20  }
  0x13   :  { %31570 = sst [smem:[#allocation5_spill]] %s28401_s30  ;;  %s28314_s28 = smov 21  }
  0x14   :  { %31571 = sst [smem:[#allocation6_spill]] %s28406_s6 }
  0x15   :  { %s28431_s6 = sld [smem:[%s31555_s0 + %s28311_s7]]   ;;  %s28315_s7 = smov 22  }
  0x16   :  { %31572 = sst [smem:[#allocation7_spill]] %s28416_s20 }
  0x17   :  { %31573 = sst [smem:[#allocation8_spill]] %s28421_s27 }
  0x18   :  { %s28436_s30 = sld [smem:[%s31555_s0 + %s28312_s15]]   ;;  %s28316_s15 = smov 23  }
  0x19   :  { %s28441_s27 = sld [smem:[%s31555_s0 + %s28313_s22]]   ;;  %s28317_s22 = smov 24  }
  0x1a   :  { %s28446_s20 = sld [smem:[%s31555_s0 + %s28314_s28]]   ;;  %s28318_s28 = smov 25  }
  0x1b   :  { %31574 = sst [smem:[#allocation9_spill]] %s28431_s6 }
  0x1c   :  { %s28451_s6 = sld [smem:[%s31555_s0 + %s28315_s7]]   ;;  %s28319_s7 = smov 26  }
  0x1e   :  { %31575 = sst [smem:[#allocation10_spill]] %s28436_s30 }
  0x1f   :  { %31576 = sst [smem:[#allocation11_spill]] %s28441_s27 }
  0x20   :  { %31577 = sst [smem:[#allocation12_spill]] %s28446_s20 }
  0x21   :  { %s28456_s30 = sld [smem:[%s31555_s0 + %s28316_s15]]   ;;  %s28320_s15 = smov 27  }
  0x22   :  { %31578 = sst [smem:[#allocation13_spill]] %s28451_s6 }
  0x23   :  { %s28461_s27 = sld [smem:[%s31555_s0 + %s28317_s22]]   ;;  %s28321_s22 = smov 28  }
  0x24   :  { %s28466_s20 = sld [smem:[%s31555_s0 + %s28318_s28]]   ;;  %s28322_s28 = smov 29  }
  0x25   :  { %s28471_s6 = sld [smem:[%s31555_s0 + %s28319_s7]]   ;;  %s28323_s7 = smov 30  }
  0x27   :  { %31579 = sst [smem:[#allocation14_spill]] %s28456_s30 }
  0x28   :  { %s28476_s30 = sld [smem:[%s31555_s0 + %s28320_s15]]   ;;  %s28324_s15 = smov 31  }
  0x29   :  { %31580 = sst [smem:[#allocation15_spill]] %s28461_s27 }
  0x2a   :  { %31581 = sst [smem:[#allocation16_spill]] %s28466_s20 }
  0x2b   :  { %31582 = sst [smem:[#allocation17_spill]] %s28471_s6 }
  0x2c   :  { %s28481_s27 = sld [smem:[%s31555_s0 + %s28321_s22]]   ;;  %s28325_s22 = smov 32  }
  0x2d   :  { %s28486_s20 = sld [smem:[%s31555_s0 + %s28322_s28]]   ;;  %s28326_s28 = smov 33  }
  0x2e   :  { %31583 = sst [smem:[#allocation18_spill]] %s28476_s30 }
  0x2f   :  { %s28491_s6 = sld [smem:[%s31555_s0 + %s28323_s7]]  }
  0x30   :  { %s28496_s30 = sld [smem:[%s31555_s0 + %s28324_s15]]  }
  0x32   :  { %31584 = sst [smem:[#allocation19_spill]] %s28481_s27 }
  0x33   :  { %31585 = sst [smem:[#allocation20_spill]] %s28486_s20 }
  0x34   :  { %s28501_s27 = sld [smem:[%s31555_s0 + %s28325_s22]]  }
  0x35   :  { %s28506_s20 = sld [smem:[%s31555_s0 + %s28326_s28]]  }
  0x36   :  { %v28509_v0 = vld [vmem:[%s28341_s5] sm:$0xff]  ;;  %vm143_vm0 = vcmask 261120  }
  0x37   :  { %72 = vsyncpa [#allocation3], 0  ;;  %v144_v1 = vsel %vm143_vm0, %v28509_v0, 0.0  ;;  %v28327_v7 = vmov 0.0   ;;  %v28518_v8 = vld [vmem:[%s28361_s21] sm:$0xff]  ;;  %v28521_v9 = vld [vmem:[%s28366_s25 + $0x8] sm:$0xff] }
  0x38   :  { %145 = vadd.xlane.f32.xlu0 %v144_v1  ;;  %25539 = vmatprep.subr.mxu0 %v28327_v7  ;;  %vm28328_vm1 = vmmov 0   ;;  %v28534_v14 = vld [vmem:[%s28351_s13] ss:$0 sm:$0xff]  ;;  %v28542_v19 = vld [vmem:[%s28361_s21 + $0x8] sm:$0xff]  ;;  %v28545_v20 = vld [vmem:[%s28366_s25 + $0x18] sm:$0xff]  ;;  %vm1094_vm2 = vcmask 64512  }
  0x39   :  { %25564 = vmatprep.subr.mxu1 %v28327_v7  ;;  %25540 = vmatpush3.xpose.msk.msra.mxu0 %vm143_vm0, %v28518_v8  ;;  %v28537_v16 = vld [vmem:[%s28356_s17] ss:$0 sm:$0xff]  ;;  %v28558_v21 = vld [vmem:[%s28361_s21 + $0x10] sm:$0xff]  ;;  %v28561_v22 = vld [vmem:[%s28371_s29 + $0x8] sm:$0xff]  ;;  %vm4041_vm5 = vcmask 523264   ;;  %s31592_s0 = sld [smem:[#allocation7_spill]] }
  0x3a   :  { %25565 = vmatpush3.xpose.msk.msra.mxu1 %vm143_vm0, %v28521_v9  ;;  %25544 = vmatprep.subr.mxu0 %v28327_v7  ;;  %v28576_v23 = vld [vmem:[%s28361_s21 + $0x18] sm:$0xff]  ;;  %v28594_v25 = vld [vmem:[%s28366_s25] sm:$0xff]  ;;  %v28606_v26 = vld [vmem:[%s28366_s25 + $0x10] sm:$0xff]  ;;  %s31605_s7 = sld [smem:[#allocation18_spill]]  ;;  %s31606_s10 = sld [smem:[#allocation19_spill]] }
  0x3b   :  { %25574 = vmatprep.subr.mxu1 %v28327_v7  ;;  %25541 = vmatprep.mubr.msk.f32.mxu0 %vm28328_vm1, %v28327_v7  ;;  %v28579_v24 = vld [vmem:[%s28371_s29 + $0x18] sm:$0xff]  ;;  %v28617_v27 = vld [vmem:[%s28371_s29] sm:$0xff]  ;;  %v28626_v28 = vld [vmem:[%s28371_s29 + $0x10] sm:$0xff]  ;;  %s31607_s11 = sld [smem:[#allocation20_spill]] }
  0x3c   :  { %25566 = vmatprep.mubr.msk.f32.mxu1 %vm28328_vm1, %v28327_v7  ;;  %vm28700_vm3 = vmpackc.low %vm1094_vm2, %vm1094_vm2 }
  0x3d   :  { %vm28973_vm4 = vmpackc.low %vm143_vm0, %vm143_vm0 }
  0x3e   :  { %vm29009_vm6 = vmpackc.low %vm4041_vm5, %vm4041_vm5 }
  0xc5   :  { %v146_v2 = vpop.xlane.xlu0 %145 }
  0xc6   :  { %v151_v3 = vmul.f32 0.03125, %v146_v2 }
  0xc8   :  { %v153_v4 = vsub.f32 %v28509_v0, %v151_v3 }
  0xca   :  { %v155_v5 = vmul.f32 %v153_v4, %v153_v4 }
  0xcc   :  { %v157_v6 = vsel %vm143_vm0, %v155_v5, 0.0 }
  0xcd   :  { %158 = vadd.xlane.f32.xlu0 %v157_v6 }
 0x15a   :  { %v159_v10 = vpop.xlane.xlu0 %158 }
 0x15b   :  { %v163_v11 = vmul.f32 0.03125, %v159_v10 }
 0x15d   :  { %v165_v12 = vadd.f32 1e-05, %v163_v11 }
 0x15f   :  { %27997 = vrsqrt.f32 %v165_v12 }
 0x169   :  { %v27998_v13 = vpop.eup %27997 }
 0x16a   :  { %v169_v15 = vmul.f32 %v27998_v13, %v153_v4 }
 0x16c   :  { %v177_v17 = vmul.f32 %v28534_v14, %v169_v15 }
 0x16e   :  { %v185_v18 = vadd.f32 %v28537_v16, %v177_v17 }
 0x170   :  { %25542 = vmatmul.mubr.msk.f32.vlgmr.msra.gmra.mrb[0].mxu0 %vm143_vm0, %v185_v18  ;;  %25567 = vmatmul.mubr.msk.f32.vlgmr.msra.gmra.mrb[0].mxu1 %vm143_vm0, %v185_v18 }
 0x171   :  { %25545 = vmatpush3.xpose.msk.msra.mxu0 %vm143_vm0, %v28542_v19  ;;  %25575 = vmatpush3.xpose.msk.msra.mxu1 %vm143_vm0, %v28545_v20 }
 0x172   :  { %25546 = vmatprep.mubr.msk.f32.mxu0 %vm28328_vm1, %v28327_v7  ;;  %25576 = vmatprep.mubr.msk.f32.mxu1 %vm28328_vm1, %v28327_v7 }
 0x173   :  { %25549 = vmatprep.subr.mxu0 %v28327_v7  ;;  %25584 = vmatprep.subr.mxu1 %v28327_v7 }
 0x174   :  { %25547 = vmatmul.mubr.msk.f32.vlgmr.msra.gmra.mrb[2].mxu0 %vm143_vm0, %v185_v18  ;;  %25577 = vmatmul.mubr.msk.f32.vlgmr.msra.gmra.mrb[2].mxu1 %vm143_vm0, %v185_v18 }
 0x175   :  { %25550 = vmatpush3.xpose.msk.msra.mxu0 %vm143_vm0, %v28558_v21  ;;  %25585 = vmatpush3.xpose.msk.msra.mxu1 %vm143_vm0, %v28561_v22 }
 0x176   :  { %25551 = vmatprep.mubr.msk.f32.mxu0 %vm28328_vm1, %v28327_v7  ;;  %25586 = vmatprep.mubr.msk.f32.mxu1 %vm28328_vm1, %v28327_v7 }
 0x177   :  { %25554 = vmatprep.subr.mxu0 %v28327_v7  ;;  %25594 = vmatprep.subr.mxu1 %v28327_v7 }
 0x178   :  { %25552 = vmatmul.mubr.msk.f32.vlgmr.msra.gmra.mrb[4].mxu0 %vm143_vm0, %v185_v18  ;;  %25587 = vmatmul.mubr.msk.f32.vlgmr.msra.gmra.mrb[4].mxu1 %vm143_vm0, %v185_v18 }
 0x179   :  { %25555 = vmatpush3.xpose.msk.msra.mxu0 %vm143_vm0, %v28576_v23  ;;  %25595 = vmatpush3.xpose.msk.msra.mxu1 %vm143_vm0, %v28579_v24 }
 0x17a   :  { %25556 = vmatprep.mubr.msk.f32.mxu0 %vm28328_vm1, %v28327_v7  ;;  %25596 = vmatprep.mubr.msk.f32.mxu1 %vm28328_vm1, %v28327_v7 }
 0x17b   :  { %25559 = vmatprep.subr.mxu0 %v28327_v7  ;;  %25604 = vmatprep.subr.mxu1 %v28327_v7 }
 0x17c   :  { %25557 = vmatmul.mubr.msk.f32.vlgmr.msra.gmra.mrb[6].mxu0 %vm143_vm0, %v185_v18  ;;  %25597 = vmatmul.mubr.msk.f32.vlgmr.msra.gmra.mrb[6].mxu1 %vm143_vm0, %v185_v18 }
 0x17d   :  { %25560 = vmatpush3.xpose.msk.msra.mxu0 %vm143_vm0, %v28594_v25  ;;  %25561 = vmatprep.mubr.msk.f32.mxu0 %vm28328_vm1, %v28327_v7 }
 0x17e   :  { %25569 = vmatprep.subr.mxu0 %v28327_v7  ;;  %25606 = vmatprep.mubr.msk.f32.mxu1 %vm28328_vm1, %v28327_v7 }
 0x180   :  { %25562 = vmatmul.mubr.msk.f32.vlgmr.msra.gmra.mrb[8].mxu0 %vm143_vm0, %v185_v18 }
 0x181   :  { %25570 = vmatpush3.xpose.msk.msra.mxu0 %vm143_vm0, %v28606_v26  ;;  %25571 = vmatprep.mubr.msk.f32.mxu0 %vm28328_vm1, %v28327_v7 }
 0x182   :  { %25579 = vmatprep.subr.mxu0 %v28327_v7 }
 0x184   :  { %25572 = vmatmul.mubr.msk.f32.vlgmr.msra.gmra.mrb[10].mxu0 %vm143_vm0, %v185_v18 }
 0x185   :  { %25580 = vmatpush3.xpose.msk.msra.mxu0 %vm143_vm0, %v28617_v27  ;;  %25581 = vmatprep.mubr.msk.f32.mxu0 %vm28328_vm1, %v28327_v7 }
 0x186   :  { %25589 = vmatprep.subr.mxu0 %v28327_v7 }
 0x188   :  { %25582 = vmatmul.mubr.msk.f32.vlgmr.msra.gmra.mrb[12].mxu0 %vm143_vm0, %v185_v18 }
 0x189   :  { %25590 = vmatpush3.xpose.msk.msra.mxu0 %vm143_vm0, %v28626_v28  ;;  %25591 = vmatprep.mubr.msk.f32.mxu0 %vm28328_vm1, %v28327_v7 }
 0x18a   :  { %25599 = vmatprep.subr.mxu0 %v28327_v7 }
 0x18c   :  { %25592 = vmatmul.mubr.msk.f32.vlgmr.msra.gmra.mrb[14].mxu0 %vm143_vm0, %v185_v18 }
 0x18d   :  { %25601 = vmatprep.mubr.msk.f32.mxu0 %vm28328_vm1, %v28327_v7 }
 0x243   :  { %v287_v29 = vpop.f32.mrb[0].mxu0  ;;  %v652_v30 = vpop.f32.mrb[0].mxu1 }
 0x244   :  { %v25543_v31 = vpop.f32.mrb[1].mxu0  ;;  %v25568_v32 = vpop.f32.mrb[1].mxu1  ;;  %25605 = vmatpush3.xpose.msk.msra.mxu1 %vm1094_vm2, %v652_v30 }
 0x245   :  { %25614 = vmatprep.subr.mxu1 %v28327_v7 }
 0x247   :  { %v360_v33 = vpop.f32.mrb[2].mxu0  ;;  %v798_v34 = vpop.f32.mrb[2].mxu1 }
 0x248   :  { %v25548_v35 = vpop.f32.mrb[3].mxu0  ;;  %v25578_v36 = vpop.f32.mrb[3].mxu1  ;;  %25607 = vmatmul.mubr.msk.f32.vlgmr.msra.gmra.mrb[8].mxu1 %vm1094_vm2, %v360_v33 }
 0x249   :  { %25615 = vmatpush3.xpose.msk.msra.mxu1 %vm1094_vm2, %v798_v34  ;;  %25616 = vmatprep.mubr.msk.f32.mxu1 %vm28328_vm1, %v28327_v7  ;;  %v28670_v34 = vld [vmem:[%s28341_s5 + $0x8] sm:$0xff]  ;;  %s31593_s5 = sld [smem:[#allocation9_spill]] }
 0x24a   :  { %25624 = vmatprep.subr.mxu1 %v28327_v7 }
 0x24b   :  { %v433_v37 = vpop.f32.mrb[4].mxu0  ;;  %v944_v38 = vpop.f32.mrb[4].mxu1 }
 0x24c   :  { %v25553_v39 = vpop.f32.mrb[5].mxu0  ;;  %v25588_v40 = vpop.f32.mrb[5].mxu1 }
 0x24f   :  { %v506_v41 = vpop.f32.mrb[6].mxu0  ;;  %v28644_v42 = vpop.f32.mrb[6].mxu1 }
 0x250   :  { %v25558_v43 = vpop.f32.mrb[7].mxu0  ;;  %v25598_v44 = vpop.f32.mrb[7].mxu1  ;;  %25617 = vmatmul.mubr.msk.f32.vlgmr.msra.gmra.mrb[10].mxu1 %vm1094_vm2, %v506_v41 }
 0x251   :  { %25625 = vmatpush3.msra.mxu1 %v944_v38  ;;  %25626 = vmatprep.mubr.msk.f32.mxu1 %vm28328_vm1, %v28327_v7 }
 0x252   :  { %25634 = vmatprep.subr.mxu1 %v28327_v7 }
 0x253   :  { %v579_v45 = vpop.f32.mrb[8].mxu0 }
 0x254   :  { %v25563_v46 = vpop.f32.mrb[9].mxu0  ;;  %25600 = vmatpush3.xpose.msk.msra.mxu0 %vm1094_vm2, %v579_v45 }
 0x255   :  { %25609 = vmatprep.subr.mxu0 %v28327_v7 }
 0x257   :  { %v725_v47 = vpop.f32.mrb[10].mxu0  ;;  %25602 = vmatmul.mubr.msk.f32.vlgmr.msra.gmra.mrb[16].mxu0 %vm1094_vm2, %v287_v29 }
 0x258   :  { %v25573_v48 = vpop.f32.mrb[11].mxu0  ;;  %25610 = vmatpush3.xpose.msk.msra.mxu0 %vm1094_vm2, %v725_v47  ;;  %25611 = vmatprep.mubr.msk.f32.mxu0 %vm28328_vm1, %v28327_v7 }
 0x259   :  { %25619 = vmatprep.subr.mxu0 %v28327_v7 }
 0x25b   :  { %v871_v49 = vpop.f32.mrb[12].mxu0  ;;  %25612 = vmatmul.mubr.msk.f32.vlgmr.msra.gmra.mrb[18].mxu0 %vm1094_vm2, %v433_v37  ;;  %v147_v37 = vsel %vm143_vm0, %v28670_v34, 0.0 }
 0x25c   :  { %v25583_v50 = vpop.f32.mrb[13].mxu0  ;;  %25620 = vmatpush3.msra.mxu0 %v871_v49  ;;  %25621 = vmatprep.mubr.msk.f32.mxu0 %vm28328_vm1, %v28327_v7 }
 0x25d   :  { %25629 = vmatprep.subr.mxu0 %v28327_v7 }
 0x25f   :  { %v28661_v51 = vpop.f32.mrb[14].mxu0 }
 0x260   :  { %v25593_v52 = vpop.f32.mrb[15].mxu0 }
 0x31b   :  { %v1243_v53 = vpop.f32.mrb[8].mxu1 }
 0x31c   :  { %v25608_v54 = vpop.f32.mrb[9].mxu1  ;;  %v1402_v62 = vsel %vm1094_vm2, %v1243_v53, -inf }
 0x323   :  { %v1395_v55 = vpop.f32.mrb[10].mxu1 }
 0x324   :  { %v25618_v56 = vpop.f32.mrb[11].mxu1  ;;  %v1408_v1 = vsel %vm1094_vm2, %v1395_v55, -inf }
 0x32a   :  { %v1167_v57 = vpop.f32.mrb[16].mxu0 }
 0x32b   :  { %v25603_v58 = vpop.f32.mrb[17].mxu0  ;;  %v1399_v59 = vsel %vm1094_vm2, %v1167_v57, -inf }
 0x32c   :  { %1400 = vmax.xlane.f32.xlu1 %v1399_v59  ;;  %v200_v58 = vld [vmem:[%s28376_s3 + $0x8] sm:$0xff]  ;;  %v28329_v59 = vmov 0.0|0.0  }
 0x32e   :  { %v1319_v60 = vpop.f32.mrb[18].mxu0 }
 0x32f   :  { %v25613_v61 = vpop.f32.mrb[19].mxu0  ;;  %v1405_v63 = vsel %vm1094_vm2, %v1319_v60, -inf }
 0x330   :  { %1403 = vmax.xlane.f32.xlu1 %v1402_v62  ;;  %1406 = vmax.xlane.f32.xlu0 %v1405_v63  ;;  %v203_v61 = vld [vmem:[%s28376_s3 + $0x20] sm:$0xff]  ;;  %v204_v62 = vld [vmem:[%s28376_s3 + $0x28] sm:$0xff] }
 0x331   :  { %v28710_v63 = vpack.c.bf16 %v204_v62, %v203_v61 }
 0x334   :  { %1409 = vmax.xlane.f32.xlu1 %v1408_v1  ;;  %v201_v1 = vld [vmem:[%s28376_s3 + $0x10] sm:$0xff] }
 0x3b9   :  { %v1401_v2 = vpop.xlane.xlu1 %1400 }
 0x3ba   :  { %v1411_v3 = vsub.f32 %v1167_v57, %v1401_v2  ;;  %v199_v57 = vld [vmem:[%s28376_s3] sm:$0xff]  ;;  %v202_v2 = vld [vmem:[%s28376_s3 + $0x18] sm:$0xff] }
 0x3bc   :  { %v1415_v4 = vmul.f32 1.442695, %v1411_v3  ;;  %v205_v3 = vld [vmem:[%s28376_s3 + $0x30] sm:$0xff] }
 0x3bd   :  { %v1404_v5 = vpop.xlane.xlu1 %1403  ;;  %v1407_v6 = vpop.xlane.xlu0 %1406 }
 0x3be   :  { %27999 = vpow2.f32 %v1415_v4  ;;  %v1412_v10 = vsub.f32 %v1243_v53, %v1404_v5  ;;  %v1413_v11 = vsub.f32 %v1319_v60, %v1407_v6  ;;  %v28705_v60 = vpack.c.bf16 %v200_v58, %v199_v57  ;;  %v206_v4 = vld [vmem:[%s28376_s3 + $0x38] sm:$0xff] }
 0x3bf   :  { %v28724_v5 = vpack.c.bf16 %v202_v2, %v201_v1  ;;  %v28726_v6 = vpack.c.bf16 %v206_v4, %v205_v3 }
 0x3c0   :  { %v1417_v12 = vmul.f32 1.442695, %v1412_v10  ;;  %v1419_v13 = vmul.f32 1.442695, %v1413_v11 }
 0x3c1   :  { %v1410_v15 = vpop.xlane.xlu1 %1409 }
 0x3c2   :  { %28001 = vpow2.f32 %v1417_v12  ;;  %v1414_v17 = vsub.f32 %v1395_v55, %v1410_v15  ;;  %v208_v15 = vld [vmem:[%s28376_s3 + $0x48] sm:$0xff] }
 0x3c3   :  { %28003 = vpow2.f32 %v1419_v13  ;;  %v207_v13 = vld [vmem:[%s28376_s3 + $0x40] sm:$0xff] }
 0x3c4   :  { %v1421_v18 = vmul.f32 1.442695, %v1414_v17  ;;  %v28738_v17 = vpack.c.bf16 %v208_v15, %v207_v13 }
 0x3c6   :  { %28005 = vpow2.f32 %v1421_v18  ;;  %v211_v18 = vld [vmem:[%s28376_s3 + $0x60] sm:$0xff] }
 0x3c8   :  { %v28000_v29 = vpop.eup %27999 }
 0x3c9   :  { %v1423_v30 = vsel %vm1094_vm2, %v28000_v29, 0.0 }
 0x3ca   :  { %1424 = vadd.xlane.f32.xlu0 %v1423_v30 }
 0x3cc   :  { %v28002_v31 = vpop.eup %28001 }
 0x3cd   :  { %v28004_v32 = vpop.eup %28003  ;;  %v1426_v33 = vsel %vm1094_vm2, %v28002_v31, 0.0 }
 0x3ce   :  { %1427 = vadd.xlane.f32.xlu1 %v1426_v33  ;;  %v1429_v35 = vsel %vm1094_vm2, %v28004_v32, 0.0  ;;  %v209_v33 = vld [vmem:[%s28376_s3 + $0x50] sm:$0xff] }
 0x3cf   :  { %1430 = vadd.xlane.f32.xlu0 %v1429_v35  ;;  %v210_v35 = vld [vmem:[%s28376_s3 + $0x58] sm:$0xff] }
 0x3d0   :  { %v28006_v36 = vpop.eup %28005 }
 0x3d1   :  { %v1432_v38 = vsel %vm1094_vm2, %v28006_v36, 0.0 }
 0x3d2   :  { %1433 = vadd.xlane.f32.xlu1 %v1432_v38 }
 0x3d3   :  { %148 = vadd.xlane.f32.xlu0 %v147_v37 }
 0x457   :  { %v1425_v39 = vpop.xlane.xlu0 %1424 }
 0x458   :  { %28007 = vrcp.f32 %v1425_v39 }
 0x45b   :  { %v1428_v40 = vpop.xlane.xlu1 %1427 }
 0x45c   :  { %28009 = vrcp.f32 %v1428_v40  ;;  %v1431_v41 = vpop.xlane.xlu0 %1430  ;;  %v28757_v40 = vpack.c.bf16 %v210_v35, %v209_v33 }
 0x45d   :  { %28011 = vrcp.f32 %v1431_v41  ;;  %v213_v41 = vld [vmem:[%s28376_s3 + $0x70] sm:$0xff] }
 0x45f   :  { %v1434_v43 = vpop.xlane.xlu1 %1433 }
 0x460   :  { %28013 = vrcp.f32 %v1434_v43  ;;  %v149_v44 = vpop.xlane.xlu0 %148  ;;  %v214_v43 = vld [vmem:[%s28376_s3 + $0x78] sm:$0xff] }
 0x461   :  { %v152_v45 = vmul.f32 0.03125, %v149_v44 }
 0x462   :  { %v28008_v46 = vpop.eup %28007 }
 0x463   :  { %v28677_v47 = vsub.f32 %v28670_v34, %v152_v45  ;;  %v1436_v48 = vmul.f32 %v28008_v46, %v28000_v29  ;;  %v212_v29 = vld [vmem:[%s28376_s3 + $0x68] sm:$0xff] }
 0x465   :  { %25622 = vmatmul.mubr.msk.f32.vlgmr.msra.gmra.mrb[20].mxu0 %vm1094_vm2, %v1436_v48  ;;  %v156_v49 = vmul.f32 %v28677_v47, %v28677_v47  ;;  %v28767_v48 = vpack.c.bf16 %v214_v43, %v213_v41 }
 0x466   :  { %v28010_v50 = vpop.eup %28009  ;;  %25630 = vmatpush3.msra.mxu0 %v28661_v51  ;;  %25631 = vmatprep.mubr.msk.f32.mxu0 %vm28328_vm1, %v28327_v7 }
 0x467   :  { %v28012_v52 = vpop.eup %28011  ;;  %v160_v53 = vsel %vm143_vm0, %v156_v49, 0.0  ;;  %v1438_v54 = vmul.f32 %v28010_v50, %v28002_v31  ;;  %27406 = vmatprep.subr.bf16.mxu0 %v28329_v59 }
 0x468   :  { %161 = vadd.xlane.f32.xlu1 %v160_v53  ;;  %v1440_v55 = vmul.f32 %v28012_v52, %v28004_v32  ;;  %v28746_v32 = vpack.c.bf16 %v212_v29, %v211_v18 }
 0x469   :  { %25627 = vmatmul.mubr.msk.f32.vlgmr.msra.gmra.mrb[12].mxu1 %vm1094_vm2, %v1438_v54 }
 0x46a   :  { %v28014_v56 = vpop.eup %28013  ;;  %25632 = vmatmul.mubr.msk.f32.vlgmr.msra.gmra.mrb[22].mxu0 %vm1094_vm2, %v1440_v55  ;;  %25635 = vmatpush3.msra.mxu1 %v28644_v42 }
 0x46b   :  { %25636 = vmatprep.mubr.msk.f32.mxu1 %vm28328_vm1, %v28327_v7  ;;  %v1442_v51 = vmul.f32 %v28014_v56, %v28006_v36  ;;  %25647 = vmatprep.mubr.msk.f32.mxu0 %vm28328_vm1, %v28327_v7 }
 0x46c   :  { %27414 = vmatprep.subr.bf16.mxu1 %v28329_v59 }
 0x46d   :  { %25637 = vmatmul.mubr.msk.f32.vlgmr.msra.gmra.mrb[14].mxu1 %vm1094_vm2, %v1442_v51  ;;  %27409 = vmatpush3.bf16.xpose.msk.msra.mxu0 %vm28700_vm3, %v28705_v60 }
 0x46e   :  { %25658 = vmatprep.mubr.msk.f32.mxu1 %vm28328_vm1, %v28327_v7  ;;  %27410 = vmatprep.subr.bf16.mxu0 %v28329_v59 }
 0x471   :  { %27417 = vmatpush3.bf16.xpose.msk.msra.mxu1 %vm28700_vm3, %v28710_v63 }
 0x472   :  { %27418 = vmatprep.subr.bf16.mxu1 %v28329_v59 }
 0x475   :  { %27413 = vmatpush3.bf16.xpose.msk.msra.mxu0 %vm28700_vm3, %v28724_v5 }
 0x476   :  { %27422 = vmatprep.subr.bf16.mxu0 %v28329_v59 }
 0x479   :  { %27421 = vmatpush3.bf16.xpose.msk.msra.mxu1 %vm28700_vm3, %v28726_v6 }
 0x47a   :  { %27430 = vmatprep.subr.bf16.mxu1 %v28329_v59 }
 0x4f5   :  { %v162_v10 = vpop.xlane.xlu1 %161 }
 0x4f6   :  { %v164_v11 = vmul.f32 0.03125, %v162_v10 }
 0x4f8   :  { %v166_v12 = vadd.f32 1e-05, %v164_v11 }
 0x4fa   :  { %28015 = vrsqrt.f32 %v166_v12 }
 0x504   :  { %v28016_v44 = vpop.eup %28015 }
 0x505   :  { %v170_v49 = vmul.f32 %v28016_v44, %v28677_v47 }
 0x507   :  { %v178_v50 = vmul.f32 %v28534_v14, %v170_v49 }
 0x509   :  { %v186_v47 = vadd.f32 %v28537_v16, %v178_v50 }
 0x538   :  { %v1512_v30 = vpop.f32.mrb[20].mxu0 }
 0x539   :  { %v25623_v31 = vpop.f32.mrb[21].mxu0  ;;  %25648 = vmatmul.mubr.msk.f32.vlgmr.msra.gmra.mrb[24].mxu0 %vm1094_vm2, %v1512_v30 }
 0x53a   :  { %27425 = vmatpush3.bf16.xpose.msk.msra.mxu0 %vm28700_vm3, %v28738_v17  ;;  %25669 = vmatprep.mubr.msk.f32.mxu0 %vm28328_vm1, %v28327_v7 }
 0x53b   :  { %27426 = vmatprep.subr.bf16.mxu0 %v28329_v59 }
 0x53c   :  { %v1585_v36 = vpop.f32.mrb[12].mxu1 }
 0x53d   :  { %v1658_v37 = vpop.f32.mrb[22].mxu0  ;;  %v25628_v38 = vpop.f32.mrb[13].mxu1  ;;  %25659 = vmatmul.mubr.msk.f32.vlgmr.msra.gmra.mrb[16].mxu1 %vm1094_vm2, %v1585_v36 }
 0x53e   :  { %v25633_v39 = vpop.f32.mrb[23].mxu0  ;;  %27433 = vmatpush3.bf16.xpose.msk.msra.mxu1 %vm28700_vm3, %v28746_v32  ;;  %25680 = vmatprep.mubr.msk.f32.mxu1 %vm28328_vm1, %v28327_v7 }
 0x53f   :  { %27434 = vmatprep.subr.bf16.mxu1 %v28329_v59 }
 0x540   :  { %v1731_v45 = vpop.f32.mrb[14].mxu1 }
 0x541   :  { %v25638_v46 = vpop.f32.mrb[15].mxu1 }
 0x542   :  { %27429 = vmatpush3.bf16.xpose.msk.msra.mxu0 %vm28700_vm3, %v28757_v40 }
 0x543   :  { %25683 = vmatprep.subr.mxu0 %v28327_v7 }
 0x546   :  { %27437 = vmatpush3.bf16.xpose.msk.msra.mxu1 %vm28700_vm3, %v28767_v48 }
 0x547   :  { %25688 = vmatprep.subr.mxu1 %v28327_v7 }
 0x549   :  { %25670 = vmatmul.mubr.msk.f32.vlgmr.msra.gmra.mrb[26].mxu0 %vm1094_vm2, %v1658_v37 }
 0x54a   :  { %25684 = vmatpush3.xpose.msk.msra.mxu0 %vm143_vm0, %v28518_v8  ;;  %25685 = vmatprep.mubr.msk.f32.mxu0 %vm28328_vm1, %v28327_v7 }
 0x54b   :  { %25693 = vmatprep.subr.mxu0 %v28327_v7 }
 0x54d   :  { %25681 = vmatmul.mubr.msk.f32.vlgmr.msra.gmra.mrb[18].mxu1 %vm1094_vm2, %v1731_v45  ;;  %25686 = vmatmul.mubr.msk.f32.vlgmr.msra.gmra.mrb[28].mxu0 %vm143_vm0, %v186_v47 }
 0x54e   :  { %25689 = vmatpush3.xpose.msk.msra.mxu1 %vm143_vm0, %v28542_v19  ;;  %25694 = vmatpush3.xpose.msk.msra.mxu0 %vm143_vm0, %v28558_v21 }
 0x54f   :  { %25690 = vmatprep.mubr.msk.f32.mxu1 %vm28328_vm1, %v28327_v7  ;;  %25695 = vmatprep.mubr.msk.f32.mxu0 %vm28328_vm1, %v28327_v7 }
 0x550   :  { %25698 = vmatprep.subr.mxu1 %v28327_v7  ;;  %25703 = vmatprep.subr.mxu0 %v28327_v7 }
 0x551   :  { %25691 = vmatmul.mubr.msk.f32.vlgmr.msra.gmra.mrb[20].mxu1 %vm143_vm0, %v186_v47  ;;  %25696 = vmatmul.mubr.msk.f32.vlgmr.msra.gmra.mrb[30].mxu0 %vm143_vm0, %v186_v47 }
 0x552   :  { %25699 = vmatpush3.xpose.msk.msra.mxu1 %vm143_vm0, %v28576_v23  ;;  %25704 = vmatpush3.xpose.msk.msra.mxu0 %vm143_vm0, %v28594_v25 }
 0x553   :  { %25700 = vmatprep.mubr.msk.f32.mxu1 %vm28328_vm1, %v28327_v7  ;;  %25705 = vmatprep.mubr.msk.f32.mxu0 %vm28328_vm1, %v28327_v7 }
 0x554   :  { %25708 = vmatprep.subr.mxu1 %v28327_v7  ;;  %25713 = vmatprep.subr.mxu0 %v28327_v7 }
 0x555   :  { %25701 = vmatmul.mubr.msk.f32.vlgmr.msra.gmra.mrb[22].mxu1 %vm143_vm0, %v186_v47  ;;  %25706 = vmatmul.mubr.msk.f32.vlgmr.msra.gmra.mrb[32].mxu0 %vm143_vm0, %v186_v47 }
 0x556   :  { %25709 = vmatpush3.xpose.msk.msra.mxu1 %vm143_vm0, %v28521_v9  ;;  %25714 = vmatpush3.xpose.msk.msra.mxu0 %vm143_vm0, %v28606_v26 }
 0x557   :  { %25710 = vmatprep.mubr.msk.f32.mxu1 %vm28328_vm1, %v28327_v7  ;;  %25715 = vmatprep.mubr.msk.f32.mxu0 %vm28328_vm1, %v28327_v7 }
 0x558   :  { %25718 = vmatprep.subr.mxu1 %v28327_v7  ;;  %25723 = vmatprep.subr.mxu0 %v28327_v7 }
 0x559   :  { %25711 = vmatmul.mubr.msk.f32.vlgmr.msra.gmra.mrb[24].mxu1 %vm143_vm0, %v186_v47  ;;  %25716 = vmatmul.mubr.msk.f32.vlgmr.msra.gmra.mrb[34].mxu0 %vm143_vm0, %v186_v47 }
 0x55a   :  { %25719 = vmatpush3.xpose.msk.msra.mxu1 %vm143_vm0, %v28545_v20  ;;  %25724 = vmatpush3.xpose.msk.msra.mxu0 %vm143_vm0, %v28617_v27 }
 0x55b   :  { %25720 = vmatprep.mubr.msk.f32.mxu1 %vm28328_vm1, %v28327_v7  ;;  %25725 = vmatprep.mubr.msk.f32.mxu0 %vm28328_vm1, %v28327_v7 }
 0x55c   :  { %25728 = vmatprep.subr.mxu1 %v28327_v7  ;;  %25733 = vmatprep.subr.mxu0 %v28327_v7 }
 0x55d   :  { %25721 = vmatmul.mubr.msk.f32.vlgmr.msra.gmra.mrb[26].mxu1 %vm143_vm0, %v186_v47  ;;  %25726 = vmatmul.mubr.msk.f32.vlgmr.msra.gmra.mrb[36].mxu0 %vm143_vm0, %v186_v47 }
 0x55e   :  { %25729 = vmatpush3.xpose.msk.msra.mxu1 %vm143_vm0, %v28561_v22  ;;  %25734 = vmatpush3.xpose.msk.msra.mxu0 %vm143_vm0, %v28626_v28 }
 0x55f   :  { %25730 = vmatprep.mubr.msk.f32.mxu1 %vm28328_vm1, %v28327_v7  ;;  %25735 = vmatprep.mubr.msk.f32.mxu0 %vm28328_vm1, %v28327_v7 }
 0x560   :  { %25738 = vmatprep.subr.mxu1 %v28327_v7  ;;  %25743 = vmatprep.subr.mxu0 %v28327_v7 }
 0x561   :  { %25731 = vmatmul.mubr.msk.f32.vlgmr.msra.gmra.mrb[28].mxu1 %vm143_vm0, %v186_v47  ;;  %25736 = vmatmul.mubr.msk.f32.vlgmr.msra.gmra.mrb[38].mxu0 %vm143_vm0, %v186_v47 }
 0x562   :  { %25739 = vmatpush3.xpose.msk.msra.mxu1 %vm143_vm0, %v28579_v24  ;;  %25740 = vmatprep.mubr.msk.f32.mxu1 %vm28328_vm1, %v28327_v7 }
 0x563   :  { %25745 = vmatprep.mubr.msk.f32.mxu0 %vm28328_vm1, %v28327_v7  ;;  %25748 = vmatprep.subr.mxu1 %v28327_v7 }
 0x565   :  { %25741 = vmatmul.mubr.msk.f32.vlgmr.msra.gmra.mrb[30].mxu1 %vm143_vm0, %v186_v47 }
 0x566   :  { %25750 = vmatprep.mubr.msk.f32.mxu1 %vm28328_vm1, %v28327_v7 }
 0x60c   :  { %v1816_v8 = vpop.f32.mrb[24].mxu0 }
 0x60d   :  { %v25649_v9 = vpop.f32.mrb[25].mxu0  ;;  %v2075_v16 = vsel %vm143_vm0, %v1816_v8, 0.0 }
 0x610   :  { %v1901_v14 = vpop.f32.mrb[16].mxu1 }
 0x611   :  { %v2076_v19 = vsel %vm143_vm0, %v1901_v14, 0.0  ;;  %v25660_v20 = vpop.f32.mrb[17].mxu1 }
 0x612   :  { %v2077_v21 = vadd.f32 %v2076_v19, %v2075_v16 }
 0x61c   :  { %v1986_v22 = vpop.f32.mrb[26].mxu0 }
 0x61d   :  { %v2078_v23 = vsel %vm143_vm0, %v1986_v22, 0.0  ;;  %v25671_v24 = vpop.f32.mrb[27].mxu0 }
 0x61e   :  { %v2079_v25 = vadd.f32 %v2078_v23, %v2077_v21 }
 0x620   :  { %v2071_v26 = vpop.f32.mrb[18].mxu1  ;;  %v2151_v27 = vpop.f32.mrb[28].mxu0 }
 0x621   :  { %v2080_v28 = vsel %vm143_vm0, %v2071_v26, 0.0  ;;  %v25682_v52 = vpop.f32.mrb[19].mxu1  ;;  %v25687_v53 = vpop.f32.mrb[29].mxu0 }
 0x622   :  { %v28859_v54 = vadd.f32 %v2080_v28, %v2079_v25 }
 0x624   :  { %v2221_v55 = vpop.f32.mrb[20].mxu1  ;;  %v2291_v56 = vpop.f32.mrb[30].mxu0 }
 0x625   :  { %v25692_v51 = vpop.f32.mrb[21].mxu1  ;;  %v25697_v57 = vpop.f32.mrb[31].mxu0 }
 0x626   :  { %v28896_v51 = vadd.f32 %v28859_v54, %v28509_v0 }
 0x628   :  { %v2361_v58 = vpop.f32.mrb[22].mxu1  ;;  %v2431_v61 = vpop.f32.mrb[32].mxu0 }
 0x629   :  { %v25702_v62 = vpop.f32.mrb[23].mxu1  ;;  %v25707_v1 = vpop.f32.mrb[33].mxu0  ;;  %25744 = vmatpush3.xpose.msk.msra.mxu0 %vm1094_vm2, %v2431_v61  ;;  %v3868_v61 = vsel %vm143_vm0, %v28896_v51, 0.0 }
 0x62a   :  { %25753 = vmatprep.subr.mxu0 %v28327_v7 }
 0x62c   :  { %v2501_v2 = vpop.f32.mrb[24].mxu1  ;;  %v2571_v3 = vpop.f32.mrb[34].mxu0  ;;  %25746 = vmatmul.mubr.msk.f32.vlgmr.msra.gmra.mrb[40].mxu0 %vm1094_vm2, %v2151_v27 }
 0x62d   :  { %v25712_v4 = vpop.f32.mrb[25].mxu1  ;;  %v25717_v10 = vpop.f32.mrb[35].mxu0  ;;  %25749 = vmatpush3.xpose.msk.msra.mxu1 %vm1094_vm2, %v2501_v2  ;;  %25754 = vmatpush3.xpose.msk.msra.mxu0 %vm1094_vm2, %v2571_v3 }
 0x62e   :  { %25755 = vmatprep.mubr.msk.f32.mxu0 %vm28328_vm1, %v28327_v7  ;;  %25758 = vmatprep.subr.mxu1 %v28327_v7 }
 0x62f   :  { %25763 = vmatprep.subr.mxu0 %v28327_v7 }
 0x630   :  { %v2641_v11 = vpop.f32.mrb[26].mxu1  ;;  %v2711_v12 = vpop.f32.mrb[36].mxu0  ;;  %25751 = vmatmul.mubr.msk.f32.vlgmr.msra.gmra.mrb[32].mxu1 %vm1094_vm2, %v2221_v55  ;;  %25756 = vmatmul.mubr.msk.f32.vlgmr.msra.gmra.mrb[42].mxu0 %vm1094_vm2, %v2291_v56 }
 0x631   :  { %v25722_v13 = vpop.f32.mrb[27].mxu1  ;;  %v25727_v15 = vpop.f32.mrb[37].mxu0  ;;  %25759 = vmatpush3.xpose.msk.msra.mxu1 %vm1094_vm2, %v2641_v11  ;;  %25764 = vmatpush3.msra.mxu0 %v2711_v12 }
 0x632   :  { %25760 = vmatprep.mubr.msk.f32.mxu1 %vm28328_vm1, %v28327_v7  ;;  %25768 = vmatprep.subr.mxu1 %v28327_v7 }
 0x633   :  { %25765 = vmatprep.mubr.msk.f32.mxu0 %vm28328_vm1, %v28327_v7  ;;  %25773 = vmatprep.subr.mxu0 %v28327_v7 }
 0x634   :  { %v2781_v18 = vpop.f32.mrb[28].mxu1  ;;  %v28879_v29 = vpop.f32.mrb[38].mxu0  ;;  %25761 = vmatmul.mubr.msk.f32.vlgmr.msra.gmra.mrb[34].mxu1 %vm1094_vm2, %v2361_v58 }
 0x635   :  { %v25732_v30 = vpop.f32.mrb[29].mxu1  ;;  %v25737_v31 = vpop.f32.mrb[39].mxu0  ;;  %25769 = vmatpush3.msra.mxu1 %v2781_v18  ;;  %25770 = vmatprep.mubr.msk.f32.mxu1 %vm28328_vm1, %v28327_v7 }
 0x636   :  { %25778 = vmatprep.subr.mxu1 %v28327_v7 }
 0x638   :  { %v28885_v33 = vpop.f32.mrb[30].mxu1 }
 0x639   :  { %v25742_v35 = vpop.f32.mrb[31].mxu1 }
 0x6ff   :  { %v2997_v36 = vpop.f32.mrb[40].mxu0 }
 0x700   :  { %v25747_v37 = vpop.f32.mrb[41].mxu0  ;;  %v3229_v38 = vsel %vm1094_vm2, %v2997_v36, -inf }
 0x701   :  { %3230 = vmax.xlane.f32.xlu0 %v3229_v38 }
 0x703   :  { %v3073_v39 = vpop.f32.mrb[32].mxu1  ;;  %v3149_v41 = vpop.f32.mrb[42].mxu0 }
 0x704   :  { %v25752_v43 = vpop.f32.mrb[33].mxu1  ;;  %v25757_v44 = vpop.f32.mrb[43].mxu0  ;;  %v3232_v45 = vsel %vm1094_vm2, %v3073_v39, -inf  ;;  %v3235_v46 = vsel %vm1094_vm2, %v3149_v41, -inf }
 0x705   :  { %3233 = vmax.xlane.f32.xlu1 %v3232_v45  ;;  %3236 = vmax.xlane.f32.xlu0 %v3235_v46  ;;  %v23963_v45 = vld [vmem:[%s28381_s8] ss:$0 sm:$0xff] }
 0x707   :  { %v3225_v49 = vpop.f32.mrb[34].mxu1 }
 0x708   :  { %v25762_v50 = vpop.f32.mrb[35].mxu1  ;;  %v3238_v47 = vsel %vm1094_vm2, %v3225_v49, -inf }
 0x709   :  { %3239 = vmax.xlane.f32.xlu1 %v3238_v47 }
 0x78e   :  { %v3231_v8 = vpop.xlane.xlu0 %3230 }
 0x78f   :  { %v3241_v9 = vsub.f32 %v2997_v36, %v3231_v8 }
 0x791   :  { %v3245_v14 = vmul.f32 1.442695, %v3241_v9 }
 0x792   :  { %v3234_v16 = vpop.xlane.xlu1 %3233  ;;  %v3237_v19 = vpop.xlane.xlu0 %3236 }
 0x793   :  { %28017 = vpow2.f32 %v3245_v14  ;;  %v3242_v20 = vsub.f32 %v3073_v39, %v3234_v16  ;;  %v3243_v21 = vsub.f32 %v3149_v41, %v3237_v19 }
 0x795   :  { %v3247_v22 = vmul.f32 1.442695, %v3242_v20  ;;  %v3249_v23 = vmul.f32 1.442695, %v3243_v21 }
 0x796   :  { %v3240_v24 = vpop.xlane.xlu1 %3239 }
 0x797   :  { %28019 = vpow2.f32 %v3247_v22  ;;  %v3244_v25 = vsub.f32 %v3225_v49, %v3240_v24  ;;  %v23964_v49 = vld [vmem:[%s28386_s14] ss:$0 sm:$0xff] }
 0x798   :  { %28021 = vpow2.f32 %v3249_v23 }
 0x799   :  { %v3251_v26 = vmul.f32 1.442695, %v3244_v25 }
 0x79b   :  { %28023 = vpow2.f32 %v3251_v26 }
 0x79d   :  { %v28018_v27 = vpop.eup %28017 }
 0x79e   :  { %v3253_v28 = vsel %vm1094_vm2, %v28018_v27, 0.0 }
 0x79f   :  { %3254 = vadd.xlane.f32.xlu0 %v3253_v28  ;;  %v3910_v28 = vld [vmem:[%s28391_s19] sm:$0xff] }
 0x7a1   :  { %v28020_v52 = vpop.eup %28019 }
 0x7a2   :  { %v28022_v53 = vpop.eup %28021  ;;  %v3256_v55 = vsel %vm1094_vm2, %v28020_v52, 0.0 }
 0x7a3   :  { %3257 = vadd.xlane.f32.xlu1 %v3256_v55  ;;  %v3259_v56 = vsel %vm1094_vm2, %v28022_v53, 0.0 }
 0x7a4   :  { %3260 = vadd.xlane.f32.xlu0 %v3259_v56  ;;  %v3912_v56 = vld [vmem:[%s28391_s19 + $0x10] sm:$0xff] }
 0x7a5   :  { %v28024_v57 = vpop.eup %28023 }
 0x7a6   :  { %v3262_v58 = vsel %vm1094_vm2, %v28024_v57, 0.0 }
 0x7a7   :  { %3263 = vadd.xlane.f32.xlu1 %v3262_v58 }
 0x7a8   :  { %3869 = vadd.xlane.f32.xlu0 %v3868_v61 }
 0x82c   :  { %v3255_v62 = vpop.xlane.xlu0 %3254 }
 0x82d   :  { %28025 = vrcp.f32 %v3255_v62 }
 0x830   :  { %v3258_v1 = vpop.xlane.xlu1 %3257 }
 0x831   :  { %28027 = vrcp.f32 %v3258_v1  ;;  %v3261_v2 = vpop.xlane.xlu0 %3260 }
 0x832   :  { %28029 = vrcp.f32 %v3261_v2 }
 0x834   :  { %v3264_v3 = vpop.xlane.xlu1 %3263 }
 0x835   :  { %28031 = vrcp.f32 %v3264_v3  ;;  %v3870_v4 = vpop.xlane.xlu0 %3869  ;;  %v3914_v3 = vld [vmem:[%s28391_s19 + $0x20] sm:$0xff] }
 0x836   :  { %v3874_v0 = vmul.f32 0.03125, %v3870_v4  ;;  %v3915_v4 = vld [vmem:[%s28391_s19 + $0x28] sm:$0xff] }
 0x837   :  { %v28026_v54 = vpop.eup %28025 }
 0x838   :  { %v3876_v10 = vsub.f32 %v28896_v51, %v3874_v0  ;;  %v3266_v11 = vmul.f32 %v28026_v54, %v28018_v27  ;;  %v27482_v0 = vpack.c.bf16 %v3915_v4, %v3914_v3  ;;  %v3916_v54 = vld [vmem:[%s28391_s19 + $0x30] sm:$0xff]  ;;  %v29122_v3 = vld [vmem:[%s28366_s25 + $0x38] sm:$0xff]  ;;  %v29133_v4 = vld [vmem:[%s28371_s29 + $0x28] sm:$0xff] }
 0x83a   :  { %25766 = vmatmul.mubr.msk.f32.vlgmr.msra.gmra.mrb[44].mxu0 %vm1094_vm2, %v3266_v11  ;;  %v3878_v12 = vmul.f32 %v3876_v10, %v3876_v10 }
 0x83b   :  { %v28028_v13 = vpop.eup %28027  ;;  %25774 = vmatpush3.msra.mxu0 %v28879_v29  ;;  %25775 = vmatprep.mubr.msk.f32.mxu0 %vm28328_vm1, %v28327_v7 }
 0x83c   :  { %v28030_v15 = vpop.eup %28029  ;;  %v3880_v18 = vsel %vm143_vm0, %v3878_v12, 0.0  ;;  %v3268_v30 = vmul.f32 %v28028_v13, %v28020_v52  ;;  %27438 = vmatprep.subr.bf16.mxu0 %v28329_v59  ;;  %v3911_v52 = vld [vmem:[%s28391_s19 + $0x8] sm:$0xff] }
 0x83d   :  { %3881 = vadd.xlane.f32.xlu0 %v3880_v18  ;;  %v3270_v31 = vmul.f32 %v28030_v15, %v28022_v53  ;;  %v27470_v55 = vpack.c.bf16 %v3911_v52, %v3910_v28  ;;  %v29053_v52 = vld [vmem:[%s28356_s17 + $0x1] ss:$0 sm:$0xff]  ;;  %s31595_s17 = sld [smem:[#allocation10_spill]] }
 0x83e   :  { %25771 = vmatmul.mubr.msk.f32.vlgmr.msra.gmra.mrb[36].mxu1 %vm1094_vm2, %v3268_v30 }
 0x83f   :  { %v28032_v35 = vpop.eup %28031  ;;  %25776 = vmatmul.mubr.msk.f32.vlgmr.msra.gmra.mrb[46].mxu0 %vm1094_vm2, %v3270_v31  ;;  %25779 = vmatpush3.msra.mxu1 %v28885_v33 }
 0x840   :  { %25780 = vmatprep.mubr.msk.f32.mxu1 %vm28328_vm1, %v28327_v7  ;;  %v3272_v29 = vmul.f32 %v28032_v35, %v28024_v57  ;;  %27446 = vmatprep.subr.bf16.mxu1 %v28329_v59  ;;  %v3913_v57 = vld [vmem:[%s28391_s19 + $0x18] sm:$0xff] }
 0x841   :  { %25791 = vmatprep.mubr.msk.f32.mxu0 %vm28328_vm1, %v28327_v7  ;;  %v27476_v58 = vpack.c.bf16 %v3913_v57, %v3912_v56  ;;  %v29058_v57 = vld [vmem:[%s28361_s21 + $0x28] sm:$0xff] }
 0x842   :  { %25781 = vmatmul.mubr.msk.f32.vlgmr.msra.gmra.mrb[38].mxu1 %vm1094_vm2, %v3272_v29  ;;  %27441 = vmatpush3.bf16.xpose.msk.msra.mxu0 %vm28700_vm3, %v28705_v60  ;;  %v4037_v29 = vld [vmem:[%s28396_s24] sm:$0xff] }
 0x843   :  { %27442 = vmatprep.subr.bf16.mxu0 %v28329_v59  ;;  %25802 = vmatprep.mubr.msk.f32.mxu1 %vm28328_vm1, %v28327_v7 }
 0x846   :  { %27449 = vmatpush3.bf16.xpose.msk.msra.mxu1 %vm28700_vm3, %v28710_v63 }
 0x847   :  { %27450 = vmatprep.subr.bf16.mxu1 %v28329_v59 }
 0x84a   :  { %27445 = vmatpush3.bf16.xpose.msk.msra.mxu0 %vm28700_vm3, %v28724_v5 }
 0x84b   :  { %27454 = vmatprep.subr.bf16.mxu0 %v28329_v59 }
 0x84e   :  { %27453 = vmatpush3.bf16.xpose.msk.msra.mxu1 %vm28700_vm3, %v28726_v6 }
 0x84f   :  { %27462 = vmatprep.subr.bf16.mxu1 %v28329_v59 }
 0x8ca   :  { %v3882_v60 = vpop.xlane.xlu0 %3881 }
 0x8cb   :  { %v3886_v33 = vmul.f32 0.03125, %v3882_v60  ;;  %v4038_v60 = vld [vmem:[%s28396_s24 + $0x8] sm:$0xff] }
 0x8cd   :  { %v3888_v36 = vadd.f32 1e-05, %v3886_v33  ;;  %v27494_v33 = vpack.c.bf16 %v4038_v60, %v4037_v29 }
 0x8cf   :  { %28033 = vrsqrt.f32 %v3888_v36 }
 0x8d9   :  { %v28034_v6 = vpop.eup %28033 }
 0x8da   :  { %v3892_v43 = vmul.f32 %v28034_v6, %v3876_v10  ;;  %v3917_v10 = vld [vmem:[%s28391_s19 + $0x38] sm:$0xff] }
 0x8db   :  { %v27488_v11 = vpack.c.bf16 %v3917_v10, %v3916_v54 }
 0x8dc   :  { %v3900_v46 = vmul.f32 %v23963_v45, %v3892_v43 }
 0x90d   :  { %v3342_v37 = vpop.f32.mrb[44].mxu0 }
 0x90e   :  { %v25767_v63 = vpop.f32.mrb[45].mxu0  ;;  %25792 = vmatmul.mubr.msk.f32.vlgmr.msra.gmra.mrb[48].mxu0 %vm1094_vm2, %v3342_v37  ;;  %v4039_v37 = vld [vmem:[%s28396_s24 + $0x10] sm:$0xff] }
 0x90f   :  { %27457 = vmatpush3.bf16.xpose.msk.msra.mxu0 %vm28700_vm3, %v28738_v17  ;;  %25813 = vmatprep.mubr.msk.f32.mxu0 %vm28328_vm1, %v28327_v7  ;;  %v4040_v63 = vld [vmem:[%s28396_s24 + $0x18] sm:$0xff] }
 0x910   :  { %27458 = vmatprep.subr.bf16.mxu0 %v28329_v59 }
 0x911   :  { %v3415_v5 = vpop.f32.mrb[36].mxu1 }
 0x912   :  { %v3488_v38 = vpop.f32.mrb[46].mxu0  ;;  %v25772_v39 = vpop.f32.mrb[37].mxu1  ;;  %25803 = vmatmul.mubr.msk.f32.vlgmr.msra.gmra.mrb[40].mxu1 %vm1094_vm2, %v3415_v5  ;;  %v27500_v5 = vpack.c.bf16 %v4040_v63, %v4039_v37 }
 0x913   :  { %v25777_v41 = vpop.f32.mrb[47].mxu0  ;;  %27465 = vmatpush3.bf16.xpose.msk.msra.mxu1 %vm28700_vm3, %v28746_v32  ;;  %25824 = vmatprep.mubr.msk.f32.mxu1 %vm28328_vm1, %v28327_v7  ;;  %v3908_v32 = vadd.f32 %v23964_v49, %v3900_v46 }
 0x914   :  { %27466 = vmatprep.subr.bf16.mxu1 %v28329_v59 }
 0x915   :  { %v3561_v17 = vpop.f32.mrb[38].mxu1 }
 0x916   :  { %v25782_v44 = vpop.f32.mrb[39].mxu1 }
 0x917   :  { %27461 = vmatpush3.bf16.xpose.msk.msra.mxu0 %vm28700_vm3, %v28757_v40 }
 0x918   :  { %27472 = vmatprep.subr.msk.bf16.mxu0 %vm28973_vm4, %v27470_v55 }
 0x91b   :  { %27469 = vmatpush3.bf16.xpose.msk.msra.mxu1 %vm28700_vm3, %v28767_v48 }
 0x91c   :  { %27496 = vmatprep.subr.msk.bf16.mxu1 %vm29009_vm6, %v27494_v33 }
 0x91e   :  { %25814 = vmatmul.mubr.msk.f32.vlgmr.msra.gmra.mrb[50].mxu0 %vm1094_vm2, %v3488_v38 }
 0x91f   :  { %25843 = vmatprep.mubr.msk.f32.mxu0 %vm143_vm0, %v3908_v32  ;;  %27475 = vmatpush3.bf16.xpose.msk.msra.mxu0 %vm28973_vm4, %v27470_v55 }
 0x920   :  { %27478 = vmatprep.subr.msk.bf16.mxu0 %vm28973_vm4, %v27476_v58 }
 0x922   :  { %25825 = vmatmul.mubr.msk.f32.vlgmr.msra.gmra.mrb[42].mxu1 %vm1094_vm2, %v3561_v17 }
 0x923   :  { %27499 = vmatpush3.bf16.xpose.msk.msra.mxu1 %vm29009_vm6, %v27494_v33 }
 0x924   :  { %27502 = vmatprep.subr.msk.bf16.mxu1 %vm29009_vm6, %v27500_v5 }
 0x927   :  { %27481 = vmatpush3.bf16.xpose.msk.msra.mxu0 %vm28973_vm4, %v27476_v58  ;;  %v29061_v58 = vld [vmem:[%s28366_s25 + $0x30] sm:$0xff] }
 0x928   :  { %27484 = vmatprep.subr.msk.bf16.mxu0 %vm28973_vm4, %v27482_v0 }
 0x92b   :  { %27505 = vmatpush3.bf16.xpose.msk.msra.mxu1 %vm29009_vm6, %v27500_v5 }
 0x92c   :  { %25857 = vmatprep.subr.mxu1 %v28327_v7 }
 0x92f   :  { %27487 = vmatpush3.bf16.xpose.msk.msra.mxu0 %vm28973_vm4, %v27482_v0  ;;  %v29142_v0 = vld [vmem:[%s28371_s29 + $0x38] sm:$0xff] }
 0x930   :  { %27490 = vmatprep.subr.msk.bf16.mxu0 %vm28973_vm4, %v27488_v11 }
 0x937   :  { %27493 = vmatpush3.bf16.xpose.msk.msra.mxu0 %vm28973_vm4, %v27488_v11 }
 0x938   :  { %25877 = vmatprep.subr.mxu0 %v28327_v7 }
 0x9e1   :  { %v3634_v50 = vpop.f32.mrb[48].mxu0 }
 0x9e2   :  { %v25793_v47 = vpop.f32.mrb[49].mxu0  ;;  %v3857_v9 = vsel %vm143_vm0, %v3634_v50, 0.0 }
 0x9e5   :  { %v3707_v8 = vpop.f32.mrb[40].mxu1 }
 0x9e6   :  { %v3858_v40 = vsel %vm143_vm0, %v3707_v8, 0.0  ;;  %v25804_v14 = vpop.f32.mrb[41].mxu1 }
 0x9e7   :  { %v3859_v16 = vadd.f32 %v3858_v40, %v3857_v9 }
 0x9f1   :  { %v3780_v48 = vpop.f32.mrb[50].mxu0 }
 0x9f2   :  { %v3860_v19 = vsel %vm143_vm0, %v3780_v48, 0.0  ;;  %v25815_v20 = vpop.f32.mrb[51].mxu0 }
 0x9f3   :  { %v3861_v21 = vadd.f32 %v3860_v19, %v3859_v16 }
 0x9f5   :  { %v3853_v22 = vpop.f32.mrb[42].mxu1 }
 0x9f6   :  { %v3862_v23 = vsel %vm143_vm0, %v3853_v22, 0.0  ;;  %v25826_v24 = vpop.f32.mrb[43].mxu1  ;;  %v29041_v22 = vld [vmem:[%s28366_s25 + $0x20] sm:$0xff] }
 0x9f7   :  { %v3863_v25 = vadd.f32 %v3862_v23, %v3861_v21  ;;  %v29038_v21 = vld [vmem:[%s28361_s21 + $0x20] sm:$0xff] }
 0x9f9   :  { %v28965_v26 = vadd.f32 %v3863_v25, %v28670_v34 }
 0x9fb   :  { %v3871_v27 = vsel %vm143_vm0, %v28965_v26, 0.0 }
 0x9fc   :  { %3872 = vadd.xlane.f32.xlu1 %v3871_v27  ;;  %v29050_v27 = vld [vmem:[%s28351_s13 + $0x1] ss:$0 sm:$0xff]  ;;  %s31594_s13 = sld [smem:[#allocation8_spill]] }
 0xa89   :  { %v3873_v34 = vpop.xlane.xlu1 %3872 }
 0xa8a   :  { %v3875_v61 = vmul.f32 0.03125, %v3873_v34  ;;  %v29074_v34 = vld [vmem:[%s28361_s21 + $0x30] sm:$0xff] }
 0xa8c   :  { %v3877_v62 = vsub.f32 %v28965_v26, %v3875_v61  ;;  %v29077_v61 = vld [vmem:[%s28371_s29 + $0x20] sm:$0xff] }
 0xa8e   :  { %v3879_v1 = vmul.f32 %v3877_v62, %v3877_v62 }
 0xa90   :  { %v3883_v2 = vsel %vm143_vm0, %v3879_v1, 0.0  ;;  %v29095_v1 = vld [vmem:[%s28371_s29 + $0x30] sm:$0xff]  ;;  %s31598_s29 = sld [smem:[#allocation12_spill]] }
 0xa91   :  { %3884 = vadd.xlane.f32.xlu1 %v3883_v2  ;;  %v29110_v2 = vld [vmem:[%s28366_s25 + $0x28] sm:$0xff]  ;;  %s31597_s25 = sld [smem:[#allocation13_spill]] }
 0xb1e   :  { %v3885_v12 = vpop.xlane.xlu1 %3884 }
 0xb1f   :  { %v3887_v13 = vmul.f32 0.03125, %v3885_v12 }
 0xb21   :  { %v3889_v15 = vadd.f32 1e-05, %v3887_v13 }
 0xb23   :  { %28035 = vrsqrt.f32 %v3889_v15 }
 0xb2d   :  { %v28036_v18 = vpop.eup %28035 }
 0xb2e   :  { %v3893_v30 = vmul.f32 %v28036_v18, %v3877_v62  ;;  %v29092_v62 = vld [vmem:[%s28361_s21 + $0x38] sm:$0xff]  ;;  %s31596_s21 = sld [smem:[#allocation11_spill]] }
 0xb30   :  { %v3901_v31 = vmul.f32 %v23963_v45, %v3893_v30 }
 0xb32   :  { %v3909_v35 = vadd.f32 %v23964_v49, %v3901_v31 }
 0xb34   :  { %25844 = vmatmul.mubr.msk.f32.vlgmr.msra.gmra.mrb[52].mxu0 %vm143_vm0, %v3909_v35 }
 0xb35   :  { %25879 = vmatprep.mubr.msk.f32.mxu0 %vm28328_vm1, %v28327_v7  ;;  %25878 = vmatpush3.xpose.msk.msra.mxu0 %vm143_vm0, %v29041_v22 }
 0xb36   :  { %25887 = vmatprep.subr.mxu0 %v28327_v7 }
 0xc07   :  { %v25845_v6 = vpop.f32.mrb[52].mxu0 }
 0xc08   :  { %v23976_v38 = vmul.f32 -1.442695, %v25845_v6  ;;  %v4014_v39 = vpop.f32.mrb[53].mxu0 }
 0xc09   :  { %v23975_v41 = vmul.f32 -1.442695, %v4014_v39 }
 0xc0a   :  { %28037 = vpow2.f32 %v23976_v38 }
 0xc0b   :  { %28039 = vpow2.f32 %v23975_v41 }
 0xc14   :  { %v28038_v17 = vpop.eup %28037 }
 0xc15   :  { %v28040_v43 = vpop.eup %28039  ;;  %v4030_v44 = vadd.f32 1.0, %v28038_v17 }
 0xc16   :  { %v4029_v45 = vadd.f32 1.0, %v28040_v43 }
 0xc17   :  { %28041 = vrcp.f32 %v4030_v44 }
 0xc18   :  { %28043 = vrcp.f32 %v4029_v45 }
 0xc21   :  { %v28042_v46 = vpop.eup %28041 }
 0xc22   :  { %v28044_v49 = vpop.eup %28043  ;;  %v4036_v50 = vmul.f32 %v28042_v46, %v25845_v6 }
 0xc23   :  { %v4035_v32 = vmul.f32 %v28044_v49, %v4014_v39 }
 0xc25   :  { %25854 = vmatprep.mubr.msk.f32.mxu1 %vm4041_vm5, %v4035_v32 }
 0xc26   :  { %25855 = vmatmul.mubr.msk.f32.vlgmr.msra.gmra.mrb[44].mxu1 %vm4041_vm5, %v4036_v50 }
 0xc27   :  { %25859 = vmatprep.mubr.msk.f32.mxu1 %vm28328_vm1, %v28327_v7  ;;  %25858 = vmatpush3.xpose.msk.msra.mxu1 %vm143_vm0, %v29038_v21 }
 0xc28   :  { %25862 = vmatprep.subr.mxu1 %v28327_v7 }
 0xcf9   :  { %v29028_v47 = vpop.f32.mrb[44].mxu1 }
 0xcfa   :  { %v4126_v8 = vpop.f32.mrb[45].mxu1 }
 0xcfb   :  { %v29031_v9 = vadd.f32 %v4126_v8, %v28896_v51 }
 0xcfd   :  { %v4141_v40 = vsel %vm143_vm0, %v29031_v9, 0.0 }
 0xcfe   :  { %4142 = vadd.xlane.f32.xlu0 %v4141_v40 }
 0xd8b   :  { %v4143_v14 = vpop.xlane.xlu0 %4142 }
 0xd8c   :  { %v4147_v16 = vmul.f32 0.03125, %v4143_v14 }
 0xd8e   :  { %v4149_v48 = vsub.f32 %v29031_v9, %v4147_v16 }
 0xd90   :  { %v4151_v19 = vmul.f32 %v4149_v48, %v4149_v48 }
 0xd92   :  { %v4153_v20 = vsel %vm143_vm0, %v4151_v19, 0.0 }
 0xd93   :  { %4154 = vadd.xlane.f32.xlu1 %v4153_v20 }
 0xe20   :  { %v4155_v51 = vpop.xlane.xlu1 %4154 }
 0xe21   :  { %v4159_v23 = vmul.f32 0.03125, %v4155_v51 }
 0xe23   :  { %v4161_v24 = vadd.f32 1e-05, %v4159_v23 }
 0xe25   :  { %28045 = vrsqrt.f32 %v4161_v24 }
 0xe2f   :  { %v28046_v25 = vpop.eup %28045 }
 0xe30   :  { %v4165_v28 = vmul.f32 %v28046_v25, %v4149_v48 }
 0xe32   :  { %v4173_v55 = vmul.f32 %v29050_v27, %v4165_v28 }
 0xe34   :  { %v4181_v56 = vadd.f32 %v29053_v52, %v4173_v55 }
 0xe36   :  { %25860 = vmatmul.mubr.msk.f32.vlgmr.msra.gmra.mrb[46].mxu1 %vm143_vm0, %v4181_v56  ;;  %25880 = vmatmul.mubr.msk.f32.vlgmr.msra.gmra.mrb[54].mxu0 %vm143_vm0, %v4181_v56 }
 0xe37   :  { %25863 = vmatpush3.xpose.msk.msra.mxu1 %vm143_vm0, %v29058_v57  ;;  %25888 = vmatpush3.xpose.msk.msra.mxu0 %vm143_vm0, %v29061_v58 }
 0xe38   :  { %25864 = vmatprep.mubr.msk.f32.mxu1 %vm28328_vm1, %v28327_v7  ;;  %25889 = vmatprep.mubr.msk.f32.mxu0 %vm28328_vm1, %v28327_v7 }
 0xe39   :  { %25867 = vmatprep.subr.mxu1 %v28327_v7  ;;  %25897 = vmatprep.subr.mxu0 %v28327_v7 }
 0xe3a   :  { %25865 = vmatmul.mubr.msk.f32.vlgmr.msra.gmra.mrb[48].mxu1 %vm143_vm0, %v4181_v56  ;;  %25890 = vmatmul.mubr.msk.f32.vlgmr.msra.gmra.mrb[56].mxu0 %vm143_vm0, %v4181_v56 }
 0xe3b   :  { %25868 = vmatpush3.xpose.msk.msra.mxu1 %vm143_vm0, %v29074_v34  ;;  %25898 = vmatpush3.xpose.msk.msra.mxu0 %vm143_vm0, %v29077_v61 }
 0xe3c   :  { %25869 = vmatprep.mubr.msk.f32.mxu1 %vm28328_vm1, %v28327_v7  ;;  %25899 = vmatprep.mubr.msk.f32.mxu0 %vm28328_vm1, %v28327_v7 }
 0xe3d   :  { %25872 = vmatprep.subr.mxu1 %v28327_v7  ;;  %25907 = vmatprep.subr.mxu0 %v28327_v7 }
 0xe3e   :  { %25870 = vmatmul.mubr.msk.f32.vlgmr.msra.gmra.mrb[50].mxu1 %vm143_vm0, %v4181_v56  ;;  %25900 = vmatmul.mubr.msk.f32.vlgmr.msra.gmra.mrb[58].mxu0 %vm143_vm0, %v4181_v56 }
 0xe3f   :  { %25873 = vmatpush3.xpose.msk.msra.mxu1 %vm143_vm0, %v29092_v62  ;;  %25908 = vmatpush3.xpose.msk.msra.mxu0 %vm143_vm0, %v29095_v1 }
 0xe40   :  { %25874 = vmatprep.mubr.msk.f32.mxu1 %vm28328_vm1, %v28327_v7  ;;  %25909 = vmatprep.mubr.msk.f32.mxu0 %vm28328_vm1, %v28327_v7 }
 0xe41   :  { %25882 = vmatprep.subr.mxu1 %v28327_v7  ;;  %25917 = vmatprep.subr.mxu0 %v28327_v7 }
 0xe42   :  { %25875 = vmatmul.mubr.msk.f32.vlgmr.msra.gmra.mrb[52].mxu1 %vm143_vm0, %v4181_v56  ;;  %25910 = vmatmul.mubr.msk.f32.vlgmr.msra.gmra.mrb[60].mxu0 %vm143_vm0, %v4181_v56 }
 0xe43   :  { %25883 = vmatpush3.xpose.msk.msra.mxu1 %vm143_vm0, %v29110_v2  ;;  %25884 = vmatprep.mubr.msk.f32.mxu1 %vm28328_vm1, %v28327_v7 }
 0xe44   :  { %25892 = vmatprep.subr.mxu1 %v28327_v7  ;;  %25919 = vmatprep.mubr.msk.f32.mxu0 %vm28328_vm1, %v28327_v7 }
 0xe46   :  { %25885 = vmatmul.mubr.msk.f32.vlgmr.msra.gmra.mrb[54].mxu1 %vm143_vm0, %v4181_v56 }
 0xe47   :  { %25893 = vmatpush3.xpose.msk.msra.mxu1 %vm143_vm0, %v29122_v3  ;;  %25894 = vmatprep.mubr.msk.f32.mxu1 %vm28328_vm1, %v28327_v7 }
 0xe48   :  { %25902 = vmatprep.subr.mxu1 %v28327_v7 }
 0xe4a   :  { %25895 = vmatmul.mubr.msk.f32.vlgmr.msra.gmra.mrb[56].mxu1 %vm143_vm0, %v4181_v56 }
 0xe4b   :  { %25903 = vmatpush3.xpose.msk.msra.mxu1 %vm143_vm0, %v29133_v4  ;;  %25904 = vmatprep.mubr.msk.f32.mxu1 %vm28328_vm1, %v28327_v7 }
 0xe4c   :  { %25912 = vmatprep.subr.mxu1 %v28327_v7 }
 0xe4e   :  { %25905 = vmatmul.mubr.msk.f32.vlgmr.msra.gmra.mrb[58].mxu1 %vm143_vm0, %v4181_v56 }
 0xe4f   :  { %25913 = vmatpush3.xpose.msk.msra.mxu1 %vm143_vm0, %v29142_v0  ;;  %25914 = vmatprep.mubr.msk.f32.mxu1 %vm28328_vm1, %v28327_v7 }
 0xe50   :  { %25922 = vmatprep.subr.mxu1 %v28327_v7 }
 0xe52   :  { %25915 = vmatmul.mubr.msk.f32.vlgmr.msra.gmra.mrb[60].mxu1 %vm143_vm0, %v4181_v56 }
 0xe53   :  { %25924 = vmatprep.mubr.msk.f32.mxu1 %vm28328_vm1, %v28327_v7 }
 0xf09   :  { %v4287_v54 = vpop.f32.mrb[46].mxu1  ;;  %v4579_v10 = vpop.f32.mrb[54].mxu0 }
 0xf0a   :  { %v25861_v11 = vpop.f32.mrb[47].mxu1  ;;  %v25881_v12 = vpop.f32.mrb[55].mxu0  ;;  %25918 = vmatpush3.xpose.msk.msra.mxu0 %vm1094_vm2, %v4579_v10 }
 0xf0b   :  { %25927 = vmatprep.subr.mxu0 %v28327_v7 }
 0xf0d   :  { %v4360_v13 = vpop.f32.mrb[48].mxu1  ;;  %v4725_v15 = vpop.f32.mrb[56].mxu0  ;;  %25920 = vmatmul.mubr.msk.f32.vlgmr.msra.gmra.mrb[62].mxu0 %vm1094_vm2, %v4287_v54 }
 0xf0e   :  { %v25866_v18 = vpop.f32.mrb[49].mxu1  ;;  %v25891_v30 = vpop.f32.mrb[57].mxu0  ;;  %25928 = vmatpush3.xpose.msk.msra.mxu0 %vm1094_vm2, %v4725_v15  ;;  %25929 = vmatprep.mubr.msk.f32.mxu0 %vm28328_vm1, %v28327_v7 }
 0xf0f   :  { %25937 = vmatprep.subr.mxu0 %v28327_v7  ;;  %v29186_v30 = vadd.f32 %v29028_v47, %v28965_v26 }
 0xf11   :  { %v4433_v31 = vpop.f32.mrb[50].mxu1  ;;  %v4871_v35 = vpop.f32.mrb[58].mxu0 }
 0xf12   :  { %v25871_v29 = vpop.f32.mrb[51].mxu1  ;;  %v25901_v60 = vpop.f32.mrb[59].mxu0  ;;  %25930 = vmatmul.mubr.msk.f32.vlgmr.msra.gmra.mrb[64].mxu0 %vm1094_vm2, %v4433_v31 }
 0xf13   :  { %25938 = vmatpush3.msra.mxu0 %v4871_v35  ;;  %25939 = vmatprep.mubr.msk.f32.mxu0 %vm28328_vm1, %v28327_v7  ;;  %v4144_v60 = vsel %vm143_vm0, %v29186_v30, 0.0 }
 0xf14   :  { %25947 = vmatprep.subr.mxu0 %v28327_v7 }
 0xf15   :  { %v4506_v33 = vpop.f32.mrb[52].mxu1  ;;  %v29164_v37 = vpop.f32.mrb[60].mxu0 }
 0xf16   :  { %v25876_v63 = vpop.f32.mrb[53].mxu1  ;;  %v25911_v5 = vpop.f32.mrb[61].mxu0 }
 0xf19   :  { %v4652_v6 = vpop.f32.mrb[54].mxu1 }
 0xf1a   :  { %v25886_v38 = vpop.f32.mrb[55].mxu1  ;;  %25923 = vmatpush3.xpose.msk.msra.mxu1 %vm1094_vm2, %v4652_v6 }
 0xf1b   :  { %25932 = vmatprep.subr.mxu1 %v28327_v7 }
 0xf1d   :  { %v4798_v39 = vpop.f32.mrb[56].mxu1  ;;  %25925 = vmatmul.mubr.msk.f32.vlgmr.msra.gmra.mrb[62].mxu1 %vm1094_vm2, %v4360_v13 }
 0xf1e   :  { %v25896_v41 = vpop.f32.mrb[57].mxu1  ;;  %25933 = vmatpush3.xpose.msk.msra.mxu1 %vm1094_vm2, %v4798_v39  ;;  %25934 = vmatprep.mubr.msk.f32.mxu1 %vm28328_vm1, %v28327_v7 }
 0xf1f   :  { %25942 = vmatprep.subr.mxu1 %v28327_v7 }
 0xf21   :  { %v4944_v17 = vpop.f32.mrb[58].mxu1  ;;  %25935 = vmatmul.mubr.msk.f32.vlgmr.msra.gmra.mrb[64].mxu1 %vm1094_vm2, %v4506_v33 }
 0xf22   :  { %v25906_v43 = vpop.f32.mrb[59].mxu1  ;;  %25943 = vmatpush3.msra.mxu1 %v4944_v17  ;;  %25944 = vmatprep.mubr.msk.f32.mxu1 %vm28328_vm1, %v28327_v7 }
 0xf23   :  { %25952 = vmatprep.subr.mxu1 %v28327_v7 }
 0xf25   :  { %v29177_v44 = vpop.f32.mrb[60].mxu1 }
 0xf26   :  { %v25916_v45 = vpop.f32.mrb[61].mxu1 }
 0xfe0   :  { %v5166_v46 = vpop.f32.mrb[62].mxu0 }
 0xfe1   :  { %v25921_v49 = vpop.f32.mrb[63].mxu0  ;;  %v5398_v32 = vsel %vm1094_vm2, %v5166_v46, -inf }
 0xfe2   :  { %5399 = vmax.xlane.f32.xlu0 %v5398_v32 }
 0xfe5   :  { %v5318_v50 = vpop.f32.mrb[64].mxu0 }
 0xfe6   :  { %v25931_v8 = vpop.f32.mrb[65].mxu0  ;;  %v5404_v40 = vsel %vm1094_vm2, %v5318_v50, -inf }
 0xfe7   :  { %5405 = vmax.xlane.f32.xlu0 %v5404_v40 }
 0xff0   :  { %v5242_v14 = vpop.f32.mrb[62].mxu1 }
 0xff1   :  { %v25926_v16 = vpop.f32.mrb[63].mxu1  ;;  %v5401_v48 = vsel %vm1094_vm2, %v5242_v14, -inf }
 0xff2   :  { %5402 = vmax.xlane.f32.xlu1 %v5401_v48  ;;  %v23999_v48 = vld [vmem:[%s28376_s3 + $0x80] sm:$0xff] }
 0xff4   :  { %v5394_v19 = vpop.f32.mrb[64].mxu1 }
 0xff5   :  { %v25936_v20 = vpop.f32.mrb[65].mxu1  ;;  %v5407_v51 = vsel %vm1094_vm2, %v5394_v19, -inf }
 0xff6   :  { %5408 = vmax.xlane.f32.xlu1 %v5407_v51  ;;  %v24002_v51 = vld [vmem:[%s28376_s3 + $0x98] sm:$0xff] }
0x106f   :  { %v5400_v23 = vpop.xlane.xlu0 %5399 }
0x1070   :  { %v5410_v24 = vsub.f32 %v5166_v46, %v5400_v23 }
0x1072   :  { %v5414_v25 = vmul.f32 1.442695, %v5410_v24  ;;  %v24003_v24 = vld [vmem:[%s28376_s3 + $0xa0] sm:$0xff] }
0x1074   :  { %28047 = vpow2.f32 %v5414_v25  ;;  %v5406_v28 = vpop.xlane.xlu0 %5405  ;;  %v24004_v25 = vld [vmem:[%s28376_s3 + $0xa8] sm:$0xff] }
0x1075   :  { %v5412_v55 = vsub.f32 %v5318_v50, %v5406_v28  ;;  %v29233_v28 = vpack.c.bf16 %v24004_v25, %v24003_v24 }
0x1077   :  { %v5418_v56 = vmul.f32 1.442695, %v5412_v55  ;;  %v24005_v55 = vld [vmem:[%s28376_s3 + $0xb0] sm:$0xff] }
0x1079   :  { %28049 = vpow2.f32 %v5418_v56  ;;  %v24006_v56 = vld [vmem:[%s28376_s3 + $0xb8] sm:$0xff] }
0x107e   :  { %v28048_v54 = vpop.eup %28047 }
0x107f   :  { %v5403_v10 = vpop.xlane.xlu1 %5402  ;;  %v5422_v11 = vsel %vm1094_vm2, %v28048_v54, 0.0 }
0x1080   :  { %v5411_v12 = vsub.f32 %v5242_v14, %v5403_v10  ;;  %5423 = vadd.xlane.f32.xlu0 %v5422_v11 }
0x1082   :  { %v5416_v13 = vmul.f32 1.442695, %v5411_v12 }
0x1083   :  { %v28050_v15 = vpop.eup %28049  ;;  %v5409_v18 = vpop.xlane.xlu1 %5408 }
0x1084   :  { %28051 = vpow2.f32 %v5416_v13  ;;  %v5413_v31 = vsub.f32 %v5394_v19, %v5409_v18  ;;  %v5428_v35 = vsel %vm1094_vm2, %v28050_v15, 0.0  ;;  %v24000_v19 = vld [vmem:[%s28376_s3 + $0x88] sm:$0xff]  ;;  %v24007_v13 = vld [vmem:[%s28376_s3 + $0xc0] sm:$0xff] }
0x1085   :  { %5429 = vadd.xlane.f32.xlu0 %v5428_v35  ;;  %v29217_v20 = vpack.c.bf16 %v24000_v19, %v23999_v48 }
0x1086   :  { %v5420_v29 = vmul.f32 1.442695, %v5413_v31 }
0x1088   :  { %28053 = vpow2.f32 %v5420_v29  ;;  %v24009_v29 = vld [vmem:[%s28376_s3 + $0xd0] sm:$0xff] }
0x1089   :  { %4145 = vadd.xlane.f32.xlu0 %v4144_v60  ;;  %v24010_v60 = vld [vmem:[%s28376_s3 + $0xd8] sm:$0xff] }
0x108e   :  { %v28052_v33 = vpop.eup %28051 }
0x108f   :  { %v5425_v63 = vsel %vm1094_vm2, %v28052_v33, 0.0 }
0x1090   :  { %5426 = vadd.xlane.f32.xlu1 %v5425_v63 }
0x1092   :  { %v28054_v5 = vpop.eup %28053 }
0x1093   :  { %v5431_v6 = vsel %vm1094_vm2, %v28054_v5, 0.0 }
0x1094   :  { %5432 = vadd.xlane.f32.xlu1 %v5431_v6 }
0x110d   :  { %v5424_v26 = vpop.xlane.xlu0 %5423 }
0x110e   :  { %28055 = vrcp.f32 %v5424_v26 }
0x1112   :  { %v5430_v47 = vpop.xlane.xlu0 %5429 }
0x1113   :  { %28057 = vrcp.f32 %v5430_v47  ;;  %v24011_v47 = vld [vmem:[%s28376_s3 + $0xe0] sm:$0xff] }
0x1116   :  { %v4146_v38 = vpop.xlane.xlu0 %4145 }
0x1117   :  { %v4148_v39 = vmul.f32 0.03125, %v4146_v38  ;;  %v24012_v38 = vld [vmem:[%s28376_s3 + $0xe8] sm:$0xff] }
0x1118   :  { %v28056_v41 = vpop.eup %28055 }
0x1119   :  { %v29194_v17 = vsub.f32 %v29186_v30, %v4148_v39  ;;  %v5435_v43 = vmul.f32 %v28056_v41, %v28048_v54  ;;  %v29241_v54 = vpack.c.bf16 %v24006_v56, %v24005_v55  ;;  %v29269_v39 = vpack.c.bf16 %v24012_v38, %v24011_v47 }
0x111b   :  { %25940 = vmatmul.mubr.msk.f32.vlgmr.msra.gmra.mrb[66].mxu0 %vm1094_vm2, %v5435_v43  ;;  %v4152_v45 = vmul.f32 %v29194_v17, %v29194_v17 }
0x111c   :  { %25948 = vmatpush3.msra.mxu0 %v29164_v37  ;;  %25949 = vmatprep.mubr.msk.f32.mxu0 %vm28328_vm1, %v28327_v7 }
0x111d   :  { %v28058_v46 = vpop.eup %28057  ;;  %v5427_v49 = vpop.xlane.xlu1 %5426  ;;  %v4156_v32 = vsel %vm143_vm0, %v4152_v45, 0.0  ;;  %27506 = vmatprep.subr.bf16.mxu0 %v28329_v59 }
0x111e   :  { %28059 = vrcp.f32 %v5427_v49  ;;  %4157 = vadd.xlane.f32.xlu1 %v4156_v32  ;;  %v5439_v50 = vmul.f32 %v28058_v46, %v28050_v15  ;;  %v24008_v15 = vld [vmem:[%s28376_s3 + $0xc8] sm:$0xff]  ;;  %v24014_v46 = vld [vmem:[%s28376_s3 + $0xf8] sm:$0xff] }
0x111f   :  { %v29249_v18 = vpack.c.bf16 %v24008_v15, %v24007_v13 }
0x1120   :  { %25950 = vmatmul.mubr.msk.f32.vlgmr.msra.gmra.mrb[68].mxu0 %vm1094_vm2, %v5439_v50 }
0x1121   :  { %v5433_v8 = vpop.xlane.xlu1 %5432  ;;  %25965 = vmatprep.mubr.msk.f32.mxu0 %vm28328_vm1, %v28327_v7 }
0x1122   :  { %28061 = vrcp.f32 %v5433_v8 }
0x1123   :  { %27509 = vmatpush3.bf16.xpose.msk.msra.mxu0 %vm28700_vm3, %v29217_v20 }
0x1124   :  { %27510 = vmatprep.subr.bf16.mxu0 %v28329_v59 }
0x1128   :  { %v28060_v37 = vpop.eup %28059 }
0x1129   :  { %v5437_v40 = vmul.f32 %v28060_v37, %v28052_v33 }
0x112b   :  { %25945 = vmatmul.mubr.msk.f32.vlgmr.msra.gmra.mrb[66].mxu1 %vm1094_vm2, %v5437_v40 }
0x112c   :  { %v28062_v14 = vpop.eup %28061  ;;  %25953 = vmatpush3.msra.mxu1 %v29177_v44  ;;  %25954 = vmatprep.mubr.msk.f32.mxu1 %vm28328_vm1, %v28327_v7  ;;  %v24001_v44 = vld [vmem:[%s28376_s3 + $0x90] sm:$0xff] }
0x112d   :  { %v5441_v16 = vmul.f32 %v28062_v14, %v28054_v5  ;;  %27514 = vmatprep.subr.bf16.mxu1 %v28329_v59  ;;  %v29225_v23 = vpack.c.bf16 %v24002_v51, %v24001_v44  ;;  %v29260_v5 = vpack.c.bf16 %v24010_v60, %v24009_v29 }
0x112f   :  { %25955 = vmatmul.mubr.msk.f32.vlgmr.msra.gmra.mrb[68].mxu1 %vm1094_vm2, %v5441_v16  ;;  %27513 = vmatpush3.bf16.xpose.msk.msra.mxu0 %vm28700_vm3, %v29225_v23 }
0x1130   :  { %25976 = vmatprep.mubr.msk.f32.mxu1 %vm28328_vm1, %v28327_v7  ;;  %27522 = vmatprep.subr.bf16.mxu0 %v28329_v59 }
0x1133   :  { %27517 = vmatpush3.bf16.xpose.msk.msra.mxu1 %vm28700_vm3, %v29233_v28 }
0x1134   :  { %27518 = vmatprep.subr.bf16.mxu1 %v28329_v59 }
0x113b   :  { %27521 = vmatpush3.bf16.xpose.msk.msra.mxu1 %vm28700_vm3, %v29241_v54 }
0x113c   :  { %27530 = vmatprep.subr.bf16.mxu1 %v28329_v59 }
0x11ab   :  { %v4158_v10 = vpop.xlane.xlu1 %4157 }
0x11ac   :  { %v4160_v11 = vmul.f32 0.03125, %v4158_v10 }
0x11ae   :  { %v4162_v12 = vadd.f32 1e-05, %v4160_v11 }
0x11b0   :  { %28063 = vrsqrt.f32 %v4162_v12 }
0x11ba   :  { %v28064_v6 = vpop.eup %28063 }
0x11bb   :  { %v4166_v26 = vmul.f32 %v28064_v6, %v29194_v17 }
0x11bd   :  { %v4174_v41 = vmul.f32 %v29050_v27, %v4166_v26  ;;  %v24013_v27 = vld [vmem:[%s28376_s3 + $0xf0] sm:$0xff]  ;;  %s31599_s3 = sld [smem:[#allocation5_spill]] }
0x11bf   :  { %v4182_v17 = vadd.f32 %v29053_v52, %v4174_v41 }
0x11ee   :  { %v5511_v31 = vpop.f32.mrb[66].mxu0 }
0x11ef   :  { %v25941_v35 = vpop.f32.mrb[67].mxu0  ;;  %25966 = vmatmul.mubr.msk.f32.vlgmr.msra.gmra.mrb[70].mxu0 %vm1094_vm2, %v5511_v31 }
0x11f0   :  { %27525 = vmatpush3.bf16.xpose.msk.msra.mxu0 %vm28700_vm3, %v29249_v18  ;;  %25987 = vmatprep.mubr.msk.f32.mxu0 %vm28328_vm1, %v28327_v7 }
0x11f1   :  { %27526 = vmatprep.subr.bf16.mxu0 %v28329_v59 }
0x11f3   :  { %v5657_v33 = vpop.f32.mrb[68].mxu0 }
0x11f4   :  { %v25951_v63 = vpop.f32.mrb[69].mxu0 }
0x11f8   :  { %27529 = vmatpush3.bf16.xpose.msk.msra.mxu0 %vm28700_vm3, %v29260_v5 }
0x11f9   :  { %26001 = vmatprep.subr.mxu0 %v28327_v7 }
0x11fe   :  { %v5584_v43 = vpop.f32.mrb[66].mxu1 }
0x11ff   :  { %25988 = vmatmul.mubr.msk.f32.vlgmr.msra.gmra.mrb[72].mxu0 %vm1094_vm2, %v5657_v33  ;;  %v25946_v45 = vpop.f32.mrb[67].mxu1  ;;  %25977 = vmatmul.mubr.msk.f32.vlgmr.msra.gmra.mrb[70].mxu1 %vm1094_vm2, %v5584_v43 }
0x1200   :  { %27533 = vmatpush3.bf16.xpose.msk.msra.mxu1 %vm28700_vm3, %v29269_v39  ;;  %26002 = vmatpush3.xpose.msk.msra.mxu0 %vm143_vm0, %v29038_v21  ;;  %v29293_v21 = vpack.c.bf16 %v24014_v46, %v24013_v27 }
0x1201   :  { %26003 = vmatprep.mubr.msk.f32.mxu0 %vm28328_vm1, %v28327_v7  ;;  %26011 = vmatprep.subr.mxu0 %v28327_v7 }
0x1202   :  { %v5730_v49 = vpop.f32.mrb[68].mxu1  ;;  %27534 = vmatprep.subr.bf16.mxu1 %v28329_v59  ;;  %25998 = vmatprep.mubr.msk.f32.mxu1 %vm28328_vm1, %v28327_v7 }
0x1203   :  { %26004 = vmatmul.mubr.msk.f32.vlgmr.msra.gmra.mrb[74].mxu0 %vm143_vm0, %v4182_v17  ;;  %v25956_v32 = vpop.f32.mrb[69].mxu1 }
0x1204   :  { %26012 = vmatpush3.xpose.msk.msra.mxu0 %vm143_vm0, %v29074_v34  ;;  %26013 = vmatprep.mubr.msk.f32.mxu0 %vm28328_vm1, %v28327_v7 }
0x1205   :  { %26021 = vmatprep.subr.mxu0 %v28327_v7 }
0x1207   :  { %26014 = vmatmul.mubr.msk.f32.vlgmr.msra.gmra.mrb[76].mxu0 %vm143_vm0, %v4182_v17 }
0x1208   :  { %27537 = vmatpush3.bf16.xpose.msk.msra.mxu1 %vm28700_vm3, %v29293_v21  ;;  %26022 = vmatpush3.xpose.msk.msra.mxu0 %vm143_vm0, %v29041_v22 }
0x1209   :  { %26023 = vmatprep.mubr.msk.f32.mxu0 %vm28328_vm1, %v28327_v7  ;;  %26031 = vmatprep.subr.mxu0 %v28327_v7 }
0x120a   :  { %26006 = vmatprep.subr.mxu1 %v28327_v7 }
0x120b   :  { %26024 = vmatmul.mubr.msk.f32.vlgmr.msra.gmra.mrb[78].mxu0 %vm143_vm0, %v4182_v17 }
0x120c   :  { %26032 = vmatpush3.xpose.msk.msra.mxu0 %vm143_vm0, %v29061_v58  ;;  %26033 = vmatprep.mubr.msk.f32.mxu0 %vm28328_vm1, %v28327_v7 }
0x120d   :  { %26041 = vmatprep.subr.mxu0 %v28327_v7 }
0x120f   :  { %25999 = vmatmul.mubr.msk.f32.vlgmr.msra.gmra.mrb[72].mxu1 %vm1094_vm2, %v5730_v49  ;;  %26034 = vmatmul.mubr.msk.f32.vlgmr.msra.gmra.mrb[80].mxu0 %vm143_vm0, %v4182_v17 }
0x1210   :  { %26007 = vmatpush3.xpose.msk.msra.mxu1 %vm143_vm0, %v29058_v57  ;;  %26042 = vmatpush3.xpose.msk.msra.mxu0 %vm143_vm0, %v29077_v61 }
0x1211   :  { %26008 = vmatprep.mubr.msk.f32.mxu1 %vm28328_vm1, %v28327_v7  ;;  %26043 = vmatprep.mubr.msk.f32.mxu0 %vm28328_vm1, %v28327_v7 }
0x1212   :  { %26016 = vmatprep.subr.mxu1 %v28327_v7  ;;  %26051 = vmatprep.subr.mxu0 %v28327_v7 }
0x1213   :  { %26009 = vmatmul.mubr.msk.f32.vlgmr.msra.gmra.mrb[74].mxu1 %vm143_vm0, %v4182_v17  ;;  %26044 = vmatmul.mubr.msk.f32.vlgmr.msra.gmra.mrb[82].mxu0 %vm143_vm0, %v4182_v17 }
0x1214   :  { %26017 = vmatpush3.xpose.msk.msra.mxu1 %vm143_vm0, %v29092_v62  ;;  %26052 = vmatpush3.xpose.msk.msra.mxu0 %vm143_vm0, %v29095_v1 }
0x1215   :  { %26018 = vmatprep.mubr.msk.f32.mxu1 %vm28328_vm1, %v28327_v7  ;;  %26053 = vmatprep.mubr.msk.f32.mxu0 %vm28328_vm1, %v28327_v7 }
0x1216   :  { %26026 = vmatprep.subr.mxu1 %v28327_v7  ;;  %26061 = vmatprep.subr.mxu0 %v28327_v7 }
0x1217   :  { %26019 = vmatmul.mubr.msk.f32.vlgmr.msra.gmra.mrb[76].mxu1 %vm143_vm0, %v4182_v17  ;;  %26054 = vmatmul.mubr.msk.f32.vlgmr.msra.gmra.mrb[84].mxu0 %vm143_vm0, %v4182_v17 }
0x1218   :  { %26027 = vmatpush3.xpose.msk.msra.mxu1 %vm143_vm0, %v29110_v2  ;;  %26028 = vmatprep.mubr.msk.f32.mxu1 %vm28328_vm1, %v28327_v7 }
0x1219   :  { %26036 = vmatprep.subr.mxu1 %v28327_v7  ;;  %26063 = vmatprep.mubr.msk.f32.mxu0 %vm28328_vm1, %v28327_v7 }
0x121b   :  { %26029 = vmatmul.mubr.msk.f32.vlgmr.msra.gmra.mrb[78].mxu1 %vm143_vm0, %v4182_v17 }
0x121c   :  { %26037 = vmatpush3.xpose.msk.msra.mxu1 %vm143_vm0, %v29122_v3  ;;  %26038 = vmatprep.mubr.msk.f32.mxu1 %vm28328_vm1, %v28327_v7 }
0x121d   :  { %26046 = vmatprep.subr.mxu1 %v28327_v7 }
0x121f   :  { %26039 = vmatmul.mubr.msk.f32.vlgmr.msra.gmra.mrb[80].mxu1 %vm143_vm0, %v4182_v17 }
0x1220   :  { %26047 = vmatpush3.xpose.msk.msra.mxu1 %vm143_vm0, %v29133_v4  ;;  %26048 = vmatprep.mubr.msk.f32.mxu1 %vm28328_vm1, %v28327_v7 }
0x1221   :  { %26056 = vmatprep.subr.mxu1 %v28327_v7 }
0x1223   :  { %26049 = vmatmul.mubr.msk.f32.vlgmr.msra.gmra.mrb[82].mxu1 %vm143_vm0, %v4182_v17 }
0x1224   :  { %26057 = vmatpush3.xpose.msk.msra.mxu1 %vm143_vm0, %v29142_v0  ;;  %26058 = vmatprep.mubr.msk.f32.mxu1 %vm28328_vm1, %v28327_v7 }
0x1225   :  { %26066 = vmatprep.subr.mxu1 %v28327_v7 }
0x1227   :  { %26059 = vmatmul.mubr.msk.f32.vlgmr.msra.gmra.mrb[84].mxu1 %vm143_vm0, %v4182_v17 }
0x1228   :  { %26068 = vmatprep.mubr.msk.f32.mxu1 %vm28328_vm1, %v28327_v7 }
0x12c2   :  { %v5815_v22 = vpop.f32.mrb[70].mxu0 }
0x12c3   :  { %v25967_v52 = vpop.f32.mrb[71].mxu0  ;;  %v6074_v34 = vsel %vm143_vm0, %v5815_v22, 0.0 }
0x12d2   :  { %v5985_v57 = vpop.f32.mrb[72].mxu0  ;;  %v5900_v58 = vpop.f32.mrb[70].mxu1 }
0x12d3   :  { %v6075_v61 = vsel %vm143_vm0, %v5900_v58, 0.0  ;;  %v25989_v62 = vpop.f32.mrb[73].mxu0  ;;  %v25978_v1 = vpop.f32.mrb[71].mxu1  ;;  %v6077_v3 = vsel %vm143_vm0, %v5985_v57, 0.0 }
0x12d4   :  { %v6076_v2 = vadd.f32 %v6075_v61, %v6074_v34 }
0x12d6   :  { %v6150_v4 = vpop.f32.mrb[74].mxu0  ;;  %v6078_v0 = vadd.f32 %v6077_v3, %v6076_v2 }
0x12d7   :  { %v26005_v50 = vpop.f32.mrb[75].mxu0 }
0x12da   :  { %v6290_v8 = vpop.f32.mrb[76].mxu0 }
0x12db   :  { %v26015_v37 = vpop.f32.mrb[77].mxu0 }
0x12de   :  { %v6430_v40 = vpop.f32.mrb[78].mxu0 }
0x12df   :  { %v26025_v14 = vpop.f32.mrb[79].mxu0  ;;  %26062 = vmatpush3.xpose.msk.msra.mxu0 %vm1094_vm2, %v6430_v40 }
0x12e0   :  { %26071 = vmatprep.subr.mxu0 %v28327_v7 }
0x12e2   :  { %v6070_v16 = vpop.f32.mrb[72].mxu1  ;;  %v6570_v48 = vpop.f32.mrb[80].mxu0  ;;  %26064 = vmatmul.mubr.msk.f32.vlgmr.msra.gmra.mrb[86].mxu0 %vm1094_vm2, %v6150_v4 }
0x12e3   :  { %v6079_v19 = vsel %vm143_vm0, %v6070_v16, 0.0  ;;  %v26000_v44 = vpop.f32.mrb[73].mxu1  ;;  %v26035_v51 = vpop.f32.mrb[81].mxu0  ;;  %26072 = vmatpush3.xpose.msk.msra.mxu0 %vm1094_vm2, %v6570_v48  ;;  %26073 = vmatprep.mubr.msk.f32.mxu0 %vm28328_vm1, %v28327_v7 }
0x12e4   :  { %v29376_v24 = vadd.f32 %v6079_v19, %v6078_v0  ;;  %26081 = vmatprep.subr.mxu0 %v28327_v7 }
0x12e6   :  { %v6220_v25 = vpop.f32.mrb[74].mxu1  ;;  %v6710_v55 = vpop.f32.mrb[82].mxu0  ;;  %26074 = vmatmul.mubr.msk.f32.vlgmr.msra.gmra.mrb[88].mxu0 %vm1094_vm2, %v6290_v8  ;;  %v29405_v37 = vadd.f32 %v29376_v24, %v29031_v9 }
0x12e7   :  { %v26010_v56 = vpop.f32.mrb[75].mxu1  ;;  %v26045_v10 = vpop.f32.mrb[83].mxu0  ;;  %26082 = vmatpush3.msra.mxu0 %v6710_v55  ;;  %26083 = vmatprep.mubr.msk.f32.mxu0 %vm28328_vm1, %v28327_v7 }
0x12e8   :  { %26091 = vmatprep.subr.mxu0 %v28327_v7  ;;  %v7869_v19 = vsel %vm143_vm0, %v29405_v37, 0.0 }
0x12ea   :  { %v6360_v11 = vpop.f32.mrb[76].mxu1  ;;  %v29383_v12 = vpop.f32.mrb[84].mxu0 }
0x12eb   :  { %v26020_v13 = vpop.f32.mrb[77].mxu1  ;;  %v26055_v15 = vpop.f32.mrb[85].mxu0 }
0x12ee   :  { %v6500_v31 = vpop.f32.mrb[78].mxu1 }
0x12ef   :  { %v26030_v35 = vpop.f32.mrb[79].mxu1  ;;  %26067 = vmatpush3.xpose.msk.msra.mxu1 %vm1094_vm2, %v6500_v31 }
0x12f0   :  { %26076 = vmatprep.subr.mxu1 %v28327_v7 }
0x12f2   :  { %v6640_v29 = vpop.f32.mrb[80].mxu1  ;;  %26069 = vmatmul.mubr.msk.f32.vlgmr.msra.gmra.mrb[86].mxu1 %vm1094_vm2, %v6220_v25 }
0x12f3   :  { %v26040_v60 = vpop.f32.mrb[81].mxu1  ;;  %26077 = vmatpush3.xpose.msk.msra.mxu1 %vm1094_vm2, %v6640_v29  ;;  %26078 = vmatprep.mubr.msk.f32.mxu1 %vm28328_vm1, %v28327_v7 }
0x12f4   :  { %26086 = vmatprep.subr.mxu1 %v28327_v7 }
0x12f6   :  { %v6780_v33 = vpop.f32.mrb[82].mxu1  ;;  %26079 = vmatmul.mubr.msk.f32.vlgmr.msra.gmra.mrb[88].mxu1 %vm1094_vm2, %v6360_v11 }
0x12f7   :  { %v26050_v63 = vpop.f32.mrb[83].mxu1  ;;  %26087 = vmatpush3.msra.mxu1 %v6780_v33  ;;  %26088 = vmatprep.mubr.msk.f32.mxu1 %vm28328_vm1, %v28327_v7 }
0x12f8   :  { %26096 = vmatprep.subr.mxu1 %v28327_v7 }
0x12fa   :  { %v29396_v6 = vpop.f32.mrb[84].mxu1 }
0x12fb   :  { %v26060_v26 = vpop.f32.mrb[85].mxu1 }
0x13b5   :  { %v6996_v47 = vpop.f32.mrb[86].mxu0 }
0x13b6   :  { %v26065_v38 = vpop.f32.mrb[87].mxu0  ;;  %v7228_v41 = vsel %vm1094_vm2, %v6996_v47, -inf }
0x13b7   :  { %7229 = vmax.xlane.f32.xlu0 %v7228_v41 }
0x13b9   :  { %v7148_v43 = vpop.f32.mrb[88].mxu0 }
0x13ba   :  { %v26075_v45 = vpop.f32.mrb[89].mxu0  ;;  %v7234_v17 = vsel %vm1094_vm2, %v7148_v43, -inf }
0x13bb   :  { %7235 = vmax.xlane.f32.xlu0 %v7234_v17 }
0x13c5   :  { %v7072_v27 = vpop.f32.mrb[86].mxu1 }
0x13c6   :  { %v26070_v46 = vpop.f32.mrb[87].mxu1  ;;  %v7231_v49 = vsel %vm1094_vm2, %v7072_v27, -inf }
0x13c7   :  { %7232 = vmax.xlane.f32.xlu1 %v7231_v49  ;;  %v29461_v49 = vld [vmem:[%s28386_s14 + $0x1] ss:$0 sm:$0xff]  ;;  %s31601_s14 = sld [smem:[#allocation6_spill]] }
0x13c9   :  { %v7224_v32 = vpop.f32.mrb[88].mxu1 }
0x13ca   :  { %v26080_v22 = vpop.f32.mrb[89].mxu1  ;;  %v7237_v52 = vsel %vm1094_vm2, %v7224_v32, -inf }
0x13cb   :  { %7238 = vmax.xlane.f32.xlu1 %v7237_v52 }
0x1444   :  { %v7230_v57 = vpop.xlane.xlu0 %7229 }
0x1445   :  { %v7240_v58 = vsub.f32 %v6996_v47, %v7230_v57  ;;  %v29478_v57 = vld [vmem:[%s28346_s9] sm:$0xff] }
0x1447   :  { %v7244_v34 = vmul.f32 1.442695, %v7240_v58 }
0x1448   :  { %v7236_v61 = vpop.xlane.xlu0 %7235 }
0x1449   :  { %28065 = vpow2.f32 %v7244_v34  ;;  %v7242_v62 = vsub.f32 %v7148_v43, %v7236_v61 }
0x144b   :  { %v7248_v1 = vmul.f32 1.442695, %v7242_v62 }
0x144d   :  { %28067 = vpow2.f32 %v7248_v1 }
0x1453   :  { %v28066_v2 = vpop.eup %28065 }
0x1454   :  { %v7233_v3 = vpop.xlane.xlu1 %7232  ;;  %v7252_v4 = vsel %vm1094_vm2, %v28066_v2, 0.0 }
0x1455   :  { %v7241_v0 = vsub.f32 %v7072_v27, %v7233_v3  ;;  %7253 = vadd.xlane.f32.xlu0 %v7252_v4  ;;  %v29454_v27 = vld [vmem:[%s28381_s8 + $0x1] ss:$0 sm:$0xff]  ;;  %s31600_s8 = sld [smem:[#allocation14_spill]] }
0x1457   :  { %v28068_v50 = vpop.eup %28067  ;;  %v7246_v8 = vmul.f32 1.442695, %v7241_v0 }
0x1458   :  { %v7239_v40 = vpop.xlane.xlu1 %7238  ;;  %v7258_v14 = vsel %vm1094_vm2, %v28068_v50, 0.0 }
0x1459   :  { %28069 = vpow2.f32 %v7246_v8  ;;  %v7243_v16 = vsub.f32 %v7224_v32, %v7239_v40  ;;  %7259 = vadd.xlane.f32.xlu0 %v7258_v14 }
0x145b   :  { %v7250_v48 = vmul.f32 1.442695, %v7243_v16 }
0x145d   :  { %28071 = vpow2.f32 %v7250_v48  ;;  %7870 = vadd.xlane.f32.xlu0 %v7869_v19 }
0x1463   :  { %v28070_v44 = vpop.eup %28069 }
0x1464   :  { %v7255_v51 = vsel %vm1094_vm2, %v28070_v44, 0.0 }
0x1465   :  { %7256 = vadd.xlane.f32.xlu1 %v7255_v51  ;;  %v24132_v51 = vld [vmem:[%s28391_s19 + $0x48] sm:$0xff] }
0x1467   :  { %v28072_v25 = vpop.eup %28071 }
0x1468   :  { %v7261_v9 = vsel %vm1094_vm2, %v28072_v25, 0.0 }
0x1469   :  { %7262 = vadd.xlane.f32.xlu1 %v7261_v9 }
0x14e2   :  { %v7254_v24 = vpop.xlane.xlu0 %7253 }
0x14e3   :  { %28073 = vrcp.f32 %v7254_v24  ;;  %v24134_v24 = vld [vmem:[%s28391_s19 + $0x58] sm:$0xff] }
0x14e6   :  { %v7260_v55 = vpop.xlane.xlu0 %7259 }
0x14e7   :  { %28075 = vrcp.f32 %v7260_v55 }
0x14ea   :  { %v7871_v56 = vpop.xlane.xlu0 %7870 }
0x14eb   :  { %v7875_v10 = vmul.f32 0.03125, %v7871_v56 }
0x14ed   :  { %v28074_v11 = vpop.eup %28073  ;;  %v7877_v13 = vsub.f32 %v29405_v37, %v7875_v10 }
0x14ee   :  { %v7265_v15 = vmul.f32 %v28074_v11, %v28066_v2 }
0x14ef   :  { %v7879_v31 = vmul.f32 %v7877_v13, %v7877_v13 }
0x14f0   :  { %26084 = vmatmul.mubr.msk.f32.vlgmr.msra.gmra.mrb[90].mxu0 %vm1094_vm2, %v7265_v15 }
0x14f1   :  { %v28076_v35 = vpop.eup %28075  ;;  %26092 = vmatpush3.msra.mxu0 %v29383_v12  ;;  %v7881_v29 = vsel %vm143_vm0, %v7879_v31, 0.0  ;;  %26093 = vmatprep.mubr.msk.f32.mxu0 %vm28328_vm1, %v28327_v7 }
0x14f2   :  { %7882 = vadd.xlane.f32.xlu0 %v7881_v29  ;;  %v7257_v60 = vpop.xlane.xlu1 %7256  ;;  %v7269_v33 = vmul.f32 %v28076_v35, %v28068_v50  ;;  %27538 = vmatprep.subr.bf16.mxu0 %v28329_v59 }
0x14f3   :  { %28077 = vrcp.f32 %v7257_v60 }
0x14f4   :  { %26094 = vmatmul.mubr.msk.f32.vlgmr.msra.gmra.mrb[92].mxu0 %vm1094_vm2, %v7269_v33  ;;  %v24135_v33 = vld [vmem:[%s28391_s19 + $0x60] sm:$0xff] }
0x14f5   :  { %26109 = vmatprep.mubr.msk.f32.mxu0 %vm28328_vm1, %v28327_v7 }
0x14f6   :  { %v7263_v63 = vpop.xlane.xlu1 %7262 }
0x14f7   :  { %28079 = vrcp.f32 %v7263_v63  ;;  %v24136_v63 = vld [vmem:[%s28391_s19 + $0x68] sm:$0xff] }
0x14f8   :  { %27541 = vmatpush3.bf16.xpose.msk.msra.mxu0 %vm28700_vm3, %v29217_v20 }
0x14f9   :  { %27542 = vmatprep.subr.bf16.mxu0 %v28329_v59 }
0x14fd   :  { %v28078_v12 = vpop.eup %28077 }
0x14fe   :  { %v7267_v26 = vmul.f32 %v28078_v12, %v28070_v44  ;;  %v24131_v44 = vld [vmem:[%s28391_s19 + $0x40] sm:$0xff]  ;;  %v27582_v12 = vpack.c.bf16 %v24136_v63, %v24135_v33  ;;  %v29637_v33 = vld [vmem:[%s28426_s4 + $0x8] sm:$0xff]  ;;  %v29647_v63 = vld [vmem:[%s28426_s4 + $0x18] sm:$0xff] }
0x14ff   :  { %v27570_v9 = vpack.c.bf16 %v24132_v51, %v24131_v44 }
0x1500   :  { %26089 = vmatmul.mubr.msk.f32.vlgmr.msra.gmra.mrb[90].mxu1 %vm1094_vm2, %v7267_v26  ;;  %27545 = vmatpush3.bf16.xpose.msk.msra.mxu0 %vm28700_vm3, %v29225_v23  ;;  %v24137_v26 = vld [vmem:[%s28391_s19 + $0x70] sm:$0xff] }
0x1501   :  { %v28080_v47 = vpop.eup %28079  ;;  %26097 = vmatpush3.msra.mxu1 %v29396_v6  ;;  %26098 = vmatprep.mubr.msk.f32.mxu1 %vm28328_vm1, %v28327_v7 }
0x1502   :  { %v7271_v38 = vmul.f32 %v28080_v47, %v28072_v25  ;;  %27546 = vmatprep.subr.bf16.mxu1 %v28329_v59  ;;  %27554 = vmatprep.subr.bf16.mxu0 %v28329_v59  ;;  %v24133_v25 = vld [vmem:[%s28391_s19 + $0x50] sm:$0xff]  ;;  %v24138_v47 = vld [vmem:[%s28391_s19 + $0x78] sm:$0xff]  ;;  %s31602_s19 = sld [smem:[#allocation15_spill]] }
0x1503   :  { %v27576_v55 = vpack.c.bf16 %v24134_v24, %v24133_v25 }
0x1504   :  { %26099 = vmatmul.mubr.msk.f32.vlgmr.msra.gmra.mrb[92].mxu1 %vm1094_vm2, %v7271_v38  ;;  %v27588_v38 = vpack.c.bf16 %v24138_v47, %v24137_v26  ;;  %v29667_v26 = vld [vmem:[%s31593_s5 + $0x18] sm:$0xff] }
0x1505   :  { %26120 = vmatprep.mubr.msk.f32.mxu1 %vm28328_vm1, %v28327_v7 }
0x1508   :  { %27549 = vmatpush3.bf16.xpose.msk.msra.mxu1 %vm28700_vm3, %v29233_v28 }
0x1509   :  { %27550 = vmatprep.subr.bf16.mxu1 %v28329_v59 }
0x1510   :  { %27553 = vmatpush3.bf16.xpose.msk.msra.mxu1 %vm28700_vm3, %v29241_v54 }
0x1511   :  { %27562 = vmatprep.subr.bf16.mxu1 %v28329_v59 }
0x157f   :  { %v7883_v20 = vpop.xlane.xlu0 %7882 }
0x1580   :  { %v7887_v23 = vmul.f32 0.03125, %v7883_v20 }
0x1582   :  { %v7889_v6 = vadd.f32 1e-05, %v7887_v23 }
0x1584   :  { %28081 = vrsqrt.f32 %v7889_v6 }
0x158e   :  { %v28082_v54 = vpop.eup %28081 }
0x158f   :  { %v7893_v17 = vmul.f32 %v28082_v54, %v7877_v13 }
0x1591   :  { %v7901_v46 = vmul.f32 %v29454_v27, %v7893_v17 }
0x1593   :  { %v7909_v32 = vadd.f32 %v29461_v49, %v7901_v46 }
0x15c3   :  { %v7341_v41 = vpop.f32.mrb[90].mxu0 }
0x15c4   :  { %v26085_v43 = vpop.f32.mrb[91].mxu0  ;;  %26110 = vmatmul.mubr.msk.f32.vlgmr.msra.gmra.mrb[94].mxu0 %vm1094_vm2, %v7341_v41 }
0x15c5   :  { %27557 = vmatpush3.bf16.xpose.msk.msra.mxu0 %vm28700_vm3, %v29249_v18  ;;  %26131 = vmatprep.mubr.msk.f32.mxu0 %vm28328_vm1, %v28327_v7 }
0x15c6   :  { %27558 = vmatprep.subr.bf16.mxu0 %v28329_v59 }
0x15c7   :  { %v7487_v28 = vpop.f32.mrb[92].mxu0 }
0x15c8   :  { %v26095_v45 = vpop.f32.mrb[93].mxu0 }
0x15cd   :  { %27561 = vmatpush3.bf16.xpose.msk.msra.mxu0 %vm28700_vm3, %v29260_v5 }
0x15ce   :  { %27572 = vmatprep.subr.msk.bf16.mxu0 %vm28973_vm4, %v27570_v9 }
0x15d3   :  { %v7414_v18 = vpop.f32.mrb[90].mxu1 }
0x15d4   :  { %26132 = vmatmul.mubr.msk.f32.vlgmr.msra.gmra.mrb[96].mxu0 %vm1094_vm2, %v7487_v28  ;;  %v26090_v22 = vpop.f32.mrb[91].mxu1  ;;  %26121 = vmatmul.mubr.msk.f32.vlgmr.msra.gmra.mrb[94].mxu1 %vm1094_vm2, %v7414_v18  ;;  %v29522_v18 = vld [vmem:[%s28411_s12] ss:$0 sm:$0xff] }
0x15d5   :  { %27565 = vmatpush3.bf16.xpose.msk.msra.mxu1 %vm28700_vm3, %v29269_v39  ;;  %26161 = vmatprep.mubr.msk.f32.mxu0 %vm143_vm0, %v7909_v32  ;;  %v8193_v39 = vsel %vm143_vm0, %v29478_v57, 0.0 }
0x15d6   :  { %27566 = vmatprep.subr.bf16.mxu1 %v28329_v59  ;;  %26142 = vmatprep.mubr.msk.f32.mxu1 %vm28328_vm1, %v28327_v7 }
0x15d7   :  { %v7560_v5 = vpop.f32.mrb[92].mxu1  ;;  %8194 = vadd.xlane.f32.xlu0 %v8193_v39  ;;  %27575 = vmatpush3.bf16.xpose.msk.msra.mxu0 %vm28973_vm4, %v27570_v9 }
0x15d8   :  { %v26100_v52 = vpop.f32.mrb[93].mxu1  ;;  %27578 = vmatprep.subr.msk.bf16.mxu0 %vm28973_vm4, %v27576_v55 }
0x15d9   :  { %v29529_v52 = vld [vmem:[%s31592_s0] ss:$0 sm:$0xff] }
0x15dd   :  { %27569 = vmatpush3.bf16.xpose.msk.msra.mxu1 %vm28700_vm3, %v29293_v21 }
0x15df   :  { %27581 = vmatpush3.bf16.xpose.msk.msra.mxu0 %vm28973_vm4, %v27576_v55 }
0x15e0   :  { %27584 = vmatprep.subr.msk.bf16.mxu0 %vm28973_vm4, %v27582_v12 }
0x15e4   :  { %26143 = vmatmul.mubr.msk.f32.vlgmr.msra.gmra.mrb[96].mxu1 %vm1094_vm2, %v7560_v5  ;;  %v29526_v5 = vld [vmem:[%s28426_s4] sm:$0xff] }
0x15e7   :  { %27587 = vmatpush3.bf16.xpose.msk.msra.mxu0 %vm28973_vm4, %v27582_v12  ;;  %v29657_v12 = vld [vmem:[%s31593_s5 + $0x8] sm:$0xff] }
0x15e8   :  { %27590 = vmatprep.subr.msk.bf16.mxu0 %vm28973_vm4, %v27588_v38 }
0x15ef   :  { %27593 = vmatpush3.bf16.xpose.msk.msra.mxu0 %vm28973_vm4, %v27588_v38 }
0x15f0   :  { %26195 = vmatprep.subr.mxu0 %v28327_v7 }
0x1697   :  { %v7633_v58 = vpop.f32.mrb[94].mxu0 }
0x1698   :  { %v26111_v34 = vpop.f32.mrb[95].mxu0  ;;  %v7856_v1 = vsel %vm143_vm0, %v7633_v58, 0.0  ;;  %v29552_v58 = vld [vmem:[%s31593_s5] sm:$0xff] }
0x1699   :  { %v29562_v34 = vld [vmem:[%s31593_s5 + $0x10] sm:$0xff] }
0x16a7   :  { %v7779_v61 = vpop.f32.mrb[96].mxu0  ;;  %v7706_v62 = vpop.f32.mrb[94].mxu1 }
0x16a8   :  { %v7857_v2 = vsel %vm143_vm0, %v7706_v62, 0.0  ;;  %v26133_v21 = vpop.f32.mrb[97].mxu0  ;;  %v26122_v3 = vpop.f32.mrb[95].mxu1  ;;  %v7859_v0 = vsel %vm143_vm0, %v7779_v61, 0.0  ;;  %v24151_v61 = vld [vmem:[%s28396_s24 + $0x20] sm:$0xff]  ;;  %v24152_v62 = vld [vmem:[%s28396_s24 + $0x28] sm:$0xff] }
0x16a9   :  { %v7858_v4 = vadd.f32 %v7857_v2, %v7856_v1  ;;  %v27594_v1 = vpack.c.bf16 %v24152_v62, %v24151_v61  ;;  %v24153_v2 = vld [vmem:[%s28396_s24 + $0x30] sm:$0xff]  ;;  %v24154_v21 = vld [vmem:[%s28396_s24 + $0x38] sm:$0xff]  ;;  %s31604_s24 = sld [smem:[#allocation17_spill]] }
0x16aa   :  { %v27600_v3 = vpack.c.bf16 %v24154_v21, %v24153_v2 }
0x16ab   :  { %v7860_v50 = vadd.f32 %v7859_v0, %v7858_v4  ;;  %27596 = vmatprep.subr.msk.bf16.mxu1 %vm29009_vm6, %v27594_v1 }
0x16ac   :  { %27599 = vmatpush3.bf16.xpose.msk.msra.mxu1 %vm29009_vm6, %v27594_v1  ;;  %v8183_v1 = vlaneseq }
0x16ad   :  { %27602 = vmatprep.subr.msk.bf16.mxu1 %vm29009_vm6, %v27600_v3 }
0x16ae   :  { %v8184_v2 = vshrl.u32 %v8183_v1, 7  ;;  %v8186_v21 = vand.u32 127, %v8183_v1 }
0x16b0   :  { %vm8187_vm7 = vcmp.gt.s32.totalorder %v8186_v21, %v8184_v2 }
0x16b4   :  { %27605 = vmatpush3.bf16.xpose.msk.msra.mxu1 %vm29009_vm6, %v27600_v3  ;;  %v29709_v3 = vsel %vm8187_vm7, -1e+30, %v28327_v7 }
0x16b5   :  { %26175 = vmatprep.subr.mxu1 %v28327_v7 }
0x16b7   :  { %v7852_v8 = vpop.f32.mrb[96].mxu1 }
0x16b8   :  { %v7861_v40 = vsel %vm143_vm0, %v7852_v8, 0.0  ;;  %v26144_v14 = vpop.f32.mrb[97].mxu1 }
0x16b9   :  { %v7862_v16 = vadd.f32 %v7861_v40, %v7860_v50 }
0x16bb   :  { %v29487_v48 = vadd.f32 %v7862_v16, %v29186_v30  ;;  %v8195_v30 = vpop.xlane.xlu0 %8194 }
0x16bc   :  { %v8199_v56 = vmul.f32 0.03125, %v8195_v30 }
0x16bd   :  { %v7872_v19 = vsel %vm143_vm0, %v29487_v48, 0.0 }
0x16be   :  { %7873 = vadd.xlane.f32.xlu1 %v7872_v19  ;;  %v8201_v13 = vsub.f32 %v29478_v57, %v8199_v56 }
0x16c0   :  { %v8203_v35 = vmul.f32 %v8201_v13, %v8201_v13 }
0x16c2   :  { %v8205_v60 = vsel %vm143_vm0, %v8203_v35, 0.0  ;;  %v29607_v35 = vld [vmem:[%s31594_s13 + $0x8] sm:$0xff] }
0x174b   :  { %v7874_v10 = vpop.xlane.xlu1 %7873 }
0x174c   :  { %v7876_v11 = vmul.f32 0.03125, %v7874_v10 }
0x174e   :  { %v7878_v15 = vsub.f32 %v29487_v48, %v7876_v11 }
0x1750   :  { %v7880_v31 = vmul.f32 %v7878_v15, %v7878_v15 }
0x1752   :  { %v7884_v29 = vsel %vm143_vm0, %v7880_v31, 0.0  ;;  %v29597_v31 = vld [vmem:[%s31594_s13] sm:$0xff] }
0x1753   :  { %7885 = vadd.xlane.f32.xlu1 %v7884_v29  ;;  %v29617_v29 = vld [vmem:[%s31594_s13 + $0x10] sm:$0xff] }
0x1757   :  { %8206 = vadd.xlane.f32.xlu1 %v8205_v60  ;;  %v29627_v60 = vld [vmem:[%s31594_s13 + $0x18] sm:$0xff] }
0x17e0   :  { %v7886_v20 = vpop.xlane.xlu1 %7885 }
0x17e1   :  { %v7888_v23 = vmul.f32 0.03125, %v7886_v20 }
0x17e3   :  { %v7890_v6 = vadd.f32 1e-05, %v7888_v23 }
0x17e4   :  { %v8207_v41 = vpop.xlane.xlu1 %8206 }
0x17e5   :  { %28083 = vrsqrt.f32 %v7890_v6  ;;  %v8211_v43 = vmul.f32 0.03125, %v8207_v41 }
0x17e7   :  { %v8213_v28 = vadd.f32 1e-05, %v8211_v43 }
0x17e9   :  { %28085 = vrsqrt.f32 %v8213_v28 }
0x17ef   :  { %v28084_v54 = vpop.eup %28083 }
0x17f0   :  { %v7894_v45 = vmul.f32 %v28084_v54, %v7878_v15 }
0x17f2   :  { %v7902_v17 = vmul.f32 %v29454_v27, %v7894_v45 }
0x17f3   :  { %v28086_v46 = vpop.eup %28085 }
0x17f4   :  { %v7910_v32 = vadd.f32 %v29461_v49, %v7902_v17  ;;  %v8217_v22 = vmul.f32 %v28086_v46, %v8201_v13  ;;  %v29542_v49 = vld [vmem:[%s28426_s4 + $0x10] sm:$0xff] }
0x17f6   :  { %26162 = vmatmul.mubr.msk.f32.vlgmr.msra.gmra.mrb[98].mxu0 %vm143_vm0, %v7910_v32  ;;  %v8225_v39 = vmul.f32 %v29522_v18, %v8217_v22 }
0x17f7   :  { %26196 = vmatpush3.xpose.msk.msra.mxu0 %vm143_vm0, %v29526_v5  ;;  %26197 = vmatprep.mubr.msk.f32.mxu0 %vm28328_vm1, %v28327_v7 }
0x17f8   :  { %v29538_v27 = vadd.f32 %v29529_v52, %v8225_v39  ;;  %26205 = vmatprep.subr.mxu0 %v28327_v7 }
0x17fa   :  { %26198 = vmatmul.mubr.msk.f32.vlgmr.msra.gmra.mrb[100].mxu0 %vm143_vm0, %v29538_v27 }
0x17fb   :  { %26206 = vmatpush3.xpose.msk.msra.mxu0 %vm143_vm0, %v29542_v49  ;;  %26207 = vmatprep.mubr.msk.f32.mxu0 %vm28328_vm1, %v28327_v7 }
0x17fc   :  { %26215 = vmatprep.subr.mxu0 %v28327_v7 }
0x17fe   :  { %26208 = vmatmul.mubr.msk.f32.vlgmr.msra.gmra.mrb[102].mxu0 %vm143_vm0, %v29538_v27 }
0x17ff   :  { %26216 = vmatpush3.xpose.msk.msra.mxu0 %vm143_vm0, %v29552_v58  ;;  %26217 = vmatprep.mubr.msk.f32.mxu0 %vm28328_vm1, %v28327_v7 }
0x1800   :  { %26225 = vmatprep.subr.mxu0 %v28327_v7 }
0x1802   :  { %26218 = vmatmul.mubr.msk.f32.vlgmr.msra.gmra.mrb[104].mxu0 %vm143_vm0, %v29538_v27 }
0x1803   :  { %26226 = vmatpush3.xpose.msk.msra.mxu0 %vm143_vm0, %v29562_v34  ;;  %26227 = vmatprep.mubr.msk.f32.mxu0 %vm28328_vm1, %v28327_v7 }
0x1804   :  { %26235 = vmatprep.subr.mxu0 %v28327_v7 }
0x1806   :  { %26228 = vmatmul.mubr.msk.f32.vlgmr.msra.gmra.mrb[106].mxu0 %vm143_vm0, %v29538_v27 }
0x1807   :  { %26237 = vmatprep.mubr.msk.f32.mxu0 %vm28328_vm1, %v28327_v7 }
0x18c9   :  { %v26163_v4 = vpop.f32.mrb[98].mxu0 }
0x18ca   :  { %v24150_v0 = vmul.f32 -1.442695, %v26163_v4  ;;  %v8016_v50 = vpop.f32.mrb[99].mxu0 }
0x18cb   :  { %v24149_v8 = vmul.f32 -1.442695, %v8016_v50 }
0x18cc   :  { %28087 = vpow2.f32 %v24150_v0 }
0x18cd   :  { %28089 = vpow2.f32 %v24149_v8  ;;  %v8627_v40 = vpop.f32.mrb[100].mxu0 }
0x18ce   :  { %v26199_v14 = vpop.f32.mrb[101].mxu0  ;;  %26236 = vmatpush3.xpose.msk.msra.mxu0 %vm1094_vm2, %v8627_v40 }
0x18cf   :  { %26245 = vmatprep.subr.mxu0 %v28327_v7 }
0x18d1   :  { %v29590_v16 = vpop.f32.mrb[102].mxu0 }
0x18d2   :  { %v26209_v19 = vpop.f32.mrb[103].mxu0 }
0x18d5   :  { %v29592_v44 = vpop.f32.mrb[104].mxu0 }
0x18d6   :  { %v28088_v51 = vpop.eup %28087  ;;  %v26219_v25 = vpop.f32.mrb[105].mxu0 }
0x18d7   :  { %v28090_v9 = vpop.eup %28089  ;;  %v8032_v24 = vadd.f32 1.0, %v28088_v51 }
0x18d8   :  { %v8031_v55 = vadd.f32 1.0, %v28090_v9 }
0x18d9   :  { %28091 = vrcp.f32 %v8032_v24  ;;  %v29594_v30 = vpop.f32.mrb[106].mxu0 }
0x18da   :  { %28093 = vrcp.f32 %v8031_v55  ;;  %v26229_v56 = vpop.f32.mrb[107].mxu0 }
0x18e3   :  { %v28092_v10 = vpop.eup %28091 }
0x18e4   :  { %v28094_v11 = vpop.eup %28093  ;;  %v8038_v15 = vmul.f32 %v28092_v10, %v26163_v4 }
0x18e5   :  { %v8037_v13 = vmul.f32 %v28094_v11, %v8016_v50 }
0x18e7   :  { %26172 = vmatprep.mubr.msk.f32.mxu1 %vm4041_vm5, %v8037_v13 }
0x18e8   :  { %26173 = vmatmul.mubr.msk.f32.vlgmr.msra.gmra.mrb[98].mxu1 %vm4041_vm5, %v8038_v15 }
0x18e9   :  { %26176 = vmatpush3.xpose.msk.msra.mxu1 %vm143_vm0, %v29597_v31  ;;  %26177 = vmatprep.mubr.msk.f32.mxu1 %vm28328_vm1, %v28327_v7 }
0x18ea   :  { %26180 = vmatprep.subr.mxu1 %v28327_v7 }
0x18ec   :  { %26178 = vmatmul.mubr.msk.f32.vlgmr.msra.gmra.mrb[100].mxu1 %vm143_vm0, %v29538_v27 }
0x18ed   :  { %26181 = vmatpush3.xpose.msk.msra.mxu1 %vm143_vm0, %v29607_v35  ;;  %26182 = vmatprep.mubr.msk.f32.mxu1 %vm28328_vm1, %v28327_v7 }
0x18ee   :  { %26185 = vmatprep.subr.mxu1 %v28327_v7 }
0x18f0   :  { %26183 = vmatmul.mubr.msk.f32.vlgmr.msra.gmra.mrb[102].mxu1 %vm143_vm0, %v29538_v27 }
0x18f1   :  { %26186 = vmatpush3.xpose.msk.msra.mxu1 %vm143_vm0, %v29617_v29  ;;  %26187 = vmatprep.mubr.msk.f32.mxu1 %vm28328_vm1, %v28327_v7 }
0x18f2   :  { %26190 = vmatprep.subr.mxu1 %v28327_v7 }
0x18f4   :  { %26188 = vmatmul.mubr.msk.f32.vlgmr.msra.gmra.mrb[104].mxu1 %vm143_vm0, %v29538_v27 }
0x18f5   :  { %26191 = vmatpush3.xpose.msk.msra.mxu1 %vm143_vm0, %v29627_v60  ;;  %26192 = vmatprep.mubr.msk.f32.mxu1 %vm28328_vm1, %v28327_v7 }
0x18f6   :  { %26200 = vmatprep.subr.mxu1 %v28327_v7 }
0x18f8   :  { %26193 = vmatmul.mubr.msk.f32.vlgmr.msra.gmra.mrb[106].mxu1 %vm143_vm0, %v29538_v27 }
0x18f9   :  { %26201 = vmatpush3.xpose.msk.msra.mxu1 %vm143_vm0, %v29637_v33  ;;  %26202 = vmatprep.mubr.msk.f32.mxu1 %vm28328_vm1, %v28327_v7 }
0x18fa   :  { %26210 = vmatprep.subr.mxu1 %v28327_v7 }
0x18fc   :  { %26203 = vmatmul.mubr.msk.f32.vlgmr.msra.gmra.mrb[108].mxu1 %vm143_vm0, %v29538_v27 }
0x18fd   :  { %26211 = vmatpush3.xpose.msk.msra.mxu1 %vm143_vm0, %v29647_v63  ;;  %26212 = vmatprep.mubr.msk.f32.mxu1 %vm28328_vm1, %v28327_v7 }
0x18fe   :  { %26220 = vmatprep.subr.mxu1 %v28327_v7 }
0x1900   :  { %26213 = vmatmul.mubr.msk.f32.vlgmr.msra.gmra.mrb[110].mxu1 %vm143_vm0, %v29538_v27 }
0x1901   :  { %26221 = vmatpush3.xpose.msk.msra.mxu1 %vm143_vm0, %v29657_v12  ;;  %26222 = vmatprep.mubr.msk.f32.mxu1 %vm28328_vm1, %v28327_v7 }
0x1902   :  { %26230 = vmatprep.subr.mxu1 %v28327_v7 }
0x1904   :  { %26223 = vmatmul.mubr.msk.f32.vlgmr.msra.gmra.mrb[112].mxu1 %vm143_vm0, %v29538_v27 }
0x1905   :  { %26231 = vmatpush3.xpose.msk.msra.mxu1 %vm143_vm0, %v29667_v26  ;;  %26232 = vmatprep.mubr.msk.f32.mxu1 %vm28328_vm1, %v28327_v7 }
0x1906   :  { %26240 = vmatprep.subr.mxu1 %v28327_v7 }
0x1908   :  { %26233 = vmatmul.mubr.msk.f32.vlgmr.msra.gmra.mrb[114].mxu1 %vm143_vm0, %v29538_v27 }
0x1909   :  { %26242 = vmatprep.mubr.msk.f32.mxu1 %vm28328_vm1, %v28327_v7 }
0x19bb   :  { %v29680_v47 = vpop.f32.mrb[98].mxu1 }
0x19bc   :  { %v29682_v38 = vpop.f32.mrb[99].mxu1 }
0x19bf   :  { %v8335_v20 = vpop.f32.mrb[100].mxu1 }
0x19c0   :  { %v26179_v23 = vpop.f32.mrb[101].mxu1  ;;  %26238 = vmatmul.mubr.msk.f32.vlgmr.msra.gmra.mrb[108].mxu0 %vm1094_vm2, %v8335_v20 }
0x19c1   :  { %26246 = vmatpush3.xpose.msk.msra.mxu0 %vm1094_vm2, %v29590_v16  ;;  %26247 = vmatprep.mubr.msk.f32.mxu0 %vm28328_vm1, %v28327_v7 }
0x19c2   :  { %26255 = vmatprep.subr.mxu0 %v28327_v7 }
0x19c3   :  { %v8408_v6 = vpop.f32.mrb[102].mxu1 }
0x19c4   :  { %v26184_v41 = vpop.f32.mrb[103].mxu1 }
0x19c7   :  { %v8481_v43 = vpop.f32.mrb[104].mxu1 }
0x19c8   :  { %v26189_v28 = vpop.f32.mrb[105].mxu1  ;;  %26248 = vmatmul.mubr.msk.f32.vlgmr.msra.gmra.mrb[110].mxu0 %vm1094_vm2, %v8481_v43 }
0x19c9   :  { %26256 = vmatpush3.msra.mxu0 %v29592_v44  ;;  %26257 = vmatprep.mubr.msk.f32.mxu0 %vm28328_vm1, %v28327_v7 }
0x19ca   :  { %26265 = vmatprep.subr.mxu0 %v28327_v7 }
0x19cb   :  { %v8554_v54 = vpop.f32.mrb[106].mxu1 }
0x19cc   :  { %v26194_v45 = vpop.f32.mrb[107].mxu1 }
0x19cf   :  { %v8700_v17 = vpop.f32.mrb[108].mxu1 }
0x19d0   :  { %v26204_v46 = vpop.f32.mrb[109].mxu1  ;;  %26241 = vmatpush3.xpose.msk.msra.mxu1 %vm1094_vm2, %v8700_v17 }
0x19d1   :  { %26250 = vmatprep.subr.mxu1 %v28327_v7 }
0x19d3   :  { %v8846_v32 = vpop.f32.mrb[110].mxu1  ;;  %26243 = vmatmul.mubr.msk.f32.vlgmr.msra.gmra.mrb[116].mxu1 %vm1094_vm2, %v8408_v6 }
0x19d4   :  { %v26214_v22 = vpop.f32.mrb[111].mxu1  ;;  %26251 = vmatpush3.xpose.msk.msra.mxu1 %vm1094_vm2, %v8846_v32  ;;  %26252 = vmatprep.mubr.msk.f32.mxu1 %vm28328_vm1, %v28327_v7  ;;  %v8190_v32 = vld [vmem:[%s28346_s9 + $0x8] sm:$0xff] }
0x19d5   :  { %26260 = vmatprep.subr.mxu1 %v28327_v7 }
0x19d7   :  { %v8992_v39 = vpop.f32.mrb[112].mxu1  ;;  %26253 = vmatmul.mubr.msk.f32.vlgmr.msra.gmra.mrb[118].mxu1 %vm1094_vm2, %v8554_v54 }
0x19d8   :  { %v26224_v27 = vpop.f32.mrb[113].mxu1  ;;  %26261 = vmatpush3.msra.mxu1 %v8992_v39  ;;  %26262 = vmatprep.mubr.msk.f32.mxu1 %vm28328_vm1, %v28327_v7 }
0x19d9   :  { %26270 = vmatprep.subr.mxu1 %v28327_v7 }
0x19db   :  { %v29706_v61 = vpop.f32.mrb[114].mxu1 }
0x19dc   :  { %v26234_v62 = vpop.f32.mrb[115].mxu1 }
0x19dd   :  { %v8196_v62 = vsel %vm143_vm0, %v8190_v32, 0.0 }
0x1a93   :  { %v9214_v4 = vpop.f32.mrb[108].mxu0 }
0x1a94   :  { %v9215_v0 = vadd.f32 %v9214_v4, %v29709_v3  ;;  %v26239_v50 = vpop.f32.mrb[109].mxu0 }
0x1a96   :  { %v9446_v8 = vsel %vm1094_vm2, %v9215_v0, -inf }
0x1a97   :  { %9447 = vmax.xlane.f32.xlu0 %v9446_v8 }
0x1a9b   :  { %v9366_v40 = vpop.f32.mrb[110].mxu0 }
0x1a9c   :  { %v9367_v14 = vadd.f32 %v9366_v40, %v29709_v3  ;;  %v26249_v16 = vpop.f32.mrb[111].mxu0 }
0x1a9e   :  { %v9452_v19 = vsel %vm1094_vm2, %v9367_v14, -inf }
0x1a9f   :  { %9453 = vmax.xlane.f32.xlu0 %v9452_v19 }
0x1aa6   :  { %v9290_v44 = vpop.f32.mrb[116].mxu1 }
0x1aa7   :  { %v9291_v51 = vadd.f32 %v9290_v44, %v29709_v3  ;;  %v26244_v25 = vpop.f32.mrb[117].mxu1 }
0x1aa9   :  { %v9449_v9 = vsel %vm1094_vm2, %v9291_v51, -inf }
0x1aaa   :  { %9450 = vmax.xlane.f32.xlu1 %v9449_v9  ;;  %v9442_v24 = vpop.f32.mrb[118].mxu1 }
0x1aab   :  { %v9443_v55 = vadd.f32 %v9442_v24, %v29709_v3  ;;  %v26254_v56 = vpop.f32.mrb[119].mxu1 }
0x1aad   :  { %v9455_v10 = vsel %vm1094_vm2, %v9443_v55, -inf }
0x1aae   :  { %9456 = vmax.xlane.f32.xlu1 %v9455_v10 }
0x1b24   :  { %v9448_v11 = vpop.xlane.xlu0 %9447 }
0x1b25   :  { %v9458_v13 = vsub.f32 %v9215_v0, %v9448_v11 }
0x1b27   :  { %v9462_v15 = vmul.f32 1.442695, %v9458_v13  ;;  %v8247_v13 = vld [vmem:[%s31595_s17] sm:$0xff] }
0x1b29   :  { %28095 = vpow2.f32 %v9462_v15  ;;  %v8248_v15 = vld [vmem:[%s31595_s17 + $0x8] sm:$0xff] }
0x1b2c   :  { %v9454_v20 = vpop.xlane.xlu0 %9453 }
0x1b2d   :  { %v9460_v23 = vsub.f32 %v9367_v14, %v9454_v20  ;;  %v29748_v20 = vpack.c.bf16 %v8248_v15, %v8247_v13 }
0x1b2f   :  { %v9466_v6 = vmul.f32 1.442695, %v9460_v23  ;;  %v8250_v23 = vld [vmem:[%s31595_s17 + $0x18] sm:$0xff] }
0x1b31   :  { %28097 = vpow2.f32 %v9466_v6 }
0x1b33   :  { %v28096_v41 = vpop.eup %28095 }
0x1b34   :  { %v9470_v43 = vsel %vm1094_vm2, %v28096_v41, 0.0 }
0x1b35   :  { %9471 = vadd.xlane.f32.xlu0 %v9470_v43  ;;  %v8252_v43 = vld [vmem:[%s31595_s17 + $0x28] sm:$0xff] }
0x1b37   :  { %v9451_v28 = vpop.xlane.xlu1 %9450 }
0x1b38   :  { %v9459_v54 = vsub.f32 %v9291_v51, %v9451_v28 }
0x1b3a   :  { %v9464_v45 = vmul.f32 1.442695, %v9459_v54  ;;  %v8253_v54 = vld [vmem:[%s31595_s17 + $0x30] sm:$0xff] }
0x1b3b   :  { %v28098_v17 = vpop.eup %28097  ;;  %v9457_v46 = vpop.xlane.xlu1 %9456 }
0x1b3c   :  { %28099 = vpow2.f32 %v9464_v45  ;;  %v9461_v22 = vsub.f32 %v9443_v55, %v9457_v46  ;;  %v9476_v39 = vsel %vm1094_vm2, %v28098_v17, 0.0  ;;  %v8254_v45 = vld [vmem:[%s31595_s17 + $0x38] sm:$0xff] }
0x1b3d   :  { %9477 = vadd.xlane.f32.xlu0 %v9476_v39  ;;  %v8255_v39 = vld [vmem:[%s31595_s17 + $0x40] sm:$0xff] }
0x1b3e   :  { %v9468_v27 = vmul.f32 1.442695, %v9461_v22 }
0x1b40   :  { %28101 = vpow2.f32 %v9468_v27  ;;  %v8256_v27 = vld [vmem:[%s31595_s17 + $0x48] sm:$0xff] }
0x1b41   :  { %8197 = vadd.xlane.f32.xlu0 %v8196_v62  ;;  %v29780_v62 = vpack.c.bf16 %v8256_v27, %v8255_v39 }
0x1b46   :  { %v28100_v1 = vpop.eup %28099 }
0x1b47   :  { %v9473_v2 = vsel %vm1094_vm2, %v28100_v1, 0.0 }
0x1b48   :  { %9474 = vadd.xlane.f32.xlu1 %v9473_v2 }
0x1b4a   :  { %v28102_v21 = vpop.eup %28101 }
0x1b4b   :  { %v9479_v4 = vsel %vm1094_vm2, %v28102_v21, 0.0 }
0x1b4c   :  { %9480 = vadd.xlane.f32.xlu1 %v9479_v4  ;;  %v8258_v4 = vld [vmem:[%s31595_s17 + $0x58] sm:$0xff] }
0x1bc2   :  { %v9472_v0 = vpop.xlane.xlu0 %9471 }
0x1bc3   :  { %28103 = vrcp.f32 %v9472_v0 }
0x1bca   :  { %v9478_v50 = vpop.xlane.xlu0 %9477 }
0x1bcb   :  { %28105 = vrcp.f32 %v9478_v50 }
0x1bcd   :  { %v28104_v8 = vpop.eup %28103 }
0x1bce   :  { %v9483_v40 = vmul.f32 %v28104_v8, %v28096_v41  ;;  %v8198_v14 = vpop.xlane.xlu0 %8197  ;;  %v8251_v41 = vld [vmem:[%s31595_s17 + $0x20] sm:$0xff] }
0x1bcf   :  { %v8200_v16 = vmul.f32 0.03125, %v8198_v14  ;;  %v29764_v28 = vpack.c.bf16 %v8252_v43, %v8251_v41 }
0x1bd0   :  { %26258 = vmatmul.mubr.msk.f32.vlgmr.msra.gmra.mrb[112].mxu0 %vm1094_vm2, %v9483_v40 }
0x1bd1   :  { %v29726_v19 = vsub.f32 %v8190_v32, %v8200_v16  ;;  %26266 = vmatpush3.msra.mxu0 %v29594_v30  ;;  %26267 = vmatprep.mubr.msk.f32.mxu0 %vm28328_vm1, %v28327_v7  ;;  %v8259_v16 = vld [vmem:[%s31595_s17 + $0x60] sm:$0xff] }
0x1bd2   :  { %27606 = vmatprep.subr.bf16.mxu0 %v28329_v59 }
0x1bd3   :  { %v8204_v44 = vmul.f32 %v29726_v19, %v29726_v19 }
0x1bd5   :  { %v28106_v51 = vpop.eup %28105  ;;  %v9475_v25 = vpop.xlane.xlu1 %9474  ;;  %v8208_v9 = vsel %vm143_vm0, %v8204_v44, 0.0  ;;  %v8260_v44 = vld [vmem:[%s31595_s17 + $0x68] sm:$0xff] }
0x1bd6   :  { %v9487_v24 = vmul.f32 %v28106_v51, %v28098_v17  ;;  %28107 = vrcp.f32 %v9475_v25  ;;  %8209 = vadd.xlane.f32.xlu1 %v8208_v9  ;;  %v29772_v17 = vpack.c.bf16 %v8254_v45, %v8253_v54  ;;  %v29802_v25 = vpack.c.bf16 %v8260_v44, %v8259_v16 }
0x1bd8   :  { %26268 = vmatmul.mubr.msk.f32.vlgmr.msra.gmra.mrb[114].mxu0 %vm1094_vm2, %v9487_v24 }
0x1bd9   :  { %v9481_v30 = vpop.xlane.xlu1 %9480  ;;  %26283 = vmatprep.mubr.msk.f32.mxu0 %vm28328_vm1, %v28327_v7  ;;  %27609 = vmatpush3.bf16.xpose.msk.msra.mxu0 %vm28700_vm3, %v29748_v20 }
0x1bda   :  { %28109 = vrcp.f32 %v9481_v30  ;;  %27610 = vmatprep.subr.bf16.mxu0 %v28329_v59 }
0x1be0   :  { %v28108_v55 = vpop.eup %28107 }
0x1be1   :  { %v9485_v56 = vmul.f32 %v28108_v55, %v28100_v1 }
0x1be3   :  { %26263 = vmatmul.mubr.msk.f32.vlgmr.msra.gmra.mrb[120].mxu1 %vm1094_vm2, %v9485_v56 }
0x1be4   :  { %v28110_v10 = vpop.eup %28109  ;;  %26271 = vmatpush3.msra.mxu1 %v29706_v61  ;;  %26272 = vmatprep.mubr.msk.f32.mxu1 %vm28328_vm1, %v28327_v7  ;;  %v8249_v61 = vld [vmem:[%s31595_s17 + $0x10] sm:$0xff] }
0x1be5   :  { %v9489_v11 = vmul.f32 %v28110_v10, %v28102_v21  ;;  %27614 = vmatprep.subr.bf16.mxu1 %v28329_v59  ;;  %v29756_v6 = vpack.c.bf16 %v8250_v23, %v8249_v61  ;;  %v8257_v21 = vld [vmem:[%s31595_s17 + $0x50] sm:$0xff] }
0x1be6   :  { %v29791_v0 = vpack.c.bf16 %v8258_v4, %v8257_v21 }
0x1be7   :  { %26273 = vmatmul.mubr.msk.f32.vlgmr.msra.gmra.mrb[122].mxu1 %vm1094_vm2, %v9489_v11  ;;  %27613 = vmatpush3.bf16.xpose.msk.msra.mxu0 %vm28700_vm3, %v29756_v6 }
0x1be8   :  { %26294 = vmatprep.mubr.msk.f32.mxu1 %vm28328_vm1, %v28327_v7  ;;  %27622 = vmatprep.subr.bf16.mxu0 %v28329_v59 }
0x1beb   :  { %27617 = vmatpush3.bf16.xpose.msk.msra.mxu1 %vm28700_vm3, %v29764_v28 }
0x1bec   :  { %27618 = vmatprep.subr.bf16.mxu1 %v28329_v59 }
0x1bf3   :  { %27621 = vmatpush3.bf16.xpose.msk.msra.mxu1 %vm28700_vm3, %v29772_v17 }
0x1bf4   :  { %27630 = vmatprep.subr.bf16.mxu1 %v28329_v59 }
0x1c63   :  { %v8210_v46 = vpop.xlane.xlu1 %8209 }
0x1c64   :  { %v8212_v32 = vmul.f32 0.03125, %v8210_v46 }
0x1c66   :  { %v8214_v22 = vadd.f32 1e-05, %v8212_v32 }
0x1c68   :  { %28111 = vrsqrt.f32 %v8214_v22 }
0x1c72   :  { %v28112_v50 = vpop.eup %28111 }
0x1c73   :  { %v8218_v14 = vmul.f32 %v28112_v50, %v29726_v19 }
0x1c75   :  { %v8226_v51 = vmul.f32 %v29522_v18, %v8218_v14  ;;  %v8261_v18 = vld [vmem:[%s31595_s17 + $0x70] sm:$0xff] }
0x1c77   :  { %v8234_v19 = vadd.f32 %v29529_v52, %v8226_v51  ;;  %v8262_v52 = vld [vmem:[%s31595_s17 + $0x78] sm:$0xff] }
0x1c78   :  { %v29826_v55 = vpack.c.bf16 %v8262_v52, %v8261_v18 }
0x1ca3   :  { %v9559_v1 = vpop.f32.mrb[112].mxu0 }
0x1ca4   :  { %v26259_v2 = vpop.f32.mrb[113].mxu0  ;;  %26284 = vmatmul.mubr.msk.f32.vlgmr.msra.gmra.mrb[116].mxu0 %vm1094_vm2, %v9559_v1 }
0x1ca5   :  { %27625 = vmatpush3.bf16.xpose.msk.msra.mxu0 %vm28700_vm3, %v29780_v62  ;;  %26305 = vmatprep.mubr.msk.f32.mxu0 %vm28328_vm1, %v28327_v7 }
0x1ca6   :  { %27626 = vmatprep.subr.bf16.mxu0 %v28329_v59 }
0x1cab   :  { %v9705_v8 = vpop.f32.mrb[114].mxu0 }
0x1cac   :  { %v26269_v40 = vpop.f32.mrb[115].mxu0 }
0x1cad   :  { %27629 = vmatpush3.bf16.xpose.msk.msra.mxu0 %vm28700_vm3, %v29791_v0 }
0x1cae   :  { %26319 = vmatprep.subr.mxu0 %v28327_v7 }
0x1cb4   :  { %26306 = vmatmul.mubr.msk.f32.vlgmr.msra.gmra.mrb[118].mxu0 %vm1094_vm2, %v9705_v8 }
0x1cb5   :  { %26320 = vmatpush3.xpose.msk.msra.mxu0 %vm143_vm0, %v29597_v31  ;;  %26321 = vmatprep.mubr.msk.f32.mxu0 %vm28328_vm1, %v28327_v7 }
0x1cb6   :  { %v9632_v9 = vpop.f32.mrb[120].mxu1  ;;  %26329 = vmatprep.subr.mxu0 %v28327_v7 }
0x1cb7   :  { %v26264_v24 = vpop.f32.mrb[121].mxu1  ;;  %26295 = vmatmul.mubr.msk.f32.vlgmr.msra.gmra.mrb[124].mxu1 %vm1094_vm2, %v9632_v9 }
0x1cb8   :  { %27633 = vmatpush3.bf16.xpose.msk.msra.mxu1 %vm28700_vm3, %v29802_v25  ;;  %26322 = vmatmul.mubr.msk.f32.vlgmr.msra.gmra.mrb[120].mxu0 %vm143_vm0, %v8234_v19 }
0x1cb9   :  { %26330 = vmatpush3.xpose.msk.msra.mxu0 %vm143_vm0, %v29617_v29  ;;  %26331 = vmatprep.mubr.msk.f32.mxu0 %vm28328_vm1, %v28327_v7 }
0x1cba   :  { %v9778_v31 = vpop.f32.mrb[122].mxu1  ;;  %26339 = vmatprep.subr.mxu0 %v28327_v7  ;;  %27634 = vmatprep.subr.bf16.mxu1 %v28329_v59 }
0x1cbb   :  { %v26274_v30 = vpop.f32.mrb[123].mxu1  ;;  %26316 = vmatprep.mubr.msk.f32.mxu1 %vm28328_vm1, %v28327_v7 }
0x1cbc   :  { %26332 = vmatmul.mubr.msk.f32.vlgmr.msra.gmra.mrb[122].mxu0 %vm143_vm0, %v8234_v19 }
0x1cbd   :  { %26340 = vmatpush3.xpose.msk.msra.mxu0 %vm143_vm0, %v29526_v5  ;;  %26341 = vmatprep.mubr.msk.f32.mxu0 %vm28328_vm1, %v28327_v7 }
0x1cbe   :  { %26349 = vmatprep.subr.mxu0 %v28327_v7 }
0x1cc0   :  { %27637 = vmatpush3.bf16.xpose.msk.msra.mxu1 %vm28700_vm3, %v29826_v55  ;;  %26342 = vmatmul.mubr.msk.f32.vlgmr.msra.gmra.mrb[124].mxu0 %vm143_vm0, %v8234_v19 }
0x1cc1   :  { %26350 = vmatpush3.xpose.msk.msra.mxu0 %vm143_vm0, %v29542_v49  ;;  %26351 = vmatprep.mubr.msk.f32.mxu0 %vm28328_vm1, %v28327_v7 }
0x1cc2   :  { %26359 = vmatprep.subr.mxu0 %v28327_v7  ;;  %26324 = vmatprep.subr.mxu1 %v28327_v7 }
0x1cc4   :  { %26352 = vmatmul.mubr.msk.f32.vlgmr.msra.gmra.mrb[126].mxu0 %vm143_vm0, %v8234_v19 }
0x1cc5   :  { %26360 = vmatpush3.xpose.msk.msra.mxu0 %vm143_vm0, %v29552_v58  ;;  %26361 = vmatprep.mubr.msk.f32.mxu0 %vm28328_vm1, %v28327_v7 }
0x1cc6   :  { %26369 = vmatprep.subr.mxu0 %v28327_v7 }
0x1cc7   :  { %26317 = vmatmul.mubr.msk.f32.vlgmr.msra.gmra.mrb[126].mxu1 %vm1094_vm2, %v9778_v31 }
0x1cc8   :  { %26325 = vmatpush3.xpose.msk.msra.mxu1 %vm143_vm0, %v29607_v35  ;;  %26362 = vmatmul.mubr.msk.f32.vlgmr.msra.gmra.mrb[128].mxu0 %vm143_vm0, %v8234_v19 }
0x1cc9   :  { %26370 = vmatpush3.xpose.msk.msra.mxu0 %vm143_vm0, %v29562_v34  ;;  %26326 = vmatprep.mubr.msk.f32.mxu1 %vm28328_vm1, %v28327_v7 }
0x1cca   :  { %26334 = vmatprep.subr.mxu1 %v28327_v7  ;;  %26371 = vmatprep.mubr.msk.f32.mxu0 %vm28328_vm1, %v28327_v7 }
0x1ccb   :  { %26327 = vmatmul.mubr.msk.f32.vlgmr.msra.gmra.mrb[128].mxu1 %vm143_vm0, %v8234_v19  ;;  %26379 = vmatprep.subr.mxu0 %v28327_v7 }
0x1ccc   :  { %26335 = vmatpush3.xpose.msk.msra.mxu1 %vm143_vm0, %v29627_v60  ;;  %26372 = vmatmul.mubr.msk.f32.vlgmr.msra.gmra.mrb[130].mxu0 %vm143_vm0, %v8234_v19 }
0x1ccd   :  { %26336 = vmatprep.mubr.msk.f32.mxu1 %vm28328_vm1, %v28327_v7  ;;  %26344 = vmatprep.subr.mxu1 %v28327_v7 }
0x1cce   :  { %26381 = vmatprep.mubr.msk.f32.mxu0 %vm28328_vm1, %v28327_v7 }
0x1ccf   :  { %26337 = vmatmul.mubr.msk.f32.vlgmr.msra.gmra.mrb[130].mxu1 %vm143_vm0, %v8234_v19 }
0x1cd0   :  { %26345 = vmatpush3.xpose.msk.msra.mxu1 %vm143_vm0, %v29637_v33  ;;  %26346 = vmatprep.mubr.msk.f32.mxu1 %vm28328_vm1, %v28327_v7 }
0x1cd1   :  { %26354 = vmatprep.subr.mxu1 %v28327_v7 }
0x1cd3   :  { %26347 = vmatmul.mubr.msk.f32.vlgmr.msra.gmra.mrb[132].mxu1 %vm143_vm0, %v8234_v19 }
0x1cd4   :  { %26355 = vmatpush3.xpose.msk.msra.mxu1 %vm143_vm0, %v29647_v63  ;;  %26356 = vmatprep.mubr.msk.f32.mxu1 %vm28328_vm1, %v28327_v7 }
0x1cd5   :  { %26364 = vmatprep.subr.mxu1 %v28327_v7 }
0x1cd7   :  { %26357 = vmatmul.mubr.msk.f32.vlgmr.msra.gmra.mrb[134].mxu1 %vm143_vm0, %v8234_v19 }
0x1cd8   :  { %26365 = vmatpush3.xpose.msk.msra.mxu1 %vm143_vm0, %v29657_v12  ;;  %26366 = vmatprep.mubr.msk.f32.mxu1 %vm28328_vm1, %v28327_v7 }
0x1cd9   :  { %26374 = vmatprep.subr.mxu1 %v28327_v7 }
0x1cdb   :  { %26367 = vmatmul.mubr.msk.f32.vlgmr.msra.gmra.mrb[136].mxu1 %vm143_vm0, %v8234_v19 }
0x1cdc   :  { %26375 = vmatpush3.xpose.msk.msra.mxu1 %vm143_vm0, %v29667_v26  ;;  %26376 = vmatprep.mubr.msk.f32.mxu1 %vm28328_vm1, %v28327_v7 }
0x1cdd   :  { %26384 = vmatprep.subr.mxu1 %v28327_v7 }
0x1cdf   :  { %26377 = vmatmul.mubr.msk.f32.vlgmr.msra.gmra.mrb[138].mxu1 %vm143_vm0, %v8234_v19 }
0x1ce0   :  { %26386 = vmatprep.mubr.msk.f32.mxu1 %vm28328_vm1, %v28327_v7 }
0x1d77   :  { %v9863_v5 = vpop.f32.mrb[116].mxu0 }
0x1d78   :  { %v26285_v49 = vpop.f32.mrb[117].mxu0  ;;  %v10122_v29 = vsel %vm143_vm0, %v9863_v5, 0.0 }
0x1d87   :  { %v10033_v58 = vpop.f32.mrb[118].mxu0 }
0x1d88   :  { %v26307_v34 = vpop.f32.mrb[119].mxu0  ;;  %v10125_v56 = vsel %vm143_vm0, %v10033_v58, 0.0 }
0x1d8a   :  { %v9948_v35 = vpop.f32.mrb[124].mxu1 }
0x1d8b   :  { %v10123_v60 = vsel %vm143_vm0, %v9948_v35, 0.0  ;;  %v10198_v33 = vpop.f32.mrb[120].mxu0  ;;  %v26296_v63 = vpop.f32.mrb[125].mxu1 }
0x1d8c   :  { %v10124_v12 = vadd.f32 %v10123_v60, %v10122_v29  ;;  %v26323_v26 = vpop.f32.mrb[121].mxu0 }
0x1d8e   :  { %v10126_v10 = vadd.f32 %v10125_v56, %v10124_v12 }
0x1d8f   :  { %v10338_v11 = vpop.f32.mrb[122].mxu0 }
0x1d90   :  { %v26333_v13 = vpop.f32.mrb[123].mxu0 }
0x1d93   :  { %v10478_v15 = vpop.f32.mrb[124].mxu0 }
0x1d94   :  { %v26343_v61 = vpop.f32.mrb[125].mxu0  ;;  %26380 = vmatpush3.xpose.msk.msra.mxu0 %vm1094_vm2, %v10478_v15 }
0x1d95   :  { %26389 = vmatprep.subr.mxu0 %v28327_v7 }
0x1d97   :  { %v10618_v23 = vpop.f32.mrb[126].mxu0  ;;  %26382 = vmatmul.mubr.msk.f32.vlgmr.msra.gmra.mrb[132].mxu0 %vm1094_vm2, %v10198_v33 }
0x1d98   :  { %v26353_v41 = vpop.f32.mrb[127].mxu0  ;;  %26390 = vmatpush3.xpose.msk.msra.mxu0 %vm1094_vm2, %v10618_v23  ;;  %26391 = vmatprep.mubr.msk.f32.mxu0 %vm28328_vm1, %v28327_v7 }
0x1d99   :  { %26399 = vmatprep.subr.mxu0 %v28327_v7 }
0x1d9a   :  { %v10118_v43 = vpop.f32.mrb[126].mxu1 }
0x1d9b   :  { %v10127_v54 = vsel %vm143_vm0, %v10118_v43, 0.0  ;;  %v26318_v45 = vpop.f32.mrb[127].mxu1  ;;  %v10758_v46 = vpop.f32.mrb[128].mxu0  ;;  %26392 = vmatmul.mubr.msk.f32.vlgmr.msra.gmra.mrb[134].mxu0 %vm1094_vm2, %v10338_v11 }
0x1d9c   :  { %v10128_v32 = vadd.f32 %v10127_v54, %v10126_v10  ;;  %v26363_v22 = vpop.f32.mrb[129].mxu0  ;;  %26400 = vmatpush3.msra.mxu0 %v10758_v46  ;;  %26401 = vmatprep.mubr.msk.f32.mxu0 %vm28328_vm1, %v28327_v7 }
0x1d9d   :  { %26409 = vmatprep.subr.mxu0 %v28327_v7 }
0x1d9e   :  { %v10268_v39 = vpop.f32.mrb[128].mxu1  ;;  %v29937_v54 = vadd.f32 %v10128_v32, %v29478_v57  ;;  %v8137_v32 = vadd.f32 %v29682_v38, %v29405_v37 }
0x1d9f   :  { %v26328_v27 = vpop.f32.mrb[129].mxu1  ;;  %v29912_v1 = vpop.f32.mrb[130].mxu0 }
0x1da0   :  { %v26373_v2 = vpop.f32.mrb[131].mxu0 }
0x1da1   :  { %v11915_v2 = vsel %vm143_vm0, %v29937_v54, 0.0 }
0x1da2   :  { %v10408_v21 = vpop.f32.mrb[130].mxu1 }
0x1da3   :  { %v26338_v4 = vpop.f32.mrb[131].mxu1 }
0x1da6   :  { %v10548_v50 = vpop.f32.mrb[132].mxu1 }
0x1da7   :  { %v26348_v8 = vpop.f32.mrb[133].mxu1  ;;  %26385 = vmatpush3.xpose.msk.msra.mxu1 %vm1094_vm2, %v10548_v50 }
0x1da8   :  { %26394 = vmatprep.subr.mxu1 %v28327_v7 }
0x1daa   :  { %v10688_v40 = vpop.f32.mrb[134].mxu1  ;;  %26387 = vmatmul.mubr.msk.f32.vlgmr.msra.gmra.mrb[140].mxu1 %vm1094_vm2, %v10268_v39 }
0x1dab   :  { %v26358_v14 = vpop.f32.mrb[135].mxu1  ;;  %26395 = vmatpush3.xpose.msk.msra.mxu1 %vm1094_vm2, %v10688_v40  ;;  %26396 = vmatprep.mubr.msk.f32.mxu1 %vm28328_vm1, %v28327_v7  ;;  %v8141_v40 = vsel %vm143_vm0, %v8137_v32, 0.0 }
0x1dac   :  { %26404 = vmatprep.subr.mxu1 %v28327_v7 }
0x1dae   :  { %v10828_v16 = vpop.f32.mrb[136].mxu1  ;;  %26397 = vmatmul.mubr.msk.f32.vlgmr.msra.gmra.mrb[142].mxu1 %vm1094_vm2, %v10408_v21 }
0x1daf   :  { %v26368_v44 = vpop.f32.mrb[137].mxu1  ;;  %26405 = vmatpush3.msra.mxu1 %v10828_v16  ;;  %26406 = vmatprep.mubr.msk.f32.mxu1 %vm28328_vm1, %v28327_v7 }
0x1db0   :  { %26414 = vmatprep.subr.mxu1 %v28327_v7 }
0x1db2   :  { %v29925_v51 = vpop.f32.mrb[138].mxu1 }
0x1db3   :  { %v26378_v19 = vpop.f32.mrb[139].mxu1 }
0x1e6a   :  { %v11044_v9 = vpop.f32.mrb[132].mxu0 }
0x1e6b   :  { %v11045_v24 = vadd.f32 %v11044_v9, %v29709_v3  ;;  %v26383_v18 = vpop.f32.mrb[133].mxu0 }
0x1e6d   :  { %v11276_v52 = vsel %vm1094_vm2, %v11045_v24, -inf }
0x1e6e   :  { %11277 = vmax.xlane.f32.xlu0 %v11276_v52  ;;  %v11196_v31 = vpop.f32.mrb[134].mxu0 }
0x1e6f   :  { %v11197_v30 = vadd.f32 %v11196_v31, %v29709_v3  ;;  %v26393_v5 = vpop.f32.mrb[135].mxu0 }
0x1e71   :  { %v11282_v49 = vsel %vm1094_vm2, %v11197_v30, -inf }
0x1e72   :  { %11283 = vmax.xlane.f32.xlu0 %v11282_v49 }
0x1e7d   :  { %v11120_v58 = vpop.f32.mrb[140].mxu1 }
0x1e7e   :  { %v11121_v34 = vadd.f32 %v11120_v58, %v29709_v3  ;;  %v26388_v35 = vpop.f32.mrb[141].mxu1 }
0x1e80   :  { %v11279_v29 = vsel %vm1094_vm2, %v11121_v34, -inf }
0x1e81   :  { %11280 = vmax.xlane.f32.xlu1 %v11279_v29  ;;  %v11272_v60 = vpop.f32.mrb[142].mxu1 }
0x1e82   :  { %v11273_v33 = vadd.f32 %v11272_v60, %v29709_v3  ;;  %v26398_v63 = vpop.f32.mrb[143].mxu1 }
0x1e84   :  { %v11285_v12 = vsel %vm1094_vm2, %v11273_v33, -inf }
0x1e85   :  { %11286 = vmax.xlane.f32.xlu1 %v11285_v12 }
0x1efb   :  { %v11278_v26 = vpop.xlane.xlu0 %11277 }
0x1efc   :  { %v11288_v56 = vsub.f32 %v11045_v24, %v11278_v26 }
0x1efe   :  { %v11292_v10 = vmul.f32 1.442695, %v11288_v56 }
0x1eff   :  { %v11284_v11 = vpop.xlane.xlu0 %11283 }
0x1f00   :  { %28113 = vpow2.f32 %v11292_v10  ;;  %v11290_v13 = vsub.f32 %v11197_v30, %v11284_v11 }
0x1f02   :  { %v11296_v15 = vmul.f32 1.442695, %v11290_v13 }
0x1f04   :  { %28115 = vpow2.f32 %v11296_v15 }
0x1f0a   :  { %v28114_v61 = vpop.eup %28113 }
0x1f0b   :  { %v11300_v23 = vsel %vm1094_vm2, %v28114_v61, 0.0 }
0x1f0c   :  { %11301 = vadd.xlane.f32.xlu0 %v11300_v23 }
0x1f0e   :  { %v28116_v41 = vpop.eup %28115  ;;  %v11281_v43 = vpop.xlane.xlu1 %11280 }
0x1f0f   :  { %v11289_v45 = vsub.f32 %v11121_v34, %v11281_v43  ;;  %v11306_v46 = vsel %vm1094_vm2, %v28116_v41, 0.0  ;;  %v30001_v43 = vld [vmem:[%s31598_s29] ss:$0 sm:$0xff] }
0x1f10   :  { %11307 = vadd.xlane.f32.xlu0 %v11306_v46 }
0x1f11   :  { %v11294_v22 = vmul.f32 1.442695, %v11289_v45 }
0x1f12   :  { %v11287_v39 = vpop.xlane.xlu1 %11286 }
0x1f13   :  { %28117 = vpow2.f32 %v11294_v22  ;;  %v11291_v27 = vsub.f32 %v11273_v33, %v11287_v39  ;;  %v30011_v22 = vld [vmem:[%s31597_s25 + $0x10] sm:$0xff]  ;;  %v30014_v39 = vld [vmem:[%s31599_s3] ss:$0 sm:$0xff] }
0x1f14   :  { %11916 = vadd.xlane.f32.xlu0 %v11915_v2 }
0x1f15   :  { %v11298_v21 = vmul.f32 1.442695, %v11291_v27 }
0x1f17   :  { %28119 = vpow2.f32 %v11298_v21 }
0x1f1d   :  { %v28118_v4 = vpop.eup %28117 }
0x1f1e   :  { %v11303_v50 = vsel %vm1094_vm2, %v28118_v4, 0.0 }
0x1f1f   :  { %11304 = vadd.xlane.f32.xlu1 %v11303_v50 }
0x1f21   :  { %v28120_v57 = vpop.eup %28119 }
0x1f22   :  { %v11309_v8 = vsel %vm1094_vm2, %v28120_v57, 0.0 }
0x1f23   :  { %11310 = vadd.xlane.f32.xlu1 %v11309_v8  ;;  %v30059_v8 = vld [vmem:[%s31602_s19] sm:$0xff] }
0x1f27   :  { %8142 = vadd.xlane.f32.xlu1 %v8141_v40  ;;  %v30073_v40 = vld [vmem:[%s31602_s19 + $0x10] sm:$0xff] }
0x1f99   :  { %v11302_v14 = vpop.xlane.xlu0 %11301 }
0x1f9a   :  { %28121 = vrcp.f32 %v11302_v14  ;;  %v30085_v14 = vld [vmem:[%s31597_s25 + $0x18] sm:$0xff] }
0x1f9d   :  { %v11308_v16 = vpop.xlane.xlu0 %11307 }
0x1f9e   :  { %28123 = vrcp.f32 %v11308_v16  ;;  %v30100_v16 = vld [vmem:[%s31600_s8 + $0x8] sm:$0xff] }
0x1fa1   :  { %v11917_v44 = vpop.xlane.xlu0 %11916 }
0x1fa2   :  { %v11921_v19 = vmul.f32 0.03125, %v11917_v44  ;;  %v30111_v44 = vld [vmem:[%s31600_s8 + $0x18] sm:$0xff] }
0x1fa4   :  { %v28122_v9 = vpop.eup %28121  ;;  %v11923_v24 = vsub.f32 %v29937_v54, %v11921_v19  ;;  %v30121_v19 = vld [vmem:[%s31602_s19 + $0x8] sm:$0xff] }
0x1fa5   :  { %v11313_v18 = vmul.f32 %v28122_v9, %v28114_v61  ;;  %v29994_v61 = vld [vmem:[%s31596_s21] ss:$0 sm:$0xff]  ;;  %v30131_v9 = vld [vmem:[%s31602_s19 + $0x18] sm:$0xff] }
0x1fa6   :  { %v11925_v52 = vmul.f32 %v11923_v24, %v11923_v24 }
0x1fa7   :  { %26402 = vmatmul.mubr.msk.f32.vlgmr.msra.gmra.mrb[136].mxu0 %vm1094_vm2, %v11313_v18 }
0x1fa8   :  { %v28124_v37 = vpop.eup %28123  ;;  %26410 = vmatpush3.msra.mxu0 %v29912_v1  ;;  %v11927_v38 = vsel %vm143_vm0, %v11925_v52, 0.0  ;;  %26411 = vmatprep.mubr.msk.f32.mxu0 %vm28328_vm1, %v28327_v7 }
0x1fa9   :  { %v11317_v31 = vmul.f32 %v28124_v37, %v28116_v41  ;;  %11928 = vadd.xlane.f32.xlu0 %v11927_v38  ;;  %27638 = vmatprep.subr.bf16.mxu0 %v28329_v59 }
0x1fab   :  { %26412 = vmatmul.mubr.msk.f32.vlgmr.msra.gmra.mrb[138].mxu0 %vm1094_vm2, %v11317_v31 }
0x1fac   :  { %v11305_v30 = vpop.xlane.xlu1 %11304  ;;  %26427 = vmatprep.mubr.msk.f32.mxu0 %vm28328_vm1, %v28327_v7 }
0x1fad   :  { %28125 = vrcp.f32 %v11305_v30 }
0x1faf   :  { %27641 = vmatpush3.bf16.xpose.msk.msra.mxu0 %vm28700_vm3, %v29748_v20 }
0x1fb0   :  { %v11311_v1 = vpop.xlane.xlu1 %11310  ;;  %27642 = vmatprep.subr.bf16.mxu0 %v28329_v59 }
0x1fb1   :  { %28127 = vrcp.f32 %v11311_v1 }
0x1fb4   :  { %v8143_v5 = vpop.xlane.xlu1 %8142 }
0x1fb5   :  { %v8147_v49 = vmul.f32 0.03125, %v8143_v5 }
0x1fb7   :  { %v28126_v58 = vpop.eup %28125  ;;  %v8149_v34 = vsub.f32 %v8137_v32, %v8147_v49  ;;  %27645 = vmatpush3.bf16.xpose.msk.msra.mxu0 %vm28700_vm3, %v29756_v6  ;;  %v30046_v32 = vld [vmem:[%s31600_s8 + $0x10] sm:$0xff] }
0x1fb8   :  { %v11315_v35 = vmul.f32 %v28126_v58, %v28118_v4  ;;  %27654 = vmatprep.subr.bf16.mxu0 %v28329_v59  ;;  %v30028_v4 = vld [vmem:[%s31600_s8] sm:$0xff] }
0x1fb9   :  { %v8151_v29 = vmul.f32 %v8149_v34, %v8149_v34 }
0x1fba   :  { %26407 = vmatmul.mubr.msk.f32.vlgmr.msra.gmra.mrb[144].mxu1 %vm1094_vm2, %v11315_v35 }
0x1fbb   :  { %v28128_v60 = vpop.eup %28127  ;;  %26415 = vmatpush3.msra.mxu1 %v29925_v51  ;;  %v8153_v20 = vsel %vm143_vm0, %v8151_v29, 0.0  ;;  %26416 = vmatprep.mubr.msk.f32.mxu1 %vm28328_vm1, %v28327_v7 }
0x1fbc   :  { %v11319_v33 = vmul.f32 %v28128_v60, %v28120_v57  ;;  %8154 = vadd.xlane.f32.xlu1 %v8153_v20  ;;  %27646 = vmatprep.subr.bf16.mxu1 %v28329_v59 }
0x1fbe   :  { %26417 = vmatmul.mubr.msk.f32.vlgmr.msra.gmra.mrb[146].mxu1 %vm1094_vm2, %v11319_v33 }
0x1fbf   :  { %26438 = vmatprep.mubr.msk.f32.mxu1 %vm28328_vm1, %v28327_v7 }
0x1fc2   :  { %27649 = vmatpush3.bf16.xpose.msk.msra.mxu1 %vm28700_vm3, %v29764_v28 }
0x1fc3   :  { %27650 = vmatprep.subr.bf16.mxu1 %v28329_v59 }
0x1fca   :  { %27653 = vmatpush3.bf16.xpose.msk.msra.mxu1 %vm28700_vm3, %v29772_v17 }
0x1fcb   :  { %27662 = vmatprep.subr.bf16.mxu1 %v28329_v59 }
0x2036   :  { %v11929_v6 = vpop.xlane.xlu0 %11928 }
0x2037   :  { %v11933_v51 = vmul.f32 0.03125, %v11929_v6 }
0x2039   :  { %v11935_v63 = vadd.f32 1e-05, %v11933_v51 }
0x203b   :  { %28129 = vrsqrt.f32 %v11935_v63 }
0x2045   :  { %v28130_v13 = vpop.eup %28129 }
0x2046   :  { %v11939_v15 = vmul.f32 %v28130_v13, %v11923_v24 }
0x2048   :  { %v11947_v23 = vmul.f32 %v29994_v61, %v11939_v15 }
0x2049   :  { %v8155_v12 = vpop.xlane.xlu1 %8154 }
0x204a   :  { %v8159_v26 = vmul.f32 0.03125, %v8155_v12  ;;  %v11955_v46 = vadd.f32 %v30001_v43, %v11947_v23 }
0x204c   :  { %v8161_v28 = vadd.f32 1e-05, %v8159_v26 }
0x204e   :  { %28131 = vrsqrt.f32 %v8161_v28 }
0x2058   :  { %v28132_v41 = vpop.eup %28131 }
0x207a   :  { %v11389_v56 = vpop.f32.mrb[136].mxu0 }
0x207b   :  { %v26403_v10 = vpop.f32.mrb[137].mxu0  ;;  %26428 = vmatmul.mubr.msk.f32.vlgmr.msra.gmra.mrb[140].mxu0 %vm1094_vm2, %v11389_v56 }
0x207c   :  { %27657 = vmatpush3.bf16.xpose.msk.msra.mxu0 %vm28700_vm3, %v29780_v62  ;;  %26449 = vmatprep.mubr.msk.f32.mxu0 %vm28328_vm1, %v28327_v7  ;;  %v29997_v62 = vld [vmem:[%s31597_s25] sm:$0xff] }
0x207d   :  { %27658 = vmatprep.subr.bf16.mxu0 %v28329_v59 }
0x207e   :  { %v11535_v17 = vpop.f32.mrb[138].mxu0 }
0x207f   :  { %v26413_v11 = vpop.f32.mrb[139].mxu0 }
0x2084   :  { %27661 = vmatpush3.bf16.xpose.msk.msra.mxu0 %vm28700_vm3, %v29791_v0  ;;  %v8165_v0 = vmul.f32 %v28132_v41, %v8149_v34 }
0x2085   :  { %26463 = vmatprep.subr.mxu0 %v28327_v7 }
0x2086   :  { %v8173_v2 = vmul.f32 %v30014_v39, %v8165_v0 }
0x208b   :  { %26450 = vmatmul.mubr.msk.f32.vlgmr.msra.gmra.mrb[142].mxu0 %vm1094_vm2, %v11535_v17 }
0x208c   :  { %26464 = vmatpush3.xpose.msk.msra.mxu0 %vm143_vm0, %v29997_v62  ;;  %26465 = vmatprep.mubr.msk.f32.mxu0 %vm28328_vm1, %v28327_v7 }
0x208d   :  { %v11462_v45 = vpop.f32.mrb[144].mxu1  ;;  %26473 = vmatprep.subr.mxu0 %v28327_v7 }
0x208e   :  { %v26408_v27 = vpop.f32.mrb[145].mxu1  ;;  %26439 = vmatmul.mubr.msk.f32.vlgmr.msra.gmra.mrb[148].mxu1 %vm1094_vm2, %v11462_v45 }
0x208f   :  { %27665 = vmatpush3.bf16.xpose.msk.msra.mxu1 %vm28700_vm3, %v29802_v25  ;;  %26466 = vmatmul.mubr.msk.f32.vlgmr.msra.gmra.mrb[144].mxu0 %vm143_vm0, %v11955_v46  ;;  %v30032_v25 = vld [vmem:[%s31601_s14] ss:$0 sm:$0xff] }
0x2090   :  { %26474 = vmatpush3.xpose.msk.msra.mxu0 %vm143_vm0, %v30011_v22  ;;  %26475 = vmatprep.mubr.msk.f32.mxu0 %vm28328_vm1, %v28327_v7  ;;  %v30042_v57 = vadd.f32 %v30032_v25, %v8173_v2 }
0x2091   :  { %v11608_v21 = vpop.f32.mrb[146].mxu1  ;;  %26483 = vmatprep.subr.mxu0 %v28327_v7  ;;  %27666 = vmatprep.subr.bf16.mxu1 %v28329_v59 }
0x2092   :  { %v26418_v50 = vpop.f32.mrb[147].mxu1  ;;  %26460 = vmatprep.mubr.msk.f32.mxu1 %vm28328_vm1, %v28327_v7 }
0x2093   :  { %26476 = vmatmul.mubr.msk.f32.vlgmr.msra.gmra.mrb[146].mxu0 %vm143_vm0, %v11955_v46 }
0x2094   :  { %26484 = vmatpush3.xpose.msk.msra.mxu0 %vm143_vm0, %v30028_v4  ;;  %26485 = vmatprep.mubr.msk.f32.mxu0 %vm28328_vm1, %v28327_v7 }
0x2095   :  { %26493 = vmatprep.subr.mxu0 %v28327_v7 }
0x2097   :  { %27669 = vmatpush3.bf16.xpose.msk.msra.mxu1 %vm28700_vm3, %v29826_v55  ;;  %26486 = vmatmul.mubr.msk.f32.vlgmr.msra.gmra.mrb[148].mxu0 %vm143_vm0, %v30042_v57  ;;  %v30069_v55 = vld [vmem:[%s31597_s25 + $0x8] sm:$0xff] }
0x2098   :  { %26494 = vmatpush3.xpose.msk.msra.mxu0 %vm143_vm0, %v30046_v32  ;;  %26495 = vmatprep.mubr.msk.f32.mxu0 %vm28328_vm1, %v28327_v7 }
0x2099   :  { %26503 = vmatprep.subr.mxu0 %v28327_v7  ;;  %26468 = vmatprep.subr.mxu1 %v28327_v7 }
0x209b   :  { %26496 = vmatmul.mubr.msk.f32.vlgmr.msra.gmra.mrb[150].mxu0 %vm143_vm0, %v30042_v57 }
0x209c   :  { %26504 = vmatpush3.xpose.msk.msra.mxu0 %vm143_vm0, %v30059_v8  ;;  %26505 = vmatprep.mubr.msk.f32.mxu0 %vm28328_vm1, %v28327_v7 }
0x209d   :  { %26513 = vmatprep.subr.mxu0 %v28327_v7 }
0x209e   :  { %26461 = vmatmul.mubr.msk.f32.vlgmr.msra.gmra.mrb[150].mxu1 %vm1094_vm2, %v11608_v21 }
0x209f   :  { %26469 = vmatpush3.xpose.msk.msra.mxu1 %vm143_vm0, %v30069_v55  ;;  %26506 = vmatmul.mubr.msk.f32.vlgmr.msra.gmra.mrb[152].mxu0 %vm143_vm0, %v30042_v57 }
0x20a0   :  { %26514 = vmatpush3.xpose.msk.msra.mxu0 %vm143_vm0, %v30073_v40  ;;  %26470 = vmatprep.mubr.msk.f32.mxu1 %vm28328_vm1, %v28327_v7 }
0x20a1   :  { %26478 = vmatprep.subr.mxu1 %v28327_v7  ;;  %26515 = vmatprep.mubr.msk.f32.mxu0 %vm28328_vm1, %v28327_v7 }
0x20a2   :  { %26471 = vmatmul.mubr.msk.f32.vlgmr.msra.gmra.mrb[152].mxu1 %vm143_vm0, %v11955_v46  ;;  %26523 = vmatprep.subr.mxu0 %v28327_v7 }
0x20a3   :  { %26479 = vmatpush3.xpose.msk.msra.mxu1 %vm143_vm0, %v30085_v14  ;;  %26516 = vmatmul.mubr.msk.f32.vlgmr.msra.gmra.mrb[154].mxu0 %vm143_vm0, %v30042_v57 }
0x20a4   :  { %26480 = vmatprep.mubr.msk.f32.mxu1 %vm28328_vm1, %v28327_v7  ;;  %26488 = vmatprep.subr.mxu1 %v28327_v7 }
0x20a5   :  { %26525 = vmatprep.mubr.msk.f32.mxu0 %vm28328_vm1, %v28327_v7 }
0x20a6   :  { %26481 = vmatmul.mubr.msk.f32.vlgmr.msra.gmra.mrb[154].mxu1 %vm143_vm0, %v11955_v46 }
0x20a7   :  { %26489 = vmatpush3.xpose.msk.msra.mxu1 %vm143_vm0, %v30100_v16  ;;  %26490 = vmatprep.mubr.msk.f32.mxu1 %vm28328_vm1, %v28327_v7 }
0x20a8   :  { %26498 = vmatprep.subr.mxu1 %v28327_v7 }
0x20aa   :  { %26491 = vmatmul.mubr.msk.f32.vlgmr.msra.gmra.mrb[156].mxu1 %vm143_vm0, %v30042_v57 }
0x20ab   :  { %26499 = vmatpush3.xpose.msk.msra.mxu1 %vm143_vm0, %v30111_v44  ;;  %26500 = vmatprep.mubr.msk.f32.mxu1 %vm28328_vm1, %v28327_v7 }
0x20ac   :  { %26508 = vmatprep.subr.mxu1 %v28327_v7 }
0x20ae   :  { %26501 = vmatmul.mubr.msk.f32.vlgmr.msra.gmra.mrb[158].mxu1 %vm143_vm0, %v30042_v57 }
0x20af   :  { %26509 = vmatpush3.xpose.msk.msra.mxu1 %vm143_vm0, %v30121_v19  ;;  %26510 = vmatprep.mubr.msk.f32.mxu1 %vm28328_vm1, %v28327_v7 }
0x20b0   :  { %26518 = vmatprep.subr.mxu1 %v28327_v7 }
0x20b2   :  { %26511 = vmatmul.mubr.msk.f32.vlgmr.msra.gmra.mrb[160].mxu1 %vm143_vm0, %v30042_v57 }
0x20b3   :  { %26519 = vmatpush3.xpose.msk.msra.mxu1 %vm143_vm0, %v30131_v9  ;;  %26520 = vmatprep.mubr.msk.f32.mxu1 %vm28328_vm1, %v28327_v7 }
0x20b4   :  { %26528 = vmatprep.subr.mxu1 %v28327_v7 }
0x20b6   :  { %26521 = vmatmul.mubr.msk.f32.vlgmr.msra.gmra.mrb[162].mxu1 %vm143_vm0, %v30042_v57 }
0x20b7   :  { %26530 = vmatprep.mubr.msk.f32.mxu1 %vm28328_vm1, %v28327_v7 }
0x214e   :  { %v11681_v24 = vpop.f32.mrb[140].mxu0 }
0x214f   :  { %v26429_v18 = vpop.f32.mrb[141].mxu0  ;;  %v11904_v31 = vsel %vm143_vm0, %v11681_v24, 0.0 }
0x215e   :  { %v11827_v52 = vpop.f32.mrb[142].mxu0 }
0x215f   :  { %v26451_v37 = vpop.f32.mrb[143].mxu0  ;;  %v11907_v34 = vsel %vm143_vm0, %v11827_v52, 0.0 }
0x2161   :  { %v11754_v38 = vpop.f32.mrb[148].mxu1 }
0x2162   :  { %v11905_v30 = vsel %vm143_vm0, %v11754_v38, 0.0  ;;  %v12057_v1 = vpop.f32.mrb[144].mxu0  ;;  %v26440_v5 = vpop.f32.mrb[149].mxu1 }
0x2163   :  { %v11906_v49 = vadd.f32 %v11905_v30, %v11904_v31  ;;  %v26467_v58 = vpop.f32.mrb[145].mxu0 }
0x2165   :  { %v11908_v35 = vadd.f32 %v11907_v34, %v11906_v49 }
0x2166   :  { %v12203_v29 = vpop.f32.mrb[146].mxu0 }
0x2167   :  { %v26477_v60 = vpop.f32.mrb[147].mxu0 }
0x216a   :  { %v12352_v20 = vpop.f32.mrb[148].mxu0 }
0x216b   :  { %v26487_v33 = vpop.f32.mrb[149].mxu0  ;;  %26524 = vmatpush3.xpose.msk.msra.mxu0 %vm1094_vm2, %v12352_v20 }
0x216c   :  { %26533 = vmatprep.subr.mxu0 %v28327_v7 }
0x216e   :  { %v12498_v6 = vpop.f32.mrb[150].mxu0  ;;  %26526 = vmatmul.mubr.msk.f32.vlgmr.msra.gmra.mrb[156].mxu0 %vm1094_vm2, %v12057_v1 }
0x216f   :  { %v26497_v51 = vpop.f32.mrb[151].mxu0  ;;  %26534 = vmatpush3.xpose.msk.msra.mxu0 %vm1094_vm2, %v12498_v6  ;;  %26535 = vmatprep.mubr.msk.f32.mxu0 %vm28328_vm1, %v28327_v7 }
0x2170   :  { %26543 = vmatprep.subr.mxu0 %v28327_v7 }
0x2171   :  { %v11900_v63 = vpop.f32.mrb[150].mxu1 }
0x2172   :  { %v11909_v12 = vsel %vm143_vm0, %v11900_v63, 0.0  ;;  %v26462_v26 = vpop.f32.mrb[151].mxu1  ;;  %v12644_v56 = vpop.f32.mrb[152].mxu0  ;;  %26536 = vmatmul.mubr.msk.f32.vlgmr.msra.gmra.mrb[158].mxu0 %vm1094_vm2, %v12203_v29 }
0x2173   :  { %v11910_v10 = vadd.f32 %v11909_v12, %v11908_v35  ;;  %v26507_v28 = vpop.f32.mrb[153].mxu0  ;;  %26544 = vmatpush3.msra.mxu0 %v12644_v56  ;;  %26545 = vmatprep.mubr.msk.f32.mxu0 %vm28328_vm1, %v28327_v7 }
0x2174   :  { %26553 = vmatprep.subr.mxu0 %v28327_v7  ;;  %v28269_v28 = vld [vmem:[%s28346_s9 + $0x8] sm:$0xff]  ;;  %s31603_s9 = sld [smem:[#allocation16_spill]] }
0x2175   :  { %v12130_v17 = vpop.f32.mrb[152].mxu1 }
0x2176   :  { %v26472_v11 = vpop.f32.mrb[153].mxu1  ;;  %v30159_v13 = vpop.f32.mrb[154].mxu0 }
0x2177   :  { %v26517_v15 = vpop.f32.mrb[155].mxu0 }
0x2179   :  { %v12276_v23 = vpop.f32.mrb[154].mxu1 }
0x217a   :  { %v26482_v41 = vpop.f32.mrb[155].mxu1 }
0x217d   :  { %v12425_v0 = vpop.f32.mrb[156].mxu1 }
0x217e   :  { %v26492_v45 = vpop.f32.mrb[157].mxu1  ;;  %26529 = vmatpush3.xpose.msk.msra.mxu1 %vm1094_vm2, %v12425_v0 }
0x217f   :  { %26538 = vmatprep.subr.mxu1 %v28327_v7 }
0x2181   :  { %v12571_v46 = vpop.f32.mrb[158].mxu1  ;;  %26531 = vmatmul.mubr.msk.f32.vlgmr.msra.gmra.mrb[164].mxu1 %vm1094_vm2, %v12130_v17  ;;  %v30180_v17 = vadd.f32 %v28269_v28, %v11910_v10  ;;  %v11971_v28 = vld [vmem:[%s31603_s9 + $0x10] sm:$0xff] }
0x2182   :  { %v26502_v27 = vpop.f32.mrb[159].mxu1  ;;  %26539 = vmatpush3.xpose.msk.msra.mxu1 %vm1094_vm2, %v12571_v46  ;;  %26540 = vmatprep.mubr.msk.f32.mxu1 %vm28328_vm1, %v28327_v7 }
0x2183   :  { %26548 = vmatprep.subr.mxu1 %v28327_v7  ;;  %v11918_v45 = vsel %vm143_vm0, %v30180_v17, 0.0 }
0x2185   :  { %v12717_v2 = vpop.f32.mrb[160].mxu1  ;;  %26541 = vmatmul.mubr.msk.f32.vlgmr.msra.gmra.mrb[166].mxu1 %vm1094_vm2, %v12276_v23 }
0x2186   :  { %v26512_v21 = vpop.f32.mrb[161].mxu1  ;;  %26549 = vmatpush3.msra.mxu1 %v12717_v2  ;;  %26550 = vmatprep.mubr.msk.f32.mxu1 %vm28328_vm1, %v28327_v7 }
0x2187   :  { %26558 = vmatprep.subr.mxu1 %v28327_v7  ;;  %v8138_v21 = vadd.f32 %v29680_v47, %v29487_v48 }
0x2189   :  { %v30172_v50 = vpop.f32.mrb[162].mxu1 }
0x218a   :  { %v26522_v24 = vpop.f32.mrb[163].mxu1 }
0x2241   :  { %v12939_v18 = vpop.f32.mrb[156].mxu0 }
0x2242   :  { %v26527_v52 = vpop.f32.mrb[157].mxu0  ;;  %v13171_v37 = vsel %vm1094_vm2, %v12939_v18, -inf }
0x2243   :  { %13172 = vmax.xlane.f32.xlu0 %v13171_v37 }
0x2245   :  { %v13091_v38 = vpop.f32.mrb[158].mxu0 }
0x2246   :  { %v26537_v31 = vpop.f32.mrb[159].mxu0  ;;  %v13177_v30 = vsel %vm1094_vm2, %v13091_v38, -inf }
0x2247   :  { %13178 = vmax.xlane.f32.xlu0 %v13177_v30 }
0x2254   :  { %v13015_v1 = vpop.f32.mrb[164].mxu1 }
0x2255   :  { %v26532_v5 = vpop.f32.mrb[165].mxu1  ;;  %v13174_v49 = vsel %vm1094_vm2, %v13015_v1, -inf }
0x2256   :  { %13175 = vmax.xlane.f32.xlu1 %v13174_v49 }
0x2258   :  { %v13167_v58 = vpop.f32.mrb[166].mxu1 }
0x2259   :  { %v26542_v34 = vpop.f32.mrb[167].mxu1  ;;  %v13180_v35 = vsel %vm1094_vm2, %v13167_v58, -inf }
0x225a   :  { %13181 = vmax.xlane.f32.xlu1 %v13180_v35 }
0x22d0   :  { %v13173_v29 = vpop.xlane.xlu0 %13172 }
0x22d1   :  { %v13183_v60 = vsub.f32 %v12939_v18, %v13173_v29  ;;  %v8144_v18 = vsel %vm143_vm0, %v8138_v21, 0.0 }
0x22d3   :  { %v13187_v20 = vmul.f32 1.442695, %v13183_v60 }
0x22d4   :  { %v13179_v33 = vpop.xlane.xlu0 %13178 }
0x22d5   :  { %28133 = vpow2.f32 %v13187_v20  ;;  %v13185_v6 = vsub.f32 %v13091_v38, %v13179_v33 }
0x22d7   :  { %v13191_v51 = vmul.f32 1.442695, %v13185_v6 }
0x22d9   :  { %28135 = vpow2.f32 %v13191_v51 }
0x22df   :  { %v28134_v63 = vpop.eup %28133 }
0x22e0   :  { %v13195_v12 = vsel %vm1094_vm2, %v28134_v63, 0.0 }
0x22e1   :  { %13196 = vadd.xlane.f32.xlu0 %v13195_v12 }
0x22e3   :  { %v28136_v26 = vpop.eup %28135  ;;  %v13176_v56 = vpop.xlane.xlu1 %13175 }
0x22e4   :  { %v13184_v11 = vsub.f32 %v13015_v1, %v13176_v56  ;;  %v13201_v15 = vsel %vm1094_vm2, %v28136_v26, 0.0 }
0x22e5   :  { %13202 = vadd.xlane.f32.xlu0 %v13201_v15 }
0x22e6   :  { %v13189_v23 = vmul.f32 1.442695, %v13184_v11  ;;  %v11972_v11 = vld [vmem:[%s31603_s9 + $0x18] sm:$0xff] }
0x22e7   :  { %v13182_v41 = vpop.xlane.xlu1 %13181  ;;  %v30227_v15 = vpack.c.bf16 %v11972_v11, %v11971_v28 }
0x22e8   :  { %28137 = vpow2.f32 %v13189_v23  ;;  %v13186_v0 = vsub.f32 %v13167_v58, %v13182_v41  ;;  %v11973_v23 = vld [vmem:[%s31603_s9 + $0x20] sm:$0xff]  ;;  %v11974_v41 = vld [vmem:[%s31603_s9 + $0x28] sm:$0xff] }
0x22e9   :  { %11919 = vadd.xlane.f32.xlu0 %v11918_v45  ;;  %v11975_v45 = vld [vmem:[%s31603_s9 + $0x30] sm:$0xff] }
0x22ea   :  { %v13193_v46 = vmul.f32 1.442695, %v13186_v0  ;;  %v30235_v0 = vpack.c.bf16 %v11974_v41, %v11973_v23 }
0x22ec   :  { %28139 = vpow2.f32 %v13193_v46  ;;  %v11976_v46 = vld [vmem:[%s31603_s9 + $0x38] sm:$0xff] }
0x22f2   :  { %v28138_v27 = vpop.eup %28137 }
0x22f3   :  { %v13198_v2 = vsel %vm1094_vm2, %v28138_v27, 0.0 }
0x22f4   :  { %13199 = vadd.xlane.f32.xlu1 %v13198_v2 }
0x22f6   :  { %v28140_v10 = vpop.eup %28139 }
0x22f7   :  { %v13204_v24 = vsel %vm1094_vm2, %v28140_v10, 0.0 }
0x22f8   :  { %13205 = vadd.xlane.f32.xlu1 %v13204_v24 }
0x22fc   :  { %8145 = vadd.xlane.f32.xlu1 %v8144_v18  ;;  %v11977_v18 = vld [vmem:[%s31603_s9 + $0x40] sm:$0xff] }
0x236e   :  { %v13197_v52 = vpop.xlane.xlu0 %13196 }
0x236f   :  { %28141 = vrcp.f32 %v13197_v52  ;;  %v11978_v52 = vld [vmem:[%s31603_s9 + $0x48] sm:$0xff] }
0x2372   :  { %v13203_v37 = vpop.xlane.xlu0 %13202 }
0x2373   :  { %28143 = vrcp.f32 %v13203_v37 }
0x2376   :  { %v11920_v38 = vpop.xlane.xlu0 %11919 }
0x2377   :  { %v11922_v31 = vmul.f32 0.03125, %v11920_v38  ;;  %v30251_v38 = vpack.c.bf16 %v11978_v52, %v11977_v18 }
0x2379   :  { %v28142_v30 = vpop.eup %28141  ;;  %v30191_v1 = vsub.f32 %v30180_v17, %v11922_v31 }
0x237a   :  { %v13208_v5 = vmul.f32 %v28142_v30, %v28134_v63 }
0x237b   :  { %v11926_v48 = vmul.f32 %v30191_v1, %v30191_v1 }
0x237c   :  { %26546 = vmatmul.mubr.msk.f32.vlgmr.msra.gmra.mrb[160].mxu0 %vm1094_vm2, %v13208_v5 }
0x237d   :  { %v28144_v47 = vpop.eup %28143  ;;  %26554 = vmatpush3.msra.mxu0 %v30159_v13  ;;  %v11930_v49 = vsel %vm143_vm0, %v11926_v48, 0.0  ;;  %26555 = vmatprep.mubr.msk.f32.mxu0 %vm28328_vm1, %v28327_v7  ;;  %v11979_v48 = vld [vmem:[%s31603_s9 + $0x50] sm:$0xff] }
0x237e   :  { %v13212_v58 = vmul.f32 %v28144_v47, %v28136_v26  ;;  %11931 = vadd.xlane.f32.xlu0 %v11930_v49  ;;  %27670 = vmatprep.subr.bf16.mxu0 %v28329_v59  ;;  %v11969_v26 = vld [vmem:[%s31603_s9] sm:$0xff]  ;;  %v11980_v47 = vld [vmem:[%s31603_s9 + $0x58] sm:$0xff] }
0x2380   :  { %26556 = vmatmul.mubr.msk.f32.vlgmr.msra.gmra.mrb[162].mxu0 %vm1094_vm2, %v13212_v58 }
0x2381   :  { %v13200_v34 = vpop.xlane.xlu1 %13199  ;;  %26571 = vmatprep.mubr.msk.f32.mxu0 %vm28328_vm1, %v28327_v7 }
0x2382   :  { %28145 = vrcp.f32 %v13200_v34  ;;  %v30262_v34 = vpack.c.bf16 %v11980_v47, %v11979_v48 }
0x2385   :  { %v13206_v35 = vpop.xlane.xlu1 %13205 }
0x2386   :  { %28147 = vrcp.f32 %v13206_v35 }
0x2389   :  { %v8146_v29 = vpop.xlane.xlu1 %8145 }
0x238a   :  { %v8148_v13 = vmul.f32 0.03125, %v8146_v29 }
0x238c   :  { %v28146_v60 = vpop.eup %28145  ;;  %v30204_v20 = vsub.f32 %v8138_v21, %v8148_v13  ;;  %v11981_v13 = vld [vmem:[%s31603_s9 + $0x60] sm:$0xff] }
0x238d   :  { %v13210_v33 = vmul.f32 %v28146_v60, %v28138_v27  ;;  %v30243_v27 = vpack.c.bf16 %v11976_v46, %v11975_v45  ;;  %v11982_v60 = vld [vmem:[%s31603_s9 + $0x68] sm:$0xff] }
0x238e   :  { %v8152_v6 = vmul.f32 %v30204_v20, %v30204_v20 }
0x238f   :  { %26551 = vmatmul.mubr.msk.f32.vlgmr.msra.gmra.mrb[168].mxu1 %vm1094_vm2, %v13210_v33 }
0x2390   :  { %v28148_v51 = vpop.eup %28147  ;;  %26559 = vmatpush3.msra.mxu1 %v30172_v50  ;;  %v8156_v63 = vsel %vm143_vm0, %v8152_v6, 0.0  ;;  %26560 = vmatprep.mubr.msk.f32.mxu1 %vm28328_vm1, %v28327_v7  ;;  %v11970_v50 = vld [vmem:[%s31603_s9 + $0x8] sm:$0xff] }
0x2391   :  { %v13214_v12 = vmul.f32 %v28148_v51, %v28140_v10  ;;  %8157 = vadd.xlane.f32.xlu1 %v8156_v63  ;;  %27678 = vmatprep.subr.bf16.mxu1 %v28329_v59  ;;  %v30219_v56 = vpack.c.bf16 %v11970_v50, %v11969_v26  ;;  %v30273_v51 = vpack.c.bf16 %v11982_v60, %v11981_v13 }
0x2393   :  { %26561 = vmatmul.mubr.msk.f32.vlgmr.msra.gmra.mrb[170].mxu1 %vm1094_vm2, %v13214_v12  ;;  %27673 = vmatpush3.bf16.xpose.msk.msra.mxu0 %vm28700_vm3, %v30219_v56 }
0x2394   :  { %26582 = vmatprep.mubr.msk.f32.mxu1 %vm28328_vm1, %v28327_v7  ;;  %27674 = vmatprep.subr.bf16.mxu0 %v28329_v59 }
0x2397   :  { %27681 = vmatpush3.bf16.xpose.msk.msra.mxu1 %vm28700_vm3, %v30235_v0 }
0x2398   :  { %27682 = vmatprep.subr.bf16.mxu1 %v28329_v59 }
0x239b   :  { %27677 = vmatpush3.bf16.xpose.msk.msra.mxu0 %vm28700_vm3, %v30227_v15 }
0x239c   :  { %27686 = vmatprep.subr.bf16.mxu0 %v28329_v59 }
0x239f   :  { %27685 = vmatpush3.bf16.xpose.msk.msra.mxu1 %vm28700_vm3, %v30243_v27 }
0x23a0   :  { %27694 = vmatprep.subr.bf16.mxu1 %v28329_v59 }
0x240b   :  { %v11932_v2 = vpop.xlane.xlu0 %11931 }
0x240c   :  { %v11934_v10 = vmul.f32 0.03125, %v11932_v2 }
0x240e   :  { %v11936_v21 = vadd.f32 1e-05, %v11934_v10 }
0x2410   :  { %28149 = vrsqrt.f32 %v11936_v21 }
0x241a   :  { %v28150_v35 = vpop.eup %28149 }
0x241b   :  { %v11940_v29 = vmul.f32 %v28150_v35, %v30191_v1 }
0x241d   :  { %v11948_v33 = vmul.f32 %v29994_v61, %v11940_v29 }
0x241e   :  { %v8158_v24 = vpop.xlane.xlu1 %8157 }
0x241f   :  { %v8160_v37 = vmul.f32 0.03125, %v8158_v24  ;;  %v11956_v12 = vadd.f32 %v30001_v43, %v11948_v33 }
0x2421   :  { %v8162_v5 = vadd.f32 1e-05, %v8160_v37 }
0x2423   :  { %28151 = vrsqrt.f32 %v8162_v5 }
0x242d   :  { %v28152_v6 = vpop.eup %28151 }
0x242e   :  { %v8166_v1 = vmul.f32 %v28152_v6, %v30204_v20  ;;  %v11984_v20 = vld [vmem:[%s31603_s9 + $0x78] sm:$0xff] }
0x2430   :  { %v8174_v43 = vmul.f32 %v30014_v39, %v8166_v1 }
0x244f   :  { %v13284_v31 = vpop.f32.mrb[160].mxu0 }
0x2450   :  { %v26547_v30 = vpop.f32.mrb[161].mxu0  ;;  %26572 = vmatmul.mubr.msk.f32.vlgmr.msra.gmra.mrb[164].mxu0 %vm1094_vm2, %v13284_v31 }
0x2451   :  { %27689 = vmatpush3.bf16.xpose.msk.msra.mxu0 %vm28700_vm3, %v30251_v38  ;;  %26593 = vmatprep.mubr.msk.f32.mxu0 %vm28328_vm1, %v28327_v7 }
0x2452   :  { %27690 = vmatprep.subr.bf16.mxu0 %v28329_v59 }
0x2453   :  { %v13430_v49 = vpop.f32.mrb[162].mxu0 }
0x2454   :  { %v26557_v58 = vpop.f32.mrb[163].mxu0 }
0x2459   :  { %27693 = vmatpush3.bf16.xpose.msk.msra.mxu0 %vm28700_vm3, %v30262_v34 }
0x245a   :  { %26607 = vmatprep.subr.mxu0 %v28327_v7 }
0x2460   :  { %26594 = vmatmul.mubr.msk.f32.vlgmr.msra.gmra.mrb[166].mxu0 %vm1094_vm2, %v13430_v49 }
0x2461   :  { %26608 = vmatpush3.xpose.msk.msra.mxu0 %vm143_vm0, %v29997_v62  ;;  %26609 = vmatprep.mubr.msk.f32.mxu0 %vm28328_vm1, %v28327_v7  ;;  %v11983_v62 = vld [vmem:[%s31603_s9 + $0x70] sm:$0xff] }
0x2462   :  { %v13357_v63 = vpop.f32.mrb[168].mxu1  ;;  %26617 = vmatprep.subr.mxu0 %v28327_v7  ;;  %v30299_v28 = vpack.c.bf16 %v11984_v20, %v11983_v62 }
0x2463   :  { %v26552_v61 = vpop.f32.mrb[169].mxu1  ;;  %26583 = vmatmul.mubr.msk.f32.vlgmr.msra.gmra.mrb[172].mxu1 %vm1094_vm2, %v13357_v63 }
0x2464   :  { %27697 = vmatpush3.bf16.xpose.msk.msra.mxu1 %vm28700_vm3, %v30273_v51  ;;  %26610 = vmatmul.mubr.msk.f32.vlgmr.msra.gmra.mrb[168].mxu0 %vm143_vm0, %v11956_v12 }
0x2465   :  { %26618 = vmatpush3.xpose.msk.msra.mxu0 %vm143_vm0, %v30011_v22  ;;  %26619 = vmatprep.mubr.msk.f32.mxu0 %vm28328_vm1, %v28327_v7  ;;  %v30306_v22 = vadd.f32 %v30032_v25, %v8174_v43 }
0x2466   :  { %v13503_v26 = vpop.f32.mrb[170].mxu1  ;;  %26627 = vmatprep.subr.mxu0 %v28327_v7  ;;  %27698 = vmatprep.subr.bf16.mxu1 %v28329_v59 }
0x2467   :  { %v26562_v50 = vpop.f32.mrb[171].mxu1  ;;  %26604 = vmatprep.mubr.msk.f32.mxu1 %vm28328_vm1, %v28327_v7 }
0x2468   :  { %26620 = vmatmul.mubr.msk.f32.vlgmr.msra.gmra.mrb[170].mxu0 %vm143_vm0, %v11956_v12 }
0x2469   :  { %26628 = vmatpush3.xpose.msk.msra.mxu0 %vm143_vm0, %v30028_v4  ;;  %26629 = vmatprep.mubr.msk.f32.mxu0 %vm28328_vm1, %v28327_v7 }
0x246a   :  { %26637 = vmatprep.subr.mxu0 %v28327_v7 }
0x246c   :  { %27701 = vmatpush3.bf16.xpose.msk.msra.mxu1 %vm28700_vm3, %v30299_v28  ;;  %26630 = vmatmul.mubr.msk.f32.vlgmr.msra.gmra.mrb[172].mxu0 %vm143_vm0, %v30306_v22 }
0x246d   :  { %26638 = vmatpush3.xpose.msk.msra.mxu0 %vm143_vm0, %v30046_v32  ;;  %26639 = vmatprep.mubr.msk.f32.mxu0 %vm28328_vm1, %v28327_v7 }
0x246e   :  { %26647 = vmatprep.subr.mxu0 %v28327_v7  ;;  %26612 = vmatprep.subr.mxu1 %v28327_v7 }
0x2470   :  { %26640 = vmatmul.mubr.msk.f32.vlgmr.msra.gmra.mrb[174].mxu0 %vm143_vm0, %v30306_v22 }
0x2471   :  { %26648 = vmatpush3.xpose.msk.msra.mxu0 %vm143_vm0, %v30059_v8  ;;  %26649 = vmatprep.mubr.msk.f32.mxu0 %vm28328_vm1, %v28327_v7 }
0x2472   :  { %26657 = vmatprep.subr.mxu0 %v28327_v7 }
0x2473   :  { %26605 = vmatmul.mubr.msk.f32.vlgmr.msra.gmra.mrb[174].mxu1 %vm1094_vm2, %v13503_v26 }
0x2474   :  { %26613 = vmatpush3.xpose.msk.msra.mxu1 %vm143_vm0, %v30069_v55  ;;  %26650 = vmatmul.mubr.msk.f32.vlgmr.msra.gmra.mrb[176].mxu0 %vm143_vm0, %v30306_v22 }
0x2475   :  { %26658 = vmatpush3.xpose.msk.msra.mxu0 %vm143_vm0, %v30073_v40  ;;  %26614 = vmatprep.mubr.msk.f32.mxu1 %vm28328_vm1, %v28327_v7 }
0x2476   :  { %26622 = vmatprep.subr.mxu1 %v28327_v7  ;;  %26659 = vmatprep.mubr.msk.f32.mxu0 %vm28328_vm1, %v28327_v7 }
0x2477   :  { %26615 = vmatmul.mubr.msk.f32.vlgmr.msra.gmra.mrb[176].mxu1 %vm143_vm0, %v11956_v12  ;;  %26667 = vmatprep.subr.mxu0 %v28327_v7 }
0x2478   :  { %26623 = vmatpush3.xpose.msk.msra.mxu1 %vm143_vm0, %v30085_v14  ;;  %26660 = vmatmul.mubr.msk.f32.vlgmr.msra.gmra.mrb[178].mxu0 %vm143_vm0, %v30306_v22 }
0x2479   :  { %26624 = vmatprep.mubr.msk.f32.mxu1 %vm28328_vm1, %v28327_v7  ;;  %26632 = vmatprep.subr.mxu1 %v28327_v7 }
0x247a   :  { %26669 = vmatprep.mubr.msk.f32.mxu0 %vm28328_vm1, %v28327_v7 }
0x247b   :  { %26625 = vmatmul.mubr.msk.f32.vlgmr.msra.gmra.mrb[178].mxu1 %vm143_vm0, %v11956_v12 }
0x247c   :  { %26633 = vmatpush3.xpose.msk.msra.mxu1 %vm143_vm0, %v30100_v16  ;;  %26634 = vmatprep.mubr.msk.f32.mxu1 %vm28328_vm1, %v28327_v7 }
0x247d   :  { %26642 = vmatprep.subr.mxu1 %v28327_v7 }
0x247f   :  { %26635 = vmatmul.mubr.msk.f32.vlgmr.msra.gmra.mrb[180].mxu1 %vm143_vm0, %v30306_v22 }
0x2480   :  { %26643 = vmatpush3.xpose.msk.msra.mxu1 %vm143_vm0, %v30111_v44  ;;  %26644 = vmatprep.mubr.msk.f32.mxu1 %vm28328_vm1, %v28327_v7 }
0x2481   :  { %26652 = vmatprep.subr.mxu1 %v28327_v7 }
0x2483   :  { %26645 = vmatmul.mubr.msk.f32.vlgmr.msra.gmra.mrb[182].mxu1 %vm143_vm0, %v30306_v22 }
0x2484   :  { %26653 = vmatpush3.xpose.msk.msra.mxu1 %vm143_vm0, %v30121_v19  ;;  %26654 = vmatprep.mubr.msk.f32.mxu1 %vm28328_vm1, %v28327_v7 }
0x2485   :  { %26662 = vmatprep.subr.mxu1 %v28327_v7 }
0x2487   :  { %26655 = vmatmul.mubr.msk.f32.vlgmr.msra.gmra.mrb[184].mxu1 %vm143_vm0, %v30306_v22 }
0x2488   :  { %26663 = vmatpush3.xpose.msk.msra.mxu1 %vm143_vm0, %v30131_v9  ;;  %26664 = vmatprep.mubr.msk.f32.mxu1 %vm28328_vm1, %v28327_v7 }
0x2489   :  { %26672 = vmatprep.subr.mxu1 %v28327_v7 }
0x248b   :  { %26665 = vmatmul.mubr.msk.f32.vlgmr.msra.gmra.mrb[186].mxu1 %vm143_vm0, %v30306_v22 }
0x248c   :  { %26674 = vmatprep.mubr.msk.f32.mxu1 %vm28328_vm1, %v28327_v7 }
0x2523   :  { %v13588_v39 = vpop.f32.mrb[164].mxu0 }
0x2524   :  { %v26573_v4 = vpop.f32.mrb[165].mxu0  ;;  %v13847_v55 = vsel %vm143_vm0, %v13588_v39, 0.0 }
0x2533   :  { %v13758_v25 = vpop.f32.mrb[166].mxu0 }
0x2534   :  { %v26595_v32 = vpop.f32.mrb[167].mxu0  ;;  %v13850_v9 = vsel %vm143_vm0, %v13758_v25, 0.0 }
0x2536   :  { %v13673_v8 = vpop.f32.mrb[172].mxu1 }
0x2537   :  { %v13848_v40 = vsel %vm143_vm0, %v13673_v8, 0.0  ;;  %v13923_v14 = vpop.f32.mrb[168].mxu0  ;;  %v26584_v16 = vpop.f32.mrb[173].mxu1 }
0x2538   :  { %v13849_v44 = vadd.f32 %v13848_v40, %v13847_v55  ;;  %v26611_v19 = vpop.f32.mrb[169].mxu0 }
0x253a   :  { %v13851_v11 = vadd.f32 %v13850_v9, %v13849_v44 }
0x253b   :  { %v14063_v23 = vpop.f32.mrb[170].mxu0 }
0x253c   :  { %v26621_v41 = vpop.f32.mrb[171].mxu0 }
0x253f   :  { %v14206_v45 = vpop.f32.mrb[172].mxu0 }
0x2540   :  { %v26631_v46 = vpop.f32.mrb[173].mxu0  ;;  %26668 = vmatpush3.xpose.msk.msra.mxu0 %vm1094_vm2, %v14206_v45 }
0x2541   :  { %26677 = vmatprep.subr.mxu0 %v28327_v7 }
0x2543   :  { %v14346_v2 = vpop.f32.mrb[174].mxu0  ;;  %26670 = vmatmul.mubr.msk.f32.vlgmr.msra.gmra.mrb[180].mxu0 %vm1094_vm2, %v13923_v14 }
0x2544   :  { %v26641_v10 = vpop.f32.mrb[175].mxu0  ;;  %26678 = vmatpush3.xpose.msk.msra.mxu0 %vm1094_vm2, %v14346_v2  ;;  %26679 = vmatprep.mubr.msk.f32.mxu0 %vm28328_vm1, %v28327_v7 }
0x2545   :  { %26687 = vmatprep.subr.mxu0 %v28327_v7 }
0x2546   :  { %v13843_v21 = vpop.f32.mrb[174].mxu1 }
0x2547   :  { %v13852_v24 = vsel %vm143_vm0, %v13843_v21, 0.0  ;;  %v26606_v18 = vpop.f32.mrb[175].mxu1  ;;  %v14486_v52 = vpop.f32.mrb[176].mxu0  ;;  %26680 = vmatmul.mubr.msk.f32.vlgmr.msra.gmra.mrb[182].mxu0 %vm1094_vm2, %v14063_v23 }
0x2548   :  { %v13853_v37 = vadd.f32 %v13852_v24, %v13851_v11  ;;  %v26651_v31 = vpop.f32.mrb[177].mxu0  ;;  %26688 = vmatpush3.msra.mxu0 %v14486_v52  ;;  %26689 = vmatprep.mubr.msk.f32.mxu0 %vm28328_vm1, %v28327_v7 }
0x2549   :  { %26697 = vmatprep.subr.mxu0 %v28327_v7 }
0x254a   :  { %v13993_v30 = vpop.f32.mrb[176].mxu1  ;;  %v30417_v45 = vadd.f32 %v13853_v37, %v29937_v54 }
0x254b   :  { %v26616_v5 = vpop.f32.mrb[177].mxu1  ;;  %v30396_v48 = vpop.f32.mrb[178].mxu0 }
0x254c   :  { %v26661_v47 = vpop.f32.mrb[179].mxu0  ;;  %v15643_v18 = vsel %vm143_vm0, %v30417_v45, 0.0 }
0x254e   :  { %v14133_v49 = vpop.f32.mrb[178].mxu1 }
0x254f   :  { %v26626_v58 = vpop.f32.mrb[179].mxu1 }
0x2552   :  { %v14276_v35 = vpop.f32.mrb[180].mxu1 }
0x2553   :  { %v26636_v29 = vpop.f32.mrb[181].mxu1  ;;  %26673 = vmatpush3.xpose.msk.msra.mxu1 %vm1094_vm2, %v14276_v35 }
0x2554   :  { %26682 = vmatprep.subr.mxu1 %v28327_v7 }
0x2556   :  { %v14416_v13 = vpop.f32.mrb[182].mxu1  ;;  %26675 = vmatmul.mubr.msk.f32.vlgmr.msra.gmra.mrb[188].mxu1 %vm1094_vm2, %v13993_v30 }
0x2557   :  { %v26646_v60 = vpop.f32.mrb[183].mxu1  ;;  %26683 = vmatpush3.xpose.msk.msra.mxu1 %vm1094_vm2, %v14416_v13  ;;  %26684 = vmatprep.mubr.msk.f32.mxu1 %vm28328_vm1, %v28327_v7 }
0x2558   :  { %26692 = vmatprep.subr.mxu1 %v28327_v7 }
0x255a   :  { %v14556_v33 = vpop.f32.mrb[184].mxu1  ;;  %26685 = vmatmul.mubr.msk.f32.vlgmr.msra.gmra.mrb[190].mxu1 %vm1094_vm2, %v14133_v49 }
0x255b   :  { %v26656_v6 = vpop.f32.mrb[185].mxu1  ;;  %26693 = vmatpush3.msra.mxu1 %v14556_v33  ;;  %26694 = vmatprep.mubr.msk.f32.mxu1 %vm28328_vm1, %v28327_v7 }
0x255c   :  { %26702 = vmatprep.subr.mxu1 %v28327_v7 }
0x255e   :  { %v30409_v1 = vpop.f32.mrb[186].mxu1 }
0x255f   :  { %v26666_v63 = vpop.f32.mrb[187].mxu1 }
0x2616   :  { %v14772_v12 = vpop.f32.mrb[180].mxu0 }
0x2617   :  { %v26671_v61 = vpop.f32.mrb[181].mxu0  ;;  %v15004_v62 = vsel %vm1094_vm2, %v14772_v12, -inf }
0x2618   :  { %15005 = vmax.xlane.f32.xlu0 %v15004_v62 }
0x261a   :  { %v14924_v20 = vpop.f32.mrb[182].mxu0 }
0x261b   :  { %v26681_v43 = vpop.f32.mrb[183].mxu0  ;;  %v15010_v26 = vsel %vm1094_vm2, %v14924_v20, -inf }
0x261c   :  { %15011 = vmax.xlane.f32.xlu0 %v15010_v26 }
0x2629   :  { %v14848_v50 = vpop.f32.mrb[188].mxu1 }
0x262a   :  { %v26676_v39 = vpop.f32.mrb[189].mxu1  ;;  %v15007_v4 = vsel %vm1094_vm2, %v14848_v50, -inf }
0x262b   :  { %15008 = vmax.xlane.f32.xlu1 %v15007_v4 }
0x262d   :  { %v15000_v25 = vpop.f32.mrb[190].mxu1 }
0x262e   :  { %v26686_v32 = vpop.f32.mrb[191].mxu1  ;;  %v15013_v8 = vsel %vm1094_vm2, %v15000_v25, -inf }
0x262f   :  { %15014 = vmax.xlane.f32.xlu1 %v15013_v8  ;;  %v30473_v8 = vld [vmem:[%s31605_s7] ss:$0 sm:$0xff] }
0x26a5   :  { %v15006_v55 = vpop.xlane.xlu0 %15005 }
0x26a6   :  { %v15016_v40 = vsub.f32 %v14772_v12, %v15006_v55 }
0x26a8   :  { %v15020_v14 = vmul.f32 1.442695, %v15016_v40 }
0x26a9   :  { %v15012_v16 = vpop.xlane.xlu0 %15011 }
0x26aa   :  { %28153 = vpow2.f32 %v15020_v14  ;;  %v15018_v44 = vsub.f32 %v14924_v20, %v15012_v16 }
0x26ac   :  { %v15024_v19 = vmul.f32 1.442695, %v15018_v44 }
0x26ae   :  { %28155 = vpow2.f32 %v15024_v19 }
0x26b4   :  { %v28154_v9 = vpop.eup %28153 }
0x26b5   :  { %v15028_v11 = vsel %vm1094_vm2, %v28154_v9, 0.0 }
0x26b6   :  { %15029 = vadd.xlane.f32.xlu0 %v15028_v11 }
0x26b8   :  { %v28156_v23 = vpop.eup %28155  ;;  %v15009_v41 = vpop.xlane.xlu1 %15008 }
0x26b9   :  { %v15017_v46 = vsub.f32 %v14848_v50, %v15009_v41  ;;  %v15034_v2 = vsel %vm1094_vm2, %v28156_v23, 0.0 }
0x26ba   :  { %15035 = vadd.xlane.f32.xlu0 %v15034_v2 }
0x26bb   :  { %v15022_v10 = vmul.f32 1.442695, %v15017_v46 }
0x26bc   :  { %v15015_v21 = vpop.xlane.xlu1 %15014 }
0x26bd   :  { %28157 = vpow2.f32 %v15022_v10  ;;  %v15019_v24 = vsub.f32 %v15000_v25, %v15015_v21  ;;  %v30466_v25 = vld [vmem:[%s31604_s24] ss:$0 sm:$0xff] }
0x26be   :  { %15644 = vadd.xlane.f32.xlu0 %v15643_v18 }
0x26bf   :  { %v15026_v52 = vmul.f32 1.442695, %v15019_v24 }
0x26c1   :  { %28159 = vpow2.f32 %v15026_v52 }
0x26c7   :  { %v28158_v31 = vpop.eup %28157 }
0x26c8   :  { %v15031_v30 = vsel %vm1094_vm2, %v28158_v31, 0.0 }
0x26c9   :  { %15032 = vadd.xlane.f32.xlu1 %v15031_v30  ;;  %v15685_v30 = vld [vmem:[%s31606_s10] sm:$0xff] }
0x26cb   :  { %v28160_v54 = vpop.eup %28159 }
0x26cc   :  { %v15037_v37 = vsel %vm1094_vm2, %v28160_v54, 0.0 }
0x26cd   :  { %15038 = vadd.xlane.f32.xlu1 %v15037_v37  ;;  %v15687_v37 = vld [vmem:[%s31606_s10 + $0x10] sm:$0xff] }
0x2743   :  { %v15030_v5 = vpop.xlane.xlu0 %15029 }
0x2744   :  { %28161 = vrcp.f32 %v15030_v5 }
0x2747   :  { %v15036_v47 = vpop.xlane.xlu0 %15035 }
0x2748   :  { %28163 = vrcp.f32 %v15036_v47  ;;  %v15688_v47 = vld [vmem:[%s31606_s10 + $0x18] sm:$0xff] }
0x274b   :  { %v15645_v49 = vpop.xlane.xlu0 %15644 }
0x274c   :  { %v15649_v58 = vmul.f32 0.03125, %v15645_v49  ;;  %v27740_v49 = vpack.c.bf16 %v15688_v47, %v15687_v37  ;;  %v30569_v37 = vld [vmem:[%s28411_s12 + $0x1] ss:$0 sm:$0xff]  ;;  %s28330_s12 = smov [#allocation2]  }
0x274d   :  { %v30572_v47 = vld [vmem:[%s31592_s0 + $0x1] ss:$0 sm:$0xff] }
0x274e   :  { %v28162_v35 = vpop.eup %28161  ;;  %v15651_v29 = vsub.f32 %v30417_v45, %v15649_v58 }
0x274f   :  { %v15041_v13 = vmul.f32 %v28162_v35, %v28154_v9 }
0x2750   :  { %v15653_v60 = vmul.f32 %v15651_v29, %v15651_v29 }
0x2751   :  { %26690 = vmatmul.mubr.msk.f32.vlgmr.msra.gmra.mrb[184].mxu0 %vm1094_vm2, %v15041_v13 }
0x2752   :  { %v28164_v33 = vpop.eup %28163  ;;  %26698 = vmatpush3.msra.mxu0 %v30396_v48  ;;  %v15655_v6 = vsel %vm143_vm0, %v15653_v60, 0.0  ;;  %26699 = vmatprep.mubr.msk.f32.mxu0 %vm28328_vm1, %v28327_v7  ;;  %v15689_v60 = vld [vmem:[%s31606_s10 + $0x20] sm:$0xff] }
0x2753   :  { %v15045_v63 = vmul.f32 %v28164_v33, %v28156_v23  ;;  %15656 = vadd.xlane.f32.xlu0 %v15655_v6  ;;  %27702 = vmatprep.subr.bf16.mxu0 %v28329_v59  ;;  %v15690_v33 = vld [vmem:[%s31606_s10 + $0x28] sm:$0xff] }
0x2754   :  { %v27746_v6 = vpack.c.bf16 %v15690_v33, %v15689_v60  ;;  %v30611_v60 = vld [vmem:[%s31594_s13 + $0x38] sm:$0xff]  ;;  %v30614_v33 = vld [vmem:[%s31593_s5 + $0x30] sm:$0xff] }
0x2755   :  { %26700 = vmatmul.mubr.msk.f32.vlgmr.msra.gmra.mrb[186].mxu0 %vm1094_vm2, %v15045_v63  ;;  %v15691_v63 = vld [vmem:[%s31606_s10 + $0x30] sm:$0xff] }
0x2756   :  { %v15033_v12 = vpop.xlane.xlu1 %15032  ;;  %26715 = vmatprep.mubr.msk.f32.mxu0 %vm28328_vm1, %v28327_v7 }
0x2757   :  { %28165 = vrcp.f32 %v15033_v12  ;;  %v15692_v12 = vld [vmem:[%s31606_s10 + $0x38] sm:$0xff] }
0x2759   :  { %27705 = vmatpush3.bf16.xpose.msk.msra.mxu0 %vm28700_vm3, %v30219_v56 }
0x275a   :  { %v15039_v48 = vpop.xlane.xlu1 %15038  ;;  %27706 = vmatprep.subr.bf16.mxu0 %v28329_v59 }
0x275b   :  { %28167 = vrcp.f32 %v15039_v48  ;;  %v27752_v48 = vpack.c.bf16 %v15692_v12, %v15691_v63  ;;  %v30641_v63 = vld [vmem:[%s28426_s4 + $0x38] sm:$0xff]  ;;  %v30652_v12 = vld [vmem:[%s31593_s5 + $0x28] sm:$0xff] }
0x2761   :  { %v28166_v61 = vpop.eup %28165  ;;  %27709 = vmatpush3.bf16.xpose.msk.msra.mxu0 %vm28700_vm3, %v30227_v15 }
0x2762   :  { %v15043_v62 = vmul.f32 %v28166_v61, %v28158_v31  ;;  %27718 = vmatprep.subr.bf16.mxu0 %v28329_v59 }
0x2764   :  { %26695 = vmatmul.mubr.msk.f32.vlgmr.msra.gmra.mrb[192].mxu1 %vm1094_vm2, %v15043_v62 }
0x2765   :  { %v28168_v20 = vpop.eup %28167  ;;  %26703 = vmatpush3.msra.mxu1 %v30409_v1  ;;  %26704 = vmatprep.mubr.msk.f32.mxu1 %vm28328_vm1, %v28327_v7 }
0x2766   :  { %v15047_v56 = vmul.f32 %v28168_v20, %v28160_v54  ;;  %27710 = vmatprep.subr.bf16.mxu1 %v28329_v59  ;;  %v15686_v54 = vld [vmem:[%s31606_s10 + $0x8] sm:$0xff] }
0x2767   :  { %v27734_v5 = vpack.c.bf16 %v15686_v54, %v15685_v30 }
0x2768   :  { %26705 = vmatmul.mubr.msk.f32.vlgmr.msra.gmra.mrb[194].mxu1 %vm1094_vm2, %v15047_v56 }
0x2769   :  { %26726 = vmatprep.mubr.msk.f32.mxu1 %vm28328_vm1, %v28327_v7 }
0x276c   :  { %27713 = vmatpush3.bf16.xpose.msk.msra.mxu1 %vm28700_vm3, %v30235_v0 }
0x276d   :  { %27714 = vmatprep.subr.bf16.mxu1 %v28329_v59 }
0x2774   :  { %27717 = vmatpush3.bf16.xpose.msk.msra.mxu1 %vm28700_vm3, %v30243_v27 }
0x2775   :  { %27726 = vmatprep.subr.bf16.mxu1 %v28329_v59 }
0x27e0   :  { %v15657_v15 = vpop.xlane.xlu0 %15656 }
0x27e1   :  { %v15661_v1 = vmul.f32 0.03125, %v15657_v15 }
0x27e3   :  { %v15663_v43 = vadd.f32 1e-05, %v15661_v1 }
0x27e5   :  { %28169 = vrsqrt.f32 %v15663_v43 }
0x27ef   :  { %v28170_v27 = vpop.eup %28169 }
0x27f0   :  { %v15667_v4 = vmul.f32 %v28170_v27, %v15651_v29  ;;  %v15814_v27 = vld [vmem:[%s31607_s11 + $0x10] sm:$0xff] }
0x27f2   :  { %v15675_v32 = vmul.f32 %v30466_v25, %v15667_v4 }
0x2824   :  { %v15117_v26 = vpop.f32.mrb[184].mxu0 }
0x2825   :  { %v26691_v50 = vpop.f32.mrb[185].mxu0  ;;  %26716 = vmatmul.mubr.msk.f32.vlgmr.msra.gmra.mrb[188].mxu0 %vm1094_vm2, %v15117_v26  ;;  %v15812_v26 = vld [vmem:[%s31607_s11] sm:$0xff] }
0x2826   :  { %27721 = vmatpush3.bf16.xpose.msk.msra.mxu0 %vm28700_vm3, %v30251_v38  ;;  %26737 = vmatprep.mubr.msk.f32.mxu0 %vm28328_vm1, %v28327_v7  ;;  %v15683_v38 = vadd.f32 %v30473_v8, %v15675_v32  ;;  %v15813_v50 = vld [vmem:[%s31607_s11 + $0x8] sm:$0xff] }
0x2827   :  { %27722 = vmatprep.subr.bf16.mxu0 %v28329_v59 }
0x2828   :  { %v15263_v0 = vpop.f32.mrb[186].mxu0 }
0x2829   :  { %v26701_v39 = vpop.f32.mrb[187].mxu0 }
0x282a   :  { %v15815_v39 = vld [vmem:[%s31607_s11 + $0x18] sm:$0xff] }
0x282b   :  { %v27764_v4 = vpack.c.bf16 %v15815_v39, %v15814_v27 }
0x282e   :  { %27725 = vmatpush3.bf16.xpose.msk.msra.mxu0 %vm28700_vm3, %v30262_v34 }
0x282f   :  { %27736 = vmatprep.subr.msk.bf16.mxu0 %vm28973_vm4, %v27734_v5 }
0x2835   :  { %26738 = vmatmul.mubr.msk.f32.vlgmr.msra.gmra.mrb[190].mxu0 %vm1094_vm2, %v15263_v0  ;;  %v27758_v0 = vpack.c.bf16 %v15813_v50, %v15812_v26 }
0x2836   :  { %26767 = vmatprep.mubr.msk.f32.mxu0 %vm143_vm0, %v15683_v38  ;;  %27739 = vmatpush3.bf16.xpose.msk.msra.mxu0 %vm28973_vm4, %v27734_v5 }
0x2837   :  { %v15190_v55 = vpop.f32.mrb[192].mxu1  ;;  %27742 = vmatprep.subr.msk.bf16.mxu0 %vm28973_vm4, %v27740_v49 }
0x2838   :  { %v26696_v40 = vpop.f32.mrb[193].mxu1  ;;  %26727 = vmatmul.mubr.msk.f32.vlgmr.msra.gmra.mrb[196].mxu1 %vm1094_vm2, %v15190_v55 }
0x2839   :  { %27729 = vmatpush3.bf16.xpose.msk.msra.mxu1 %vm28700_vm3, %v30273_v51  ;;  %26748 = vmatprep.mubr.msk.f32.mxu1 %vm28328_vm1, %v28327_v7 }
0x283a   :  { %27730 = vmatprep.subr.bf16.mxu1 %v28329_v59 }
0x283b   :  { %v15336_v34 = vpop.f32.mrb[194].mxu1 }
0x283c   :  { %v26706_v14 = vpop.f32.mrb[195].mxu1 }
0x283e   :  { %27745 = vmatpush3.bf16.xpose.msk.msra.mxu0 %vm28973_vm4, %v27740_v49 }
0x283f   :  { %27748 = vmatprep.subr.msk.bf16.mxu0 %vm28973_vm4, %v27746_v6 }
0x2841   :  { %27733 = vmatpush3.bf16.xpose.msk.msra.mxu1 %vm28700_vm3, %v30299_v28 }
0x2842   :  { %27760 = vmatprep.subr.msk.bf16.mxu1 %vm29009_vm6, %v27758_v0 }
0x2846   :  { %27751 = vmatpush3.bf16.xpose.msk.msra.mxu0 %vm28973_vm4, %v27746_v6  ;;  %v30629_v6 = vld [vmem:[%s28426_s4 + $0x28] sm:$0xff] }
0x2847   :  { %27754 = vmatprep.subr.msk.bf16.mxu0 %vm28973_vm4, %v27752_v48 }
0x2848   :  { %26749 = vmatmul.mubr.msk.f32.vlgmr.msra.gmra.mrb[198].mxu1 %vm1094_vm2, %v15336_v34 }
0x2849   :  { %27763 = vmatpush3.bf16.xpose.msk.msra.mxu1 %vm29009_vm6, %v27758_v0 }
0x284a   :  { %27766 = vmatprep.subr.msk.bf16.mxu1 %vm29009_vm6, %v27764_v4 }
0x284e   :  { %27757 = vmatpush3.bf16.xpose.msk.msra.mxu0 %vm28973_vm4, %v27752_v48  ;;  %v30661_v48 = vld [vmem:[%s31593_s5 + $0x38] sm:$0xff] }
0x284f   :  { %26801 = vmatprep.subr.mxu0 %v28327_v7 }
0x2851   :  { %27769 = vmatpush3.bf16.xpose.msk.msra.mxu1 %vm29009_vm6, %v27764_v4 }
0x2852   :  { %26781 = vmatprep.subr.mxu1 %v28327_v7 }
0x28f8   :  { %v15409_v16 = vpop.f32.mrb[188].mxu0 }
0x28f9   :  { %v26717_v44 = vpop.f32.mrb[189].mxu0  ;;  %v15632_v11 = vsel %vm143_vm0, %v15409_v16, 0.0 }
0x2908   :  { %v15555_v19 = vpop.f32.mrb[190].mxu0 }
0x2909   :  { %v26739_v9 = vpop.f32.mrb[191].mxu0  ;;  %v15635_v2 = vsel %vm143_vm0, %v15555_v19, 0.0 }
0x290b   :  { %v15482_v51 = vpop.f32.mrb[196].mxu1 }
0x290c   :  { %v15633_v23 = vsel %vm143_vm0, %v15482_v51, 0.0  ;;  %v26728_v41 = vpop.f32.mrb[197].mxu1 }
0x290d   :  { %v15634_v46 = vadd.f32 %v15633_v23, %v15632_v11 }
0x290f   :  { %v15636_v28 = vadd.f32 %v15635_v2, %v15634_v46 }
0x291b   :  { %v15628_v10 = vpop.f32.mrb[198].mxu1 }
0x291c   :  { %v15637_v21 = vsel %vm143_vm0, %v15628_v10, 0.0  ;;  %v26750_v24 = vpop.f32.mrb[199].mxu1 }
0x291d   :  { %v15638_v18 = vadd.f32 %v15637_v21, %v15636_v28  ;;  %v30557_v24 = vld [vmem:[%s31594_s13 + $0x20] sm:$0xff] }
0x291f   :  { %v30494_v52 = vadd.f32 %v15638_v18, %v30180_v17  ;;  %v30560_v18 = vld [vmem:[%s28426_s4 + $0x20] sm:$0xff] }
0x2921   :  { %v15646_v31 = vsel %vm143_vm0, %v30494_v52, 0.0 }
0x2922   :  { %15647 = vadd.xlane.f32.xlu1 %v15646_v31 }
0x29af   :  { %v15648_v17 = vpop.xlane.xlu1 %15647 }
0x29b0   :  { %v15650_v58 = vmul.f32 0.03125, %v15648_v17 }
0x29b2   :  { %v15652_v35 = vsub.f32 %v30494_v52, %v15650_v58  ;;  %v30577_v58 = vld [vmem:[%s31594_s13 + $0x28] sm:$0xff] }
0x29b4   :  { %v15654_v29 = vmul.f32 %v15652_v35, %v15652_v35 }
0x29b6   :  { %v15658_v13 = vsel %vm143_vm0, %v15654_v29, 0.0  ;;  %v30593_v29 = vld [vmem:[%s31594_s13 + $0x30] sm:$0xff] }
0x29b7   :  { %15659 = vadd.xlane.f32.xlu1 %v15658_v13  ;;  %v30596_v13 = vld [vmem:[%s31593_s5 + $0x20] sm:$0xff] }
0x2a44   :  { %v15660_v61 = vpop.xlane.xlu1 %15659 }
0x2a45   :  { %v15662_v62 = vmul.f32 0.03125, %v15660_v61 }
0x2a47   :  { %v15664_v20 = vadd.f32 1e-05, %v15662_v62 }
0x2a49   :  { %28171 = vrsqrt.f32 %v15664_v20 }
0x2a53   :  { %v28172_v56 = vpop.eup %28171 }
0x2a54   :  { %v15668_v15 = vmul.f32 %v28172_v56, %v15652_v35  ;;  %v30580_v35 = vld [vmem:[%s28426_s4 + $0x30] sm:$0xff] }
0x2a56   :  { %v15676_v1 = vmul.f32 %v30466_v25, %v15668_v15 }
0x2a58   :  { %v15684_v43 = vadd.f32 %v30473_v8, %v15676_v1 }
0x2a5a   :  { %26768 = vmatmul.mubr.msk.f32.vlgmr.msra.gmra.mrb[192].mxu0 %vm143_vm0, %v15684_v43 }
0x2a5b   :  { %26803 = vmatprep.mubr.msk.f32.mxu0 %vm28328_vm1, %v28327_v7  ;;  %26802 = vmatpush3.xpose.msk.msra.mxu0 %vm143_vm0, %v30560_v18 }
0x2a5c   :  { %26811 = vmatprep.subr.mxu0 %v28327_v7 }
0x2b2d   :  { %v26769_v25 = vpop.f32.mrb[192].mxu0 }
0x2b2e   :  { %v24404_v32 = vmul.f32 -1.442695, %v26769_v25  ;;  %v15789_v8 = vpop.f32.mrb[193].mxu0 }
0x2b2f   :  { %v24403_v38 = vmul.f32 -1.442695, %v15789_v8 }
0x2b30   :  { %28173 = vpow2.f32 %v24404_v32 }
0x2b31   :  { %28175 = vpow2.f32 %v24403_v38 }
0x2b3a   :  { %v28174_v55 = vpop.eup %28173 }
0x2b3b   :  { %v28176_v40 = vpop.eup %28175  ;;  %v15805_v34 = vadd.f32 1.0, %v28174_v55 }
0x2b3c   :  { %v15804_v14 = vadd.f32 1.0, %v28176_v40 }
0x2b3d   :  { %28177 = vrcp.f32 %v15805_v34 }
0x2b3e   :  { %28179 = vrcp.f32 %v15804_v14 }
0x2b47   :  { %v28178_v16 = vpop.eup %28177 }
0x2b48   :  { %v28180_v44 = vpop.eup %28179  ;;  %v15811_v9 = vmul.f32 %v28178_v16, %v26769_v25 }
0x2b49   :  { %v15810_v19 = vmul.f32 %v28180_v44, %v15789_v8 }
0x2b4b   :  { %26778 = vmatprep.mubr.msk.f32.mxu1 %vm4041_vm5, %v15810_v19 }
0x2b4c   :  { %26779 = vmatmul.mubr.msk.f32.vlgmr.msra.gmra.mrb[200].mxu1 %vm4041_vm5, %v15811_v9 }
0x2b4d   :  { %26783 = vmatprep.mubr.msk.f32.mxu1 %vm28328_vm1, %v28327_v7  ;;  %26782 = vmatpush3.xpose.msk.msra.mxu1 %vm143_vm0, %v30557_v24 }
0x2b4e   :  { %26786 = vmatprep.subr.mxu1 %v28327_v7 }
0x2c1f   :  { %v30547_v51 = vpop.f32.mrb[200].mxu1 }
0x2c20   :  { %v15900_v11 = vpop.f32.mrb[201].mxu1 }
0x2c21   :  { %v30550_v23 = vadd.f32 %v15900_v11, %v30417_v45 }
0x2c23   :  { %v15915_v41 = vsel %vm143_vm0, %v30550_v23, 0.0 }
0x2c24   :  { %15916 = vadd.xlane.f32.xlu0 %v15915_v41 }
0x2cb1   :  { %v15917_v46 = vpop.xlane.xlu0 %15916 }
0x2cb2   :  { %v15921_v2 = vmul.f32 0.03125, %v15917_v46 }
0x2cb4   :  { %v15923_v28 = vsub.f32 %v30550_v23, %v15921_v2 }
0x2cb6   :  { %v15925_v10 = vmul.f32 %v15923_v28, %v15923_v28 }
0x2cb8   :  { %v15927_v21 = vsel %vm143_vm0, %v15925_v10, 0.0 }
0x2cb9   :  { %15928 = vadd.xlane.f32.xlu1 %v15927_v21 }
0x2d46   :  { %v15929_v45 = vpop.xlane.xlu1 %15928 }
0x2d47   :  { %v15933_v31 = vmul.f32 0.03125, %v15929_v45 }
0x2d49   :  { %v15935_v30 = vadd.f32 1e-05, %v15933_v31 }
0x2d4b   :  { %28181 = vrsqrt.f32 %v15935_v30 }
0x2d55   :  { %v28182_v54 = vpop.eup %28181 }
0x2d56   :  { %v15939_v5 = vmul.f32 %v28182_v54, %v15923_v28 }
0x2d58   :  { %v15947_v49 = vmul.f32 %v30569_v37, %v15939_v5 }
0x2d5a   :  { %v15955_v17 = vadd.f32 %v30572_v47, %v15947_v49 }
0x2d5c   :  { %26784 = vmatmul.mubr.msk.f32.vlgmr.msra.gmra.mrb[202].mxu1 %vm143_vm0, %v15955_v17  ;;  %26804 = vmatmul.mubr.msk.f32.vlgmr.msra.gmra.mrb[194].mxu0 %vm143_vm0, %v15955_v17 }
0x2d5d   :  { %26787 = vmatpush3.xpose.msk.msra.mxu1 %vm143_vm0, %v30577_v58  ;;  %26812 = vmatpush3.xpose.msk.msra.mxu0 %vm143_vm0, %v30580_v35 }
0x2d5e   :  { %26788 = vmatprep.mubr.msk.f32.mxu1 %vm28328_vm1, %v28327_v7  ;;  %26813 = vmatprep.mubr.msk.f32.mxu0 %vm28328_vm1, %v28327_v7 }
0x2d5f   :  { %26791 = vmatprep.subr.mxu1 %v28327_v7  ;;  %26821 = vmatprep.subr.mxu0 %v28327_v7 }
0x2d60   :  { %26789 = vmatmul.mubr.msk.f32.vlgmr.msra.gmra.mrb[204].mxu1 %vm143_vm0, %v15955_v17  ;;  %26814 = vmatmul.mubr.msk.f32.vlgmr.msra.gmra.mrb[196].mxu0 %vm143_vm0, %v15955_v17 }
0x2d61   :  { %26792 = vmatpush3.xpose.msk.msra.mxu1 %vm143_vm0, %v30593_v29  ;;  %26822 = vmatpush3.xpose.msk.msra.mxu0 %vm143_vm0, %v30596_v13 }
0x2d62   :  { %26793 = vmatprep.mubr.msk.f32.mxu1 %vm28328_vm1, %v28327_v7  ;;  %26823 = vmatprep.mubr.msk.f32.mxu0 %vm28328_vm1, %v28327_v7 }
0x2d63   :  { %26796 = vmatprep.subr.mxu1 %v28327_v7  ;;  %26831 = vmatprep.subr.mxu0 %v28327_v7 }
0x2d64   :  { %26794 = vmatmul.mubr.msk.f32.vlgmr.msra.gmra.mrb[206].mxu1 %vm143_vm0, %v15955_v17  ;;  %26824 = vmatmul.mubr.msk.f32.vlgmr.msra.gmra.mrb[198].mxu0 %vm143_vm0, %v15955_v17 }
0x2d65   :  { %26797 = vmatpush3.xpose.msk.msra.mxu1 %vm143_vm0, %v30611_v60  ;;  %26832 = vmatpush3.xpose.msk.msra.mxu0 %vm143_vm0, %v30614_v33 }
0x2d66   :  { %26798 = vmatprep.mubr.msk.f32.mxu1 %vm28328_vm1, %v28327_v7  ;;  %26833 = vmatprep.mubr.msk.f32.mxu0 %vm28328_vm1, %v28327_v7 }
0x2d67   :  { %26806 = vmatprep.subr.mxu1 %v28327_v7  ;;  %26841 = vmatprep.subr.mxu0 %v28327_v7 }
0x2d68   :  { %26799 = vmatmul.mubr.msk.f32.vlgmr.msra.gmra.mrb[208].mxu1 %vm143_vm0, %v15955_v17  ;;  %26834 = vmatmul.mubr.msk.f32.vlgmr.msra.gmra.mrb[200].mxu0 %vm143_vm0, %v15955_v17 }
0x2d69   :  { %26807 = vmatpush3.xpose.msk.msra.mxu1 %vm143_vm0, %v30629_v6  ;;  %26808 = vmatprep.mubr.msk.f32.mxu1 %vm28328_vm1, %v28327_v7 }
0x2d6a   :  { %26816 = vmatprep.subr.mxu1 %v28327_v7  ;;  %26843 = vmatprep.mubr.msk.f32.mxu0 %vm28328_vm1, %v28327_v7 }
0x2d6c   :  { %26809 = vmatmul.mubr.msk.f32.vlgmr.msra.gmra.mrb[210].mxu1 %vm143_vm0, %v15955_v17 }
0x2d6d   :  { %26817 = vmatpush3.xpose.msk.msra.mxu1 %vm143_vm0, %v30641_v63  ;;  %26818 = vmatprep.mubr.msk.f32.mxu1 %vm28328_vm1, %v28327_v7 }
0x2d6e   :  { %26826 = vmatprep.subr.mxu1 %v28327_v7 }
0x2d70   :  { %26819 = vmatmul.mubr.msk.f32.vlgmr.msra.gmra.mrb[212].mxu1 %vm143_vm0, %v15955_v17 }
0x2d71   :  { %26827 = vmatpush3.xpose.msk.msra.mxu1 %vm143_vm0, %v30652_v12  ;;  %26828 = vmatprep.mubr.msk.f32.mxu1 %vm28328_vm1, %v28327_v7 }
0x2d72   :  { %26836 = vmatprep.subr.mxu1 %v28327_v7 }
0x2d74   :  { %26829 = vmatmul.mubr.msk.f32.vlgmr.msra.gmra.mrb[214].mxu1 %vm143_vm0, %v15955_v17 }
0x2d75   :  { %26837 = vmatpush3.xpose.msk.msra.mxu1 %vm143_vm0, %v30661_v48  ;;  %26838 = vmatprep.mubr.msk.f32.mxu1 %vm28328_vm1, %v28327_v7 }
0x2d76   :  { %26846 = vmatprep.subr.mxu1 %v28327_v7 }
0x2d78   :  { %26839 = vmatmul.mubr.msk.f32.vlgmr.msra.gmra.mrb[216].mxu1 %vm143_vm0, %v15955_v17 }
0x2d79   :  { %26848 = vmatprep.mubr.msk.f32.mxu1 %vm28328_vm1, %v28327_v7 }
0x2e2f   :  { %v16061_v61 = vpop.f32.mrb[202].mxu1  ;;  %v16353_v62 = vpop.f32.mrb[194].mxu0 }
0x2e30   :  { %v26785_v20 = vpop.f32.mrb[203].mxu1  ;;  %v26805_v56 = vpop.f32.mrb[195].mxu0  ;;  %26842 = vmatpush3.xpose.msk.msra.mxu0 %vm1094_vm2, %v16353_v62 }
0x2e31   :  { %26851 = vmatprep.subr.mxu0 %v28327_v7 }
0x2e33   :  { %v16134_v15 = vpop.f32.mrb[204].mxu1  ;;  %v16499_v1 = vpop.f32.mrb[196].mxu0  ;;  %26844 = vmatmul.mubr.msk.f32.vlgmr.msra.gmra.mrb[202].mxu0 %vm1094_vm2, %v16061_v61 }
0x2e34   :  { %v26790_v43 = vpop.f32.mrb[205].mxu1  ;;  %v26815_v26 = vpop.f32.mrb[197].mxu0  ;;  %26852 = vmatpush3.xpose.msk.msra.mxu0 %vm1094_vm2, %v16499_v1  ;;  %26853 = vmatprep.mubr.msk.f32.mxu0 %vm28328_vm1, %v28327_v7 }
0x2e35   :  { %26861 = vmatprep.subr.mxu0 %v28327_v7 }
0x2e37   :  { %v16207_v50 = vpop.f32.mrb[206].mxu1  ;;  %v16645_v0 = vpop.f32.mrb[198].mxu0 }
0x2e38   :  { %v26795_v27 = vpop.f32.mrb[207].mxu1  ;;  %v26825_v39 = vpop.f32.mrb[199].mxu0  ;;  %26854 = vmatmul.mubr.msk.f32.vlgmr.msra.gmra.mrb[204].mxu0 %vm1094_vm2, %v16207_v50 }
0x2e39   :  { %26862 = vmatpush3.msra.mxu0 %v16645_v0  ;;  %26863 = vmatprep.mubr.msk.f32.mxu0 %vm28328_vm1, %v28327_v7 }
0x2e3a   :  { %26871 = vmatprep.subr.mxu0 %v28327_v7 }
0x2e3b   :  { %v16280_v4 = vpop.f32.mrb[208].mxu1  ;;  %v30683_v25 = vpop.f32.mrb[200].mxu0 }
0x2e3c   :  { %v26800_v32 = vpop.f32.mrb[209].mxu1  ;;  %v26835_v8 = vpop.f32.mrb[201].mxu0 }
0x2e3d   :  { %v30709_v8 = vadd.f32 %v30547_v51, %v30494_v52 }
0x2e3f   :  { %v16426_v38 = vpop.f32.mrb[210].mxu1 }
0x2e40   :  { %v26810_v55 = vpop.f32.mrb[211].mxu1  ;;  %26847 = vmatpush3.xpose.msk.msra.mxu1 %vm1094_vm2, %v16426_v38 }
0x2e41   :  { %26856 = vmatprep.subr.mxu1 %v28327_v7 }
0x2e43   :  { %v16572_v40 = vpop.f32.mrb[212].mxu1  ;;  %26849 = vmatmul.mubr.msk.f32.vlgmr.msra.gmra.mrb[218].mxu1 %vm1094_vm2, %v16134_v15 }
0x2e44   :  { %v26820_v34 = vpop.f32.mrb[213].mxu1  ;;  %26857 = vmatpush3.xpose.msk.msra.mxu1 %vm1094_vm2, %v16572_v40  ;;  %26858 = vmatprep.mubr.msk.f32.mxu1 %vm28328_vm1, %v28327_v7 }
0x2e45   :  { %26866 = vmatprep.subr.mxu1 %v28327_v7  ;;  %v15918_v34 = vsel %vm143_vm0, %v30709_v8, 0.0 }
0x2e47   :  { %v16718_v14 = vpop.f32.mrb[214].mxu1  ;;  %26859 = vmatmul.mubr.msk.f32.vlgmr.msra.gmra.mrb[220].mxu1 %vm1094_vm2, %v16280_v4 }
0x2e48   :  { %v26830_v16 = vpop.f32.mrb[215].mxu1  ;;  %26867 = vmatpush3.msra.mxu1 %v16718_v14  ;;  %26868 = vmatprep.mubr.msk.f32.mxu1 %vm28328_vm1, %v28327_v7 }
0x2e49   :  { %26876 = vmatprep.subr.mxu1 %v28327_v7 }
0x2e4b   :  { %v30696_v44 = vpop.f32.mrb[216].mxu1 }
0x2e4c   :  { %v26840_v19 = vpop.f32.mrb[217].mxu1 }
0x2f06   :  { %v16940_v9 = vpop.f32.mrb[202].mxu0 }
0x2f07   :  { %v16941_v11 = vadd.f32 %v16940_v9, %v29709_v3  ;;  %v26845_v41 = vpop.f32.mrb[203].mxu0 }
0x2f09   :  { %v17172_v46 = vsel %vm1094_vm2, %v16941_v11, -inf }
0x2f0a   :  { %17173 = vmax.xlane.f32.xlu0 %v17172_v46 }
0x2f0b   :  { %v17092_v2 = vpop.f32.mrb[204].mxu0 }
0x2f0c   :  { %v17093_v28 = vadd.f32 %v17092_v2, %v29709_v3  ;;  %v26855_v10 = vpop.f32.mrb[205].mxu0 }
0x2f0e   :  { %v17178_v21 = vsel %vm1094_vm2, %v17093_v28, -inf }
0x2f0f   :  { %17179 = vmax.xlane.f32.xlu0 %v17178_v21 }
0x2f16   :  { %v17016_v45 = vpop.f32.mrb[218].mxu1 }
0x2f17   :  { %v17017_v31 = vadd.f32 %v17016_v45, %v29709_v3  ;;  %v26850_v30 = vpop.f32.mrb[219].mxu1 }
0x2f19   :  { %v17175_v54 = vsel %vm1094_vm2, %v17017_v31, -inf }
0x2f1a   :  { %17176 = vmax.xlane.f32.xlu1 %v17175_v54  ;;  %v17168_v5 = vpop.f32.mrb[220].mxu1 }
0x2f1b   :  { %v17169_v49 = vadd.f32 %v17168_v5, %v29709_v3  ;;  %v26860_v17 = vpop.f32.mrb[221].mxu1 }
0x2f1d   :  { %v17181_v61 = vsel %vm1094_vm2, %v17169_v49, -inf }
0x2f1e   :  { %17182 = vmax.xlane.f32.xlu1 %v17181_v61  ;;  %v24427_v61 = vld [vmem:[%s31595_s17 + $0x80] sm:$0xff] }
0x2f97   :  { %v17174_v62 = vpop.xlane.xlu0 %17173 }
0x2f98   :  { %v17184_v20 = vsub.f32 %v16941_v11, %v17174_v62  ;;  %v24428_v62 = vld [vmem:[%s31595_s17 + $0x88] sm:$0xff] }
0x2f9a   :  { %v17188_v56 = vmul.f32 1.442695, %v17184_v20  ;;  %v30740_v20 = vpack.c.bf16 %v24428_v62, %v24427_v61 }
0x2f9c   :  { %28183 = vpow2.f32 %v17188_v56  ;;  %v17180_v15 = vpop.xlane.xlu0 %17179  ;;  %v24430_v56 = vld [vmem:[%s31595_s17 + $0x98] sm:$0xff] }
0x2f9d   :  { %v17186_v1 = vsub.f32 %v17093_v28, %v17180_v15 }
0x2f9f   :  { %v17192_v43 = vmul.f32 1.442695, %v17186_v1  ;;  %v24431_v1 = vld [vmem:[%s31595_s17 + $0xa0] sm:$0xff] }
0x2fa1   :  { %28185 = vpow2.f32 %v17192_v43  ;;  %v24432_v43 = vld [vmem:[%s31595_s17 + $0xa8] sm:$0xff] }
0x2fa6   :  { %v28184_v26 = vpop.eup %28183 }
0x2fa7   :  { %v17177_v50 = vpop.xlane.xlu1 %17176  ;;  %v17196_v0 = vsel %vm1094_vm2, %v28184_v26, 0.0 }
0x2fa8   :  { %v17185_v27 = vsub.f32 %v17017_v31, %v17177_v50  ;;  %17197 = vadd.xlane.f32.xlu0 %v17196_v0  ;;  %v24433_v50 = vld [vmem:[%s31595_s17 + $0xb0] sm:$0xff]  ;;  %v24434_v0 = vld [vmem:[%s31595_s17 + $0xb8] sm:$0xff] }
0x2faa   :  { %v17190_v39 = vmul.f32 1.442695, %v17185_v27  ;;  %v30764_v27 = vpack.c.bf16 %v24434_v0, %v24433_v50 }
0x2fab   :  { %v28186_v4 = vpop.eup %28185  ;;  %v17183_v32 = vpop.xlane.xlu1 %17182 }
0x2fac   :  { %28187 = vpow2.f32 %v17190_v39  ;;  %v17187_v38 = vsub.f32 %v17169_v49, %v17183_v32  ;;  %v17202_v55 = vsel %vm1094_vm2, %v28186_v4, 0.0 }
0x2fad   :  { %17203 = vadd.xlane.f32.xlu0 %v17202_v55  ;;  %v24436_v55 = vld [vmem:[%s31595_s17 + $0xc8] sm:$0xff] }
0x2fae   :  { %v17194_v40 = vmul.f32 1.442695, %v17187_v38  ;;  %v24435_v38 = vld [vmem:[%s31595_s17 + $0xc0] sm:$0xff] }
0x2fb0   :  { %28189 = vpow2.f32 %v17194_v40  ;;  %v30772_v40 = vpack.c.bf16 %v24436_v55, %v24435_v38 }
0x2fb1   :  { %15919 = vadd.xlane.f32.xlu0 %v15918_v34 }
0x2fb6   :  { %v28188_v14 = vpop.eup %28187 }
0x2fb7   :  { %v17199_v16 = vsel %vm1094_vm2, %v28188_v14, 0.0 }
0x2fb8   :  { %17200 = vadd.xlane.f32.xlu1 %v17199_v16  ;;  %v24437_v16 = vld [vmem:[%s31595_s17 + $0xd0] sm:$0xff] }
0x2fba   :  { %v28190_v19 = vpop.eup %28189 }
0x2fbb   :  { %v17205_v9 = vsel %vm1094_vm2, %v28190_v19, 0.0 }
0x2fbc   :  { %17206 = vadd.xlane.f32.xlu1 %v17205_v9 }
0x3035   :  { %v17198_v52 = vpop.xlane.xlu0 %17197 }
0x3036   :  { %28191 = vrcp.f32 %v17198_v52 }
0x303a   :  { %v17204_v51 = vpop.xlane.xlu0 %17203 }
0x303b   :  { %28193 = vrcp.f32 %v17204_v51 }
0x303e   :  { %v15920_v11 = vpop.xlane.xlu0 %15919 }
0x303f   :  { %v15922_v41 = vmul.f32 0.03125, %v15920_v11 }
0x3040   :  { %v28192_v46 = vpop.eup %28191 }
0x3041   :  { %v17209_v2 = vmul.f32 %v28192_v46, %v28184_v26  ;;  %v30717_v28 = vsub.f32 %v30709_v8, %v15922_v41  ;;  %v30756_v26 = vpack.c.bf16 %v24432_v43, %v24431_v1  ;;  %v24439_v46 = vld [vmem:[%s31595_s17 + $0xe0] sm:$0xff] }
0x3043   :  { %26864 = vmatmul.mubr.msk.f32.vlgmr.msra.gmra.mrb[206].mxu0 %vm1094_vm2, %v17209_v2  ;;  %v15926_v10 = vmul.f32 %v30717_v28, %v30717_v28  ;;  %v24440_v2 = vld [vmem:[%s31595_s17 + $0xe8] sm:$0xff] }
0x3044   :  { %26872 = vmatpush3.msra.mxu0 %v30683_v25  ;;  %26873 = vmatprep.mubr.msk.f32.mxu0 %vm28328_vm1, %v28327_v7 }
0x3045   :  { %v28194_v21 = vpop.eup %28193  ;;  %v17201_v45 = vpop.xlane.xlu1 %17200  ;;  %v15930_v31 = vsel %vm143_vm0, %v15926_v10, 0.0  ;;  %27770 = vmatprep.subr.bf16.mxu0 %v28329_v59  ;;  %v30792_v10 = vpack.c.bf16 %v24440_v2, %v24439_v46 }
0x3046   :  { %v17213_v30 = vmul.f32 %v28194_v21, %v28186_v4  ;;  %28195 = vrcp.f32 %v17201_v45  ;;  %15931 = vadd.xlane.f32.xlu1 %v15930_v31 }
0x3048   :  { %26874 = vmatmul.mubr.msk.f32.vlgmr.msra.gmra.mrb[208].mxu0 %vm1094_vm2, %v17213_v30  ;;  %v24442_v30 = vld [vmem:[%s31595_s17 + $0xf8] sm:$0xff] }
0x3049   :  { %v17207_v54 = vpop.xlane.xlu1 %17206  ;;  %26889 = vmatprep.mubr.msk.f32.mxu0 %vm28328_vm1, %v28327_v7 }
0x304a   :  { %28197 = vrcp.f32 %v17207_v54 }
0x304b   :  { %27773 = vmatpush3.bf16.xpose.msk.msra.mxu0 %vm28700_vm3, %v30740_v20 }
0x304c   :  { %27774 = vmatprep.subr.bf16.mxu0 %v28329_v59 }
0x3050   :  { %v28196_v25 = vpop.eup %28195 }
0x3051   :  { %v17211_v5 = vmul.f32 %v28196_v25, %v28188_v14 }
0x3053   :  { %26869 = vmatmul.mubr.msk.f32.vlgmr.msra.gmra.mrb[222].mxu1 %vm1094_vm2, %v17211_v5 }
0x3054   :  { %v28198_v49 = vpop.eup %28197  ;;  %26877 = vmatpush3.msra.mxu1 %v30696_v44  ;;  %26878 = vmatprep.mubr.msk.f32.mxu1 %vm28328_vm1, %v28327_v7  ;;  %v24429_v44 = vld [vmem:[%s31595_s17 + $0x90] sm:$0xff] }
0x3055   :  { %v17215_v17 = vmul.f32 %v28198_v49, %v28190_v19  ;;  %27778 = vmatprep.subr.bf16.mxu1 %v28329_v59  ;;  %v30748_v15 = vpack.c.bf16 %v24430_v56, %v24429_v44  ;;  %v24438_v19 = vld [vmem:[%s31595_s17 + $0xd8] sm:$0xff] }
0x3056   :  { %v30783_v51 = vpack.c.bf16 %v24438_v19, %v24437_v16 }
0x3057   :  { %26879 = vmatmul.mubr.msk.f32.vlgmr.msra.gmra.mrb[224].mxu1 %vm1094_vm2, %v17215_v17  ;;  %27777 = vmatpush3.bf16.xpose.msk.msra.mxu0 %vm28700_vm3, %v30748_v15 }
0x3058   :  { %26900 = vmatprep.mubr.msk.f32.mxu1 %vm28328_vm1, %v28327_v7  ;;  %27786 = vmatprep.subr.bf16.mxu0 %v28329_v59 }
0x305b   :  { %27781 = vmatpush3.bf16.xpose.msk.msra.mxu1 %vm28700_vm3, %v30756_v26 }
0x305c   :  { %27782 = vmatprep.subr.bf16.mxu1 %v28329_v59 }
0x3063   :  { %27785 = vmatpush3.bf16.xpose.msk.msra.mxu1 %vm28700_vm3, %v30764_v27 }
0x3064   :  { %27794 = vmatprep.subr.bf16.mxu1 %v28329_v59 }
0x30d3   :  { %v15932_v39 = vpop.xlane.xlu1 %15931 }
0x30d4   :  { %v15934_v4 = vmul.f32 0.03125, %v15932_v39 }
0x30d6   :  { %v15936_v32 = vadd.f32 1e-05, %v15934_v4 }
0x30d8   :  { %28199 = vrsqrt.f32 %v15936_v32 }
0x30e2   :  { %v28200_v11 = vpop.eup %28199 }
0x30e3   :  { %v15940_v41 = vmul.f32 %v28200_v11, %v30717_v28 }
0x30e5   :  { %v15948_v21 = vmul.f32 %v30569_v37, %v15940_v41  ;;  %v24441_v37 = vld [vmem:[%s31595_s17 + $0xf0] sm:$0xff] }
0x30e7   :  { %v15956_v28 = vadd.f32 %v30572_v47, %v15948_v21 }
0x3116   :  { %v17285_v34 = vpop.f32.mrb[206].mxu0 }
0x3117   :  { %v26865_v14 = vpop.f32.mrb[207].mxu0  ;;  %26890 = vmatmul.mubr.msk.f32.vlgmr.msra.gmra.mrb[210].mxu0 %vm1094_vm2, %v17285_v34 }
0x3118   :  { %27789 = vmatpush3.bf16.xpose.msk.msra.mxu0 %vm28700_vm3, %v30772_v40  ;;  %26911 = vmatprep.mubr.msk.f32.mxu0 %vm28328_vm1, %v28327_v7 }
0x3119   :  { %27790 = vmatprep.subr.bf16.mxu0 %v28329_v59 }
0x311b   :  { %v17431_v9 = vpop.f32.mrb[208].mxu0 }
0x311c   :  { %v26875_v52 = vpop.f32.mrb[209].mxu0 }
0x3120   :  { %27793 = vmatpush3.bf16.xpose.msk.msra.mxu0 %vm28700_vm3, %v30783_v51 }
0x3121   :  { %26925 = vmatprep.subr.mxu0 %v28327_v7 }
0x3126   :  { %v17358_v45 = vpop.f32.mrb[222].mxu1 }
0x3127   :  { %26912 = vmatmul.mubr.msk.f32.vlgmr.msra.gmra.mrb[212].mxu0 %vm1094_vm2, %v17431_v9  ;;  %v26870_v31 = vpop.f32.mrb[223].mxu1  ;;  %26901 = vmatmul.mubr.msk.f32.vlgmr.msra.gmra.mrb[226].mxu1 %vm1094_vm2, %v17358_v45 }
0x3128   :  { %27797 = vmatpush3.bf16.xpose.msk.msra.mxu1 %vm28700_vm3, %v30792_v10  ;;  %26926 = vmatpush3.xpose.msk.msra.mxu0 %vm143_vm0, %v30557_v24  ;;  %v30816_v24 = vpack.c.bf16 %v24442_v30, %v24441_v37 }
0x3129   :  { %26927 = vmatprep.mubr.msk.f32.mxu0 %vm28328_vm1, %v28327_v7  ;;  %26935 = vmatprep.subr.mxu0 %v28327_v7 }
0x312a   :  { %v17504_v54 = vpop.f32.mrb[224].mxu1  ;;  %27798 = vmatprep.subr.bf16.mxu1 %v28329_v59  ;;  %26922 = vmatprep.mubr.msk.f32.mxu1 %vm28328_vm1, %v28327_v7 }
0x312b   :  { %26928 = vmatmul.mubr.msk.f32.vlgmr.msra.gmra.mrb[214].mxu0 %vm143_vm0, %v15956_v28  ;;  %v26880_v25 = vpop.f32.mrb[225].mxu1 }
0x312c   :  { %26936 = vmatpush3.xpose.msk.msra.mxu0 %vm143_vm0, %v30593_v29  ;;  %26937 = vmatprep.mubr.msk.f32.mxu0 %vm28328_vm1, %v28327_v7 }
0x312d   :  { %26945 = vmatprep.subr.mxu0 %v28327_v7 }
0x312f   :  { %26938 = vmatmul.mubr.msk.f32.vlgmr.msra.gmra.mrb[216].mxu0 %vm143_vm0, %v15956_v28 }
0x3130   :  { %27801 = vmatpush3.bf16.xpose.msk.msra.mxu1 %vm28700_vm3, %v30816_v24  ;;  %26946 = vmatpush3.xpose.msk.msra.mxu0 %vm143_vm0, %v30560_v18 }
0x3131   :  { %26947 = vmatprep.mubr.msk.f32.mxu0 %vm28328_vm1, %v28327_v7  ;;  %26955 = vmatprep.subr.mxu0 %v28327_v7 }
0x3132   :  { %26930 = vmatprep.subr.mxu1 %v28327_v7 }
0x3133   :  { %26948 = vmatmul.mubr.msk.f32.vlgmr.msra.gmra.mrb[218].mxu0 %vm143_vm0, %v15956_v28 }
0x3134   :  { %26956 = vmatpush3.xpose.msk.msra.mxu0 %vm143_vm0, %v30580_v35  ;;  %26957 = vmatprep.mubr.msk.f32.mxu0 %vm28328_vm1, %v28327_v7 }
0x3135   :  { %26965 = vmatprep.subr.mxu0 %v28327_v7 }
0x3137   :  { %26923 = vmatmul.mubr.msk.f32.vlgmr.msra.gmra.mrb[228].mxu1 %vm1094_vm2, %v17504_v54  ;;  %26958 = vmatmul.mubr.msk.f32.vlgmr.msra.gmra.mrb[220].mxu0 %vm143_vm0, %v15956_v28 }
0x3138   :  { %26931 = vmatpush3.xpose.msk.msra.mxu1 %vm143_vm0, %v30577_v58  ;;  %26966 = vmatpush3.xpose.msk.msra.mxu0 %vm143_vm0, %v30596_v13 }
0x3139   :  { %26932 = vmatprep.mubr.msk.f32.mxu1 %vm28328_vm1, %v28327_v7  ;;  %26967 = vmatprep.mubr.msk.f32.mxu0 %vm28328_vm1, %v28327_v7 }
0x313a   :  { %26940 = vmatprep.subr.mxu1 %v28327_v7  ;;  %26975 = vmatprep.subr.mxu0 %v28327_v7 }
0x313b   :  { %26933 = vmatmul.mubr.msk.f32.vlgmr.msra.gmra.mrb[230].mxu1 %vm143_vm0, %v15956_v28  ;;  %26968 = vmatmul.mubr.msk.f32.vlgmr.msra.gmra.mrb[222].mxu0 %vm143_vm0, %v15956_v28 }
0x313c   :  { %26941 = vmatpush3.xpose.msk.msra.mxu1 %vm143_vm0, %v30611_v60  ;;  %26976 = vmatpush3.xpose.msk.msra.mxu0 %vm143_vm0, %v30614_v33 }
0x313d   :  { %26942 = vmatprep.mubr.msk.f32.mxu1 %vm28328_vm1, %v28327_v7  ;;  %26977 = vmatprep.mubr.msk.f32.mxu0 %vm28328_vm1, %v28327_v7 }
0x313e   :  { %26950 = vmatprep.subr.mxu1 %v28327_v7  ;;  %26985 = vmatprep.subr.mxu0 %v28327_v7 }
0x313f   :  { %26943 = vmatmul.mubr.msk.f32.vlgmr.msra.gmra.mrb[232].mxu1 %vm143_vm0, %v15956_v28  ;;  %26978 = vmatmul.mubr.msk.f32.vlgmr.msra.gmra.mrb[224].mxu0 %vm143_vm0, %v15956_v28 }
0x3140   :  { %26951 = vmatpush3.xpose.msk.msra.mxu1 %vm143_vm0, %v30629_v6  ;;  %26952 = vmatprep.mubr.msk.f32.mxu1 %vm28328_vm1, %v28327_v7 }
0x3141   :  { %26960 = vmatprep.subr.mxu1 %v28327_v7  ;;  %26987 = vmatprep.mubr.msk.f32.mxu0 %vm28328_vm1, %v28327_v7 }
0x3143   :  { %26953 = vmatmul.mubr.msk.f32.vlgmr.msra.gmra.mrb[234].mxu1 %vm143_vm0, %v15956_v28 }
0x3144   :  { %26961 = vmatpush3.xpose.msk.msra.mxu1 %vm143_vm0, %v30641_v63  ;;  %26962 = vmatprep.mubr.msk.f32.mxu1 %vm28328_vm1, %v28327_v7 }
0x3145   :  { %26970 = vmatprep.subr.mxu1 %v28327_v7 }
0x3147   :  { %26963 = vmatmul.mubr.msk.f32.vlgmr.msra.gmra.mrb[236].mxu1 %vm143_vm0, %v15956_v28 }
0x3148   :  { %26971 = vmatpush3.xpose.msk.msra.mxu1 %vm143_vm0, %v30652_v12  ;;  %26972 = vmatprep.mubr.msk.f32.mxu1 %vm28328_vm1, %v28327_v7 }
0x3149   :  { %26980 = vmatprep.subr.mxu1 %v28327_v7 }
0x314b   :  { %26973 = vmatmul.mubr.msk.f32.vlgmr.msra.gmra.mrb[238].mxu1 %vm143_vm0, %v15956_v28 }
0x314c   :  { %26981 = vmatpush3.xpose.msk.msra.mxu1 %vm143_vm0, %v30661_v48  ;;  %26982 = vmatprep.mubr.msk.f32.mxu1 %vm28328_vm1, %v28327_v7 }
0x314d   :  { %26990 = vmatprep.subr.mxu1 %v28327_v7 }
0x314f   :  { %26983 = vmatmul.mubr.msk.f32.vlgmr.msra.gmra.mrb[240].mxu1 %vm143_vm0, %v15956_v28 }
0x3150   :  { %26992 = vmatprep.mubr.msk.f32.mxu1 %vm28328_vm1, %v28327_v7 }
0x31ea   :  { %v17589_v18 = vpop.f32.mrb[210].mxu0 }
0x31eb   :  { %v26891_v47 = vpop.f32.mrb[211].mxu0  ;;  %v17848_v29 = vsel %vm143_vm0, %v17589_v18, 0.0 }
0x31fa   :  { %v17759_v58 = vpop.f32.mrb[212].mxu0  ;;  %v17674_v35 = vpop.f32.mrb[226].mxu1 }
0x31fb   :  { %v17849_v13 = vsel %vm143_vm0, %v17674_v35, 0.0  ;;  %v26913_v60 = vpop.f32.mrb[213].mxu0  ;;  %v26902_v33 = vpop.f32.mrb[227].mxu1  ;;  %v17851_v63 = vsel %vm143_vm0, %v17759_v58, 0.0 }
0x31fc   :  { %v17850_v6 = vadd.f32 %v17849_v13, %v17848_v29 }
0x31fe   :  { %v17924_v12 = vpop.f32.mrb[214].mxu0  ;;  %v17852_v48 = vadd.f32 %v17851_v63, %v17850_v6 }
0x31ff   :  { %v26929_v5 = vpop.f32.mrb[215].mxu0 }
0x3202   :  { %v18064_v49 = vpop.f32.mrb[216].mxu0 }
0x3203   :  { %v26939_v17 = vpop.f32.mrb[217].mxu0 }
0x3206   :  { %v18204_v61 = vpop.f32.mrb[218].mxu0 }
0x3207   :  { %v26949_v62 = vpop.f32.mrb[219].mxu0  ;;  %26986 = vmatpush3.xpose.msk.msra.mxu0 %vm1094_vm2, %v18204_v61 }
0x3208   :  { %26995 = vmatprep.subr.mxu0 %v28327_v7 }
0x320a   :  { %v17844_v44 = vpop.f32.mrb[228].mxu1  ;;  %v18344_v56 = vpop.f32.mrb[220].mxu0  ;;  %26988 = vmatmul.mubr.msk.f32.vlgmr.msra.gmra.mrb[226].mxu0 %vm1094_vm2, %v17924_v12 }
0x320b   :  { %v17853_v1 = vsel %vm143_vm0, %v17844_v44, 0.0  ;;  %v26924_v43 = vpop.f32.mrb[229].mxu1  ;;  %v26959_v50 = vpop.f32.mrb[221].mxu0  ;;  %26996 = vmatpush3.xpose.msk.msra.mxu0 %vm1094_vm2, %v18344_v56  ;;  %26997 = vmatprep.mubr.msk.f32.mxu0 %vm28328_vm1, %v28327_v7 }
0x320c   :  { %v30899_v0 = vadd.f32 %v17853_v1, %v17852_v48  ;;  %27005 = vmatprep.subr.mxu0 %v28327_v7 }
0x320e   :  { %v17994_v39 = vpop.f32.mrb[230].mxu1  ;;  %v18484_v4 = vpop.f32.mrb[222].mxu0  ;;  %26998 = vmatmul.mubr.msk.f32.vlgmr.msra.gmra.mrb[228].mxu0 %vm1094_vm2, %v18064_v49  ;;  %v30932_v43 = vadd.f32 %v30899_v0, %v30550_v23 }
0x320f   :  { %v26934_v32 = vpop.f32.mrb[231].mxu1  ;;  %v26969_v38 = vpop.f32.mrb[223].mxu0  ;;  %27006 = vmatpush3.msra.mxu0 %v18484_v4  ;;  %27007 = vmatprep.mubr.msk.f32.mxu0 %vm28328_vm1, %v28327_v7 }
0x3210   :  { %27015 = vmatprep.subr.mxu0 %v28327_v7  ;;  %v19643_v38 = vsel %vm143_vm0, %v30932_v43, 0.0 }
0x3212   :  { %v18134_v55 = vpop.f32.mrb[232].mxu1  ;;  %v30906_v34 = vpop.f32.mrb[224].mxu0 }
0x3213   :  { %v26944_v14 = vpop.f32.mrb[233].mxu1  ;;  %v26979_v16 = vpop.f32.mrb[225].mxu0 }
0x3216   :  { %v18274_v19 = vpop.f32.mrb[234].mxu1 }
0x3217   :  { %v26954_v9 = vpop.f32.mrb[235].mxu1  ;;  %26991 = vmatpush3.xpose.msk.msra.mxu1 %vm1094_vm2, %v18274_v19 }
0x3218   :  { %27000 = vmatprep.subr.mxu1 %v28327_v7 }
0x321a   :  { %v18414_v52 = vpop.f32.mrb[236].mxu1  ;;  %26993 = vmatmul.mubr.msk.f32.vlgmr.msra.gmra.mrb[242].mxu1 %vm1094_vm2, %v17994_v39 }
0x321b   :  { %v26964_v11 = vpop.f32.mrb[237].mxu1  ;;  %27001 = vmatpush3.xpose.msk.msra.mxu1 %vm1094_vm2, %v18414_v52  ;;  %27002 = vmatprep.mubr.msk.f32.mxu1 %vm28328_vm1, %v28327_v7 }
0x321c   :  { %27010 = vmatprep.subr.mxu1 %v28327_v7 }
0x321e   :  { %v18554_v41 = vpop.f32.mrb[238].mxu1  ;;  %27003 = vmatmul.mubr.msk.f32.vlgmr.msra.gmra.mrb[244].mxu1 %vm1094_vm2, %v18134_v55 }
0x321f   :  { %v26974_v46 = vpop.f32.mrb[239].mxu1  ;;  %27011 = vmatpush3.msra.mxu1 %v18554_v41  ;;  %27012 = vmatprep.mubr.msk.f32.mxu1 %vm28328_vm1, %v28327_v7 }
0x3220   :  { %27020 = vmatprep.subr.mxu1 %v28327_v7 }
0x3222   :  { %v30919_v2 = vpop.f32.mrb[240].mxu1 }
0x3223   :  { %v26984_v21 = vpop.f32.mrb[241].mxu1 }
0x32dd   :  { %v18770_v45 = vpop.f32.mrb[226].mxu0 }
0x32de   :  { %v18771_v31 = vadd.f32 %v18770_v45, %v29709_v3  ;;  %v26989_v28 = vpop.f32.mrb[227].mxu0 }
0x32e0   :  { %v19002_v37 = vsel %vm1094_vm2, %v18771_v31, -inf }
0x32e1   :  { %19003 = vmax.xlane.f32.xlu0 %v19002_v37  ;;  %v18922_v30 = vpop.f32.mrb[228].mxu0 }
0x32e2   :  { %v18923_v54 = vadd.f32 %v18922_v30, %v29709_v3  ;;  %v26999_v25 = vpop.f32.mrb[229].mxu0 }
0x32e4   :  { %v19008_v18 = vsel %vm1094_vm2, %v18923_v54, -inf }
0x32e5   :  { %19009 = vmax.xlane.f32.xlu0 %v19008_v18 }
0x32ed   :  { %v18846_v47 = vpop.f32.mrb[242].mxu1 }
0x32ee   :  { %v18847_v58 = vadd.f32 %v18846_v47, %v29709_v3  ;;  %v26994_v35 = vpop.f32.mrb[243].mxu1 }
0x32f0   :  { %v19005_v29 = vsel %vm1094_vm2, %v18847_v58, -inf }
0x32f1   :  { %19006 = vmax.xlane.f32.xlu1 %v19005_v29  ;;  %v18998_v13 = vpop.f32.mrb[244].mxu1 }
0x32f2   :  { %v18999_v60 = vadd.f32 %v18998_v13, %v29709_v3  ;;  %v27004_v33 = vpop.f32.mrb[245].mxu1  ;;  %v30985_v13 = vld [vmem:[%s31596_s21 + $0x1] ss:$0 sm:$0xff] }
0x32f4   :  { %v19011_v6 = vsel %vm1094_vm2, %v18999_v60, -inf }
0x32f5   :  { %19012 = vmax.xlane.f32.xlu1 %v19011_v6  ;;  %v30992_v6 = vld [vmem:[%s31598_s29 + $0x1] ss:$0 sm:$0xff] }
0x336e   :  { %v19004_v63 = vpop.xlane.xlu0 %19003 }
0x336f   :  { %v19014_v12 = vsub.f32 %v18771_v31, %v19004_v63 }
0x3371   :  { %v19018_v48 = vmul.f32 1.442695, %v19014_v12  ;;  %v31006_v12 = vld [vmem:[%s31597_s25 + $0x30] sm:$0xff] }
0x3372   :  { %v19010_v5 = vpop.xlane.xlu0 %19009 }
0x3373   :  { %28201 = vpow2.f32 %v19018_v48  ;;  %v19016_v49 = vsub.f32 %v18923_v54, %v19010_v5  ;;  %v31018_v5 = vld [vmem:[%s31600_s8 + $0x20] sm:$0xff] }
0x3375   :  { %v19022_v17 = vmul.f32 1.442695, %v19016_v49  ;;  %v31030_v49 = vld [vmem:[%s31600_s8 + $0x30] sm:$0xff] }
0x3377   :  { %28203 = vpow2.f32 %v19022_v17  ;;  %v31044_v17 = vld [vmem:[%s31602_s19 + $0x20] sm:$0xff] }
0x337d   :  { %v28202_v61 = vpop.eup %28201 }
0x337e   :  { %v19007_v62 = vpop.xlane.xlu1 %19006  ;;  %v19026_v44 = vsel %vm1094_vm2, %v28202_v61, 0.0 }
0x337f   :  { %v19015_v56 = vsub.f32 %v18847_v58, %v19007_v62  ;;  %19027 = vadd.xlane.f32.xlu0 %v19026_v44  ;;  %v31061_v62 = vld [vmem:[%s31602_s19 + $0x30] sm:$0xff]  ;;  %v31077_v44 = vld [vmem:[%s31600_s8 + $0x28] sm:$0xff] }
0x3381   :  { %v28204_v1 = vpop.eup %28203  ;;  %v19020_v3 = vmul.f32 1.442695, %v19015_v56  ;;  %v31090_v56 = vld [vmem:[%s31600_s8 + $0x38] sm:$0xff] }
0x3382   :  { %v19013_v50 = vpop.xlane.xlu1 %19012  ;;  %v19032_v39 = vsel %vm1094_vm2, %v28204_v1, 0.0 }
0x3383   :  { %28205 = vpow2.f32 %v19020_v3  ;;  %v19017_v4 = vsub.f32 %v18999_v60, %v19013_v50  ;;  %19033 = vadd.xlane.f32.xlu0 %v19032_v39  ;;  %v30988_v60 = vld [vmem:[%s31597_s25 + $0x20] sm:$0xff]  ;;  %v31112_v3 = vld [vmem:[%s31602_s19 + $0x38] sm:$0xff] }
0x3385   :  { %v19024_v32 = vmul.f32 1.442695, %v19017_v4 }
0x3387   :  { %28207 = vpow2.f32 %v19024_v32  ;;  %19644 = vadd.xlane.f32.xlu0 %v19643_v38 }
0x338d   :  { %v28206_v55 = vpop.eup %28205 }
0x338e   :  { %v19029_v14 = vsel %vm1094_vm2, %v28206_v55, 0.0 }
0x338f   :  { %19030 = vadd.xlane.f32.xlu1 %v19029_v14 }
0x3391   :  { %v28208_v16 = vpop.eup %28207 }
0x3392   :  { %v19035_v23 = vsel %vm1094_vm2, %v28208_v16, 0.0 }
0x3393   :  { %19036 = vadd.xlane.f32.xlu1 %v19035_v23 }
0x340c   :  { %v19028_v0 = vpop.xlane.xlu0 %19027 }
0x340d   :  { %28209 = vrcp.f32 %v19028_v0 }
0x3410   :  { %v19034_v19 = vpop.xlane.xlu0 %19033 }
0x3411   :  { %28211 = vrcp.f32 %v19034_v19 }
0x3414   :  { %v19645_v9 = vpop.xlane.xlu0 %19644 }
0x3415   :  { %v19649_v52 = vmul.f32 0.03125, %v19645_v9 }
0x3417   :  { %v28210_v11 = vpop.eup %28209  ;;  %v19651_v41 = vsub.f32 %v30932_v43, %v19649_v52 }
0x3418   :  { %v19039_v46 = vmul.f32 %v28210_v11, %v28202_v61  ;;  %v31058_v61 = vld [vmem:[%s31597_s25 + $0x38] sm:$0xff] }
0x3419   :  { %v19653_v21 = vmul.f32 %v19651_v41, %v19651_v41 }
0x341a   :  { %27008 = vmatmul.mubr.msk.f32.vlgmr.msra.gmra.mrb[230].mxu0 %vm1094_vm2, %v19039_v46 }
0x341b   :  { %v28212_v45 = vpop.eup %28211  ;;  %27016 = vmatpush3.msra.mxu0 %v30906_v34  ;;  %v19655_v31 = vsel %vm143_vm0, %v19653_v21, 0.0  ;;  %27017 = vmatprep.mubr.msk.f32.mxu0 %vm28328_vm1, %v28327_v7 }
0x341c   :  { %v19043_v28 = vmul.f32 %v28212_v45, %v28204_v1  ;;  %19656 = vadd.xlane.f32.xlu1 %v19655_v31  ;;  %v19031_v37 = vpop.xlane.xlu1 %19030  ;;  %27802 = vmatprep.subr.bf16.mxu0 %v28329_v59  ;;  %v31102_v1 = vld [vmem:[%s31602_s19 + $0x28] sm:$0xff] }
0x341d   :  { %28213 = vrcp.f32 %v19031_v37 }
0x341e   :  { %27018 = vmatmul.mubr.msk.f32.vlgmr.msra.gmra.mrb[232].mxu0 %vm1094_vm2, %v19043_v28 }
0x341f   :  { %27033 = vmatprep.mubr.msk.f32.mxu0 %vm28328_vm1, %v28327_v7 }
0x3420   :  { %v19037_v30 = vpop.xlane.xlu1 %19036 }
0x3421   :  { %28215 = vrcp.f32 %v19037_v30 }
0x3422   :  { %27805 = vmatpush3.bf16.xpose.msk.msra.mxu0 %vm28700_vm3, %v30740_v20 }
0x3423   :  { %27806 = vmatprep.subr.bf16.mxu0 %v28329_v59 }
0x3427   :  { %v28214_v34 = vpop.eup %28213 }
0x3428   :  { %v19041_v54 = vmul.f32 %v28214_v34, %v28206_v55 }
0x342a   :  { %27013 = vmatmul.mubr.msk.f32.vlgmr.msra.gmra.mrb[246].mxu1 %vm1094_vm2, %v19041_v54  ;;  %27809 = vmatpush3.bf16.xpose.msk.msra.mxu0 %vm28700_vm3, %v30748_v15 }
0x342b   :  { %v28216_v25 = vpop.eup %28215  ;;  %27021 = vmatpush3.msra.mxu1 %v30919_v2  ;;  %27022 = vmatprep.mubr.msk.f32.mxu1 %vm28328_vm1, %v28327_v7 }
0x342c   :  { %v19045_v18 = vmul.f32 %v28216_v25, %v28208_v16  ;;  %27810 = vmatprep.subr.bf16.mxu1 %v28329_v59  ;;  %27818 = vmatprep.subr.bf16.mxu0 %v28329_v59 }
0x342e   :  { %27023 = vmatmul.mubr.msk.f32.vlgmr.msra.gmra.mrb[248].mxu1 %vm1094_vm2, %v19045_v18 }
0x342f   :  { %27044 = vmatprep.mubr.msk.f32.mxu1 %vm28328_vm1, %v28327_v7 }
0x3432   :  { %27813 = vmatpush3.bf16.xpose.msk.msra.mxu1 %vm28700_vm3, %v30756_v26 }
0x3433   :  { %27814 = vmatprep.subr.bf16.mxu1 %v28329_v59 }
0x343a   :  { %27817 = vmatpush3.bf16.xpose.msk.msra.mxu1 %vm28700_vm3, %v30764_v27 }
0x343b   :  { %27826 = vmatprep.subr.bf16.mxu1 %v28329_v59 }
0x34a9   :  { %v19657_v20 = vpop.xlane.xlu1 %19656 }
0x34aa   :  { %v19661_v15 = vmul.f32 0.03125, %v19657_v20 }
0x34ac   :  { %v19663_v2 = vadd.f32 1e-05, %v19661_v15 }
0x34ae   :  { %28217 = vrsqrt.f32 %v19663_v2 }
0x34b8   :  { %v28218_v35 = vpop.eup %28217 }
0x34b9   :  { %v19667_v29 = vmul.f32 %v28218_v35, %v19651_v41 }
0x34ed   :  { %v19115_v47 = vpop.f32.mrb[230].mxu0 }
0x34ee   :  { %v27009_v58 = vpop.f32.mrb[231].mxu0  ;;  %27034 = vmatmul.mubr.msk.f32.vlgmr.msra.gmra.mrb[234].mxu0 %vm1094_vm2, %v19115_v47 }
0x34ef   :  { %27821 = vmatpush3.bf16.xpose.msk.msra.mxu0 %vm28700_vm3, %v30772_v40  ;;  %27055 = vmatprep.mubr.msk.f32.mxu0 %vm28328_vm1, %v28327_v7  ;;  %v19675_v40 = vmul.f32 %v30985_v13, %v19667_v29 }
0x34f0   :  { %27822 = vmatprep.subr.bf16.mxu0 %v28329_v59 }
0x34f1   :  { %v19261_v26 = vpop.f32.mrb[232].mxu0 }
0x34f2   :  { %v27019_v27 = vpop.f32.mrb[233].mxu0 }
0x34f7   :  { %27825 = vmatpush3.bf16.xpose.msk.msra.mxu0 %vm28700_vm3, %v30783_v51  ;;  %v19683_v51 = vadd.f32 %v30992_v6, %v19675_v40 }
0x34f8   :  { %27069 = vmatprep.subr.mxu0 %v28327_v7 }
0x34fd   :  { %v19188_v33 = vpop.f32.mrb[246].mxu1 }
0x34fe   :  { %27056 = vmatmul.mubr.msk.f32.vlgmr.msra.gmra.mrb[236].mxu0 %vm1094_vm2, %v19261_v26  ;;  %v27014_v63 = vpop.f32.mrb[247].mxu1  ;;  %27045 = vmatmul.mubr.msk.f32.vlgmr.msra.gmra.mrb[250].mxu1 %vm1094_vm2, %v19188_v33 }
0x34ff   :  { %27829 = vmatpush3.bf16.xpose.msk.msra.mxu1 %vm28700_vm3, %v30792_v10  ;;  %27070 = vmatpush3.xpose.msk.msra.mxu0 %vm143_vm0, %v30988_v60 }
0x3500   :  { %27071 = vmatprep.mubr.msk.f32.mxu0 %vm28328_vm1, %v28327_v7  ;;  %27079 = vmatprep.subr.mxu0 %v28327_v7 }
0x3501   :  { %v19334_v48 = vpop.f32.mrb[248].mxu1  ;;  %27830 = vmatprep.subr.bf16.mxu1 %v28329_v59  ;;  %27066 = vmatprep.mubr.msk.f32.mxu1 %vm28328_vm1, %v28327_v7 }
0x3502   :  { %27072 = vmatmul.mubr.msk.f32.vlgmr.msra.gmra.mrb[238].mxu0 %vm143_vm0, %v19683_v51  ;;  %v27024_v10 = vpop.f32.mrb[249].mxu1 }
0x3503   :  { %27080 = vmatpush3.xpose.msk.msra.mxu0 %vm143_vm0, %v31006_v12  ;;  %27081 = vmatprep.mubr.msk.f32.mxu0 %vm28328_vm1, %v28327_v7 }
0x3504   :  { %27089 = vmatprep.subr.mxu0 %v28327_v7 }
0x3506   :  { %27082 = vmatmul.mubr.msk.f32.vlgmr.msra.gmra.mrb[240].mxu0 %vm143_vm0, %v19683_v51 }
0x3507   :  { %27833 = vmatpush3.bf16.xpose.msk.msra.mxu1 %vm28700_vm3, %v30816_v24  ;;  %27090 = vmatpush3.xpose.msk.msra.mxu0 %vm143_vm0, %v31018_v5  ;;  %v31041_v24 = vld [vmem:[%s31597_s25 + $0x28] sm:$0xff] }
0x3508   :  { %27091 = vmatprep.mubr.msk.f32.mxu0 %vm28328_vm1, %v28327_v7  ;;  %27099 = vmatprep.subr.mxu0 %v28327_v7 }
0x3509   :  { %27074 = vmatprep.subr.mxu1 %v28327_v7 }
0x350a   :  { %27092 = vmatmul.mubr.msk.f32.vlgmr.msra.gmra.mrb[242].mxu0 %vm143_vm0, %v30042_v57 }
0x350b   :  { %27100 = vmatpush3.xpose.msk.msra.mxu0 %vm143_vm0, %v31030_v49  ;;  %27101 = vmatprep.mubr.msk.f32.mxu0 %vm28328_vm1, %v28327_v7 }
0x350c   :  { %27109 = vmatprep.subr.mxu0 %v28327_v7 }
0x350e   :  { %27067 = vmatmul.mubr.msk.f32.vlgmr.msra.gmra.mrb[252].mxu1 %vm1094_vm2, %v19334_v48  ;;  %27102 = vmatmul.mubr.msk.f32.vlgmr.msra.gmra.mrb[244].mxu0 %vm143_vm0, %v30042_v57 }
0x350f   :  { %27075 = vmatpush3.xpose.msk.msra.mxu1 %vm143_vm0, %v31041_v24  ;;  %27110 = vmatpush3.xpose.msk.msra.mxu0 %vm143_vm0, %v31044_v17 }
0x3510   :  { %27076 = vmatprep.mubr.msk.f32.mxu1 %vm28328_vm1, %v28327_v7  ;;  %27111 = vmatprep.mubr.msk.f32.mxu0 %vm28328_vm1, %v28327_v7 }
0x3511   :  { %27084 = vmatprep.subr.mxu1 %v28327_v7  ;;  %27119 = vmatprep.subr.mxu0 %v28327_v7 }
0x3512   :  { %27077 = vmatmul.mubr.msk.f32.vlgmr.msra.gmra.mrb[254].mxu1 %vm143_vm0, %v19683_v51  ;;  %27112 = vmatmul.mubr.msk.f32.vlgmr.msra.gmra.mrb[246].mxu0 %vm143_vm0, %v30042_v57 }
0x3513   :  { %27085 = vmatpush3.xpose.msk.msra.mxu1 %vm143_vm0, %v31058_v61  ;;  %27120 = vmatpush3.xpose.msk.msra.mxu0 %vm143_vm0, %v31061_v62 }
0x3514   :  { %27086 = vmatprep.mubr.msk.f32.mxu1 %vm28328_vm1, %v28327_v7  ;;  %27121 = vmatprep.mubr.msk.f32.mxu0 %vm28328_vm1, %v28327_v7 }
0x3515   :  { %27094 = vmatprep.subr.mxu1 %v28327_v7  ;;  %27129 = vmatprep.subr.mxu0 %v28327_v7 }
0x3516   :  { %27087 = vmatmul.mubr.msk.f32.vlgmr.msra.gmra.mrb[0].mxu1 %vm143_vm0, %v19683_v51  ;;  %27122 = vmatmul.mubr.msk.f32.vlgmr.msra.gmra.mrb[248].mxu0 %vm143_vm0, %v30042_v57 }
0x3517   :  { %27095 = vmatpush3.xpose.msk.msra.mxu1 %vm143_vm0, %v31077_v44  ;;  %27096 = vmatprep.mubr.msk.f32.mxu1 %vm28328_vm1, %v28327_v7 }
0x3518   :  { %27104 = vmatprep.subr.mxu1 %v28327_v7  ;;  %27131 = vmatprep.mubr.msk.f32.mxu0 %vm28328_vm1, %v28327_v7 }
0x351a   :  { %27097 = vmatmul.mubr.msk.f32.vlgmr.msra.gmra.mrb[2].mxu1 %vm143_vm0, %v30042_v57 }
0x351b   :  { %27105 = vmatpush3.xpose.msk.msra.mxu1 %vm143_vm0, %v31090_v56  ;;  %27106 = vmatprep.mubr.msk.f32.mxu1 %vm28328_vm1, %v28327_v7 }
0x351c   :  { %27114 = vmatprep.subr.mxu1 %v28327_v7 }
0x351e   :  { %27107 = vmatmul.mubr.msk.f32.vlgmr.msra.gmra.mrb[4].mxu1 %vm143_vm0, %v30042_v57 }
0x351f   :  { %27115 = vmatpush3.xpose.msk.msra.mxu1 %vm143_vm0, %v31102_v1  ;;  %27116 = vmatprep.mubr.msk.f32.mxu1 %vm28328_vm1, %v28327_v7 }
0x3520   :  { %27124 = vmatprep.subr.mxu1 %v28327_v7 }
0x3522   :  { %27117 = vmatmul.mubr.msk.f32.vlgmr.msra.gmra.mrb[6].mxu1 %vm143_vm0, %v30042_v57 }
0x3523   :  { %27125 = vmatpush3.xpose.msk.msra.mxu1 %vm143_vm0, %v31112_v3  ;;  %27126 = vmatprep.mubr.msk.f32.mxu1 %vm28328_vm1, %v28327_v7 }
0x3524   :  { %27134 = vmatprep.subr.mxu1 %v28327_v7 }
0x3526   :  { %27127 = vmatmul.mubr.msk.f32.vlgmr.msra.gmra.mrb[8].mxu1 %vm143_vm0, %v30042_v57 }
0x3527   :  { %27136 = vmatprep.mubr.msk.f32.mxu1 %vm28328_vm1, %v28327_v7 }
0x35c1   :  { %v19407_v50 = vpop.f32.mrb[234].mxu0 }
0x35c2   :  { %v27035_v39 = vpop.f32.mrb[235].mxu0  ;;  %v19630_v38 = vsel %vm143_vm0, %v19407_v50, 0.0 }
0x35d1   :  { %v19553_v4 = vpop.f32.mrb[236].mxu0  ;;  %v19480_v32 = vpop.f32.mrb[250].mxu1 }
0x35d2   :  { %v19631_v55 = vsel %vm143_vm0, %v19480_v32, 0.0  ;;  %v27057_v14 = vpop.f32.mrb[237].mxu0  ;;  %v27046_v16 = vpop.f32.mrb[251].mxu1  ;;  %v19633_v0 = vsel %vm143_vm0, %v19553_v4, 0.0 }
0x35d3   :  { %v19632_v23 = vadd.f32 %v19631_v55, %v19630_v38 }
0x35d5   :  { %v19789_v19 = vpop.f32.mrb[238].mxu0  ;;  %v19634_v9 = vadd.f32 %v19633_v0, %v19632_v23 }
0x35d6   :  { %v27073_v52 = vpop.f32.mrb[239].mxu0 }
0x35d9   :  { %v19935_v57 = vpop.f32.mrb[240].mxu0 }
0x35da   :  { %v27083_v11 = vpop.f32.mrb[241].mxu0 }
0x35dd   :  { %v20081_v41 = vpop.f32.mrb[242].mxu0 }
0x35de   :  { %v27093_v46 = vpop.f32.mrb[243].mxu0  ;;  %27130 = vmatpush3.xpose.msk.msra.mxu0 %vm1094_vm2, %v20081_v41 }
0x35df   :  { %27139 = vmatprep.subr.mxu0 %v28327_v7 }
0x35e1   :  { %v19626_v21 = vpop.f32.mrb[252].mxu1  ;;  %v20227_v45 = vpop.f32.mrb[244].mxu0  ;;  %27132 = vmatmul.mubr.msk.f32.vlgmr.msra.gmra.mrb[250].mxu0 %vm1094_vm2, %v19789_v19 }
0x35e2   :  { %v19635_v31 = vsel %vm143_vm0, %v19626_v21, 0.0  ;;  %v27068_v28 = vpop.f32.mrb[253].mxu1  ;;  %v27103_v37 = vpop.f32.mrb[245].mxu0  ;;  %27140 = vmatpush3.xpose.msk.msra.mxu0 %vm1094_vm2, %v20227_v45  ;;  %27141 = vmatprep.mubr.msk.f32.mxu0 %vm28328_vm1, %v28327_v7 }
0x35e3   :  { %v31135_v30 = vadd.f32 %v19635_v31, %v19634_v9  ;;  %27149 = vmatprep.subr.mxu0 %v28327_v7 }
0x35e5   :  { %v19862_v34 = vpop.f32.mrb[254].mxu1  ;;  %v20373_v54 = vpop.f32.mrb[246].mxu0  ;;  %27142 = vmatmul.mubr.msk.f32.vlgmr.msra.gmra.mrb[252].mxu0 %vm1094_vm2, %v19935_v57  ;;  %v31164_v37 = vadd.f32 %v31135_v30, %v30709_v8 }
0x35e6   :  { %v27078_v25 = vpop.f32.mrb[255].mxu1  ;;  %v27113_v18 = vpop.f32.mrb[247].mxu0  ;;  %27150 = vmatpush3.msra.mxu0 %v20373_v54  ;;  %27151 = vmatprep.mubr.msk.f32.mxu0 %vm28328_vm1, %v28327_v7 }
0x35e7   :  { %27159 = vmatprep.subr.mxu0 %v28327_v7 }
0x35e9   :  { %v20008_v20 = vpop.f32.mrb[0].mxu1  ;;  %v31142_v15 = vpop.f32.mrb[248].mxu0 }
0x35ea   :  { %v27088_v2 = vpop.f32.mrb[1].mxu1  ;;  %v27123_v47 = vpop.f32.mrb[249].mxu0 }
0x35ed   :  { %v20154_v58 = vpop.f32.mrb[2].mxu1 }
0x35ee   :  { %v27098_v26 = vpop.f32.mrb[3].mxu1  ;;  %27135 = vmatpush3.xpose.msk.msra.mxu1 %vm1094_vm2, %v20154_v58 }
0x35ef   :  { %27144 = vmatprep.subr.mxu1 %v28327_v7 }
0x35f1   :  { %v20300_v27 = vpop.f32.mrb[4].mxu1  ;;  %27137 = vmatmul.mubr.msk.f32.vlgmr.msra.gmra.mrb[10].mxu1 %vm1094_vm2, %v19862_v34 }
0x35f2   :  { %v27108_v35 = vpop.f32.mrb[5].mxu1  ;;  %27145 = vmatpush3.xpose.msk.msra.mxu1 %vm1094_vm2, %v20300_v27  ;;  %27146 = vmatprep.mubr.msk.f32.mxu1 %vm28328_vm1, %v28327_v7 }
0x35f3   :  { %27154 = vmatprep.subr.mxu1 %v28327_v7 }
0x35f5   :  { %v20446_v29 = vpop.f32.mrb[6].mxu1  ;;  %27147 = vmatmul.mubr.msk.f32.vlgmr.msra.gmra.mrb[12].mxu1 %vm1094_vm2, %v20008_v20  ;;  %v19646_v20 = vsel %vm143_vm0, %v31164_v37, 0.0 }
0x35f6   :  { %v27118_v40 = vpop.f32.mrb[7].mxu1  ;;  %27155 = vmatpush3.msra.mxu1 %v20446_v29  ;;  %27156 = vmatprep.mubr.msk.f32.mxu1 %vm28328_vm1, %v28327_v7 }
0x35f7   :  { %27164 = vmatprep.subr.mxu1 %v28327_v7 }
0x35f9   :  { %v31155_v33 = vpop.f32.mrb[8].mxu1 }
0x35fa   :  { %v27128_v63 = vpop.f32.mrb[9].mxu1 }
0x36b4   :  { %v20668_v51 = vpop.f32.mrb[250].mxu0 }
0x36b5   :  { %v27133_v48 = vpop.f32.mrb[251].mxu0  ;;  %v20900_v10 = vsel %vm1094_vm2, %v20668_v51, -inf }
0x36b6   :  { %20901 = vmax.xlane.f32.xlu0 %v20900_v10 }
0x36b8   :  { %v20820_v50 = vpop.f32.mrb[252].mxu0 }
0x36b9   :  { %v27143_v39 = vpop.f32.mrb[253].mxu0  ;;  %v20906_v4 = vsel %vm1094_vm2, %v20820_v50, -inf }
0x36ba   :  { %20907 = vmax.xlane.f32.xlu0 %v20906_v4 }
0x36c4   :  { %v20744_v32 = vpop.f32.mrb[10].mxu1 }
0x36c5   :  { %v27138_v38 = vpop.f32.mrb[11].mxu1  ;;  %v20903_v55 = vsel %vm1094_vm2, %v20744_v32, -inf }
0x36c6   :  { %20904 = vmax.xlane.f32.xlu1 %v20903_v55 }
0x36c8   :  { %v20896_v14 = vpop.f32.mrb[12].mxu1 }
0x36c9   :  { %v27148_v16 = vpop.f32.mrb[13].mxu1  ;;  %v20909_v23 = vsel %vm1094_vm2, %v20896_v14, -inf }
0x36ca   :  { %20910 = vmax.xlane.f32.xlu1 %v20909_v23  ;;  %v24572_v16 = vld [vmem:[%s31603_s9 + $0x88] sm:$0xff] }
0x3743   :  { %v20902_v0 = vpop.xlane.xlu0 %20901 }
0x3744   :  { %v20912_v19 = vsub.f32 %v20668_v51, %v20902_v0  ;;  %v24574_v0 = vld [vmem:[%s31603_s9 + $0x98] sm:$0xff] }
0x3746   :  { %v20916_v9 = vmul.f32 1.442695, %v20912_v19 }
0x3747   :  { %v20908_v52 = vpop.xlane.xlu0 %20907 }
0x3748   :  { %28219 = vpow2.f32 %v20916_v9  ;;  %v20914_v57 = vsub.f32 %v20820_v50, %v20908_v52  ;;  %v24575_v9 = vld [vmem:[%s31603_s9 + $0xa0] sm:$0xff]  ;;  %v24576_v52 = vld [vmem:[%s31603_s9 + $0xa8] sm:$0xff] }
0x374a   :  { %v20920_v11 = vmul.f32 1.442695, %v20914_v57  ;;  %v31211_v57 = vpack.c.bf16 %v24576_v52, %v24575_v9 }
0x374c   :  { %28221 = vpow2.f32 %v20920_v11  ;;  %v24577_v11 = vld [vmem:[%s31603_s9 + $0xb0] sm:$0xff] }
0x3752   :  { %v28220_v41 = vpop.eup %28219 }
0x3753   :  { %v20905_v46 = vpop.xlane.xlu1 %20904  ;;  %v20924_v21 = vsel %vm1094_vm2, %v28220_v41, 0.0 }
0x3754   :  { %v20913_v45 = vsub.f32 %v20744_v32, %v20905_v46  ;;  %20925 = vadd.xlane.f32.xlu0 %v20924_v21 }
0x3756   :  { %v28222_v31 = vpop.eup %28221  ;;  %v20918_v28 = vmul.f32 1.442695, %v20913_v45 }
0x3757   :  { %v20911_v34 = vpop.xlane.xlu1 %20910  ;;  %v20930_v54 = vsel %vm1094_vm2, %v28222_v31, 0.0 }
0x3758   :  { %28223 = vpow2.f32 %v20918_v28  ;;  %v20915_v25 = vsub.f32 %v20896_v14, %v20911_v34  ;;  %20931 = vadd.xlane.f32.xlu0 %v20930_v54  ;;  %v24571_v14 = vld [vmem:[%s31603_s9 + $0x80] sm:$0xff]  ;;  %v24580_v34 = vld [vmem:[%s31603_s9 + $0xc8] sm:$0xff] }
0x3759   :  { %v31195_v23 = vpack.c.bf16 %v24572_v16, %v24571_v14  ;;  %v24579_v28 = vld [vmem:[%s31603_s9 + $0xc0] sm:$0xff] }
0x375a   :  { %v20922_v18 = vmul.f32 1.442695, %v20915_v25  ;;  %v31227_v54 = vpack.c.bf16 %v24580_v34, %v24579_v28 }
0x375c   :  { %28225 = vpow2.f32 %v20922_v18  ;;  %19647 = vadd.xlane.f32.xlu0 %v19646_v20  ;;  %v24581_v20 = vld [vmem:[%s31603_s9 + $0xd0] sm:$0xff] }
0x3762   :  { %v28224_v2 = vpop.eup %28223 }
0x3763   :  { %v20927_v47 = vsel %vm1094_vm2, %v28224_v2, 0.0 }
0x3764   :  { %20928 = vadd.xlane.f32.xlu1 %v20927_v47 }
0x3766   :  { %v28226_v58 = vpop.eup %28225 }
0x3767   :  { %v20933_v8 = vsel %vm1094_vm2, %v28226_v58, 0.0 }
0x3768   :  { %20934 = vadd.xlane.f32.xlu1 %v20933_v8 }
0x37e1   :  { %v20926_v30 = vpop.xlane.xlu0 %20925 }
0x37e2   :  { %28227 = vrcp.f32 %v20926_v30 }
0x37e5   :  { %v20932_v26 = vpop.xlane.xlu0 %20931 }
0x37e6   :  { %28229 = vrcp.f32 %v20932_v26 }
0x37e9   :  { %v19648_v27 = vpop.xlane.xlu0 %19647 }
0x37ea   :  { %v19650_v35 = vmul.f32 0.03125, %v19648_v27  ;;  %v24583_v27 = vld [vmem:[%s31603_s9 + $0xe0] sm:$0xff] }
0x37ec   :  { %v28228_v29 = vpop.eup %28227  ;;  %v31172_v40 = vsub.f32 %v31164_v37, %v19650_v35  ;;  %v24584_v35 = vld [vmem:[%s31603_s9 + $0xe8] sm:$0xff] }
0x37ed   :  { %v20937_v63 = vmul.f32 %v28228_v29, %v28220_v41  ;;  %v24578_v41 = vld [vmem:[%s31603_s9 + $0xb8] sm:$0xff]  ;;  %v31247_v29 = vpack.c.bf16 %v24584_v35, %v24583_v27 }
0x37ee   :  { %v19654_v51 = vmul.f32 %v31172_v40, %v31172_v40  ;;  %v31219_v46 = vpack.c.bf16 %v24578_v41, %v24577_v11 }
0x37ef   :  { %27152 = vmatmul.mubr.msk.f32.vlgmr.msra.gmra.mrb[254].mxu0 %vm1094_vm2, %v20937_v63 }
0x37f0   :  { %v28230_v48 = vpop.eup %28229  ;;  %27160 = vmatpush3.msra.mxu0 %v31142_v15  ;;  %v19658_v10 = vsel %vm143_vm0, %v19654_v51, 0.0  ;;  %27161 = vmatprep.mubr.msk.f32.mxu0 %vm28328_vm1, %v28327_v7 }
0x37f1   :  { %v20941_v50 = vmul.f32 %v28230_v48, %v28222_v31  ;;  %19659 = vadd.xlane.f32.xlu1 %v19658_v10  ;;  %v20929_v39 = vpop.xlane.xlu1 %20928  ;;  %27834 = vmatprep.subr.bf16.mxu0 %v28329_v59  ;;  %v24586_v10 = vld [vmem:[%s31603_s9 + $0xf8] sm:$0xff] }
0x37f2   :  { %28231 = vrcp.f32 %v20929_v39 }
0x37f3   :  { %27162 = vmatmul.mubr.msk.f32.vlgmr.msra.gmra.mrb[0].mxu0 %vm1094_vm2, %v20941_v50 }
0x37f4   :  { %27177 = vmatprep.mubr.msk.f32.mxu0 %vm28328_vm1, %v28327_v7 }
0x37f5   :  { %v20935_v4 = vpop.xlane.xlu1 %20934 }
0x37f6   :  { %28233 = vrcp.f32 %v20935_v4 }
0x37f7   :  { %27837 = vmatpush3.bf16.xpose.msk.msra.mxu0 %vm28700_vm3, %v31195_v23 }
0x37f8   :  { %27838 = vmatprep.subr.bf16.mxu0 %v28329_v59 }
0x37fc   :  { %v28232_v15 = vpop.eup %28231 }
0x37fd   :  { %v20939_v32 = vmul.f32 %v28232_v15, %v28224_v2  ;;  %v24582_v2 = vld [vmem:[%s31603_s9 + $0xd8] sm:$0xff] }
0x37fe   :  { %v31238_v8 = vpack.c.bf16 %v24582_v2, %v24581_v20 }
0x37ff   :  { %27157 = vmatmul.mubr.msk.f32.vlgmr.msra.gmra.mrb[14].mxu1 %vm1094_vm2, %v20939_v32 }
0x3800   :  { %v28234_v38 = vpop.eup %28233  ;;  %27165 = vmatpush3.msra.mxu1 %v31155_v33  ;;  %27166 = vmatprep.mubr.msk.f32.mxu1 %vm28328_vm1, %v28327_v7  ;;  %v24573_v33 = vld [vmem:[%s31603_s9 + $0x90] sm:$0xff] }
0x3801   :  { %v20943_v55 = vmul.f32 %v28234_v38, %v28226_v58  ;;  %27842 = vmatprep.subr.bf16.mxu1 %v28329_v59  ;;  %v31203_v19 = vpack.c.bf16 %v24574_v0, %v24573_v33 }
0x3803   :  { %27167 = vmatmul.mubr.msk.f32.vlgmr.msra.gmra.mrb[16].mxu1 %vm1094_vm2, %v20943_v55  ;;  %27841 = vmatpush3.bf16.xpose.msk.msra.mxu0 %vm28700_vm3, %v31203_v19 }
0x3804   :  { %27188 = vmatprep.mubr.msk.f32.mxu1 %vm28328_vm1, %v28327_v7  ;;  %27850 = vmatprep.subr.bf16.mxu0 %v28329_v59 }
0x3807   :  { %27845 = vmatpush3.bf16.xpose.msk.msra.mxu1 %vm28700_vm3, %v31211_v57 }
0x3808   :  { %27846 = vmatprep.subr.bf16.mxu1 %v28329_v59 }
0x380f   :  { %27849 = vmatpush3.bf16.xpose.msk.msra.mxu1 %vm28700_vm3, %v31219_v46 }
0x3810   :  { %27858 = vmatprep.subr.bf16.mxu1 %v28329_v59 }
0x387e   :  { %v19660_v21 = vpop.xlane.xlu1 %19659 }
0x387f   :  { %v19662_v45 = vmul.f32 0.03125, %v19660_v21 }
0x3881   :  { %v19664_v31 = vadd.f32 1e-05, %v19662_v45 }
0x3883   :  { %28235 = vrsqrt.f32 %v19664_v31 }
0x388d   :  { %v28236_v30 = vpop.eup %28235 }
0x388e   :  { %v19668_v26 = vmul.f32 %v28236_v30, %v31172_v40 }
0x3890   :  { %v19676_v63 = vmul.f32 %v30985_v13, %v19668_v26  ;;  %v24585_v13 = vld [vmem:[%s31603_s9 + $0xf0] sm:$0xff] }
0x3892   :  { %v19684_v40 = vadd.f32 %v30992_v6, %v19676_v63 }
0x38c2   :  { %v21013_v25 = vpop.f32.mrb[254].mxu0 }
0x38c3   :  { %v27153_v18 = vpop.f32.mrb[255].mxu0  ;;  %27178 = vmatmul.mubr.msk.f32.vlgmr.msra.gmra.mrb[2].mxu0 %vm1094_vm2, %v21013_v25 }
0x38c4   :  { %27853 = vmatpush3.bf16.xpose.msk.msra.mxu0 %vm28700_vm3, %v31227_v54  ;;  %27199 = vmatprep.mubr.msk.f32.mxu0 %vm28328_vm1, %v28327_v7 }
0x38c5   :  { %27854 = vmatprep.subr.bf16.mxu0 %v28329_v59 }
0x38c6   :  { %v21159_v47 = vpop.f32.mrb[0].mxu0 }
0x38c7   :  { %v27163_v58 = vpop.f32.mrb[1].mxu0 }
0x38cc   :  { %27857 = vmatpush3.bf16.xpose.msk.msra.mxu0 %vm28700_vm3, %v31238_v8 }
0x38cd   :  { %27213 = vmatprep.subr.mxu0 %v28327_v7 }
0x38d2   :  { %v21086_v51 = vpop.f32.mrb[14].mxu1 }
0x38d3   :  { %27200 = vmatmul.mubr.msk.f32.vlgmr.msra.gmra.mrb[4].mxu0 %vm1094_vm2, %v21159_v47  ;;  %v27158_v48 = vpop.f32.mrb[15].mxu1  ;;  %27189 = vmatmul.mubr.msk.f32.vlgmr.msra.gmra.mrb[18].mxu1 %vm1094_vm2, %v21086_v51 }
0x38d4   :  { %27861 = vmatpush3.bf16.xpose.msk.msra.mxu1 %vm28700_vm3, %v31247_v29  ;;  %27214 = vmatpush3.xpose.msk.msra.mxu0 %vm143_vm0, %v30988_v60  ;;  %v31271_v60 = vpack.c.bf16 %v24586_v10, %v24585_v13 }
0x38d5   :  { %27215 = vmatprep.mubr.msk.f32.mxu0 %vm28328_vm1, %v28327_v7  ;;  %27223 = vmatprep.subr.mxu0 %v28327_v7 }
0x38d6   :  { %v21232_v50 = vpop.f32.mrb[16].mxu1  ;;  %27862 = vmatprep.subr.bf16.mxu1 %v28329_v59  ;;  %27210 = vmatprep.mubr.msk.f32.mxu1 %vm28328_vm1, %v28327_v7 }
0x38d7   :  { %27216 = vmatmul.mubr.msk.f32.vlgmr.msra.gmra.mrb[6].mxu0 %vm143_vm0, %v19684_v40  ;;  %v27168_v39 = vpop.f32.mrb[17].mxu1 }
0x38d8   :  { %27224 = vmatpush3.xpose.msk.msra.mxu0 %vm143_vm0, %v31006_v12  ;;  %27225 = vmatprep.mubr.msk.f32.mxu0 %vm28328_vm1, %v28327_v7 }
0x38d9   :  { %27233 = vmatprep.subr.mxu0 %v28327_v7 }
0x38db   :  { %27226 = vmatmul.mubr.msk.f32.vlgmr.msra.gmra.mrb[8].mxu0 %vm143_vm0, %v19684_v40 }
0x38dc   :  { %27865 = vmatpush3.bf16.xpose.msk.msra.mxu1 %vm28700_vm3, %v31271_v60  ;;  %27234 = vmatpush3.xpose.msk.msra.mxu0 %vm143_vm0, %v31018_v5 }
0x38dd   :  { %27235 = vmatprep.mubr.msk.f32.mxu0 %vm28328_vm1, %v28327_v7  ;;  %27243 = vmatprep.subr.mxu0 %v28327_v7 }
0x38de   :  { %27218 = vmatprep.subr.mxu1 %v28327_v7 }
0x38df   :  { %27236 = vmatmul.mubr.msk.f32.vlgmr.msra.gmra.mrb[10].mxu0 %vm143_vm0, %v30306_v22 }
0x38e0   :  { %27244 = vmatpush3.xpose.msk.msra.mxu0 %vm143_vm0, %v31030_v49  ;;  %27245 = vmatprep.mubr.msk.f32.mxu0 %vm28328_vm1, %v28327_v7 }
0x38e1   :  { %27253 = vmatprep.subr.mxu0 %v28327_v7 }
0x38e3   :  { %27211 = vmatmul.mubr.msk.f32.vlgmr.msra.gmra.mrb[20].mxu1 %vm1094_vm2, %v21232_v50  ;;  %27246 = vmatmul.mubr.msk.f32.vlgmr.msra.gmra.mrb[12].mxu0 %vm143_vm0, %v30306_v22 }
0x38e4   :  { %27219 = vmatpush3.xpose.msk.msra.mxu1 %vm143_vm0, %v31041_v24  ;;  %27254 = vmatpush3.xpose.msk.msra.mxu0 %vm143_vm0, %v31044_v17 }
0x38e5   :  { %27220 = vmatprep.mubr.msk.f32.mxu1 %vm28328_vm1, %v28327_v7  ;;  %27255 = vmatprep.mubr.msk.f32.mxu0 %vm28328_vm1, %v28327_v7 }
0x38e6   :  { %27228 = vmatprep.subr.mxu1 %v28327_v7  ;;  %27263 = vmatprep.subr.mxu0 %v28327_v7 }
0x38e7   :  { %27221 = vmatmul.mubr.msk.f32.vlgmr.msra.gmra.mrb[22].mxu1 %vm143_vm0, %v19684_v40  ;;  %27256 = vmatmul.mubr.msk.f32.vlgmr.msra.gmra.mrb[14].mxu0 %vm143_vm0, %v30306_v22 }
0x38e8   :  { %27229 = vmatpush3.xpose.msk.msra.mxu1 %vm143_vm0, %v31058_v61  ;;  %27264 = vmatpush3.xpose.msk.msra.mxu0 %vm143_vm0, %v31061_v62 }
0x38e9   :  { %27230 = vmatprep.mubr.msk.f32.mxu1 %vm28328_vm1, %v28327_v7  ;;  %27265 = vmatprep.mubr.msk.f32.mxu0 %vm28328_vm1, %v28327_v7 }
0x38ea   :  { %27238 = vmatprep.subr.mxu1 %v28327_v7  ;;  %27273 = vmatprep.subr.mxu0 %v28327_v7 }
0x38eb   :  { %27231 = vmatmul.mubr.msk.f32.vlgmr.msra.gmra.mrb[24].mxu1 %vm143_vm0, %v19684_v40  ;;  %27266 = vmatmul.mubr.msk.f32.vlgmr.msra.gmra.mrb[16].mxu0 %vm143_vm0, %v30306_v22 }
0x38ec   :  { %27239 = vmatpush3.xpose.msk.msra.mxu1 %vm143_vm0, %v31077_v44  ;;  %27240 = vmatprep.mubr.msk.f32.mxu1 %vm28328_vm1, %v28327_v7 }
0x38ed   :  { %27248 = vmatprep.subr.mxu1 %v28327_v7  ;;  %27275 = vmatprep.mubr.msk.f32.mxu0 %vm28328_vm1, %v28327_v7 }
0x38ef   :  { %27241 = vmatmul.mubr.msk.f32.vlgmr.msra.gmra.mrb[26].mxu1 %vm143_vm0, %v30306_v22 }
0x38f0   :  { %27249 = vmatpush3.xpose.msk.msra.mxu1 %vm143_vm0, %v31090_v56  ;;  %27250 = vmatprep.mubr.msk.f32.mxu1 %vm28328_vm1, %v28327_v7 }
0x38f1   :  { %27258 = vmatprep.subr.mxu1 %v28327_v7 }
0x38f3   :  { %27251 = vmatmul.mubr.msk.f32.vlgmr.msra.gmra.mrb[28].mxu1 %vm143_vm0, %v30306_v22 }
0x38f4   :  { %27259 = vmatpush3.xpose.msk.msra.mxu1 %vm143_vm0, %v31102_v1  ;;  %27260 = vmatprep.mubr.msk.f32.mxu1 %vm28328_vm1, %v28327_v7 }
0x38f5   :  { %27268 = vmatprep.subr.mxu1 %v28327_v7 }
0x38f7   :  { %27261 = vmatmul.mubr.msk.f32.vlgmr.msra.gmra.mrb[30].mxu1 %vm143_vm0, %v30306_v22 }
0x38f8   :  { %27269 = vmatpush3.xpose.msk.msra.mxu1 %vm143_vm0, %v31112_v3  ;;  %27270 = vmatprep.mubr.msk.f32.mxu1 %vm28328_vm1, %v28327_v7 }
0x38f9   :  { %27278 = vmatprep.subr.mxu1 %v28327_v7 }
0x38fb   :  { %27271 = vmatmul.mubr.msk.f32.vlgmr.msra.gmra.mrb[32].mxu1 %vm143_vm0, %v30306_v22 }
0x38fc   :  { %27280 = vmatprep.mubr.msk.f32.mxu1 %vm28328_vm1, %v28327_v7 }
0x3996   :  { %v21317_v6 = vpop.f32.mrb[2].mxu0 }
0x3997   :  { %v27179_v12 = vpop.f32.mrb[3].mxu0  ;;  %v21576_v24 = vsel %vm143_vm0, %v21317_v6, 0.0 }
0x39a6   :  { %v21487_v5 = vpop.f32.mrb[4].mxu0  ;;  %v21402_v49 = vpop.f32.mrb[18].mxu1 }
0x39a7   :  { %v21577_v17 = vsel %vm143_vm0, %v21402_v49, 0.0  ;;  %v27201_v61 = vpop.f32.mrb[5].mxu0  ;;  %v27190_v62 = vpop.f32.mrb[19].mxu1  ;;  %v21579_v56 = vsel %vm143_vm0, %v21487_v5, 0.0 }
0x39a8   :  { %v21578_v44 = vadd.f32 %v21577_v17, %v21576_v24 }
0x39aa   :  { %v21652_v1 = vpop.f32.mrb[6].mxu0  ;;  %v21580_v3 = vadd.f32 %v21579_v56, %v21578_v44 }
0x39ab   :  { %v27217_v4 = vpop.f32.mrb[7].mxu0 }
0x39ae   :  { %v21792_v22 = vpop.f32.mrb[8].mxu0 }
0x39af   :  { %v27227_v15 = vpop.f32.mrb[9].mxu0 }
0x39b2   :  { %v21932_v32 = vpop.f32.mrb[10].mxu0 }
0x39b3   :  { %v27237_v38 = vpop.f32.mrb[11].mxu0  ;;  %27274 = vmatpush3.xpose.msk.msra.mxu0 %vm1094_vm2, %v21932_v32 }
0x39b4   :  { %27283 = vmatprep.subr.mxu0 %v28327_v7 }
0x39b6   :  { %v21572_v55 = vpop.f32.mrb[20].mxu1  ;;  %v22072_v14 = vpop.f32.mrb[12].mxu0  ;;  %27276 = vmatmul.mubr.msk.f32.vlgmr.msra.gmra.mrb[18].mxu0 %vm1094_vm2, %v21652_v1 }
0x39b7   :  { %v21581_v16 = vsel %vm143_vm0, %v21572_v55, 0.0  ;;  %v27212_v33 = vpop.f32.mrb[21].mxu1  ;;  %v27247_v0 = vpop.f32.mrb[13].mxu0  ;;  %27284 = vmatpush3.xpose.msk.msra.mxu0 %vm1094_vm2, %v22072_v14  ;;  %27285 = vmatprep.mubr.msk.f32.mxu0 %vm28328_vm1, %v28327_v7 }
0x39b8   :  { %v31362_v9 = vadd.f32 %v21581_v16, %v21580_v3  ;;  %27293 = vmatprep.subr.mxu0 %v28327_v7 }
0x39ba   :  { %v21722_v52 = vpop.f32.mrb[22].mxu1  ;;  %v22212_v11 = vpop.f32.mrb[14].mxu0  ;;  %27286 = vmatmul.mubr.msk.f32.vlgmr.msra.gmra.mrb[20].mxu0 %vm1094_vm2, %v21792_v22  ;;  %v31391_v15 = vadd.f32 %v31362_v9, %v30932_v43 }
0x39bb   :  { %v27222_v41 = vpop.f32.mrb[23].mxu1  ;;  %v27257_v21 = vpop.f32.mrb[15].mxu0  ;;  %27294 = vmatpush3.msra.mxu0 %v22212_v11  ;;  %27295 = vmatprep.mubr.msk.f32.mxu0 %vm28328_vm1, %v28327_v7 }
0x39bc   :  { %27303 = vmatprep.subr.mxu0 %v28327_v7  ;;  %v23371_v16 = vsel %vm143_vm0, %v31391_v15, 0.0 }
0x39be   :  { %v21862_v45 = vpop.f32.mrb[24].mxu1  ;;  %v31369_v31 = vpop.f32.mrb[16].mxu0 }
0x39bf   :  { %v27232_v28 = vpop.f32.mrb[25].mxu1  ;;  %v27267_v34 = vpop.f32.mrb[17].mxu0 }
0x39c2   :  { %v22002_v25 = vpop.f32.mrb[26].mxu1 }
0x39c3   :  { %v27242_v18 = vpop.f32.mrb[27].mxu1  ;;  %27279 = vmatpush3.xpose.msk.msra.mxu1 %vm1094_vm2, %v22002_v25 }
0x39c4   :  { %27288 = vmatprep.subr.mxu1 %v28327_v7 }
0x39c6   :  { %v22142_v20 = vpop.f32.mrb[28].mxu1  ;;  %27281 = vmatmul.mubr.msk.f32.vlgmr.msra.gmra.mrb[34].mxu1 %vm1094_vm2, %v21722_v52 }
0x39c7   :  { %v27252_v2 = vpop.f32.mrb[29].mxu1  ;;  %27289 = vmatpush3.xpose.msk.msra.mxu1 %vm1094_vm2, %v22142_v20  ;;  %27290 = vmatprep.mubr.msk.f32.mxu1 %vm28328_vm1, %v28327_v7 }
0x39c8   :  { %27298 = vmatprep.subr.mxu1 %v28327_v7 }
0x39ca   :  { %v22282_v47 = vpop.f32.mrb[30].mxu1  ;;  %27291 = vmatmul.mubr.msk.f32.vlgmr.msra.gmra.mrb[36].mxu1 %vm1094_vm2, %v21862_v45 }
0x39cb   :  { %v27262_v58 = vpop.f32.mrb[31].mxu1  ;;  %27299 = vmatpush3.msra.mxu1 %v22282_v47  ;;  %27300 = vmatprep.mubr.msk.f32.mxu1 %vm28328_vm1, %v28327_v7 }
0x39cc   :  { %27308 = vmatprep.subr.mxu1 %v28327_v7 }
0x39ce   :  { %v31382_v30 = vpop.f32.mrb[32].mxu1 }
0x39cf   :  { %v27272_v26 = vpop.f32.mrb[33].mxu1 }
0x3a89   :  { %v22498_v27 = vpop.f32.mrb[18].mxu0 }
0x3a8a   :  { %v27277_v35 = vpop.f32.mrb[19].mxu0  ;;  %v22730_v63 = vsel %vm1094_vm2, %v22498_v27, -inf }
0x3a8b   :  { %22731 = vmax.xlane.f32.xlu0 %v22730_v63 }
0x3a8d   :  { %v22650_v51 = vpop.f32.mrb[20].mxu0 }
0x3a8e   :  { %v27287_v48 = vpop.f32.mrb[21].mxu0  ;;  %v22736_v40 = vsel %vm1094_vm2, %v22650_v51, -inf }
0x3a8f   :  { %22737 = vmax.xlane.f32.xlu0 %v22736_v40 }
0x3a99   :  { %v22574_v13 = vpop.f32.mrb[34].mxu1 }
0x3a9a   :  { %v27282_v10 = vpop.f32.mrb[35].mxu1  ;;  %v22733_v50 = vsel %vm1094_vm2, %v22574_v13, -inf }
0x3a9b   :  { %22734 = vmax.xlane.f32.xlu1 %v22733_v50  ;;  %v31447_v50 = vld [vmem:[%s31605_s7 + $0x1] ss:$0 sm:$0xff] }
0x3a9d   :  { %v22726_v39 = vpop.f32.mrb[36].mxu1 }
0x3a9e   :  { %v27292_v6 = vpop.f32.mrb[37].mxu1  ;;  %v22739_v12 = vsel %vm1094_vm2, %v22726_v39, -inf }
0x3a9f   :  { %22740 = vmax.xlane.f32.xlu1 %v22739_v12 }
0x3b18   :  { %v22732_v5 = vpop.xlane.xlu0 %22731 }
0x3b19   :  { %v22742_v49 = vsub.f32 %v22498_v27, %v22732_v5 }
0x3b1b   :  { %v22746_v24 = vmul.f32 1.442695, %v22742_v49 }
0x3b1c   :  { %v22738_v17 = vpop.xlane.xlu0 %22737 }
0x3b1d   :  { %28237 = vpow2.f32 %v22746_v24  ;;  %v22744_v61 = vsub.f32 %v22650_v51, %v22738_v17 }
0x3b1f   :  { %v22750_v62 = vmul.f32 1.442695, %v22744_v61 }
0x3b21   :  { %28239 = vpow2.f32 %v22750_v62 }
0x3b27   :  { %v28238_v44 = vpop.eup %28237 }
0x3b28   :  { %v22735_v56 = vpop.xlane.xlu1 %22734  ;;  %v22754_v1 = vsel %vm1094_vm2, %v28238_v44, 0.0 }
0x3b29   :  { %v22743_v3 = vsub.f32 %v22574_v13, %v22735_v56  ;;  %22755 = vadd.xlane.f32.xlu0 %v22754_v1  ;;  %v31440_v13 = vld [vmem:[%s31604_s24 + $0x1] ss:$0 sm:$0xff] }
0x3b2b   :  { %v28240_v4 = vpop.eup %28239  ;;  %v22748_v22 = vmul.f32 1.442695, %v22743_v3 }
0x3b2c   :  { %v22741_v32 = vpop.xlane.xlu1 %22740  ;;  %v22760_v38 = vsel %vm1094_vm2, %v28240_v4, 0.0 }
0x3b2d   :  { %28241 = vpow2.f32 %v22748_v22  ;;  %v22745_v55 = vsub.f32 %v22726_v39, %v22741_v32  ;;  %22761 = vadd.xlane.f32.xlu0 %v22760_v38  ;;  %v24703_v32 = vld [vmem:[%s31606_s10 + $0x40] sm:$0xff]  ;;  %v24704_v38 = vld [vmem:[%s31606_s10 + $0x48] sm:$0xff] }
0x3b2f   :  { %v22752_v14 = vmul.f32 1.442695, %v22745_v55  ;;  %v24705_v55 = vld [vmem:[%s31606_s10 + $0x50] sm:$0xff] }
0x3b31   :  { %28243 = vpow2.f32 %v22752_v14  ;;  %23372 = vadd.xlane.f32.xlu0 %v23371_v16  ;;  %v27898_v14 = vpack.c.bf16 %v24704_v38, %v24703_v32  ;;  %v24706_v16 = vld [vmem:[%s31606_s10 + $0x58] sm:$0xff]  ;;  %v23689_v38 = vld [vmem:[%s28501_s27 + $0x20] sm:$0xff] }
0x3b37   :  { %v28242_v33 = vpop.eup %28241 }
0x3b38   :  { %v22757_v0 = vsel %vm1094_vm2, %v28242_v33, 0.0 }
0x3b39   :  { %22758 = vadd.xlane.f32.xlu1 %v22757_v0 }
0x3b3b   :  { %v28244_v52 = vpop.eup %28243 }
0x3b3c   :  { %v22763_v43 = vsel %vm1094_vm2, %v28244_v52, 0.0 }
0x3b3d   :  { %22764 = vadd.xlane.f32.xlu1 %v22763_v43 }
0x3bb6   :  { %v22756_v9 = vpop.xlane.xlu0 %22755 }
0x3bb7   :  { %28245 = vrcp.f32 %v22756_v9 }
0x3bba   :  { %v22762_v11 = vpop.xlane.xlu0 %22761 }
0x3bbb   :  { %28247 = vrcp.f32 %v22762_v11  ;;  %v24707_v11 = vld [vmem:[%s31606_s10 + $0x60] sm:$0xff] }
0x3bbe   :  { %v23373_v41 = vpop.xlane.xlu0 %23372 }
0x3bbf   :  { %v23377_v21 = vmul.f32 0.03125, %v23373_v41  ;;  %v24708_v41 = vld [vmem:[%s31606_s10 + $0x68] sm:$0xff] }
0x3bc1   :  { %v28246_v45 = vpop.eup %28245  ;;  %v23379_v28 = vsub.f32 %v31391_v15, %v23377_v21  ;;  %v27910_v21 = vpack.c.bf16 %v24708_v41, %v24707_v11 }
0x3bc2   :  { %v22767_v34 = vmul.f32 %v28246_v45, %v28238_v44  ;;  %v24709_v45 = vld [vmem:[%s31606_s10 + $0x70] sm:$0xff] }
0x3bc3   :  { %v23381_v25 = vmul.f32 %v23379_v28, %v23379_v28 }
0x3bc4   :  { %27296 = vmatmul.mubr.msk.f32.vlgmr.msra.gmra.mrb[22].mxu0 %vm1094_vm2, %v22767_v34 }
0x3bc5   :  { %v28248_v18 = vpop.eup %28247  ;;  %27304 = vmatpush3.msra.mxu0 %v31369_v31  ;;  %v23383_v20 = vsel %vm143_vm0, %v23381_v25, 0.0  ;;  %27305 = vmatprep.mubr.msk.f32.mxu0 %vm28328_vm1, %v28327_v7 }
0x3bc6   :  { %v22771_v2 = vmul.f32 %v28248_v18, %v28240_v4  ;;  %23384 = vadd.xlane.f32.xlu0 %v23383_v20  ;;  %v22759_v47 = vpop.xlane.xlu1 %22758  ;;  %27866 = vmatprep.subr.bf16.mxu0 %v28329_v59 }
0x3bc7   :  { %28249 = vrcp.f32 %v22759_v47 }
0x3bc8   :  { %27306 = vmatmul.mubr.msk.f32.vlgmr.msra.gmra.mrb[24].mxu0 %vm1094_vm2, %v22771_v2 }
0x3bc9   :  { %27321 = vmatprep.mubr.msk.f32.mxu0 %vm28328_vm1, %v28327_v7 }
0x3bca   :  { %v22765_v58 = vpop.xlane.xlu1 %22764 }
0x3bcb   :  { %28251 = vrcp.f32 %v22765_v58 }
0x3bcc   :  { %27869 = vmatpush3.bf16.xpose.msk.msra.mxu0 %vm28700_vm3, %v31195_v23 }
0x3bcd   :  { %27870 = vmatprep.subr.bf16.mxu0 %v28329_v59 }
0x3bd1   :  { %v28250_v31 = vpop.eup %28249 }
0x3bd2   :  { %v22769_v26 = vmul.f32 %v28250_v31, %v28242_v33  ;;  %v27904_v33 = vpack.c.bf16 %v24706_v16, %v24705_v55  ;;  %v23690_v55 = vld [vmem:[%s28501_s27 + $0x28] sm:$0xff]  ;;  %v23691_v16 = vld [vmem:[%s28501_s27 + $0x30] sm:$0xff] }
0x3bd4   :  { %27301 = vmatmul.mubr.msk.f32.vlgmr.msra.gmra.mrb[38].mxu1 %vm1094_vm2, %v22769_v26  ;;  %27873 = vmatpush3.bf16.xpose.msk.msra.mxu0 %vm28700_vm3, %v31203_v19  ;;  %v24723_v26 = vld [vmem:[%s31607_s11 + $0x20] sm:$0xff] }
0x3bd5   :  { %v28252_v27 = vpop.eup %28251  ;;  %27309 = vmatpush3.msra.mxu1 %v31382_v30  ;;  %27310 = vmatprep.mubr.msk.f32.mxu1 %vm28328_vm1, %v28327_v7 }
0x3bd6   :  { %v22773_v35 = vmul.f32 %v28252_v27, %v28244_v52  ;;  %27874 = vmatprep.subr.bf16.mxu1 %v28329_v59  ;;  %27882 = vmatprep.subr.bf16.mxu0 %v28329_v59  ;;  %v24724_v27 = vld [vmem:[%s31607_s11 + $0x28] sm:$0xff] }
0x3bd8   :  { %27311 = vmatmul.mubr.msk.f32.vlgmr.msra.gmra.mrb[40].mxu1 %vm1094_vm2, %v22773_v35  ;;  %v27922_v35 = vpack.c.bf16 %v24724_v27, %v24723_v26 }
0x3bd9   :  { %27332 = vmatprep.mubr.msk.f32.mxu1 %vm28328_vm1, %v28327_v7 }
0x3bdc   :  { %27877 = vmatpush3.bf16.xpose.msk.msra.mxu1 %vm28700_vm3, %v31211_v57 }
0x3bdd   :  { %27878 = vmatprep.subr.bf16.mxu1 %v28329_v59 }
0x3be4   :  { %27881 = vmatpush3.bf16.xpose.msk.msra.mxu1 %vm28700_vm3, %v31219_v46 }
0x3be5   :  { %27890 = vmatprep.subr.bf16.mxu1 %v28329_v59 }
0x3c53   :  { %v23385_v23 = vpop.xlane.xlu0 %23384 }
0x3c54   :  { %v23389_v19 = vmul.f32 0.03125, %v23385_v23  ;;  %v24725_v23 = vld [vmem:[%s31607_s11 + $0x30] sm:$0xff] }
0x3c56   :  { %v23391_v30 = vadd.f32 1e-05, %v23389_v19  ;;  %v24726_v19 = vld [vmem:[%s31607_s11 + $0x38] sm:$0xff] }
0x3c58   :  { %28253 = vrsqrt.f32 %v23391_v30  ;;  %v27928_v30 = vpack.c.bf16 %v24726_v19, %v24725_v23 }
0x3c62   :  { %v28254_v46 = vpop.eup %28253 }
0x3c63   :  { %v23395_v40 = vmul.f32 %v28254_v46, %v23379_v28  ;;  %v24710_v28 = vld [vmem:[%s31606_s10 + $0x78] sm:$0xff] }
0x3c64   :  { %v27916_v34 = vpack.c.bf16 %v24710_v28, %v24709_v45  ;;  %v24733_v45 = vld [vmem:[%s28491_s6] ss:$0 sm:$0xff] }
0x3c65   :  { %v23403_v10 = vmul.f32 %v31440_v13, %v23395_v40 }
0x3c67   :  { %v23411_v39 = vadd.f32 %v31447_v50, %v23403_v10 }
0x3c97   :  { %v22843_v63 = vpop.f32.mrb[22].mxu0 }
0x3c98   :  { %v27297_v51 = vpop.f32.mrb[23].mxu0  ;;  %27322 = vmatmul.mubr.msk.f32.vlgmr.msra.gmra.mrb[26].mxu0 %vm1094_vm2, %v22843_v63 }
0x3c99   :  { %27885 = vmatpush3.bf16.xpose.msk.msra.mxu0 %vm28700_vm3, %v31227_v54  ;;  %27343 = vmatprep.mubr.msk.f32.mxu0 %vm28328_vm1, %v28327_v7 }
0x3c9a   :  { %27886 = vmatprep.subr.bf16.mxu0 %v28329_v59 }
0x3c9b   :  { %v22989_v57 = vpop.f32.mrb[24].mxu0 }
0x3c9c   :  { %v27307_v48 = vpop.f32.mrb[25].mxu0 }
0x3ca1   :  { %27889 = vmatpush3.bf16.xpose.msk.msra.mxu0 %vm28700_vm3, %v31238_v8 }
0x3ca2   :  { %27900 = vmatprep.subr.msk.bf16.mxu0 %vm28973_vm4, %v27898_v14 }
0x3ca7   :  { %v22916_v54 = vpop.f32.mrb[38].mxu1 }
0x3ca8   :  { %27344 = vmatmul.mubr.msk.f32.vlgmr.msra.gmra.mrb[28].mxu0 %vm1094_vm2, %v22989_v57  ;;  %v27302_v6 = vpop.f32.mrb[39].mxu1  ;;  %27333 = vmatmul.mubr.msk.f32.vlgmr.msra.gmra.mrb[42].mxu1 %vm1094_vm2, %v22916_v54 }
0x3ca9   :  { %27893 = vmatpush3.bf16.xpose.msk.msra.mxu1 %vm28700_vm3, %v31247_v29  ;;  %27373 = vmatprep.mubr.msk.f32.mxu0 %vm143_vm0, %v23411_v39 }
0x3caa   :  { %27894 = vmatprep.subr.bf16.mxu1 %v28329_v59  ;;  %27354 = vmatprep.mubr.msk.f32.mxu1 %vm28328_vm1, %v28327_v7 }
0x3cab   :  { %v23062_v8 = vpop.f32.mrb[40].mxu1  ;;  %27903 = vmatpush3.bf16.xpose.msk.msra.mxu0 %vm28973_vm4, %v27898_v14  ;;  %v27946_v14 = vpack.c.bf16 %v23690_v55, %v23689_v38 }
0x3cac   :  { %v27312_v12 = vpop.f32.mrb[41].mxu1  ;;  %27906 = vmatprep.subr.msk.bf16.mxu0 %vm28973_vm4, %v27904_v33 }
0x3cb1   :  { %27897 = vmatpush3.bf16.xpose.msk.msra.mxu1 %vm28700_vm3, %v31271_v60 }
0x3cb2   :  { %27924 = vmatprep.subr.msk.bf16.mxu1 %vm29009_vm6, %v27922_v35 }
0x3cb3   :  { %27909 = vmatpush3.bf16.xpose.msk.msra.mxu0 %vm28973_vm4, %v27904_v33  ;;  %v23692_v33 = vld [vmem:[%s28501_s27 + $0x38] sm:$0xff] }
0x3cb4   :  { %27912 = vmatprep.subr.msk.bf16.mxu0 %vm28973_vm4, %v27910_v21 }
0x3cb8   :  { %27355 = vmatmul.mubr.msk.f32.vlgmr.msra.gmra.mrb[44].mxu1 %vm1094_vm2, %v23062_v8 }
0x3cb9   :  { %27927 = vmatpush3.bf16.xpose.msk.msra.mxu1 %vm29009_vm6, %v27922_v35 }
0x3cba   :  { %27930 = vmatprep.subr.msk.bf16.mxu1 %vm29009_vm6, %v27928_v30 }
0x3cbb   :  { %27915 = vmatpush3.bf16.xpose.msk.msra.mxu0 %vm28973_vm4, %v27910_v21 }
0x3cbc   :  { %27918 = vmatprep.subr.msk.bf16.mxu0 %vm28973_vm4, %v27916_v34 }
0x3cc1   :  { %27933 = vmatpush3.bf16.xpose.msk.msra.mxu1 %vm29009_vm6, %v27928_v30 }
0x3cc3   :  { %27921 = vmatpush3.bf16.xpose.msk.msra.mxu0 %vm28973_vm4, %v27916_v34 }
0x3d6b   :  { %v23135_v5 = vpop.f32.mrb[26].mxu0 }
0x3d6c   :  { %v27323_v49 = vpop.f32.mrb[27].mxu0  ;;  %v23358_v17 = vsel %vm143_vm0, %v23135_v5, 0.0 }
0x3d7b   :  { %v23281_v24 = vpop.f32.mrb[28].mxu0  ;;  %v23208_v29 = vpop.f32.mrb[42].mxu1 }
0x3d7c   :  { %v23359_v59 = vsel %vm143_vm0, %v23208_v29, 0.0  ;;  %v27345_v7 = vpop.f32.mrb[29].mxu0  ;;  %v27334_v61 = vpop.f32.mrb[43].mxu1  ;;  %v23361_v42 = vsel %vm143_vm0, %v23281_v24, 0.0  ;;  %v23685_v29 = vld [vmem:[%s28501_s27] sm:$0xff] }
0x3d7d   :  { %v23360_v62 = vadd.f32 %v23359_v59, %v23358_v17  ;;  %v23686_v17 = vld [vmem:[%s28501_s27 + $0x8] sm:$0xff]  ;;  %v23687_v59 = vld [vmem:[%s28501_s27 + $0x10] sm:$0xff]  ;;  %v23688_v61 = vld [vmem:[%s28501_s27 + $0x18] sm:$0xff]  ;;  %s23805_s27 = sshll.u32 %s28330_s12, 4  ;;  %s23806_s27 = int_to_ptr.vmem [resolvable:$true] %s23805_s27 }
0x3d7e   :  { %v27934_v7 = vpack.c.bf16 %v23686_v17, %v23685_v29  ;;  %s28270_s6 = scalar_lea.vmem %s23806_s27, 256  ;;  %p28275_p1 = scmp.lt.s32.totalorder %s23806_s27, %s23806_s27 }
0x3d7f   :  { %v23362_v60 = vadd.f32 %v23361_v42, %v23360_v62  ;;  %v27940_v62 = vpack.c.bf16 %v23688_v61, %v23687_v59  ;;  %p28271_p0 = scmp.ne.s32.totalorder %s23806_s27, %s28270_s6  ;;  %p28276_p2 = scmp.lt.s32.totalorder %s28270_s6, %s28270_s6 }
0x3d80   :  { %27936 = vmatprep.subr.msk.bf16.mxu1 %vm28973_vm4, %v27934_v7 }
0x3d81   :  { %p28277_p3 = por %p28276_p2, %p28275_p1 }
0x3d83   :  { %p28278_p4 = pnand %p28277_p3, %p28271_p0 }
0x3d8b   :  { %v23354_v44 = vpop.f32.mrb[44].mxu1 }
0x3d8c   :  { %v23363_v56 = vsel %vm143_vm0, %v23354_v44, 0.0  ;;  %v27356_v1 = vpop.f32.mrb[45].mxu1 }
0x3d8d   :  { %v23364_v3 = vadd.f32 %v23363_v56, %v23362_v60 }
0x3d8f   :  { %v31468_v4 = vadd.f32 %v23364_v3, %v31164_v37 }
0x3d91   :  { %v23374_v22 = vsel %vm143_vm0, %v31468_v4, 0.0 }
0x3d92   :  { %23375 = vadd.xlane.f32.xlu1 %v23374_v22 }
0x3e1f   :  { %v23376_v37 = vpop.xlane.xlu1 %23375 }
0x3e20   :  { %v23378_v0 = vmul.f32 0.03125, %v23376_v37  ;;  %v27952_v37 = vpack.c.bf16 %v23692_v33, %v23691_v16 }
0x3e22   :  { %v23380_v52 = vsub.f32 %v31468_v4, %v23378_v0 }
0x3e24   :  { %v23382_v43 = vmul.f32 %v23380_v52, %v23380_v52 }
0x3e26   :  { %v23386_v9 = vsel %vm143_vm0, %v23382_v43, 0.0 }
0x3e27   :  { %23387 = vadd.xlane.f32.xlu1 %v23386_v9 }
0x3eb4   :  { %v23388_v25 = vpop.xlane.xlu1 %23387 }
0x3eb5   :  { %v23390_v18 = vmul.f32 0.03125, %v23388_v25 }
0x3eb7   :  { %v23392_v20 = vadd.f32 1e-05, %v23390_v18  ;;  %v24734_v18 = vld [vmem:[%s28496_s30] ss:$0 sm:$0xff] }
0x3eb9   :  { %28255 = vrsqrt.f32 %v23392_v20 }
0x3ec3   :  { %v28256_v2 = vpop.eup %28255 }
0x3ec4   :  { %v23396_v47 = vmul.f32 %v28256_v2, %v23380_v52 }
0x3ec6   :  { %v23404_v58 = vmul.f32 %v31440_v13, %v23396_v47 }
0x3ec8   :  { %v23412_v31 = vadd.f32 %v31447_v50, %v23404_v58 }
0x3eca   :  { %27374 = vmatmul.mubr.msk.f32.vlgmr.msra.gmra.mrb[30].mxu0 %vm143_vm0, %v23412_v31 }
0x3f9d   :  { %v27375_v63 = vpop.f32.mrb[30].mxu0 }
0x3f9e   :  { %v24722_v51 = vmul.f32 -1.442695, %v27375_v63  ;;  %v23518_v57 = vpop.f32.mrb[31].mxu0 }
0x3f9f   :  { %v24721_v46 = vmul.f32 -1.442695, %v23518_v57 }
0x3fa0   :  { %28257 = vpow2.f32 %v24722_v51 }
0x3fa1   :  { %28259 = vpow2.f32 %v24721_v46 }
0x3faa   :  { %v28258_v48 = vpop.eup %28257 }
0x3fab   :  { %v28260_v40 = vpop.eup %28259  ;;  %v23534_v13 = vadd.f32 1.0, %v28258_v48 }
0x3fac   :  { %v23533_v10 = vadd.f32 1.0, %v28260_v40 }
0x3fad   :  { %28261 = vrcp.f32 %v23534_v13 }
0x3fae   :  { %28263 = vrcp.f32 %v23533_v10 }
0x3fb7   :  { %v28262_v50 = vpop.eup %28261 }
0x3fb8   :  { %v28264_v54 = vpop.eup %28263  ;;  %v23540_v36 = vmul.f32 %v28262_v50, %v27375_v63 }
0x3fb9   :  { %v23539_v39 = vmul.f32 %v28264_v54, %v23518_v57 }
0x3fbb   :  { %27384 = vmatprep.mubr.msk.f32.mxu1 %vm4041_vm5, %v23539_v39 }
0x3fbc   :  { %27385 = vmatmul.mubr.msk.f32.vlgmr.msra.gmra.mrb[46].mxu1 %vm4041_vm5, %v23540_v36 }
0x3fbd   :  { %27939 = vmatpush3.bf16.xpose.msk.msra.mxu1 %vm28973_vm4, %v27934_v7 }
0x3fbe   :  { %27942 = vmatprep.subr.msk.bf16.mxu1 %vm28973_vm4, %v27940_v62 }
0x3fc5   :  { %27945 = vmatpush3.bf16.xpose.msk.msra.mxu1 %vm28973_vm4, %v27940_v62 }
0x3fc6   :  { %27948 = vmatprep.subr.msk.bf16.mxu1 %vm28973_vm4, %v27946_v14 }
0x3fcd   :  { %27951 = vmatpush3.bf16.xpose.msk.msra.mxu1 %vm28973_vm4, %v27946_v14 }
0x3fce   :  { %27954 = vmatprep.subr.msk.bf16.mxu1 %vm28973_vm4, %v27952_v37 }
0x3fd5   :  { %27957 = vmatpush3.bf16.xpose.msk.msra.mxu1 %vm28973_vm4, %v27952_v37 }
0x408f   :  { %v27386_v6 = vpop.f32.mrb[46].mxu1 }
0x4090   :  { %v23640_v8 = vadd.f32 %v27386_v6, %v31468_v4  ;;  %v23630_v12 = vpop.f32.mrb[47].mxu1 }
0x4091   :  { %v23639_v5 = vadd.f32 %v23630_v12, %v31391_v15 }
0x4092   :  { %v23646_v49 = vsel %vm143_vm0, %v23640_v8, 0.0 }
0x4093   :  { %23647 = vadd.xlane.f32.xlu1 %v23646_v49  ;;  %v23643_v24 = vsel %vm143_vm0, %v23639_v5, 0.0 }
0x4094   :  { %23644 = vadd.xlane.f32.xlu0 %v23643_v24 }
0x4120   :  { %v23648_v15 = vpop.xlane.xlu1 %23647 }
0x4121   :  { %v23650_v42 = vmul.f32 0.03125, %v23648_v15  ;;  %v23645_v60 = vpop.xlane.xlu0 %23644 }
0x4122   :  { %v23649_v44 = vmul.f32 0.03125, %v23645_v60 }
0x4123   :  { %v23652_v56 = vsub.f32 %v23640_v8, %v23650_v42 }
0x4124   :  { %v23651_v1 = vsub.f32 %v23639_v5, %v23649_v44 }
0x4125   :  { %v23654_v3 = vmul.f32 %v23652_v56, %v23652_v56 }
0x4126   :  { %v23653_v4 = vmul.f32 %v23651_v1, %v23651_v1 }
0x4127   :  { %v23658_v22 = vsel %vm143_vm0, %v23654_v3, 0.0 }
0x4128   :  { %23659 = vadd.xlane.f32.xlu1 %v23658_v22  ;;  %v23655_v32 = vsel %vm143_vm0, %v23653_v4, 0.0 }
0x4129   :  { %23656 = vadd.xlane.f32.xlu0 %v23655_v32 }
0x41b5   :  { %v23660_v0 = vpop.xlane.xlu1 %23659 }
0x41b6   :  { %v23662_v52 = vmul.f32 0.03125, %v23660_v0  ;;  %v23657_v43 = vpop.xlane.xlu0 %23656 }
0x41b7   :  { %v23661_v9 = vmul.f32 0.03125, %v23657_v43 }
0x41b8   :  { %v23664_v11 = vadd.f32 1e-05, %v23662_v52 }
0x41b9   :  { %v23663_v41 = vadd.f32 1e-05, %v23661_v9 }
0x41ba   :  { %28265 = vrsqrt.f32 %v23664_v11 }
0x41bb   :  { %28267 = vrsqrt.f32 %v23663_v41 }
0x41c4   :  { %v28266_v21 = vpop.eup %28265 }
0x41c5   :  { %v28268_v28 = vpop.eup %28267  ;;  %v23668_v34 = vmul.f32 %v28266_v21, %v23652_v56 }
0x41c6   :  { %v23667_v25 = vmul.f32 %v28268_v28, %v23651_v1 }
0x41c7   :  { %v23676_v20 = vmul.f32 %v24733_v45, %v23668_v34 }
0x41c8   :  { %v23675_v2 = vmul.f32 %v24733_v45, %v23667_v25 }
0x41c9   :  { %v23684_v58 = vadd.f32 %v24734_v18, %v23676_v20 }
0x41ca   :  { %v23683_v47 = vadd.f32 %v24734_v18, %v23675_v2 }
0x41cc   :  { %27403 = vmatprep.mubr.msk.f32.mxu1 %vm143_vm0, %v23683_v47 }
0x41cd   :  { %27404 = vmatmul.mubr.msk.f32.vlgmr.msra.gmra.mrb[48].mxu1 %vm143_vm0, %v23684_v58 }
0x42a0   :  { %v27405_v53 = vpop.f32.mrb[48].mxu1 }
0x42a1   :  { %23799 = vst.msk [vmem:[#allocation2 + $0x8] sm:$0xff] %vm4041_vm5, %v27405_v53  ;;  %v23789_v31 = vpop.f32.mrb[49].mxu1 }
0x42a2   :  { %23798 = vst.msk [vmem:[#allocation2] sm:$0xff] %vm4041_vm5, %v23789_v31 }
0x42a3   :  { %28281 = shalt.err (!%p28278_p4)
}
0x42a4   :  { %s28282_s30 = scalar_lea.hbm %s28506_s20, 256 }
0x42a5   :  { %p28283_p5 = scmp.ne.s32.totalorder %s28506_s20, %s28282_s30  ;;  %p28286_p6 = scmp.lt.u32.totalorder %s28282_s30, %s28506_s20 }
0x42a7   :  { %p28288_p7 = pnand %p28286_p6, %p28283_p5 }
0x42a9   :  { %28291 = shalt.err (!%p28288_p7)
}
0x42aa   :  { %s28331_s4 = smov 128   ;;  %s28332_s15 = smov 8  }
0x42ab   :  { %23811 = dma.vmem_to_hbm [thread:$0]  %s23806_s27, 256, %s28506_s20, [#allocation3], %s28331_s4, %s28331_s4, %s28332_s15  }
0x42ac   :  { %28292 = dma.done.wait [#allocation3], 256  }
0x42ad   :  { %28293 = vsyncadd [#allocation3], 4294967040 }
0x42ae   :  { %23815 = vsyncpa [#allocation3], 1 }

</bundles_post_ra>
